<compile_context>
chip_gen: v6e
topology: v6e:2x2x1
jax: 0.10.0
libtpu: 0.0.40
codegen_flags: <defaults>
</compile_context>

<pallas_src>
import functools
import numpy as np
import jax
import jax.numpy as jnp
from jax.experimental import pallas as pl
from jax.experimental.pallas import tpu as pltpu

_OUT_LANES = 128      # lane-dense output slab width; wrapper slices back to (..., 1)
_MASK_NEG = -1e30     # additive mask sentinel (keep in f32; do not cast to fp8/int paths)


# ----------------------------- fused forward kernel ---------------------------
def _gatclf_fused_kernel(*refs, n_enc, node_counts, n_out, steps):
    x_ref, negb_ref, vec_ref = refs[0], refs[1], refs[2]
    out_ref = refs[-1]
    w_refs = refs[3:-1]

    wpos = [0]
    vpos = [0]

    def next_w():
        r = w_refs[wpos[0]]
        wpos[0] += 1
        return r

    def next_vec(width):
        i = vpos[0]
        vpos[0] += 1
        return vec_ref[i:i + 1, :width]                 # (1, width) f32, static slice

    negb = negb_ref[...]                                # (M, M) additive mask bias (0 / -1e30)

    def dense(h, act):
        w_ref = next_w()
        b = next_vec(w_ref.shape[1])
        y = jnp.dot(h.astype(jnp.bfloat16), w_ref[...],
                    preferred_element_type=jnp.float32) + b
        return jnp.maximum(y, 0.0) if act else y

    def mlp(h, n_layers, act_last):
        for i in range(n_layers):
            h = dense(h, act=(i < n_layers - 1) or act_last)
        return h

    def gat_bn_relu(h):
        # GATConv (heads=1, concat=True, negative_slope=0.2, add_self_loops) with the
        # eval-mode BatchNorm folded into (scale, shift) and the trailing ReLU fused.
        w_ref = next_w()
        fo = w_ref.shape[1]
        a_src_v = next_vec(fo)
        a_dst_v = next_vec(fo)
        scale = next_vec(fo)
        shift = next_vec(fo)
        xp = jnp.dot(h.astype(jnp.bfloat16), w_ref[...],
                     preferred_element_type=jnp.float32)                 # (M, Fo) f32
        # destination score: VPU multiply + lane reduction (no 1-wide MXU matmul)
        a_dst = jnp.sum(xp * a_dst_v, axis=-1, keepdims=True)            # (M, 1)
        # source score as one (1, M) row; single small MXU contraction (accepted per review)
        a_src = jax.lax.dot_general(a_src_v, xp, (((1,), (1,)), ((), ())),
                                    preferred_element_type=jnp.float32)  # (1, M)
        logits = a_dst + a_src                                           # (M, M)
        logits = jnp.where(logits > 0, logits, 0.2 * logits) + negb      # leaky + additive mask
        m = jnp.max(logits, axis=-1, keepdims=True)
        e = jnp.exp(logits - m)                                          # masked entries underflow to 0
        attn = e * pl.reciprocal(jnp.sum(e, axis=-1, keepdims=True), approx=True)
        y = jnp.dot(attn.astype(jnp.bfloat16), xp.astype(jnp.bfloat16),
                    preferred_element_type=jnp.float32)
        # TODO(synk): source does `x = self.GAT_batchnorm[step]` (module assigned, never
        # called -- would crash); we apply the batchnorm (folded affine) as intended.
        return jnp.maximum(y * scale + shift, 0.0)                       # BN + relu

    h = x_ref[...]
    h = mlp(h, n_enc, act_last=False)                    # encoder: relu on all but last
    for s in range(steps - 1):
        h = gat_bn_relu(h)
        h = mlp(h, node_counts[s], act_last=True)        # node update: relu on EVERY layer
    h = gat_bn_relu(h)
    h = mlp(h, n_out - 1, act_last=True)                 # output MLP: relu on all but last
    wrow = next_vec(h.shape[1])
    b_last = next_vec(1)
    y = jnp.sum(h * wrow, axis=-1, keepdims=True) + b_last               # F->1 via VPU reduce
    # numerically stable sigmoid: exp(-|y|) on the EUP + approx reciprocal
    z = jnp.exp(-jnp.abs(y))
    inv = pl.reciprocal(1.0 + z, approx=True)
    sig = jnp.where(y >= 0.0, inv, z * inv)
    out_ref[...] = jnp.broadcast_to(sig, out_ref.shape)                  # lane-dense store


# ----------------------------- parameter handling ------------------------------
def _init_linear(key, fin, fout):
    k1, k2 = jax.random.split(key)
    bound = 1.0 / np.sqrt(fin)
    return {"w": jax.random.uniform(k1, (fin, fout), jnp.float32, -bound, bound),
            "b": jax.random.uniform(k2, (1, fout), jnp.float32, -bound, bound)}


def _init_mlp(key, fin, fout, hidden):
    dims = [fin] + list(hidden) + [fout]
    keys = jax.random.split(key, len(dims) - 1)
    return [_init_linear(k, dims[i], dims[i + 1]) for i, k in enumerate(keys)]


def _init_gat(key, fin, fout):
    k1, k2, k3 = jax.random.split(key, 3)
    bound = 1.0 / np.sqrt(fin)
    return {"w": jax.random.uniform(k1, (fin, fout), jnp.float32, -bound, bound),
            "att_src": jax.random.uniform(k2, (1, fout), jnp.float32, -bound, bound),
            "att_dst": jax.random.uniform(k3, (1, fout), jnp.float32, -bound, bound),
            "bias": jnp.zeros((1, fout), jnp.float32)}


def _init_bn(f):
    return {"gamma": jnp.ones((1, f), jnp.float32),
            "beta": jnp.zeros((1, f), jnp.float32),
            "mean": jnp.zeros((1, f), jnp.float32),
            "var": jnp.ones((1, f), jnp.float32)}


def init_gatclf_params(key, n_node_feature, n_encoding_feature,
                       n_mid_features=(64, 128, 64),
                       encoder_hidden_layers=(128, 256, 128),
                       node_hidden_layers=((128, 256, 128),) * 3,
                       output_hidden_layers=(128, 256, 128),
                       message_passing_steps=3):
    keys = jax.random.split(key, 16)
    params = {"encoder": _init_mlp(keys[0], n_node_feature, n_encoding_feature,
                                   encoder_hidden_layers),
              "gat": [], "bn": [], "node_update": []}
    for step in range(message_passing_steps):
        fin = n_encoding_feature if step == 0 else n_mid_features[step - 1]
        fout = n_mid_features[step]
        params["gat"].append(_init_gat(keys[1 + step], fin, fout))
        params["bn"].append(_init_bn(fout))
        if step > 0:
            f = n_mid_features[step - 1]
            params["node_update"].append(
                _init_mlp(keys[5 + step], f, f, node_hidden_layers[step - 1]))
    params["output"] = _init_mlp(keys[10], n_mid_features[-1], 1, output_hidden_layers)
    return params


def _flatten_params(params, steps, eps=1e-5):
    """Weights as bf16 matrices (kernel consumption order) + all tiny (1,F) vectors
    packed into one f32 slab. Eval-mode BatchNorm (+ GAT bias) folded into (scale, shift);
    the final F->1 weight becomes a (1,F) row for the in-kernel VPU reduce."""
    weights, vecs = [], []

    def add_dense(layer):
        weights.append(layer["w"].astype(jnp.bfloat16))
        vecs.append(layer["b"].astype(jnp.float32))

    for layer in params["encoder"]:
        add_dense(layer)
    node_counts = []
    for s in range(steps):
        g, bn = params["gat"][s], params["bn"][s]
        scale = bn["gamma"] * jax.lax.rsqrt(bn["var"] + eps)
        shift = (g["bias"] - bn["mean"]) * scale + bn["beta"]
        weights.append(g["w"].astype(jnp.bfloat16))
        vecs += [g["att_src"], g["att_dst"], scale, shift]
        if s < steps - 1:
            layers = params["node_update"][s]
            node_counts.append(len(layers))
            for layer in layers:
                add_dense(layer)
    out_layers = params["output"]
    for layer in out_layers[:-1]:
        add_dense(layer)
    last = out_layers[-1]
    vecs += [last["w"].reshape(1, -1), last["b"].reshape(1, 1)]

    vec_w = max(int(v.shape[1]) for v in vecs)
    vec_w = ((vec_w + 127) // 128) * 128
    rows = [jnp.pad(v.astype(jnp.float32), ((0, 0), (0, vec_w - v.shape[1]))) for v in vecs]
    slab = jnp.concatenate(rows, axis=0)
    pad_r = (-slab.shape[0]) % 8
    if pad_r:
        slab = jnp.pad(slab, ((0, pad_r), (0, 0)))

    meta = dict(n_enc=len(params["encoder"]), node_counts=tuple(node_counts),
                n_out=len(out_layers), steps=steps)
    return weights, slab, meta


# ------------------------------- fused forward ---------------------------------
def gatclf_forward(params, x, adj, message_passing_steps=3, graphs_per_block=8):
    """x: (B, N, Fin) node features; adj: (B, N, N) with adj[b, dst, src] != 0 for edge src->dst."""
    # TODO(synk): the original forward also dumps `hidden_state` to a pickle file every
    # 3431 calls -- host-side file I/O with no Pallas equivalent; omitted.
    B, N, fin = x.shape
    G = graphs_per_block
    assert B % G == 0, "pad the batch to a multiple of graphs_per_block"
    M = G * N
    assert M % 8 == 0
    nb = B // G

    weights, vec_slab, meta = _flatten_params(params, message_passing_steps)

    # GATConv(add_self_loops=True): OR the identity into the adjacency so no softmax row is
    # empty, then build an additive mask bias. Graphs inside one grid block are stacked
    # block-diagonally so matmuls see M = G*N rows while cross-graph attention stays exactly 0.
    adj_sl = jnp.maximum(adj.astype(jnp.int32), jnp.eye(N, dtype=jnp.int32))
    neg = jnp.where(adj_sl != 0, 0.0, _MASK_NEG).astype(jnp.float32)          # (B, N, N)
    neg = neg.reshape(nb, G, N, N)
    negb = jnp.full((nb, G, N, G, N), _MASK_NEG, jnp.float32)
    negb = negb.at[:, jnp.arange(G), :, jnp.arange(G), :].set(jnp.moveaxis(neg, 1, 0))
    negb = negb.reshape(nb * M, M)

    x2 = x.reshape(nb * M, fin).astype(jnp.float32)

    # advisory cost estimate so XLA schedules neighbours sensibly
    rows = nb * M
    total_w = sum(int(np.prod(w.shape)) for w in weights)
    gat_fo = [int(params["gat"][s]["w"].shape[1]) for s in range(message_passing_steps)]
    flops = (2 * rows * total_w + sum(2 * rows * M * fo for fo in gat_fo)
             + 8 * rows * M * message_passing_steps)
    transcend = rows * M * message_passing_steps + 2 * rows
    bytes_acc = (sum(int(np.prod(a.shape)) * a.dtype.itemsize
                     for a in [x2, negb, vec_slab] + weights)
                 + rows * _OUT_LANES * 4)

    def const2d(shape):
        return pl.BlockSpec(tuple(shape), lambda i: (0, 0))   # resident across grid steps

    out = pl.pallas_call(
        functools.partial(_gatclf_fused_kernel, **meta),
        grid=(nb,),
        out_shape=jax.ShapeDtypeStruct((nb * M, _OUT_LANES), jnp.float32),
        in_specs=[pl.BlockSpec((M, fin), lambda i: (i, 0)),        # per-block node features
                  pl.BlockSpec((M, M), lambda i: (i, 0)),          # per-block mask bias
                  const2d(vec_slab.shape)]                         # packed (1,F) params
                 + [const2d(w.shape) for w in weights],            # bf16 weight matrices
        out_specs=pl.BlockSpec((M, _OUT_LANES), lambda i: (i, 0)),
        compiler_params=pltpu.CompilerParams(dimension_semantics=("parallel",)),
        cost_estimate=pl.CostEstimate(flops=flops, transcendentals=transcend,
                                      bytes_accessed=bytes_acc),
    )(x2, negb, vec_slab, *weights)
    return out[:, :1].reshape(B, N, 1)


# ------------------------- pure-JAX reference (for checking) -------------------
def _ref_forward(params, x, adj, steps=3, eps=1e-5):
    hp = jax.lax.Precision.HIGHEST
    N = x.shape[1]

    def mlp(h, layers, act_last):
        for i, layer in enumerate(layers):
            h = jnp.dot(h, layer["w"], precision=hp) + layer["b"]
            if i < len(layers) - 1 or act_last:
                h = jnp.maximum(h, 0.0)
        return h

    def gat(h, adjg, g, bn):
        xp = jnp.dot(h, g["w"], precision=hp)
        a_src = (xp * g["att_src"]).sum(-1)[None, :]
        a_dst = (xp * g["att_dst"]).sum(-1, keepdims=True)
        logits = a_dst + a_src
        logits = jnp.where(logits > 0, logits, 0.2 * logits)
        mask = (adjg + jnp.eye(N, dtype=adjg.dtype)) != 0          # add_self_loops=True
        logits = jnp.where(mask, logits, -jnp.inf)
        attn = jax.nn.softmax(logits, axis=-1)
        attn = jnp.where(mask, attn, 0.0)
        y = jnp.dot(attn, xp, precision=hp) + g["bias"]
        y = (y - bn["mean"]) * bn["gamma"] * jax.lax.rsqrt(bn["var"] + eps) + bn["beta"]
        return jnp.maximum(y, 0.0)

    def single(xg, adjg):
        h = mlp(xg, params["encoder"], act_last=False)
        for s in range(steps - 1):
            h = gat(h, adjg, params["gat"][s], params["bn"][s])
            h = mlp(h, params["node_update"][s], act_last=True)
        h = gat(h, adjg, params["gat"][-1], params["bn"][-1])
        h = mlp(h, params["output"][:-1], act_last=True)
        last = params["output"][-1]
        y = jnp.dot(h, last["w"], precision=hp) + last["b"]
        return jax.nn.sigmoid(y)

    return jax.vmap(single)(x, adj)


# ------------------------------------ main --------------------------------------
if __name__ == "__main__":
    key = jax.random.PRNGKey(0)
    B = 16                      # graphs (2 grid blocks of 8 graphs -> 128 rows per matmul)
    N = 16                      # nodes per graph
    E = 40                      # directed edges per graph
    n_node_feature = 16
    n_encoding_feature = 32

    k_x, k_src, k_dst = jax.random.split(key, 3)
    x = jax.random.normal(k_x, (B, N, n_node_feature), jnp.float32)
    src = jax.random.randint(k_src, (B, E), 0, N)
    dst = jax.random.randint(k_dst, (B, E), 0, N)
    b_idx = jnp.repeat(jnp.arange(B), E)
    adj = jnp.zeros((B, N, N), jnp.int32).at[b_idx, dst.reshape(-1), src.reshape(-1)].set(1)
    # self-loops (GATConv add_self_loops=True) are added inside gatclf_forward / _ref_forward.

    params = init_gatclf_params(jax.random.PRNGKey(811), n_node_feature, n_encoding_feature)

    fwd = jax.jit(gatclf_forward)
    out = jax.block_until_ready(fwd(params, x, adj))
    ref = _ref_forward(params, x, adj)

    assert out.shape == (B, N, 1)
    assert bool(jnp.all(jnp.isfinite(out)))
    # bf16 MXU operands (f32 accumulate) + approx EUP reciprocals vs. an all-f32 reference
    assert bool(jnp.max(jnp.abs(out - ref)) < 3e-2)
    print("KERNEL_OK")
</pallas_src>

<mosaic_0001>
module attributes {stable_mosaic.version = 11 : i64} {
  func.func @_gatclf_fused_kernel(%arg0: i32, %arg1: memref<128x16xf32, #tpu.memory_space<vmem>>, %arg2: memref<128x128xf32, #tpu.memory_space<vmem>>, %arg3: memref<32x256xf32, #tpu.memory_space<vmem>>, %arg4: memref<16x128xbf16, #tpu.memory_space<vmem>>, %arg5: memref<128x256xbf16, #tpu.memory_space<vmem>>, %arg6: memref<256x128xbf16, #tpu.memory_space<vmem>>, %arg7: memref<128x32xbf16, #tpu.memory_space<vmem>>, %arg8: memref<32x64xbf16, #tpu.memory_space<vmem>>, %arg9: memref<64x128xbf16, #tpu.memory_space<vmem>>, %arg10: memref<128x256xbf16, #tpu.memory_space<vmem>>, %arg11: memref<256x128xbf16, #tpu.memory_space<vmem>>, %arg12: memref<128x64xbf16, #tpu.memory_space<vmem>>, %arg13: memref<64x128xbf16, #tpu.memory_space<vmem>>, %arg14: memref<128x128xbf16, #tpu.memory_space<vmem>>, %arg15: memref<128x256xbf16, #tpu.memory_space<vmem>>, %arg16: memref<256x128xbf16, #tpu.memory_space<vmem>>, %arg17: memref<128x128xbf16, #tpu.memory_space<vmem>>, %arg18: memref<128x64xbf16, #tpu.memory_space<vmem>>, %arg19: memref<64x128xbf16, #tpu.memory_space<vmem>>, %arg20: memref<128x256xbf16, #tpu.memory_space<vmem>>, %arg21: memref<256x128xbf16, #tpu.memory_space<vmem>>, %arg22: memref<128x128xf32, #tpu.memory_space<vmem>>) attributes {dimension_semantics = [#tpu.dimension_semantics<parallel>], iteration_bounds = array<i64: 2>, scalar_prefetch = 0 : i64, scratch_operands = 0 : i64, tpu.core_type = #tpu.core_type<tc>, window_params = [{transform_indices = @transform_0, window_bounds = array<i64: 128, 16>}, {transform_indices = @transform_1, window_bounds = array<i64: 128, 128>}, {pipeline_mode = #tpu.pipeline_mode<synchronous>, transform_indices = @transform_2, window_bounds = array<i64: 32, 256>}, {pipeline_mode = #tpu.pipeline_mode<synchronous>, transform_indices = @transform_3, window_bounds = array<i64: 16, 128>}, {pipeline_mode = #tpu.pipeline_mode<synchronous>, transform_indices = @transform_4, window_bounds = array<i64: 128, 256>}, {pipeline_mode = #tpu.pipeline_mode<synchronous>, transform_indices = @transform_5, window_bounds = array<i64: 256, 128>}, {pipeline_mode = #tpu.pipeline_mode<synchronous>, transform_indices = @transform_6, window_bounds = array<i64: 128, 32>}, {pipeline_mode = #tpu.pipeline_mode<synchronous>, transform_indices = @transform_7, window_bounds = array<i64: 32, 64>}, {pipeline_mode = #tpu.pipeline_mode<synchronous>, transform_indices = @transform_8, window_bounds = array<i64: 64, 128>}, {pipeline_mode = #tpu.pipeline_mode<synchronous>, transform_indices = @transform_9, window_bounds = array<i64: 128, 256>}, {pipeline_mode = #tpu.pipeline_mode<synchronous>, transform_indices = @transform_10, window_bounds = array<i64: 256, 128>}, {pipeline_mode = #tpu.pipeline_mode<synchronous>, transform_indices = @transform_11, window_bounds = array<i64: 128, 64>}, {pipeline_mode = #tpu.pipeline_mode<synchronous>, transform_indices = @transform_12, window_bounds = array<i64: 64, 128>}, {pipeline_mode = #tpu.pipeline_mode<synchronous>, transform_indices = @transform_13, window_bounds = array<i64: 128, 128>}, {pipeline_mode = #tpu.pipeline_mode<synchronous>, transform_indices = @transform_14, window_bounds = array<i64: 128, 256>}, {pipeline_mode = #tpu.pipeline_mode<synchronous>, transform_indices = @transform_15, window_bounds = array<i64: 256, 128>}, {pipeline_mode = #tpu.pipeline_mode<synchronous>, transform_indices = @transform_16, window_bounds = array<i64: 128, 128>}, {pipeline_mode = #tpu.pipeline_mode<synchronous>, transform_indices = @transform_17, window_bounds = array<i64: 128, 64>}, {pipeline_mode = #tpu.pipeline_mode<synchronous>, transform_indices = @transform_18, window_bounds = array<i64: 64, 128>}, {pipeline_mode = #tpu.pipeline_mode<synchronous>, transform_indices = @transform_19, window_bounds = array<i64: 128, 256>}, {pipeline_mode = #tpu.pipeline_mode<synchronous>, transform_indices = @transform_20, window_bounds = array<i64: 256, 128>}, {transform_indices = @transform_21, window_bounds = array<i64: 128, 128>}]} {
    %c0 = arith.constant 0 : index
    %c0_0 = arith.constant 0 : index
    %0 = vector.load %arg2[%c0, %c0_0] : memref<128x128xf32, #tpu.memory_space<vmem>>, vector<128x128xf32>
    %c0_1 = arith.constant 0 : index
    %c0_2 = arith.constant 0 : index
    %1 = vector.load %arg1[%c0_1, %c0_2] : memref<128x16xf32, #tpu.memory_space<vmem>>, vector<128x16xf32>
    %c0_3 = arith.constant 0 : index
    %c0_4 = arith.constant 0 : index
    %2 = vector.load %arg3[%c0_3, %c0_4] : memref<32x256xf32, #tpu.memory_space<vmem>>, vector<1x128xf32>
    %3 = arith.truncf %1 : vector<128x16xf32> to vector<128x16xbf16>
    %c0_5 = arith.constant 0 : index
    %c0_6 = arith.constant 0 : index
    %4 = vector.load %arg4[%c0_5, %c0_6] : memref<16x128xbf16, #tpu.memory_space<vmem>>, vector<16x128xbf16>
    %cst = arith.constant dense<0.000000e+00> : vector<128x128xf32>
    %5 = tpu.matmul %3, %4, %cst {dimension_numbers = #tpu.dot_dimension_numbers<[1], [0], [0], [1], [0, 0, 1, 1], [], []>} : vector<128x16xbf16>, vector<16x128xbf16>, vector<128x128xf32> -> vector<128x128xf32>
    %6 = vector.broadcast %2 : vector<1x128xf32> to vector<128x128xf32>
    %7 = arith.addf %5, %6 : vector<128x128xf32>
    %cst_7 = arith.constant 0.000000e+00 : f32
    %8 = vector.broadcast %cst_7 : f32 to vector<128x128xf32>
    %9 = arith.maximumf %7, %8 : vector<128x128xf32>
    %c1 = arith.constant 1 : index
    %c0_8 = arith.constant 0 : index
    %10 = vector.load %arg3[%c1, %c0_8] : memref<32x256xf32, #tpu.memory_space<vmem>>, vector<1x256xf32>
    %11 = arith.truncf %9 : vector<128x128xf32> to vector<128x128xbf16>
    %c0_9 = arith.constant 0 : index
    %c0_10 = arith.constant 0 : index
    %12 = vector.load %arg5[%c0_9, %c0_10] : memref<128x256xbf16, #tpu.memory_space<vmem>>, vector<128x256xbf16>
    %cst_11 = arith.constant dense<0.000000e+00> : vector<128x256xf32>
    %13 = tpu.matmul %11, %12, %cst_11 {dimension_numbers = #tpu.dot_dimension_numbers<[1], [0], [0], [1], [0, 0, 1, 1], [], []>} : vector<128x128xbf16>, vector<128x256xbf16>, vector<128x256xf32> -> vector<128x256xf32>
    %14 = vector.broadcast %10 : vector<1x256xf32> to vector<128x256xf32>
    %15 = arith.addf %13, %14 : vector<128x256xf32>
    %cst_12 = arith.constant 0.000000e+00 : f32
    %16 = vector.broadcast %cst_12 : f32 to vector<128x256xf32>
    %17 = arith.maximumf %15, %16 : vector<128x256xf32>
    %c2 = arith.constant 2 : index
    %c0_13 = arith.constant 0 : index
    %18 = vector.load %arg3[%c2, %c0_13] : memref<32x256xf32, #tpu.memory_space<vmem>>, vector<1x128xf32>
    %19 = arith.truncf %17 : vector<128x256xf32> to vector<128x256xbf16>
    %c0_14 = arith.constant 0 : index
    %c0_15 = arith.constant 0 : index
    %20 = vector.load %arg6[%c0_14, %c0_15] : memref<256x128xbf16, #tpu.memory_space<vmem>>, vector<256x128xbf16>
    %cst_16 = arith.constant dense<0.000000e+00> : vector<128x128xf32>
    %21 = tpu.matmul %19, %20, %cst_16 {dimension_numbers = #tpu.dot_dimension_numbers<[1], [0], [0], [1], [0, 0, 1, 1], [], []>} : vector<128x256xbf16>, vector<256x128xbf16>, vector<128x128xf32> -> vector<128x128xf32>
    %22 = vector.broadcast %18 : vector<1x128xf32> to vector<128x128xf32>
    %23 = arith.addf %21, %22 : vector<128x128xf32>
    %cst_17 = arith.constant 0.000000e+00 : f32
    %24 = vector.broadcast %cst_17 : f32 to vector<128x128xf32>
    %25 = arith.maximumf %23, %24 : vector<128x128xf32>
    %c3 = arith.constant 3 : index
    %c0_18 = arith.constant 0 : index
    %26 = vector.load %arg3[%c3, %c0_18] : memref<32x256xf32, #tpu.memory_space<vmem>>, vector<1x32xf32>
    %27 = arith.truncf %25 : vector<128x128xf32> to vector<128x128xbf16>
    %c0_19 = arith.constant 0 : index
    %c0_20 = arith.constant 0 : index
    %28 = vector.load %arg7[%c0_19, %c0_20] : memref<128x32xbf16, #tpu.memory_space<vmem>>, vector<128x32xbf16>
    %cst_21 = arith.constant dense<0.000000e+00> : vector<128x32xf32>
    %29 = tpu.matmul %27, %28, %cst_21 {dimension_numbers = #tpu.dot_dimension_numbers<[1], [0], [0], [1], [0, 0, 1, 1], [], []>} : vector<128x128xbf16>, vector<128x32xbf16>, vector<128x32xf32> -> vector<128x32xf32>
    %30 = vector.broadcast %26 : vector<1x32xf32> to vector<128x32xf32>
    %31 = arith.addf %29, %30 : vector<128x32xf32>
    %c4 = arith.constant 4 : index
    %c0_22 = arith.constant 0 : index
    %32 = vector.load %arg3[%c4, %c0_22] : memref<32x256xf32, #tpu.memory_space<vmem>>, vector<1x64xf32>
    %c5 = arith.constant 5 : index
    %c0_23 = arith.constant 0 : index
    %33 = vector.load %arg3[%c5, %c0_23] : memref<32x256xf32, #tpu.memory_space<vmem>>, vector<1x64xf32>
    %c6 = arith.constant 6 : index
    %c0_24 = arith.constant 0 : index
    %34 = vector.load %arg3[%c6, %c0_24] : memref<32x256xf32, #tpu.memory_space<vmem>>, vector<1x64xf32>
    %c7 = arith.constant 7 : index
    %c0_25 = arith.constant 0 : index
    %35 = vector.load %arg3[%c7, %c0_25] : memref<32x256xf32, #tpu.memory_space<vmem>>, vector<1x64xf32>
    %36 = arith.truncf %31 : vector<128x32xf32> to vector<128x32xbf16>
    %c0_26 = arith.constant 0 : index
    %c0_27 = arith.constant 0 : index
    %37 = vector.load %arg8[%c0_26, %c0_27] : memref<32x64xbf16, #tpu.memory_space<vmem>>, vector<32x64xbf16>
    %cst_28 = arith.constant dense<0.000000e+00> : vector<128x64xf32>
    %38 = tpu.matmul %36, %37, %cst_28 {dimension_numbers = #tpu.dot_dimension_numbers<[1], [0], [0], [1], [0, 0, 1, 1], [], []>} : vector<128x32xbf16>, vector<32x64xbf16>, vector<128x64xf32> -> vector<128x64xf32>
    %39 = vector.broadcast %33 : vector<1x64xf32> to vector<128x64xf32>
    %40 = arith.mulf %38, %39 : vector<128x64xf32>
    %cst_29 = arith.constant dense<0.000000e+00> : vector<128xf32>
    %41 = vector.multi_reduction <add>, %40, %cst_29 [1] : vector<128x64xf32> to vector<128xf32>
    %42 = vector.shape_cast %41 : vector<128xf32> to vector<128x1xf32>
    %cst_30 = arith.constant dense<0.000000e+00> : vector<1x128xf32>
    %43 = tpu.matmul %32, %38, %cst_30 {dimension_numbers = #tpu.dot_dimension_numbers<[1], [1], [0], [0], [0, 0, 1, 0], [], []>} : vector<1x64xf32>, vector<128x64xf32>, vector<1x128xf32> -> vector<1x128xf32>
    %44 = vector.broadcast %42 : vector<128x1xf32> to vector<128x128xf32>
    %45 = vector.broadcast %43 : vector<1x128xf32> to vector<128x128xf32>
    %46 = arith.addf %44, %45 : vector<128x128xf32>
    %cst_31 = arith.constant 0.000000e+00 : f32
    %47 = vector.broadcast %cst_31 : f32 to vector<128x128xf32>
    %48 = arith.cmpf ogt, %46, %47 : vector<128x128xf32>
    %cst_32 = arith.constant 2.000000e-01 : f32
    %49 = vector.broadcast %cst_32 : f32 to vector<128x128xf32>
    %50 = arith.mulf %49, %46 : vector<128x128xf32>
    %51 = arith.select %48, %46, %50 : vector<128x128xi1>, vector<128x128xf32>
    %52 = arith.addf %51, %0 : vector<128x128xf32>
    %cst_33 = arith.constant dense<0xFF800000> : vector<128xf32>
    %53 = vector.multi_reduction <maximumf>, %52, %cst_33 [1] : vector<128x128xf32> to vector<128xf32>
    %54 = vector.shape_cast %53 : vector<128xf32> to vector<128x1xf32>
    %55 = vector.broadcast %54 : vector<128x1xf32> to vector<128x128xf32>
    %56 = arith.subf %52, %55 : vector<128x128xf32>
    %57 = math.exp %56 : vector<128x128xf32>
    %cst_34 = arith.constant dense<0.000000e+00> : vector<128xf32>
    %58 = vector.multi_reduction <add>, %57, %cst_34 [1] : vector<128x128xf32> to vector<128xf32>
    %59 = vector.shape_cast %58 : vector<128xf32> to vector<128x1xf32>
    %60 = tpu.reciprocal %59 {approx = true} : vector<128x1xf32> -> vector<128x1xf32>
    %61 = vector.broadcast %60 : vector<128x1xf32> to vector<128x128xf32>
    %62 = arith.mulf %57, %61 : vector<128x128xf32>
    %63 = arith.truncf %62 : vector<128x128xf32> to vector<128x128xbf16>
    %64 = arith.truncf %38 : vector<128x64xf32> to vector<128x64xbf16>
    %cst_35 = arith.constant dense<0.000000e+00> : vector<128x64xf32>
    %65 = tpu.matmul %63, %64, %cst_35 {dimension_numbers = #tpu.dot_dimension_numbers<[1], [0], [0], [1], [0, 0, 1, 1], [], []>} : vector<128x128xbf16>, vector<128x64xbf16>, vector<128x64xf32> -> vector<128x64xf32>
    %66 = vector.broadcast %34 : vector<1x64xf32> to vector<128x64xf32>
    %67 = arith.mulf %65, %66 : vector<128x64xf32>
    %68 = vector.broadcast %35 : vector<1x64xf32> to vector<128x64xf32>
    %69 = arith.addf %67, %68 : vector<128x64xf32>
    %cst_36 = arith.constant 0.000000e+00 : f32
    %70 = vector.broadcast %cst_36 : f32 to vector<128x64xf32>
    %71 = arith.maximumf %69, %70 : vector<128x64xf32>
    %c8 = arith.constant 8 : index
    %c0_37 = arith.constant 0 : index
    %72 = vector.load %arg3[%c8, %c0_37] : memref<32x256xf32, #tpu.memory_space<vmem>>, vector<1x128xf32>
    %73 = arith.truncf %71 : vector<128x64xf32> to vector<128x64xbf16>
    %c0_38 = arith.constant 0 : index
    %c0_39 = arith.constant 0 : index
    %74 = vector.load %arg9[%c0_38, %c0_39] : memref<64x128xbf16, #tpu.memory_space<vmem>>, vector<64x128xbf16>
    %cst_40 = arith.constant dense<0.000000e+00> : vector<128x128xf32>
    %75 = tpu.matmul %73, %74, %cst_40 {dimension_numbers = #tpu.dot_dimension_numbers<[1], [0], [0], [1], [0, 0, 1, 1], [], []>} : vector<128x64xbf16>, vector<64x128xbf16>, vector<128x128xf32> -> vector<128x128xf32>
    %76 = vector.broadcast %72 : vector<1x128xf32> to vector<128x128xf32>
    %77 = arith.addf %75, %76 : vector<128x128xf32>
    %cst_41 = arith.constant 0.000000e+00 : f32
    %78 = vector.broadcast %cst_41 : f32 to vector<128x128xf32>
    %79 = arith.maximumf %77, %78 : vector<128x128xf32>
    %c9 = arith.constant 9 : index
    %c0_42 = arith.constant 0 : index
    %80 = vector.load %arg3[%c9, %c0_42] : memref<32x256xf32, #tpu.memory_space<vmem>>, vector<1x256xf32>
    %81 = arith.truncf %79 : vector<128x128xf32> to vector<128x128xbf16>
    %c0_43 = arith.constant 0 : index
    %c0_44 = arith.constant 0 : index
    %82 = vector.load %arg10[%c0_43, %c0_44] : memref<128x256xbf16, #tpu.memory_space<vmem>>, vector<128x256xbf16>
    %cst_45 = arith.constant dense<0.000000e+00> : vector<128x256xf32>
    %83 = tpu.matmul %81, %82, %cst_45 {dimension_numbers = #tpu.dot_dimension_numbers<[1], [0], [0], [1], [0, 0, 1, 1], [], []>} : vector<128x128xbf16>, vector<128x256xbf16>, vector<128x256xf32> -> vector<128x256xf32>
    %84 = vector.broadcast %80 : vector<1x256xf32> to vector<128x256xf32>
    %85 = arith.addf %83, %84 : vector<128x256xf32>
    %cst_46 = arith.constant 0.000000e+00 : f32
    %86 = vector.broadcast %cst_46 : f32 to vector<128x256xf32>
    %87 = arith.maximumf %85, %86 : vector<128x256xf32>
    %c10 = arith.constant 10 : index
    %c0_47 = arith.constant 0 : index
    %88 = vector.load %arg3[%c10, %c0_47] : memref<32x256xf32, #tpu.memory_space<vmem>>, vector<1x128xf32>
    %89 = arith.truncf %87 : vector<128x256xf32> to vector<128x256xbf16>
    %c0_48 = arith.constant 0 : index
    %c0_49 = arith.constant 0 : index
    %90 = vector.load %arg11[%c0_48, %c0_49] : memref<256x128xbf16, #tpu.memory_space<vmem>>, vector<256x128xbf16>
    %cst_50 = arith.constant dense<0.000000e+00> : vector<128x128xf32>
    %91 = tpu.matmul %89, %90, %cst_50 {dimension_numbers = #tpu.dot_dimension_numbers<[1], [0], [0], [1], [0, 0, 1, 1], [], []>} : vector<128x256xbf16>, vector<256x128xbf16>, vector<128x128xf32> -> vector<128x128xf32>
    %92 = vector.broadcast %88 : vector<1x128xf32> to vector<128x128xf32>
    %93 = arith.addf %91, %92 : vector<128x128xf32>
    %cst_51 = arith.constant 0.000000e+00 : f32
    %94 = vector.broadcast %cst_51 : f32 to vector<128x128xf32>
    %95 = arith.maximumf %93, %94 : vector<128x128xf32>
    %c11 = arith.constant 11 : index
    %c0_52 = arith.constant 0 : index
    %96 = vector.load %arg3[%c11, %c0_52] : memref<32x256xf32, #tpu.memory_space<vmem>>, vector<1x64xf32>
    %97 = arith.truncf %95 : vector<128x128xf32> to vector<128x128xbf16>
    %c0_53 = arith.constant 0 : index
    %c0_54 = arith.constant 0 : index
    %98 = vector.load %arg12[%c0_53, %c0_54] : memref<128x64xbf16, #tpu.memory_space<vmem>>, vector<128x64xbf16>
    %cst_55 = arith.constant dense<0.000000e+00> : vector<128x64xf32>
    %99 = tpu.matmul %97, %98, %cst_55 {dimension_numbers = #tpu.dot_dimension_numbers<[1], [0], [0], [1], [0, 0, 1, 1], [], []>} : vector<128x128xbf16>, vector<128x64xbf16>, vector<128x64xf32> -> vector<128x64xf32>
    %100 = vector.broadcast %96 : vector<1x64xf32> to vector<128x64xf32>
    %101 = arith.addf %99, %100 : vector<128x64xf32>
    %cst_56 = arith.constant 0.000000e+00 : f32
    %102 = vector.broadcast %cst_56 : f32 to vector<128x64xf32>
    %103 = arith.maximumf %101, %102 : vector<128x64xf32>
    %c12 = arith.constant 12 : index
    %c0_57 = arith.constant 0 : index
    %104 = vector.load %arg3[%c12, %c0_57] : memref<32x256xf32, #tpu.memory_space<vmem>>, vector<1x128xf32>
    %c13 = arith.constant 13 : index
    %c0_58 = arith.constant 0 : index
    %105 = vector.load %arg3[%c13, %c0_58] : memref<32x256xf32, #tpu.memory_space<vmem>>, vector<1x128xf32>
    %c14 = arith.constant 14 : index
    %c0_59 = arith.constant 0 : index
    %106 = vector.load %arg3[%c14, %c0_59] : memref<32x256xf32, #tpu.memory_space<vmem>>, vector<1x128xf32>
    %c15 = arith.constant 15 : index
    %c0_60 = arith.constant 0 : index
    %107 = vector.load %arg3[%c15, %c0_60] : memref<32x256xf32, #tpu.memory_space<vmem>>, vector<1x128xf32>
    %108 = arith.truncf %103 : vector<128x64xf32> to vector<128x64xbf16>
    %c0_61 = arith.constant 0 : index
    %c0_62 = arith.constant 0 : index
    %109 = vector.load %arg13[%c0_61, %c0_62] : memref<64x128xbf16, #tpu.memory_space<vmem>>, vector<64x128xbf16>
    %cst_63 = arith.constant dense<0.000000e+00> : vector<128x128xf32>
    %110 = tpu.matmul %108, %109, %cst_63 {dimension_numbers = #tpu.dot_dimension_numbers<[1], [0], [0], [1], [0, 0, 1, 1], [], []>} : vector<128x64xbf16>, vector<64x128xbf16>, vector<128x128xf32> -> vector<128x128xf32>
    %111 = vector.broadcast %105 : vector<1x128xf32> to vector<128x128xf32>
    %112 = arith.mulf %110, %111 : vector<128x128xf32>
    %cst_64 = arith.constant dense<0.000000e+00> : vector<128xf32>
    %113 = vector.multi_reduction <add>, %112, %cst_64 [1] : vector<128x128xf32> to vector<128xf32>
    %114 = vector.shape_cast %113 : vector<128xf32> to vector<128x1xf32>
    %cst_65 = arith.constant dense<0.000000e+00> : vector<1x128xf32>
    %115 = tpu.matmul %104, %110, %cst_65 {dimension_numbers = #tpu.dot_dimension_numbers<[1], [1], [0], [0], [0, 0, 1, 0], [], []>} : vector<1x128xf32>, vector<128x128xf32>, vector<1x128xf32> -> vector<1x128xf32>
    %116 = vector.broadcast %114 : vector<128x1xf32> to vector<128x128xf32>
    %117 = vector.broadcast %115 : vector<1x128xf32> to vector<128x128xf32>
    %118 = arith.addf %116, %117 : vector<128x128xf32>
    %cst_66 = arith.constant 0.000000e+00 : f32
    %119 = vector.broadcast %cst_66 : f32 to vector<128x128xf32>
    %120 = arith.cmpf ogt, %118, %119 : vector<128x128xf32>
    %cst_67 = arith.constant 2.000000e-01 : f32
    %121 = vector.broadcast %cst_67 : f32 to vector<128x128xf32>
    %122 = arith.mulf %121, %118 : vector<128x128xf32>
    %123 = arith.select %120, %118, %122 : vector<128x128xi1>, vector<128x128xf32>
    %124 = arith.addf %123, %0 : vector<128x128xf32>
    %cst_68 = arith.constant dense<0xFF800000> : vector<128xf32>
    %125 = vector.multi_reduction <maximumf>, %124, %cst_68 [1] : vector<128x128xf32> to vector<128xf32>
    %126 = vector.shape_cast %125 : vector<128xf32> to vector<128x1xf32>
    %127 = vector.broadcast %126 : vector<128x1xf32> to vector<128x128xf32>
    %128 = arith.subf %124, %127 : vector<128x128xf32>
    %129 = math.exp %128 : vector<128x128xf32>
    %cst_69 = arith.constant dense<0.000000e+00> : vector<128xf32>
    %130 = vector.multi_reduction <add>, %129, %cst_69 [1] : vector<128x128xf32> to vector<128xf32>
    %131 = vector.shape_cast %130 : vector<128xf32> to vector<128x1xf32>
    %132 = tpu.reciprocal %131 {approx = true} : vector<128x1xf32> -> vector<128x1xf32>
    %133 = vector.broadcast %132 : vector<128x1xf32> to vector<128x128xf32>
    %134 = arith.mulf %129, %133 : vector<128x128xf32>
    %135 = arith.truncf %134 : vector<128x128xf32> to vector<128x128xbf16>
    %136 = arith.truncf %110 : vector<128x128xf32> to vector<128x128xbf16>
    %cst_70 = arith.constant dense<0.000000e+00> : vector<128x128xf32>
    %137 = tpu.matmul %135, %136, %cst_70 {dimension_numbers = #tpu.dot_dimension_numbers<[1], [0], [0], [1], [0, 0, 1, 1], [], []>} : vector<128x128xbf16>, vector<128x128xbf16>, vector<128x128xf32> -> vector<128x128xf32>
    %138 = vector.broadcast %106 : vector<1x128xf32> to vector<128x128xf32>
    %139 = arith.mulf %137, %138 : vector<128x128xf32>
    %140 = vector.broadcast %107 : vector<1x128xf32> to vector<128x128xf32>
    %141 = arith.addf %139, %140 : vector<128x128xf32>
    %cst_71 = arith.constant 0.000000e+00 : f32
    %142 = vector.broadcast %cst_71 : f32 to vector<128x128xf32>
    %143 = arith.maximumf %141, %142 : vector<128x128xf32>
    %c16 = arith.constant 16 : index
    %c0_72 = arith.constant 0 : index
    %144 = vector.load %arg3[%c16, %c0_72] : memref<32x256xf32, #tpu.memory_space<vmem>>, vector<1x128xf32>
    %145 = arith.truncf %143 : vector<128x128xf32> to vector<128x128xbf16>
    %c0_73 = arith.constant 0 : index
    %c0_74 = arith.constant 0 : index
    %146 = vector.load %arg14[%c0_73, %c0_74] : memref<128x128xbf16, #tpu.memory_space<vmem>>, vector<128x128xbf16>
    %cst_75 = arith.constant dense<0.000000e+00> : vector<128x128xf32>
    %147 = tpu.matmul %145, %146, %cst_75 {dimension_numbers = #tpu.dot_dimension_numbers<[1], [0], [0], [1], [0, 0, 1, 1], [], []>} : vector<128x128xbf16>, vector<128x128xbf16>, vector<128x128xf32> -> vector<128x128xf32>
    %148 = vector.broadcast %144 : vector<1x128xf32> to vector<128x128xf32>
    %149 = arith.addf %147, %148 : vector<128x128xf32>
    %cst_76 = arith.constant 0.000000e+00 : f32
    %150 = vector.broadcast %cst_76 : f32 to vector<128x128xf32>
    %151 = arith.maximumf %149, %150 : vector<128x128xf32>
    %c17 = arith.constant 17 : index
    %c0_77 = arith.constant 0 : index
    %152 = vector.load %arg3[%c17, %c0_77] : memref<32x256xf32, #tpu.memory_space<vmem>>, vector<1x256xf32>
    %153 = arith.truncf %151 : vector<128x128xf32> to vector<128x128xbf16>
    %c0_78 = arith.constant 0 : index
    %c0_79 = arith.constant 0 : index
    %154 = vector.load %arg15[%c0_78, %c0_79] : memref<128x256xbf16, #tpu.memory_space<vmem>>, vector<128x256xbf16>
    %cst_80 = arith.constant dense<0.000000e+00> : vector<128x256xf32>
    %155 = tpu.matmul %153, %154, %cst_80 {dimension_numbers = #tpu.dot_dimension_numbers<[1], [0], [0], [1], [0, 0, 1, 1], [], []>} : vector<128x128xbf16>, vector<128x256xbf16>, vector<128x256xf32> -> vector<128x256xf32>
    %156 = vector.broadcast %152 : vector<1x256xf32> to vector<128x256xf32>
    %157 = arith.addf %155, %156 : vector<128x256xf32>
    %cst_81 = arith.constant 0.000000e+00 : f32
    %158 = vector.broadcast %cst_81 : f32 to vector<128x256xf32>
    %159 = arith.maximumf %157, %158 : vector<128x256xf32>
    %c18 = arith.constant 18 : index
    %c0_82 = arith.constant 0 : index
    %160 = vector.load %arg3[%c18, %c0_82] : memref<32x256xf32, #tpu.memory_space<vmem>>, vector<1x128xf32>
    %161 = arith.truncf %159 : vector<128x256xf32> to vector<128x256xbf16>
    %c0_83 = arith.constant 0 : index
    %c0_84 = arith.constant 0 : index
    %162 = vector.load %arg16[%c0_83, %c0_84] : memref<256x128xbf16, #tpu.memory_space<vmem>>, vector<256x128xbf16>
    %cst_85 = arith.constant dense<0.000000e+00> : vector<128x128xf32>
    %163 = tpu.matmul %161, %162, %cst_85 {dimension_numbers = #tpu.dot_dimension_numbers<[1], [0], [0], [1], [0, 0, 1, 1], [], []>} : vector<128x256xbf16>, vector<256x128xbf16>, vector<128x128xf32> -> vector<128x128xf32>
    %164 = vector.broadcast %160 : vector<1x128xf32> to vector<128x128xf32>
    %165 = arith.addf %163, %164 : vector<128x128xf32>
    %cst_86 = arith.constant 0.000000e+00 : f32
    %166 = vector.broadcast %cst_86 : f32 to vector<128x128xf32>
    %167 = arith.maximumf %165, %166 : vector<128x128xf32>
    %c19 = arith.constant 19 : index
    %c0_87 = arith.constant 0 : index
    %168 = vector.load %arg3[%c19, %c0_87] : memref<32x256xf32, #tpu.memory_space<vmem>>, vector<1x128xf32>
    %169 = arith.truncf %167 : vector<128x128xf32> to vector<128x128xbf16>
    %c0_88 = arith.constant 0 : index
    %c0_89 = arith.constant 0 : index
    %170 = vector.load %arg17[%c0_88, %c0_89] : memref<128x128xbf16, #tpu.memory_space<vmem>>, vector<128x128xbf16>
    %cst_90 = arith.constant dense<0.000000e+00> : vector<128x128xf32>
    %171 = tpu.matmul %169, %170, %cst_90 {dimension_numbers = #tpu.dot_dimension_numbers<[1], [0], [0], [1], [0, 0, 1, 1], [], []>} : vector<128x128xbf16>, vector<128x128xbf16>, vector<128x128xf32> -> vector<128x128xf32>
    %172 = vector.broadcast %168 : vector<1x128xf32> to vector<128x128xf32>
    %173 = arith.addf %171, %172 : vector<128x128xf32>
    %cst_91 = arith.constant 0.000000e+00 : f32
    %174 = vector.broadcast %cst_91 : f32 to vector<128x128xf32>
    %175 = arith.maximumf %173, %174 : vector<128x128xf32>
    %c20 = arith.constant 20 : index
    %c0_92 = arith.constant 0 : index
    %176 = vector.load %arg3[%c20, %c0_92] : memref<32x256xf32, #tpu.memory_space<vmem>>, vector<1x64xf32>
    %c21 = arith.constant 21 : index
    %c0_93 = arith.constant 0 : index
    %177 = vector.load %arg3[%c21, %c0_93] : memref<32x256xf32, #tpu.memory_space<vmem>>, vector<1x64xf32>
    %c22 = arith.constant 22 : index
    %c0_94 = arith.constant 0 : index
    %178 = vector.load %arg3[%c22, %c0_94] : memref<32x256xf32, #tpu.memory_space<vmem>>, vector<1x64xf32>
    %c23 = arith.constant 23 : index
    %c0_95 = arith.constant 0 : index
    %179 = vector.load %arg3[%c23, %c0_95] : memref<32x256xf32, #tpu.memory_space<vmem>>, vector<1x64xf32>
    %180 = arith.truncf %175 : vector<128x128xf32> to vector<128x128xbf16>
    %c0_96 = arith.constant 0 : index
    %c0_97 = arith.constant 0 : index
    %181 = vector.load %arg18[%c0_96, %c0_97] : memref<128x64xbf16, #tpu.memory_space<vmem>>, vector<128x64xbf16>
    %cst_98 = arith.constant dense<0.000000e+00> : vector<128x64xf32>
    %182 = tpu.matmul %180, %181, %cst_98 {dimension_numbers = #tpu.dot_dimension_numbers<[1], [0], [0], [1], [0, 0, 1, 1], [], []>} : vector<128x128xbf16>, vector<128x64xbf16>, vector<128x64xf32> -> vector<128x64xf32>
    %183 = vector.broadcast %177 : vector<1x64xf32> to vector<128x64xf32>
    %184 = arith.mulf %182, %183 : vector<128x64xf32>
    %cst_99 = arith.constant dense<0.000000e+00> : vector<128xf32>
    %185 = vector.multi_reduction <add>, %184, %cst_99 [1] : vector<128x64xf32> to vector<128xf32>
    %186 = vector.shape_cast %185 : vector<128xf32> to vector<128x1xf32>
    %cst_100 = arith.constant dense<0.000000e+00> : vector<1x128xf32>
    %187 = tpu.matmul %176, %182, %cst_100 {dimension_numbers = #tpu.dot_dimension_numbers<[1], [1], [0], [0], [0, 0, 1, 0], [], []>} : vector<1x64xf32>, vector<128x64xf32>, vector<1x128xf32> -> vector<1x128xf32>
    %188 = vector.broadcast %186 : vector<128x1xf32> to vector<128x128xf32>
    %189 = vector.broadcast %187 : vector<1x128xf32> to vector<128x128xf32>
    %190 = arith.addf %188, %189 : vector<128x128xf32>
    %cst_101 = arith.constant 0.000000e+00 : f32
    %191 = vector.broadcast %cst_101 : f32 to vector<128x128xf32>
    %192 = arith.cmpf ogt, %190, %191 : vector<128x128xf32>
    %cst_102 = arith.constant 2.000000e-01 : f32
    %193 = vector.broadcast %cst_102 : f32 to vector<128x128xf32>
    %194 = arith.mulf %193, %190 : vector<128x128xf32>
    %195 = arith.select %192, %190, %194 : vector<128x128xi1>, vector<128x128xf32>
    %196 = arith.addf %195, %0 : vector<128x128xf32>
    %cst_103 = arith.constant dense<0xFF800000> : vector<128xf32>
    %197 = vector.multi_reduction <maximumf>, %196, %cst_103 [1] : vector<128x128xf32> to vector<128xf32>
    %198 = vector.shape_cast %197 : vector<128xf32> to vector<128x1xf32>
    %199 = vector.broadcast %198 : vector<128x1xf32> to vector<128x128xf32>
    %200 = arith.subf %196, %199 : vector<128x128xf32>
    %201 = math.exp %200 : vector<128x128xf32>
    %cst_104 = arith.constant dense<0.000000e+00> : vector<128xf32>
    %202 = vector.multi_reduction <add>, %201, %cst_104 [1] : vector<128x128xf32> to vector<128xf32>
    %203 = vector.shape_cast %202 : vector<128xf32> to vector<128x1xf32>
    %204 = tpu.reciprocal %203 {approx = true} : vector<128x1xf32> -> vector<128x1xf32>
    %205 = vector.broadcast %204 : vector<128x1xf32> to vector<128x128xf32>
    %206 = arith.mulf %201, %205 : vector<128x128xf32>
    %207 = arith.truncf %206 : vector<128x128xf32> to vector<128x128xbf16>
    %208 = arith.truncf %182 : vector<128x64xf32> to vector<128x64xbf16>
    %cst_105 = arith.constant dense<0.000000e+00> : vector<128x64xf32>
    %209 = tpu.matmul %207, %208, %cst_105 {dimension_numbers = #tpu.dot_dimension_numbers<[1], [0], [0], [1], [0, 0, 1, 1], [], []>} : vector<128x128xbf16>, vector<128x64xbf16>, vector<128x64xf32> -> vector<128x64xf32>
    %210 = vector.broadcast %178 : vector<1x64xf32> to vector<128x64xf32>
    %211 = arith.mulf %209, %210 : vector<128x64xf32>
    %212 = vector.broadcast %179 : vector<1x64xf32> to vector<128x64xf32>
    %213 = arith.addf %211, %212 : vector<128x64xf32>
    %cst_106 = arith.constant 0.000000e+00 : f32
    %214 = vector.broadcast %cst_106 : f32 to vector<128x64xf32>
    %215 = arith.maximumf %213, %214 : vector<128x64xf32>
    %c24 = arith.constant 24 : index
    %c0_107 = arith.constant 0 : index
    %216 = vector.load %arg3[%c24, %c0_107] : memref<32x256xf32, #tpu.memory_space<vmem>>, vector<1x128xf32>
    %217 = arith.truncf %215 : vector<128x64xf32> to vector<128x64xbf16>
    %c0_108 = arith.constant 0 : index
    %c0_109 = arith.constant 0 : index
    %218 = vector.load %arg19[%c0_108, %c0_109] : memref<64x128xbf16, #tpu.memory_space<vmem>>, vector<64x128xbf16>
    %cst_110 = arith.constant dense<0.000000e+00> : vector<128x128xf32>
    %219 = tpu.matmul %217, %218, %cst_110 {dimension_numbers = #tpu.dot_dimension_numbers<[1], [0], [0], [1], [0, 0, 1, 1], [], []>} : vector<128x64xbf16>, vector<64x128xbf16>, vector<128x128xf32> -> vector<128x128xf32>
    %220 = vector.broadcast %216 : vector<1x128xf32> to vector<128x128xf32>
    %221 = arith.addf %219, %220 : vector<128x128xf32>
    %cst_111 = arith.constant 0.000000e+00 : f32
    %222 = vector.broadcast %cst_111 : f32 to vector<128x128xf32>
    %223 = arith.maximumf %221, %222 : vector<128x128xf32>
    %c25 = arith.constant 25 : index
    %c0_112 = arith.constant 0 : index
    %224 = vector.load %arg3[%c25, %c0_112] : memref<32x256xf32, #tpu.memory_space<vmem>>, vector<1x256xf32>
    %225 = arith.truncf %223 : vector<128x128xf32> to vector<128x128xbf16>
    %c0_113 = arith.constant 0 : index
    %c0_114 = arith.constant 0 : index
    %226 = vector.load %arg20[%c0_113, %c0_114] : memref<128x256xbf16, #tpu.memory_space<vmem>>, vector<128x256xbf16>
    %cst_115 = arith.constant dense<0.000000e+00> : vector<128x256xf32>
    %227 = tpu.matmul %225, %226, %cst_115 {dimension_numbers = #tpu.dot_dimension_numbers<[1], [0], [0], [1], [0, 0, 1, 1], [], []>} : vector<128x128xbf16>, vector<128x256xbf16>, vector<128x256xf32> -> vector<128x256xf32>
    %228 = vector.broadcast %224 : vector<1x256xf32> to vector<128x256xf32>
    %229 = arith.addf %227, %228 : vector<128x256xf32>
    %cst_116 = arith.constant 0.000000e+00 : f32
    %230 = vector.broadcast %cst_116 : f32 to vector<128x256xf32>
    %231 = arith.maximumf %229, %230 : vector<128x256xf32>
    %c26 = arith.constant 26 : index
    %c0_117 = arith.constant 0 : index
    %232 = vector.load %arg3[%c26, %c0_117] : memref<32x256xf32, #tpu.memory_space<vmem>>, vector<1x128xf32>
    %233 = arith.truncf %231 : vector<128x256xf32> to vector<128x256xbf16>
    %c0_118 = arith.constant 0 : index
    %c0_119 = arith.constant 0 : index
    %234 = vector.load %arg21[%c0_118, %c0_119] : memref<256x128xbf16, #tpu.memory_space<vmem>>, vector<256x128xbf16>
    %cst_120 = arith.constant dense<0.000000e+00> : vector<128x128xf32>
    %235 = tpu.matmul %233, %234, %cst_120 {dimension_numbers = #tpu.dot_dimension_numbers<[1], [0], [0], [1], [0, 0, 1, 1], [], []>} : vector<128x256xbf16>, vector<256x128xbf16>, vector<128x128xf32> -> vector<128x128xf32>
    %236 = vector.broadcast %232 : vector<1x128xf32> to vector<128x128xf32>
    %237 = arith.addf %235, %236 : vector<128x128xf32>
    %cst_121 = arith.constant 0.000000e+00 : f32
    %238 = vector.broadcast %cst_121 : f32 to vector<128x128xf32>
    %239 = arith.maximumf %237, %238 : vector<128x128xf32>
    %c27 = arith.constant 27 : index
    %c0_122 = arith.constant 0 : index
    %240 = vector.load %arg3[%c27, %c0_122] : memref<32x256xf32, #tpu.memory_space<vmem>>, vector<1x128xf32>
    %c28 = arith.constant 28 : index
    %c0_123 = arith.constant 0 : index
    %241 = vector.load %arg3[%c28, %c0_123] : memref<32x256xf32, #tpu.memory_space<vmem>>, vector<1x1xf32>
    %242 = vector.broadcast %240 : vector<1x128xf32> to vector<128x128xf32>
    %243 = arith.mulf %239, %242 : vector<128x128xf32>
    %cst_124 = arith.constant dense<0.000000e+00> : vector<128xf32>
    %244 = vector.multi_reduction <add>, %243, %cst_124 [1] : vector<128x128xf32> to vector<128xf32>
    %245 = vector.shape_cast %244 : vector<128xf32> to vector<128x1xf32>
    %246 = vector.broadcast %241 : vector<1x1xf32> to vector<128x1xf32>
    %247 = arith.addf %245, %246 : vector<128x1xf32>
    %248 = math.absf %247 : vector<128x1xf32>
    %cst_125 = arith.constant 0.000000e+00 : f32
    %249 = vector.broadcast %cst_125 : f32 to vector<128x1xf32>
    %250 = arith.subf %249, %248 : vector<128x1xf32>
    %251 = math.exp %250 : vector<128x1xf32>
    %cst_126 = arith.constant 1.000000e+00 : f32
    %252 = vector.broadcast %cst_126 : f32 to vector<128x1xf32>
    %253 = arith.addf %252, %251 : vector<128x1xf32>
    %254 = tpu.reciprocal %253 {approx = true} : vector<128x1xf32> -> vector<128x1xf32>
    %cst_127 = arith.constant 0.000000e+00 : f32
    %255 = vector.broadcast %cst_127 : f32 to vector<128x1xf32>
    %256 = arith.cmpf oge, %247, %255 : vector<128x1xf32>
    %257 = arith.mulf %251, %254 : vector<128x1xf32>
    %258 = arith.select %256, %254, %257 : vector<128x1xi1>, vector<128x1xf32>
    %259 = vector.shape_cast %258 : vector<128x1xf32> to vector<128x1xf32>
    %260 = vector.broadcast %259 : vector<128x1xf32> to vector<128x128xf32>
    %c0_128 = arith.constant 0 : index
    %c0_129 = arith.constant 0 : index
    %261 = vector.load %arg22[%c0_128, %c0_129] : memref<128x128xf32, #tpu.memory_space<vmem>>, vector<128x128xf32>
    tpu.vector_store %arg22[%c0_128, %c0_129], %260 {strides = array<i32>} : memref<128x128xf32, #tpu.memory_space<vmem>>, vector<128x128xf32>,
    return
  }
  func.func @transform_0(%arg0: i32) -> (i32, i32) {
    %c0_i32 = arith.constant 0 : i32
    %c0_i32_0 = arith.constant 0 : i32
    return %arg0, %c0_i32 : i32, i32
  }
  func.func @transform_1(%arg0: i32) -> (i32, i32) {
    %c0_i32 = arith.constant 0 : i32
    %c0_i32_0 = arith.constant 0 : i32
    return %arg0, %c0_i32 : i32, i32
  }
  func.func @transform_2(%arg0: i32) -> (i32, i32) {
    %c0_i32 = arith.constant 0 : i32
    %c0_i32_0 = arith.constant 0 : i32
    %c0_i32_1 = arith.constant 0 : i32
    return %c0_i32, %c0_i32_0 : i32, i32
  }
  func.func @transform_3(%arg0: i32) -> (i32, i32) {
    %c0_i32 = arith.constant 0 : i32
    %c0_i32_0 = arith.constant 0 : i32
    %c0_i32_1 = arith.constant 0 : i32
    return %c0_i32, %c0_i32_0 : i32, i32
  }
  func.func @transform_4(%arg0: i32) -> (i32, i32) {
    %c0_i32 = arith.constant 0 : i32
    %c0_i32_0 = arith.constant 0 : i32
    %c0_i32_1 = arith.constant 0 : i32
    return %c0_i32, %c0_i32_0 : i32, i32
  }
  func.func @transform_5(%arg0: i32) -> (i32, i32) {
    %c0_i32 = arith.constant 0 : i32
    %c0_i32_0 = arith.constant 0 : i32
    %c0_i32_1 = arith.constant 0 : i32
    return %c0_i32, %c0_i32_0 : i32, i32
  }
  func.func @transform_6(%arg0: i32) -> (i32, i32) {
    %c0_i32 = arith.constant 0 : i32
    %c0_i32_0 = arith.constant 0 : i32
    %c0_i32_1 = arith.constant 0 : i32
    return %c0_i32, %c0_i32_0 : i32, i32
  }
  func.func @transform_7(%arg0: i32) -> (i32, i32) {
    %c0_i32 = arith.constant 0 : i32
    %c0_i32_0 = arith.constant 0 : i32
    %c0_i32_1 = arith.constant 0 : i32
    return %c0_i32, %c0_i32_0 : i32, i32
  }
  func.func @transform_8(%arg0: i32) -> (i32, i32) {
    %c0_i32 = arith.constant 0 : i32
    %c0_i32_0 = arith.constant 0 : i32
    %c0_i32_1 = arith.constant 0 : i32
    return %c0_i32, %c0_i32_0 : i32, i32
  }
  func.func @transform_9(%arg0: i32) -> (i32, i32) {
    %c0_i32 = arith.constant 0 : i32
    %c0_i32_0 = arith.constant 0 : i32
    %c0_i32_1 = arith.constant 0 : i32
    return %c0_i32, %c0_i32_0 : i32, i32
  }
  func.func @transform_10(%arg0: i32) -> (i32, i32) {
    %c0_i32 = arith.constant 0 : i32
    %c0_i32_0 = arith.constant 0 : i32
    %c0_i32_1 = arith.constant 0 : i32
    return %c0_i32, %c0_i32_0 : i32, i32
  }
  func.func @transform_11(%arg0: i32) -> (i32, i32) {
    %c0_i32 = arith.constant 0 : i32
    %c0_i32_0 = arith.constant 0 : i32
    %c0_i32_1 = arith.constant 0 : i32
    return %c0_i32, %c0_i32_0 : i32, i32
  }
  func.func @transform_12(%arg0: i32) -> (i32, i32) {
    %c0_i32 = arith.constant 0 : i32
    %c0_i32_0 = arith.constant 0 : i32
    %c0_i32_1 = arith.constant 0 : i32
    return %c0_i32, %c0_i32_0 : i32, i32
  }
  func.func @transform_13(%arg0: i32) -> (i32, i32) {
    %c0_i32 = arith.constant 0 : i32
    %c0_i32_0 = arith.constant 0 : i32
    %c0_i32_1 = arith.constant 0 : i32
    return %c0_i32, %c0_i32_0 : i32, i32
  }
  func.func @transform_14(%arg0: i32) -> (i32, i32) {
    %c0_i32 = arith.constant 0 : i32
    %c0_i32_0 = arith.constant 0 : i32
    %c0_i32_1 = arith.constant 0 : i32
    return %c0_i32, %c0_i32_0 : i32, i32
  }
  func.func @transform_15(%arg0: i32) -> (i32, i32) {
    %c0_i32 = arith.constant 0 : i32
    %c0_i32_0 = arith.constant 0 : i32
    %c0_i32_1 = arith.constant 0 : i32
    return %c0_i32, %c0_i32_0 : i32, i32
  }
  func.func @transform_16(%arg0: i32) -> (i32, i32) {
    %c0_i32 = arith.constant 0 : i32
    %c0_i32_0 = arith.constant 0 : i32
    %c0_i32_1 = arith.constant 0 : i32
    return %c0_i32, %c0_i32_0 : i32, i32
  }
  func.func @transform_17(%arg0: i32) -> (i32, i32) {
    %c0_i32 = arith.constant 0 : i32
    %c0_i32_0 = arith.constant 0 : i32
    %c0_i32_1 = arith.constant 0 : i32
    return %c0_i32, %c0_i32_0 : i32, i32
  }
  func.func @transform_18(%arg0: i32) -> (i32, i32) {
    %c0_i32 = arith.constant 0 : i32
    %c0_i32_0 = arith.constant 0 : i32
    %c0_i32_1 = arith.constant 0 : i32
    return %c0_i32, %c0_i32_0 : i32, i32
  }
  func.func @transform_19(%arg0: i32) -> (i32, i32) {
    %c0_i32 = arith.constant 0 : i32
    %c0_i32_0 = arith.constant 0 : i32
    %c0_i32_1 = arith.constant 0 : i32
    return %c0_i32, %c0_i32_0 : i32, i32
  }
  func.func @transform_20(%arg0: i32) -> (i32, i32) {
    %c0_i32 = arith.constant 0 : i32
    %c0_i32_0 = arith.constant 0 : i32
    %c0_i32_1 = arith.constant 0 : i32
    return %c0_i32, %c0_i32_0 : i32, i32
  }
  func.func @transform_21(%arg0: i32) -> (i32, i32) {
    %c0_i32 = arith.constant 0 : i32
    %c0_i32_0 = arith.constant 0 : i32
    return %arg0, %c0_i32 : i32, i32
  }
}

</mosaic_0001>

<bundles_post_ra>
// kernel: gatclf_forward.1
= control target key start
LH: loop header
LB: loop body
LE: loop exit
PB: predicated region body
PF: predicated region fallthrough
CT: control target
= control target key end

     0   :  { %s10465_s0 = inlined_call_operand.vmem [shape: f32[256,16], index: 0, kind: input, shape index: {}]   ;;  %s10466_s1 = inlined_call_operand.vmem [shape: f32[256,128], index: 1, kind: input, shape index: {}]   ;;  %s10467_s2 = inlined_call_operand.vmem [shape: f32[32,256], index: 2, kind: input, shape index: {}]   ;;  %s10468_s3 = inlined_call_operand.vmem [shape: bf16[16,128], index: 3, kind: input, shape index: {}]   ;;  %s10469_s4 = inlined_call_operand.vmem [shape: bf16[128,256], index: 4, kind: input, shape index: {}]   ;;  %s10470_s5 = inlined_call_operand.vmem [shape: bf16[256,128], index: 5, kind: input, shape index: {}]   ;;  %s10471_s6 = inlined_call_operand.vmem [shape: bf16[128,32], index: 6, kind: input, shape index: {}]   ;;  %s10472_s7 = inlined_call_operand.vmem [shape: bf16[32,64], index: 7, kind: input, shape index: {}]   ;;  %s10473_s8 = inlined_call_operand.vmem [shape: bf16[64,128], index: 8, kind: input, shape index: {}]   ;;  %s10474_s9 = inlined_call_operand.vmem [shape: bf16[128,256], index: 9, kind: input, shape index: {}]   ;;  %s10475_s10 = inlined_call_operand.vmem [shape: bf16[256,128], index: 10, kind: input, shape index: {}]   ;;  %s10476_s11 = inlined_call_operand.vmem [shape: bf16[128,64], index: 11, kind: input, shape index: {}]   ;;  %s10477_s12 = inlined_call_operand.vmem [shape: bf16[64,128], index: 12, kind: input, shape index: {}]   ;;  %s10478_s13 = inlined_call_operand.vmem [shape: bf16[128,128], index: 13, kind: input, shape index: {}]   ;;  %s10479_s14 = inlined_call_operand.vmem [shape: bf16[128,256], index: 14, kind: input, shape index: {}]   ;;  %s10480_s15 = inlined_call_operand.vmem [shape: bf16[256,128], index: 15, kind: input, shape index: {}]   ;;  %s10481_s16 = inlined_call_operand.vmem [shape: bf16[128,128], index: 16, kind: input, shape index: {}]   ;;  %s10482_s17 = inlined_call_operand.vmem [shape: bf16[128,64], index: 17, kind: input, shape index: {}]   ;;  %s10483_s18 = inlined_call_operand.vmem [shape: bf16[64,128], index: 18, kind: input, shape index: {}]   ;;  %s10484_s19 = inlined_call_operand.vmem [shape: bf16[128,256], index: 19, kind: input, shape index: {}]   ;;  %s10485_s20 = inlined_call_operand.vmem [shape: bf16[256,128], index: 20, kind: input, shape index: {}]   ;;  %s10486_s21 = inlined_call_operand.vmem [shape: f32[256,128], index: 21, kind: output, shape index: {}]  }
   0x1   :  { %10491 = sst [smem:[#allocation2_spill]] %s10465_s0 }
   0x2   :  { %10492 = sst [smem:[#allocation3_spill]] %s10466_s1 }
   0x3   :  { %10493 = sst [smem:[#allocation4_spill]] %s10467_s2  ;;  %s8424_s2 = smov 0  }
   0x4   :  { %10494 = sst [smem:[#allocation5_spill]] %s10468_s3 }
   0x5   :  { %10495 = sst [smem:[#allocation6_spill]] %s10469_s4 }
   0x6   :  { %10496 = sst [smem:[#allocation7_spill]] %s10470_s5 }
   0x7 LB: > { %s6552_s25 = sadd.s32 4294967295, %s8309_s2   ;;  %p6556_p0 = scmp.ge.s32.totalorder %s8309_s2, 1  ;;  %s8309_s2 = sphi %s8424_s2, %s31_s2  }
   0x8   : > { %p599_p1 = scmp.lt.s32.totalorder %s8309_s2, 3 }
   0xa   : > { %p600_p2 = pnand %p6556_p0, %p599_p1 }
   0xb   : > { %s10497_s3 = sld [smem:[#allocation5_spill]] (!%p600_p2)  ;;  %s6557_s28 = sshll.u32 (!%p600_p2), %s6552_s25, 4 }
   0xc   : > { %603 = sbr.rel (%p600_p2) target bundleno = 6603 (0x19cb), region = 104  ;;  %p665_p3 = scmp.lt.s32.totalorder (!%p600_p2), %s6557_s28, 31 }
   0xd   : > { %s10498_s4 = sld [smem:[#allocation6_spill]] (!%p600_p2) }
   0xe   : > { %s10499_s0 = sld [smem:[#allocation2_spill]] (!%p600_p2) }
   0xf   : > { %s10500_s22 = sld [smem:[#allocation7_spill]] (!%p600_p2) }
  0x11   : > { %v7800_v0 = vld [vmem:[%s10497_s3] sm:$0xff]   ;;  %s10504_s28 = smov (!%p665_p3, %s6557_s28), 31  ;;  %vm732_vm0 = vcmask 130048   ;;  %v8311_v41 = vmov 0   ;;  %vm1588_vm1 = vcmask 261120   ;;  %vm8313_vm2 = vmmov 0  }
  0x12   : > { %7316 = vmatprep.subr.bf16.mxu0 %v7800_v0  ;;  %s8447_s25 = sshll.u32 %s10504_s28, 3  ;;  %1019 = vmatprep.mubr.bf16.mxu1 %v8311_v41  ;;  %vm1726_vm3 = vcmask 523264  }
  0x13   : > { %v7801_v1 = vld [vmem:[%s10498_s4 + $0x74] ss:$8 sps:$4 sm:$0xff]   ;;  %v7803_v2 = vld [vmem:[%s10498_s4 + $0x70] ss:$8 sps:$4 sm:$0xff]   ;;  %7317 = vmatpush3.bf16.msra.mxu0 %v7800_v0  ;;  %v7804_v3 = vld [vmem:[%s10498_s4 + $0x64] ss:$8 sps:$4 sm:$0xff]   ;;  %7798 = vset.pattern.permute.xlu0 %v8311_v41 }
  0x14   : > { %987 = vmatprep.subr.bf16.mxu1 %v7801_v1  ;;  %v7806_v4 = vld [vmem:[%s10498_s4 + $0x60] ss:$8 sps:$4 sm:$0xff]   ;;  %v7807_v5 = vld [vmem:[%s10498_s4 + $0x54] ss:$8 sps:$4 sm:$0xff]   ;;  %s8456_s30 = scalar_lea.vmem %s10499_s0, %s8447_s25  ;;  %v7809_v6 = vld [vmem:[%s10498_s4 + $0x50] ss:$8 sps:$4 sm:$0xff]   ;;  %7799 = vset.pattern.permute.xlu1 %v8311_v41 }
  0x15   : > { %988 = vmatpush1.bf16.msra.mxu1 %v7803_v2  ;;  %v699_v7 = vld [vmem:[%s8456_s30] sm:$0xff]  ;;  %v700_v8 = vld [vmem:[%s8456_s30 + $0x8] sm:$0xff]  ;;  %v701_v9 = vld [vmem:[%s8456_s30 + $0x10] sm:$0xff]  ;;  %s10501_s0 = sld [smem:[#allocation4_spill]] }
  0x16   : > { %989 = vmatprep.subr.bf16.mxu1 %v7804_v3  ;;  %v716_v10 = vpack.c.bf16 %v700_v8, %v699_v7  ;;  %v702_v11 = vld [vmem:[%s8456_s30 + $0x18] sm:$0xff]  ;;  %v703_v12 = vld [vmem:[%s8456_s30 + $0x20] sm:$0xff]  ;;  %v704_v13 = vld [vmem:[%s8456_s30 + $0x28] sm:$0xff] }
  0x17   : > { %v717_v14 = vpack.c.bf16 %v702_v11, %v701_v9  ;;  %v718_v15 = vpack.c.bf16 %v704_v13, %v703_v12  ;;  %v7810_v16 = vld [vmem:[%s10498_s4 + $0x44] ss:$8 sps:$4 sm:$0xff]   ;;  %v705_v17 = vld [vmem:[%s8456_s30 + $0x30] sm:$0xff]  ;;  %v706_v18 = vld [vmem:[%s8456_s30 + $0x38] sm:$0xff] }
  0x18   : > { %7318 = vmatprep.mubr.msk.bf16.mxu0 %vm732_vm0, %v716_v10  ;;  %v7812_v19 = vld [vmem:[%s10498_s4 + $0x40] ss:$8 sps:$4 sm:$0xff]   ;;  %v7813_v22 = vld [vmem:[%s10498_s4 + $0x34] ss:$8 sps:$4 sm:$0xff]   ;;  %v7815_v23 = vld [vmem:[%s10498_s4 + $0x30] ss:$8 sps:$4 sm:$0xff]   ;;  %v719_v24 = vpack.c.bf16 %v706_v18, %v705_v17 }
  0x19   : > { %990 = vmatpush1.bf16.msra.mxu1 %v7806_v4  ;;  %7319 = vmatmul.mubr.msk.bf16.vlgmr.msra.gmra.mxu0 %vm732_vm0, %v717_v14  ;;  %v707_v20 = vld [vmem:[%s8456_s30 + $0x40] sm:$0xff]  ;;  %v708_v21 = vld [vmem:[%s8456_s30 + $0x48] sm:$0xff]  ;;  %v709_v26 = vld [vmem:[%s8456_s30 + $0x50] sm:$0xff] }
  0x1a   : > { %991 = vmatprep.subr.bf16.mxu1 %v7807_v5  ;;  %7322 = vmatprep.mubr.msk.bf16.mxu0 %vm732_vm0, %v718_v15  ;;  %v720_v25 = vpack.c.bf16 %v708_v21, %v707_v20  ;;  %v710_v27 = vld [vmem:[%s8456_s30 + $0x58] sm:$0xff]  ;;  %v711_v28 = vld [vmem:[%s8456_s30 + $0x60] sm:$0xff]  ;;  %v712_v29 = vld [vmem:[%s8456_s30 + $0x68] sm:$0xff] }
  0x1b   : > { %v721_v30 = vpack.c.bf16 %v710_v27, %v709_v26  ;;  %v722_v31 = vpack.c.bf16 %v712_v29, %v711_v28  ;;  %v713_v32 = vld [vmem:[%s8456_s30 + $0x70] sm:$0xff]  ;;  %v714_v33 = vld [vmem:[%s8456_s30 + $0x78] sm:$0xff]  ;;  %v7816_v35 = vld [vmem:[%s10498_s4 + $0x24] ss:$8 sps:$4 sm:$0xff]   ;;  %s10502_s30 = sld [smem:[#allocation3_spill]] }
  0x1c   : > { %v723_v34 = vpack.c.bf16 %v714_v33, %v713_v32  ;;  %v7818_v36 = vld [vmem:[%s10498_s4 + $0x20] ss:$8 sps:$4 sm:$0xff]   ;;  %v7819_v37 = vld [vmem:[%s10498_s4 + $0x14] ss:$8 sps:$4 sm:$0xff]   ;;  %v7821_v38 = vld [vmem:[%s10498_s4 + $0x10] ss:$8 sps:$4 sm:$0xff]  }
  0x1d   : > { %992 = vmatpush1.bf16.msra.mxu1 %v7809_v6  ;;  %v7822_v39 = vld [vmem:[%s10498_s4 + $0x4] ss:$8 sps:$4 sm:$0xff]   ;;  %v7824_v40 = vld [vmem:[%s10498_s4] ss:$8 sps:$4 sm:$0xff]   ;;  %v7825_v42 = vld [vmem:[%s10500_s22 + $0x78] sm:$0xff]  }
  0x1e   : > { %993 = vmatprep.subr.bf16.mxu1 %v7810_v16  ;;  %v7826_v43 = vld [vmem:[%s10500_s22 + $0x38] sm:$0xff]   ;;  %v7827_v44 = vld [vmem:[%s10500_s22 + $0x70] sm:$0xff]   ;;  %6835 = vmatprep.subr.bf16.mxu0 %v7825_v42  ;;  %v7829_v46 = vld [vmem:[%s10500_s22 + $0x68] sm:$0xff]  }
  0x1f   : > { %6836 = vmatpush3.bf16.msra.mxu0 %v7826_v43  ;;  %v7828_v45 = vld [vmem:[%s10500_s22 + $0x30] sm:$0xff]   ;;  %v7830_v47 = vld [vmem:[%s10500_s22 + $0x28] sm:$0xff]   ;;  %v7831_v48 = vld [vmem:[%s10500_s22 + $0x60] sm:$0xff]  }
  0x20   : > { %6837 = vmatprep.subr.bf16.mxu0 %v7827_v44  ;;  %v7832_v49 = vld [vmem:[%s10500_s22 + $0x20] sm:$0xff]   ;;  %v7833_v50 = vld [vmem:[%s10500_s22 + $0x58] sm:$0xff]  }
  0x21   : > { %994 = vmatpush1.bf16.msra.mxu1 %v7812_v19  ;;  %7323 = vmatmul.mubr.msk.bf16.gmra.mxu0 %vm732_vm0, %v719_v24  ;;  %v7834_v51 = vld [vmem:[%s10500_s22 + $0x18] sm:$0xff]   ;;  %v715_v54 = vld [vmem:[%s10501_s0] ss:$0 sm:$0xff]  ;;  %s8811_s24 = scalar_lea.vmem %s10502_s30, %s8447_s25 }
  0x22   : > { %995 = vmatprep.subr.bf16.mxu1 %v7813_v22  ;;  %7326 = vmatprep.mubr.msk.bf16.mxu0 %vm732_vm0, %v720_v25 }
  0x23   : > { %6838 = vmatpush3.bf16.msra.mxu0 %v7828_v45 }
  0x24   : > { %6839 = vmatprep.subr.bf16.mxu0 %v7829_v46  ;;  %v7835_v46 = vld [vmem:[%s10500_s22 + $0x50] sm:$0xff]  }
  0x25   : > { %996 = vmatpush1.bf16.msra.mxu1 %v7815_v23 }
  0x26   : > { %997 = vmatprep.subr.bf16.mxu1 %v7816_v35 }
  0x27   : > { %6840 = vmatpush3.bf16.msra.mxu0 %v7830_v47  ;;  %v7836_v47 = vld [vmem:[%s10500_s22 + $0x10] sm:$0xff]  }
  0x28   : > { %6841 = vmatprep.subr.bf16.mxu0 %v7831_v48  ;;  %v7837_v48 = vld [vmem:[%s10500_s22 + $0x48] sm:$0xff]  }
  0x29   : > { %7327 = vmatmul.mubr.msk.bf16.gmra.mxu0 %vm732_vm0, %v721_v30  ;;  %998 = vmatpush1.bf16.msra.mxu1 %v7818_v36 }
  0x2a   : > { %7330 = vmatprep.mubr.msk.bf16.mxu0 %vm732_vm0, %v722_v31  ;;  %999 = vmatprep.subr.bf16.mxu1 %v7819_v37 }
  0x2b   : > { %6842 = vmatpush3.bf16.msra.mxu0 %v7832_v49  ;;  %v7838_v49 = vld [vmem:[%s10500_s22 + $0x8] sm:$0xff]  }
  0x2c   : > { %6843 = vmatprep.subr.bf16.mxu0 %v7833_v50  ;;  %v7839_v50 = vld [vmem:[%s10500_s22 + $0x40] sm:$0xff]  }
  0x2d   : > { %1000 = vmatpush1.bf16.msra.mxu1 %v7821_v38 }
  0x2e   : > { %1001 = vmatprep.subr.bf16.mxu1 %v7822_v39 }
  0x2f   : > { %6844 = vmatpush3.bf16.msra.mxu0 %v7834_v51  ;;  %v7840_v51 = vld [vmem:[%s10500_s22] sm:$0xff]  }
  0x30   : > { %6845 = vmatprep.subr.bf16.mxu0 %v7835_v46 }
  0x31   : > { %7331 = vmatmul.mubr.msk.bf16.gmra.mxu0 %vm732_vm0, %v723_v34  ;;  %1002 = vmatpush1.bf16.msra.mxu1 %v7824_v40 }
  0x33   : > { %6846 = vmatpush3.bf16.msra.mxu0 %v7836_v47 }
  0x34   : > { %6847 = vmatprep.subr.bf16.mxu0 %v7837_v48 }
  0x37   : > { %6848 = vmatpush3.bf16.msra.mxu0 %v7838_v49 }
  0x38   : > { %6849 = vmatprep.subr.bf16.mxu0 %v7839_v50 }
  0x3b   : > { %6850 = vmatpush3.bf16.msra.mxu0 %v7840_v51 }
  0xd9   : > { %v7320_v52 = vpop.f32.mrf.mxu0 }
  0xda   : > { %v800_v2 = vadd.f32 %v7320_v52, %v715_v54  ;;  %v7841_v52 = vld [vmem:[%s10471_s6 + $0x38] sm:$0xff]  }
  0xdb   : > { %v791_v53 = vpop.f32.mrf.mxu0  ;;  %7334 = vmatprep.subr.bf16.mxu1 %v7841_v52 }
  0xdc   : > { %v792_v56 = vadd.f32 %v791_v53, %v715_v54  ;;  %v856_v5 = vmax.f32 %v800_v2, 0.0  ;;  %v7842_v53 = vld [vmem:[%s10471_s6 + $0x30] sm:$0xff]  }
  0xdd   : > { %v7321_v55 = vpop.f32.mrf.mxu0 }
  0xde   : > { %v854_v60 = vmax.f32 %v792_v56, 0.0  ;;  %v803_v63 = vadd.f32 %v7321_v55, %v715_v54  ;;  %v897_v55 = vlaneseq }
  0xdf   : > { %v794_v57 = vpop.f32.mrf.mxu0 }
  0xe0   : > { %v795_v58 = vadd.f32 %v794_v57, %v715_v54  ;;  %v857_v3 = vmax.f32 %v803_v63, 0.0  ;;  %v898_v56 = vshrl.u32 %v897_v55, 7 }
  0xe1   : > { %v7324_v59 = vpop.f32.mrf.mxu0 }
  0xe2   : > { %v855_v61 = vmax.f32 %v795_v58, 0.0  ;;  %v873_v6 = vpack.c.bf16 %v857_v3, %v856_v5  ;;  %v816_v13 = vadd.f32 %v7324_v59, %v715_v54  ;;  %v8585_v57 = vsub.s32 1, %v898_v56  ;;  %v6572_v59 = vld [vmem:[%s10501_s0 + $0x1] ss:$8 sm:$0x3] }
  0xe3   : > { %v807_v62 = vpop.f32.mrf.mxu0  ;;  %v8587_v58 = vsub.s32 0, %v898_v56 }
  0xe4   : > { %v872_v0 = vpack.c.bf16 %v855_v61, %v854_v60  ;;  %v808_v7 = vadd.f32 %v807_v62, %v715_v54  ;;  %v860_v17 = vmax.f32 %v816_v13, 0.0  ;;  %v8593_v61 = vrot.slane %v6572_v59, %v8585_v57 }
  0xe5   : > { %v7325_v1 = vpop.f32.mrf.mxu0  ;;  %v8596_v62 = vrot.slane %v6572_v59, %v8587_v58 }
  0xe6   : > { %1020 = vmatmul.mubr.bf16.vlgmr.msra.gmra.mxu1 %v872_v0  ;;  %v858_v10 = vmax.f32 %v808_v7, 0.0  ;;  %v819_v14 = vadd.f32 %v7325_v1, %v715_v54 }
  0xe7   : > { %1029 = vmatprep.mubr.bf16.mxu1 %v8311_v41  ;;  %v810_v4 = vpop.f32.mrf.mxu0  ;;  %7335 = vmatpush3.bf16.msra.mxu1 %v7841_v52 }
  0xe8   : > { %v811_v8 = vadd.f32 %v810_v4, %v715_v54  ;;  %v861_v18 = vmax.f32 %v819_v14, 0.0  ;;  %7336 = vmatprep.subr.bf16.mxu1 %v7842_v53 }
  0xe9   : > { %v7328_v9 = vpop.f32.mrf.mxu0 }
  0xea   : > { %v859_v11 = vmax.f32 %v811_v8, 0.0  ;;  %v875_v20 = vpack.c.bf16 %v861_v18, %v860_v17  ;;  %v832_v27 = vadd.f32 %v7328_v9, %v715_v54 }
  0xeb   : > { %v823_v12 = vpop.f32.mrf.mxu0  ;;  %7337 = vmatpush3.bf16.msra.mxu1 %v7842_v53 }
  0xec   : > { %v874_v15 = vpack.c.bf16 %v859_v11, %v858_v10  ;;  %v824_v21 = vadd.f32 %v823_v12, %v715_v54  ;;  %v864_v31 = vmax.f32 %v832_v27, 0.0 }
  0xed   : > { %v7329_v16 = vpop.f32.mrf.mxu0 }
  0xee   : > { %1030 = vmatmul.mubr.bf16.gmra.mxu1 %v873_v6  ;;  %v862_v24 = vmax.f32 %v824_v21, 0.0  ;;  %v835_v28 = vadd.f32 %v7329_v16, %v715_v54 }
  0xef   : > { %1039 = vmatprep.mubr.bf16.mxu1 %v8311_v41  ;;  %v826_v19 = vpop.f32.mrf.mxu0 }
  0xf0   : > { %v827_v22 = vadd.f32 %v826_v19, %v715_v54  ;;  %v865_v32 = vmax.f32 %v835_v28, 0.0 }
  0xf1   : > { %v7332_v23 = vpop.f32.mrf.mxu0 }
  0xf2   : > { %v863_v25 = vmax.f32 %v827_v22, 0.0  ;;  %v877_v34 = vpack.c.bf16 %v865_v32, %v864_v31  ;;  %v848_v39 = vadd.f32 %v7332_v23, %v715_v54 }
  0xf3   : > { %v839_v26 = vpop.f32.mrf.mxu0 }
  0xf4   : > { %v876_v29 = vpack.c.bf16 %v863_v25, %v862_v24  ;;  %v840_v35 = vadd.f32 %v839_v26, %v715_v54  ;;  %v868_v43 = vmax.f32 %v848_v39, 0.0 }
  0xf5   : > { %v7333_v30 = vpop.f32.mrf.mxu0 }
  0xf6   : > { %1040 = vmatmul.mubr.bf16.gmra.mxu1 %v874_v15  ;;  %v866_v37 = vmax.f32 %v840_v35, 0.0  ;;  %v851_v40 = vadd.f32 %v7333_v30, %v715_v54 }
  0xf7   : > { %1049 = vmatprep.mubr.bf16.mxu1 %v8311_v41  ;;  %v842_v33 = vpop.f32.mrf.mxu0 }
  0xf8   : > { %v843_v36 = vadd.f32 %v842_v33, %v715_v54  ;;  %v869_v44 = vmax.f32 %v851_v40, 0.0  ;;  %v7843_v54 = vld [vmem:[%s10471_s6 + $0x28] sm:$0xff]  }
  0xf9   : > { %7338 = vmatprep.subr.bf16.mxu1 %v7843_v54 }
  0xfa   : > { %v867_v38 = vmax.f32 %v843_v36, 0.0  ;;  %v879_v45 = vpack.c.bf16 %v869_v44, %v868_v43  ;;  %7339 = vmatpush3.bf16.msra.mxu1 %v7843_v54 }
  0xfc   : > { %v878_v42 = vpack.c.bf16 %v867_v38, %v866_v37 }
  0xfe   : > { %1050 = vmatmul.mubr.bf16.gmra.mxu1 %v875_v20 }
  0xff   : > { %1059 = vmatprep.mubr.bf16.mxu1 %v8311_v41 }
 0x106   : > { %1060 = vmatmul.mubr.bf16.gmra.mxu1 %v876_v29 }
 0x107   : > { %1069 = vmatprep.mubr.bf16.mxu1 %v8311_v41 }
 0x10e   : > { %1070 = vmatmul.mubr.bf16.gmra.mxu1 %v877_v34 }
 0x10f   : > { %1079 = vmatprep.mubr.bf16.mxu1 %v8311_v41 }
 0x116   : > { %1080 = vmatmul.mubr.bf16.gmra.mxu1 %v878_v42 }
 0x117   : > { %1089 = vmatprep.mubr.bf16.mxu1 %v8311_v41 }
 0x11e   : > { %1090 = vmatmul.mubr.bf16.gmra.mxu1 %v879_v45 }
 0x1a6   : > { %v1021_v60 = vpop.f32.mrf.mxu1 }
 0x1a7   : > { %v1022_v3 = vadd.f32 %v1021_v60, %v8596_v62 }
 0x1a8   : > { %v1023_v63 = vpop.f32.mrf.mxu1 }
 0x1a9   : > { %v1024_v1 = vadd.f32 %v1023_v63, %v8593_v61  ;;  %v1100_v10 = vmax.f32 %v1022_v3, 0.0 }
 0x1aa   : > { %v1025_v0 = vpop.f32.mrf.mxu1 }
 0x1ab   : > { %v1026_v2 = vadd.f32 %v1025_v0, %v8596_v62  ;;  %v1101_v8 = vmax.f32 %v1024_v1, 0.0 }
 0x1ac   : > { %v1027_v4 = vpop.f32.mrf.mxu1 }
 0x1ad   : > { %v1028_v5 = vadd.f32 %v1027_v4, %v8593_v61  ;;  %v1102_v6 = vmax.f32 %v1026_v2, 0.0 }
 0x1ae   : > { %v1031_v7 = vpop.f32.mrf.mxu1 }
 0x1af   : > { %v1103_v9 = vmax.f32 %v1028_v5, 0.0  ;;  %v1133_v13 = vpack.c.bf16 %v1102_v6, %v1100_v10  ;;  %v1032_v17 = vadd.f32 %v1031_v7, %v8596_v62 }
 0x1b0   : > { %v1033_v11 = vpop.f32.mrf.mxu1 }
 0x1b1   : > { %v1134_v12 = vpack.c.bf16 %v1103_v9, %v1101_v8  ;;  %v1034_v15 = vadd.f32 %v1033_v11, %v8593_v61  ;;  %v1104_v24 = vmax.f32 %v1032_v17, 0.0 }
 0x1b2   : > { %v1035_v14 = vpop.f32.mrf.mxu1 }
 0x1b3   : > { %v1036_v16 = vadd.f32 %v1035_v14, %v8596_v62  ;;  %1309 = vmatprep.mubr.bf16.mxu0 %v1134_v12  ;;  %v1105_v22 = vmax.f32 %v1034_v15, 0.0 }
 0x1b4   : > { %v1037_v18 = vpop.f32.mrf.mxu1  ;;  %1310 = vmatmul.mubr.bf16.vlgmr.msra.gmra.mxu0 %v1133_v13 }
 0x1b5   : > { %v1038_v19 = vadd.f32 %v1037_v18, %v8593_v61  ;;  %v1106_v20 = vmax.f32 %v1036_v16, 0.0 }
 0x1b6   : > { %v1041_v21 = vpop.f32.mrf.mxu1 }
 0x1b7   : > { %v1107_v23 = vmax.f32 %v1038_v19, 0.0  ;;  %v1135_v27 = vpack.c.bf16 %v1106_v20, %v1104_v24  ;;  %v1042_v31 = vadd.f32 %v1041_v21, %v8596_v62 }
 0x1b8   : > { %v1043_v25 = vpop.f32.mrf.mxu1 }
 0x1b9   : > { %v1136_v26 = vpack.c.bf16 %v1107_v23, %v1105_v22  ;;  %v1044_v29 = vadd.f32 %v1043_v25, %v8593_v61  ;;  %v1108_v38 = vmax.f32 %v1042_v31, 0.0 }
 0x1ba   : > { %v1045_v28 = vpop.f32.mrf.mxu1 }
 0x1bb   : > { %v1046_v30 = vadd.f32 %v1045_v28, %v8596_v62  ;;  %1317 = vmatprep.mubr.bf16.mxu0 %v1136_v26  ;;  %v1109_v36 = vmax.f32 %v1044_v29, 0.0 }
 0x1bc   : > { %v1047_v32 = vpop.f32.mrf.mxu1  ;;  %1318 = vmatmul.mubr.bf16.gmra.mxu0 %v1135_v27 }
 0x1bd   : > { %v1048_v33 = vadd.f32 %v1047_v32, %v8593_v61  ;;  %v1110_v34 = vmax.f32 %v1046_v30, 0.0 }
 0x1be   : > { %v1051_v35 = vpop.f32.mrf.mxu1 }
 0x1bf   : > { %v1111_v37 = vmax.f32 %v1048_v33, 0.0  ;;  %v1137_v42 = vpack.c.bf16 %v1110_v34, %v1108_v38  ;;  %v1052_v46 = vadd.f32 %v1051_v35, %v8596_v62 }
 0x1c0   : > { %v1053_v39 = vpop.f32.mrf.mxu1 }
 0x1c1   : > { %v1138_v40 = vpack.c.bf16 %v1111_v37, %v1109_v36  ;;  %v1054_v44 = vadd.f32 %v1053_v39, %v8593_v61  ;;  %v1112_v53 = vmax.f32 %v1052_v46, 0.0 }
 0x1c2   : > { %v1055_v43 = vpop.f32.mrf.mxu1 }
 0x1c3   : > { %v1056_v45 = vadd.f32 %v1055_v43, %v8596_v62  ;;  %1325 = vmatprep.mubr.bf16.mxu0 %v1138_v40  ;;  %v1113_v51 = vmax.f32 %v1054_v44, 0.0 }
 0x1c4   : > { %v1057_v47 = vpop.f32.mrf.mxu1  ;;  %1326 = vmatmul.mubr.bf16.gmra.mxu0 %v1137_v42 }
 0x1c5   : > { %v1058_v48 = vadd.f32 %v1057_v47, %v8593_v61  ;;  %v1114_v49 = vmax.f32 %v1056_v45, 0.0 }
 0x1c6   : > { %v1061_v50 = vpop.f32.mrf.mxu1 }
 0x1c7   : > { %v1115_v52 = vmax.f32 %v1058_v48, 0.0  ;;  %v1139_v56 = vpack.c.bf16 %v1114_v49, %v1112_v53  ;;  %v1062_v0 = vadd.f32 %v1061_v50, %v8596_v62  ;;  %v7847_v53 = vld [vmem:[%s10471_s6 + $0x8] sm:$0xff]  }
 0x1c8   : > { %v1063_v54 = vpop.f32.mrf.mxu1 }
 0x1c9   : > { %v1140_v55 = vpack.c.bf16 %v1115_v52, %v1113_v51  ;;  %v1064_v60 = vadd.f32 %v1063_v54, %v8593_v61  ;;  %v1116_v7 = vmax.f32 %v1062_v0, 0.0  ;;  %v7844_v52 = vld [vmem:[%s10471_s6 + $0x20] sm:$0xff]  }
 0x1ca   : > { %v1065_v59 = vpop.f32.mrf.mxu1  ;;  %7340 = vmatprep.subr.bf16.mxu1 %v7844_v52  ;;  %v7848_v54 = vld [vmem:[%s10471_s6] sm:$0xff]  }
 0x1cb   : > { %v1066_v63 = vadd.f32 %v1065_v59, %v8596_v62  ;;  %1333 = vmatprep.mubr.bf16.mxu0 %v1140_v55  ;;  %v1117_v5 = vmax.f32 %v1064_v60, 0.0  ;;  %7341 = vmatpush3.bf16.msra.mxu1 %v7844_v52  ;;  %v7849_v55 = vld [vmem:[%s10472_s7 + $0x8] sm:$0xff]  }
 0x1cc   : > { %v1067_v1 = vpop.f32.mrf.mxu1  ;;  %1334 = vmatmul.mubr.bf16.gmra.mxu0 %v1139_v56  ;;  %7366 = vmatprep.subr.bf16.mxu0 %v7849_v55 }
 0x1cd   : > { %v1068_v2 = vadd.f32 %v1067_v1, %v8593_v61  ;;  %v1118_v3 = vmax.f32 %v1066_v63, 0.0  ;;  %7367 = vmatpush3.bf16.msra.mxu0 %v7849_v55  ;;  %v8651_v63 = vld [vmem:[%s10501_s0 + $0x2] ss:$0 sm:$0xff] }
 0x1ce   : > { %v1071_v4 = vpop.f32.mrf.mxu1 }
 0x1cf   : > { %v1119_v6 = vmax.f32 %v1068_v2, 0.0  ;;  %v1141_v10 = vpack.c.bf16 %v1118_v3, %v1116_v7  ;;  %v1072_v14 = vadd.f32 %v1071_v4, %v8596_v62 }
 0x1d0   : > { %v1073_v8 = vpop.f32.mrf.mxu1 }
 0x1d1   : > { %v1142_v9 = vpack.c.bf16 %v1119_v6, %v1117_v5  ;;  %v1074_v12 = vadd.f32 %v1073_v8, %v8593_v61  ;;  %v1120_v21 = vmax.f32 %v1072_v14, 0.0 }
 0x1d2   : > { %v1075_v11 = vpop.f32.mrf.mxu1 }
 0x1d3   : > { %v1076_v13 = vadd.f32 %v1075_v11, %v8596_v62  ;;  %1341 = vmatprep.mubr.bf16.mxu0 %v1142_v9  ;;  %v1121_v19 = vmax.f32 %v1074_v12, 0.0 }
 0x1d4   : > { %v1077_v15 = vpop.f32.mrf.mxu1  ;;  %1342 = vmatmul.mubr.bf16.gmra.mxu0 %v1141_v10 }
 0x1d5   : > { %v1078_v16 = vadd.f32 %v1077_v15, %v8593_v61  ;;  %v1122_v17 = vmax.f32 %v1076_v13, 0.0 }
 0x1d6   : > { %v1081_v18 = vpop.f32.mrf.mxu1 }
 0x1d7   : > { %v1123_v20 = vmax.f32 %v1078_v16, 0.0  ;;  %v1143_v24 = vpack.c.bf16 %v1122_v17, %v1120_v21  ;;  %v1082_v28 = vadd.f32 %v1081_v18, %v8596_v62 }
 0x1d8   : > { %v1083_v22 = vpop.f32.mrf.mxu1 }
 0x1d9   : > { %v1144_v23 = vpack.c.bf16 %v1123_v20, %v1121_v19  ;;  %v1084_v26 = vadd.f32 %v1083_v22, %v8593_v61  ;;  %v1124_v35 = vmax.f32 %v1082_v28, 0.0 }
 0x1da   : > { %v1085_v25 = vpop.f32.mrf.mxu1 }
 0x1db   : > { %v1086_v27 = vadd.f32 %v1085_v25, %v8596_v62  ;;  %1349 = vmatprep.mubr.bf16.mxu0 %v1144_v23  ;;  %v1125_v33 = vmax.f32 %v1084_v26, 0.0 }
 0x1dc   : > { %v1087_v29 = vpop.f32.mrf.mxu1  ;;  %1350 = vmatmul.mubr.bf16.gmra.mxu0 %v1143_v24 }
 0x1dd   : > { %v1088_v30 = vadd.f32 %v1087_v29, %v8593_v61  ;;  %v1126_v31 = vmax.f32 %v1086_v27, 0.0 }
 0x1de   : > { %v1091_v32 = vpop.f32.mrf.mxu1 }
 0x1df   : > { %v1127_v34 = vmax.f32 %v1088_v30, 0.0  ;;  %v1145_v38 = vpack.c.bf16 %v1126_v31, %v1124_v35  ;;  %v1092_v43 = vadd.f32 %v1091_v32, %v8596_v62 }
 0x1e0   : > { %v1093_v36 = vpop.f32.mrf.mxu1 }
 0x1e1   : > { %v1146_v37 = vpack.c.bf16 %v1127_v34, %v1125_v33  ;;  %v1094_v40 = vadd.f32 %v1093_v36, %v8593_v61  ;;  %v1128_v49 = vmax.f32 %v1092_v43, 0.0 }
 0x1e2   : > { %v1095_v39 = vpop.f32.mrf.mxu1 }
 0x1e3   : > { %v1096_v42 = vadd.f32 %v1095_v39, %v8596_v62  ;;  %1357 = vmatprep.mubr.bf16.mxu0 %v1146_v37  ;;  %v1129_v47 = vmax.f32 %v1094_v40, 0.0  ;;  %v7845_v62 = vld [vmem:[%s10471_s6 + $0x18] sm:$0xff]  }
 0x1e4   : > { %v1097_v44 = vpop.f32.mrf.mxu1  ;;  %1358 = vmatmul.mubr.bf16.gmra.mxu0 %v1145_v38  ;;  %7342 = vmatprep.subr.bf16.mxu1 %v7845_v62 }
 0x1e5   : > { %v1098_v45 = vadd.f32 %v1097_v44, %v8593_v61  ;;  %v1130_v46 = vmax.f32 %v1096_v42, 0.0  ;;  %7343 = vmatpush3.bf16.msra.mxu1 %v7845_v62  ;;  %v7846_v61 = vld [vmem:[%s10471_s6 + $0x10] sm:$0xff]  }
 0x1e6   : > { %7344 = vmatprep.subr.bf16.mxu1 %v7846_v61 }
 0x1e7   : > { %v1131_v48 = vmax.f32 %v1098_v45, 0.0  ;;  %v1147_v51 = vpack.c.bf16 %v1130_v46, %v1128_v49 }
 0x1e9   : > { %v1148_v50 = vpack.c.bf16 %v1131_v48, %v1129_v47  ;;  %7345 = vmatpush3.bf16.msra.mxu1 %v7846_v61 }
 0x1ea   : > { %7346 = vmatprep.subr.bf16.mxu1 %v7847_v53 }
 0x1eb   : > { %1365 = vmatprep.mubr.bf16.mxu0 %v1148_v50 }
 0x1ec   : > { %1366 = vmatmul.mubr.bf16.gmra.mxu0 %v1147_v51 }
 0x1ed   : > { %7347 = vmatpush3.bf16.msra.mxu1 %v7847_v53 }
 0x1ee   : > { %7348 = vmatprep.subr.bf16.mxu1 %v7848_v54 }
 0x1f1   : > { %7349 = vmatpush3.bf16.msra.mxu1 %v7848_v54 }
 0x274   : > { %v6851_v56 = vpop.f32.mrf.mxu0 }
 0x276   : > { %v6852_v59 = vpop.f32.mrf.mxu0 }
 0x277   : > { %v6853_v60 = vadd.f32 %v6852_v59, %v6851_v56 }
 0x278   : > { %v6854_v0 = vpop.f32.mrf.mxu0 }
 0x279   : > { %v1312_v2 = vadd.f32 %v6853_v60, %v8651_v63 }
 0x27a   : > { %v6855_v1 = vpop.f32.mrf.mxu0 }
 0x27b   : > { %v6856_v3 = vadd.f32 %v6855_v1, %v6854_v0  ;;  %v1374_v7 = vmax.f32 %v1312_v2, 0.0 }
 0x27c   : > { %v6857_v4 = vpop.f32.mrf.mxu0 }
 0x27d   : > { %v1315_v5 = vadd.f32 %v6856_v3, %v8651_v63 }
 0x27e   : > { %v6858_v6 = vpop.f32.mrf.mxu0 }
 0x27f   : > { %v1375_v8 = vmax.f32 %v1315_v5, 0.0  ;;  %v6859_v9 = vadd.f32 %v6858_v6, %v6857_v4 }
 0x280   : > { %v6860_v10 = vpop.f32.mrf.mxu0 }
 0x281   : > { %v1391_v11 = vpack.c.bf16 %v1375_v8, %v1374_v7  ;;  %v1320_v13 = vadd.f32 %v6859_v9, %v8651_v63 }
 0x282   : > { %v6861_v12 = vpop.f32.mrf.mxu0 }
 0x283   : > { %v6862_v14 = vadd.f32 %v6861_v12, %v6860_v10  ;;  %7350 = vmatprep.mubr.bf16.mxu1 %v1391_v11  ;;  %v1376_v18 = vmax.f32 %v1320_v13, 0.0 }
 0x284   : > { %v6863_v15 = vpop.f32.mrf.mxu0 }
 0x285   : > { %v1323_v16 = vadd.f32 %v6862_v14, %v8651_v63 }
 0x286   : > { %v6864_v17 = vpop.f32.mrf.mxu0 }
 0x287   : > { %v1377_v19 = vmax.f32 %v1323_v16, 0.0  ;;  %v6865_v20 = vadd.f32 %v6864_v17, %v6863_v15 }
 0x288   : > { %v6866_v21 = vpop.f32.mrf.mxu0 }
 0x289   : > { %v1392_v22 = vpack.c.bf16 %v1377_v19, %v1376_v18  ;;  %v1328_v24 = vadd.f32 %v6865_v20, %v8651_v63 }
 0x28a   : > { %v6867_v23 = vpop.f32.mrf.mxu0 }
 0x28b   : > { %v6868_v25 = vadd.f32 %v6867_v23, %v6866_v21  ;;  %7351 = vmatmul.mubr.bf16.vlgmr.msra.gmra.mxu1 %v1392_v22  ;;  %v1378_v29 = vmax.f32 %v1328_v24, 0.0 }
 0x28c   : > { %v6869_v26 = vpop.f32.mrf.mxu0 }
 0x28d   : > { %v1331_v27 = vadd.f32 %v6868_v25, %v8651_v63  ;;  %v7850_v25 = vld [vmem:[%s10472_s7] sm:$0xff]  }
 0x28e   : > { %v6870_v28 = vpop.f32.mrf.mxu0  ;;  %7368 = vmatprep.subr.bf16.mxu0 %v7850_v25 }
 0x28f   : > { %v1379_v30 = vmax.f32 %v1331_v27, 0.0  ;;  %v6871_v31 = vadd.f32 %v6870_v28, %v6869_v26  ;;  %7369 = vmatpush3.bf16.msra.mxu0 %v7850_v25 }
 0x290   : > { %v6872_v32 = vpop.f32.mrf.mxu0 }
 0x291   : > { %v1393_v33 = vpack.c.bf16 %v1379_v30, %v1378_v29  ;;  %v1336_v35 = vadd.f32 %v6871_v31, %v8651_v63  ;;  %v1390_v29 = vld [vmem:[%s10501_s0 + $0x3] ss:$0 sm:$0xff] }
 0x292   : > { %v6873_v34 = vpop.f32.mrf.mxu0 }
 0x293   : > { %v6874_v36 = vadd.f32 %v6873_v34, %v6872_v32  ;;  %7354 = vmatprep.mubr.bf16.mxu1 %v1393_v33  ;;  %v1380_v40 = vmax.f32 %v1336_v35, 0.0 }
 0x294   : > { %v6875_v37 = vpop.f32.mrf.mxu0 }
 0x295   : > { %v1339_v38 = vadd.f32 %v6874_v36, %v8651_v63 }
 0x296   : > { %v6876_v39 = vpop.f32.mrf.mxu0 }
 0x297   : > { %v1381_v42 = vmax.f32 %v1339_v38, 0.0  ;;  %v6877_v43 = vadd.f32 %v6876_v39, %v6875_v37 }
 0x298   : > { %v6878_v44 = vpop.f32.mrf.mxu0 }
 0x299   : > { %v1394_v45 = vpack.c.bf16 %v1381_v42, %v1380_v40  ;;  %v1344_v47 = vadd.f32 %v6877_v43, %v8651_v63 }
 0x29a   : > { %v6879_v46 = vpop.f32.mrf.mxu0 }
 0x29b   : > { %v6880_v48 = vadd.f32 %v6879_v46, %v6878_v44  ;;  %7355 = vmatmul.mubr.bf16.gmra.mxu1 %v1394_v45  ;;  %v1382_v52 = vmax.f32 %v1344_v47, 0.0 }
 0x29c   : > { %v6881_v49 = vpop.f32.mrf.mxu0 }
 0x29d   : > { %v1347_v50 = vadd.f32 %v6880_v48, %v8651_v63 }
 0x29e   : > { %v6882_v51 = vpop.f32.mrf.mxu0 }
 0x29f   : > { %v1383_v62 = vmax.f32 %v1347_v50, 0.0  ;;  %v6883_v61 = vadd.f32 %v6882_v51, %v6881_v49 }
 0x2a0   : > { %v6884_v53 = vpop.f32.mrf.mxu0 }
 0x2a1   : > { %v1395_v54 = vpack.c.bf16 %v1383_v62, %v1382_v52  ;;  %v1352_v56 = vadd.f32 %v6883_v61, %v8651_v63 }
 0x2a2   : > { %v6885_v55 = vpop.f32.mrf.mxu0 }
 0x2a3   : > { %v6886_v59 = vadd.f32 %v6885_v55, %v6884_v53  ;;  %7358 = vmatprep.mubr.bf16.mxu1 %v1395_v54  ;;  %v1384_v2 = vmax.f32 %v1352_v56, 0.0 }
 0x2a4   : > { %v6887_v60 = vpop.f32.mrf.mxu0 }
 0x2a5   : > { %v1355_v0 = vadd.f32 %v6886_v59, %v8651_v63 }
 0x2a6   : > { %v6888_v1 = vpop.f32.mrf.mxu0 }
 0x2a7   : > { %v1385_v3 = vmax.f32 %v1355_v0, 0.0  ;;  %v6889_v4 = vadd.f32 %v6888_v1, %v6887_v60 }
 0x2a8   : > { %v6890_v5 = vpop.f32.mrf.mxu0 }
 0x2a9   : > { %v1396_v6 = vpack.c.bf16 %v1385_v3, %v1384_v2  ;;  %v1360_v8 = vadd.f32 %v6889_v4, %v8651_v63 }
 0x2aa   : > { %v6891_v7 = vpop.f32.mrf.mxu0 }
 0x2ab   : > { %v6892_v9 = vadd.f32 %v6891_v7, %v6890_v5  ;;  %7359 = vmatmul.mubr.bf16.gmra.mxu1 %v1396_v6  ;;  %v1386_v13 = vmax.f32 %v1360_v8, 0.0  ;;  %v8312_v6 = vmov 0.0   ;;  %v8689_v7 = vld [vmem:[%s10501_s0 + $0x5] ss:$0 sm:$0xff] }
 0x2ac   : > { %v6893_v10 = vpop.f32.mrf.mxu0  ;;  %7386 = vmatprep.subr.mxu1 %v8312_v6 }
 0x2ad   : > { %v1363_v11 = vadd.f32 %v6892_v9, %v8651_v63 }
 0x2ae   : > { %v6894_v12 = vpop.f32.mrf.mxu0 }
 0x2af   : > { %v1387_v14 = vmax.f32 %v1363_v11, 0.0  ;;  %v6895_v15 = vadd.f32 %v6894_v12, %v6893_v10 }
 0x2b0   : > { %v6896_v16 = vpop.f32.mrf.mxu0 }
 0x2b1   : > { %v1397_v17 = vpack.c.bf16 %v1387_v14, %v1386_v13  ;;  %v1368_v19 = vadd.f32 %v6895_v15, %v8651_v63 }
 0x2b2   : > { %v6897_v18 = vpop.f32.mrf.mxu0 }
 0x2b3   : > { %v6898_v20 = vadd.f32 %v6897_v18, %v6896_v16  ;;  %7362 = vmatprep.mubr.bf16.mxu1 %v1397_v17  ;;  %v1388_v22 = vmax.f32 %v1368_v19, 0.0 }
 0x2b5   : > { %v1371_v21 = vadd.f32 %v6898_v20, %v8651_v63 }
 0x2b7   : > { %v1389_v23 = vmax.f32 %v1371_v21, 0.0 }
 0x2b9   : > { %v1398_v24 = vpack.c.bf16 %v1389_v23, %v1388_v22 }
 0x2bb   : > { %7363 = vmatmul.mubr.bf16.gmra.mxu1 %v1398_v24 }
 0x2bc   : > { %7418 = vmatprep.mubr.msk.f32.mxu1 %vm8313_vm2, %v8312_v6 }
 0x34b   : > { %v7352_v26 = vpop.f32.mrf.mxu1 }
 0x34c   : > { %v1506_v33 = vadd.f32 %v7352_v26, %v1390_v29 }
 0x34d   : > { %v1497_v27 = vpop.f32.mrf.mxu1 }
 0x34e   : > { %v1498_v63 = vadd.f32 %v1497_v27, %v1390_v29 }
 0x34f   : > { %v7353_v28 = vpop.f32.mrf.mxu1 }
 0x350   : > { %v1509_v30 = vadd.f32 %v7353_v28, %v1390_v29 }
 0x351   : > { %v1500_v31 = vpop.f32.mrf.mxu1 }
 0x352   : > { %v1501_v32 = vadd.f32 %v1500_v31, %v1390_v29  ;;  %v1565_v35 = vpack.c.bf16 %v1509_v30, %v1506_v33 }
 0x354   : > { %v1564_v34 = vpack.c.bf16 %v1501_v32, %v1498_v63 }
 0x356   : > { %7370 = vmatprep.mubr.msk.bf16.mxu0 %vm1588_vm1, %v1564_v34 }
 0x357   : > { %7371 = vmatmul.mubr.msk.bf16.vlgmr.msra.gmra.mxu0 %vm1588_vm1, %v1565_v35 }
 0x35b   : > { %v7356_v36 = vpop.f32.mrf.mxu1 }
 0x35c   : > { %v1522_v44 = vadd.f32 %v7356_v36, %v1390_v29 }
 0x35d   : > { %v1513_v37 = vpop.f32.mrf.mxu1 }
 0x35e   : > { %v1514_v42 = vadd.f32 %v1513_v37, %v1390_v29 }
 0x35f   : > { %v7357_v38 = vpop.f32.mrf.mxu1 }
 0x360   : > { %v1525_v39 = vadd.f32 %v7357_v38, %v1390_v29 }
 0x361   : > { %v1516_v40 = vpop.f32.mrf.mxu1 }
 0x362   : > { %v1517_v43 = vadd.f32 %v1516_v40, %v1390_v29  ;;  %v1567_v46 = vpack.c.bf16 %v1525_v39, %v1522_v44 }
 0x364   : > { %v1566_v45 = vpack.c.bf16 %v1517_v43, %v1514_v42 }
 0x366   : > { %7374 = vmatprep.mubr.msk.bf16.mxu0 %vm1588_vm1, %v1566_v45 }
 0x367   : > { %7375 = vmatmul.mubr.msk.bf16.gmra.mxu0 %vm1588_vm1, %v1567_v46 }
 0x36b   : > { %v7360_v47 = vpop.f32.mrf.mxu1 }
 0x36c   : > { %v1538_v61 = vadd.f32 %v7360_v47, %v1390_v29 }
 0x36d   : > { %v1529_v48 = vpop.f32.mrf.mxu1 }
 0x36e   : > { %v1530_v52 = vadd.f32 %v1529_v48, %v1390_v29 }
 0x36f   : > { %v7361_v49 = vpop.f32.mrf.mxu1 }
 0x370   : > { %v1541_v50 = vadd.f32 %v7361_v49, %v1390_v29 }
 0x371   : > { %v1532_v51 = vpop.f32.mrf.mxu1 }
 0x372   : > { %v1533_v62 = vadd.f32 %v1532_v51, %v1390_v29  ;;  %v1569_v54 = vpack.c.bf16 %v1541_v50, %v1538_v61 }
 0x374   : > { %v1568_v53 = vpack.c.bf16 %v1533_v62, %v1530_v52 }
 0x376   : > { %7378 = vmatprep.mubr.msk.bf16.mxu0 %vm1588_vm1, %v1568_v53 }
 0x377   : > { %7379 = vmatmul.mubr.msk.bf16.gmra.mxu0 %vm1588_vm1, %v1569_v54 }
 0x37b   : > { %v7364_v55 = vpop.f32.mrf.mxu1 }
 0x37c   : > { %v1554_v3 = vadd.f32 %v7364_v55, %v1390_v29 }
 0x37d   : > { %v1545_v56 = vpop.f32.mrf.mxu1 }
 0x37e   : > { %v1546_v1 = vadd.f32 %v1545_v56, %v1390_v29 }
 0x37f   : > { %v7365_v59 = vpop.f32.mrf.mxu1 }
 0x380   : > { %v1557_v60 = vadd.f32 %v7365_v59, %v1390_v29 }
 0x381   : > { %v1548_v0 = vpop.f32.mrf.mxu1 }
 0x382   : > { %v1549_v2 = vadd.f32 %v1548_v0, %v1390_v29  ;;  %v1571_v5 = vpack.c.bf16 %v1557_v60, %v1554_v3  ;;  %v1560_v3 = vld [vmem:[%s10501_s0 + $0x4] ss:$0 sm:$0xff] }
 0x384   : > { %v1570_v4 = vpack.c.bf16 %v1549_v2, %v1546_v1 }
 0x386   : > { %7382 = vmatprep.mubr.msk.bf16.mxu0 %vm1588_vm1, %v1570_v4 }
 0x387   : > { %7383 = vmatmul.mubr.msk.bf16.gmra.mxu0 %vm1588_vm1, %v1571_v5 }
 0x417   : > { %v8691_v8 = vpop.f32.mrf.mxu0 }
 0x418   : > { %v1712_v9 = vmul.f32 %v8691_v8, %v8689_v7 }
 0x419   : > { %v8695_v10 = vpop.f32.mrf.mxu0 }
 0x41a   : > { %v1733_v11 = vsel %vm1726_vm3, %v1712_v9, 0.0  ;;  %v1710_v12 = vmul.f32 %v8695_v10, %v8689_v7 }
 0x41b   : > { %1734 = vadd.xlane.f32.xlu1 %v1733_v11  ;;  %v8700_v13 = vpop.f32.mrf.mxu0 }
 0x41c   : > { %v1727_v14 = vsel %vm1726_vm3, %v1710_v12, 0.0  ;;  %v1713_v15 = vmul.f32 %v8700_v13, %v8689_v7  ;;  %v2133_v1 = vpack.c.bf16 %v8700_v13, %v8691_v8 }
 0x41d   : > { %1728 = vadd.xlane.f32.xlu0 %v1727_v14  ;;  %v8705_v16 = vpop.f32.mrf.mxu0 }
 0x41e   : > { %v1736_v17 = vsel %vm1726_vm3, %v1713_v15, 0.0  ;;  %v1711_v18 = vmul.f32 %v8705_v16, %v8689_v7  ;;  %v2132_v2 = vpack.c.bf16 %v8705_v16, %v8695_v10 }
 0x41f   : > { %1737 = vadd.xlane.f32.xlu1 %v1736_v17 }
 0x420   : > { %v1730_v19 = vsel %vm1726_vm3, %v1711_v18, 0.0 }
 0x421   : > { %1731 = vadd.xlane.f32.xlu0 %v1730_v19 }
 0x427   : > { %v8711_v20 = vpop.f32.mrf.mxu0 }
 0x428   : > { %v1716_v25 = vmul.f32 %v8711_v20, %v8689_v7 }
 0x429   : > { %v8713_v21 = vpop.f32.mrf.mxu0 }
 0x42a   : > { %v1714_v22 = vmul.f32 %v8713_v21, %v8689_v7  ;;  %v1745_v28 = vsel %vm1726_vm3, %v1716_v25, 0.0 }
 0x42b   : > { %v8717_v23 = vpop.f32.mrf.mxu0 }
 0x42c   : > { %v1739_v24 = vsel %vm1726_vm3, %v1714_v22, 0.0  ;;  %v1717_v30 = vmul.f32 %v8717_v23, %v8689_v7  ;;  %v2135_v60 = vpack.c.bf16 %v8717_v23, %v8711_v20 }
 0x42d   : > { %1740 = vadd.xlane.f32.xlu0 %v1739_v24  ;;  %v8722_v26 = vpop.f32.mrf.mxu0 }
 0x42e   : > { %v1715_v27 = vmul.f32 %v8722_v26, %v8689_v7  ;;  %v1748_v31 = vsel %vm1726_vm3, %v1717_v30, 0.0  ;;  %v2134_v0 = vpack.c.bf16 %v8722_v26, %v8713_v21 }
 0x430   : > { %v1742_v29 = vsel %vm1726_vm3, %v1715_v27, 0.0 }
 0x431   : > { %1746 = vadd.xlane.f32.xlu0 %v1745_v28  ;;  %1743 = vadd.xlane.f32.xlu1 %v1742_v29 }
 0x435   : > { %1749 = vadd.xlane.f32.xlu1 %v1748_v31 }
 0x437   : > { %v7380_v63 = vpop.f32.mrf.mxu0 }
 0x438   : > { %v1720_v36 = vmul.f32 %v7380_v63, %v8689_v7 }
 0x439   : > { %v8731_v32 = vpop.f32.mrf.mxu0 }
 0x43a   : > { %v1718_v33 = vmul.f32 %v8731_v32, %v8689_v7  ;;  %v1757_v39 = vsel %vm1726_vm3, %v1720_v36, 0.0 }
 0x43b   : > { %v7381_v34 = vpop.f32.mrf.mxu0 }
 0x43c   : > { %v1751_v35 = vsel %vm1726_vm3, %v1718_v33, 0.0  ;;  %v1721_v42 = vmul.f32 %v7381_v34, %v8689_v7  ;;  %v2137_v55 = vpack.c.bf16 %v7381_v34, %v7380_v63 }
 0x43d   : > { %1752 = vadd.xlane.f32.xlu0 %v1751_v35  ;;  %v1682_v37 = vpop.f32.mrf.mxu0  ;;  %v685_v35 = vld [vmem:[%s8811_s24 + $0x10] sm:$0xff] }
 0x43e   : > { %v1719_v38 = vmul.f32 %v1682_v37, %v8689_v7  ;;  %v1760_v43 = vsel %vm1726_vm3, %v1721_v42, 0.0  ;;  %v2136_v59 = vpack.c.bf16 %v1682_v37, %v8731_v32 }
 0x440   : > { %v1754_v40 = vsel %vm1726_vm3, %v1719_v38, 0.0  ;;  %v686_v38 = vld [vmem:[%s8811_s24 + $0x18] sm:$0xff] }
 0x441   : > { %1758 = vadd.xlane.f32.xlu0 %v1757_v39  ;;  %1755 = vadd.xlane.f32.xlu1 %v1754_v40 }
 0x445   : > { %1761 = vadd.xlane.f32.xlu1 %v1760_v43 }
 0x447   : > { %v7384_v44 = vpop.f32.mrf.mxu0 }
 0x448   : > { %v1724_v50 = vmul.f32 %v7384_v44, %v8689_v7 }
 0x449   : > { %v1695_v45 = vpop.f32.mrf.mxu0 }
 0x44a   : > { %v1722_v46 = vmul.f32 %v1695_v45, %v8689_v7  ;;  %v1769_v61 = vsel %vm1726_vm3, %v1724_v50, 0.0 }
 0x44b   : > { %v7385_v47 = vpop.f32.mrf.mxu0 }
 0x44c   : > { %v2139_v48 = vpack.c.bf16 %v7385_v47, %v7384_v44  ;;  %7387 = vmatpush3.xpose.msk.msra.mxu1 %vm1726_vm3, %v7385_v47  ;;  %v1763_v49 = vsel %vm1726_vm3, %v1722_v46, 0.0  ;;  %v1725_v54 = vmul.f32 %v7385_v47, %v8689_v7 }
 0x44d   : > { %1764 = vadd.xlane.f32.xlu0 %v1763_v49  ;;  %v1698_v51 = vpop.f32.mrf.mxu0  ;;  %7388 = vmatprep.subr.mxu1 %v8312_v6 }
 0x44e   : > { %7421 = vmatprep.subr.bf16.mxu0 %v2139_v48  ;;  %v2138_v52 = vpack.c.bf16 %v1698_v51, %v1695_v45  ;;  %v1723_v62 = vmul.f32 %v1698_v51, %v8689_v7  ;;  %v1772_v56 = vsel %vm1726_vm3, %v1725_v54, 0.0 }
 0x44f   : > { %7422 = vmatpush3.bf16.msra.mxu0 %v2139_v48  ;;  %v688_v48 = vld [vmem:[%s8811_s24 + $0x28] sm:$0xff] }
 0x450   : > { %7389 = vmatpush3.xpose.msk.msra.mxu1 %vm1726_vm3, %v7384_v44  ;;  %7423 = vmatprep.subr.bf16.mxu0 %v2138_v52  ;;  %v1766_v53 = vsel %vm1726_vm3, %v1723_v62, 0.0 }
 0x451   : > { %1770 = vadd.xlane.f32.xlu0 %v1769_v61  ;;  %1767 = vadd.xlane.f32.xlu1 %v1766_v53 }
 0x452   : > { %7390 = vmatprep.subr.mxu1 %v8312_v6 }
 0x453   : > { %7424 = vmatpush3.bf16.msra.mxu0 %v2138_v52 }
 0x454   : > { %7391 = vmatpush3.xpose.msk.msra.mxu1 %vm1726_vm3, %v1698_v51  ;;  %7425 = vmatprep.subr.bf16.mxu0 %v2137_v55 }
 0x455   : > { %1773 = vadd.xlane.f32.xlu1 %v1772_v56  ;;  %7392 = vmatprep.subr.mxu1 %v8312_v6  ;;  %v690_v56 = vld [vmem:[%s8811_s24 + $0x38] sm:$0xff] }
 0x457   : > { %7426 = vmatpush3.bf16.msra.mxu0 %v2137_v55  ;;  %v689_v55 = vld [vmem:[%s8811_s24 + $0x30] sm:$0xff] }
 0x458   : > { %7393 = vmatpush3.xpose.msk.msra.mxu1 %vm1726_vm3, %v1695_v45  ;;  %7427 = vmatprep.subr.bf16.mxu0 %v2136_v59  ;;  %v687_v45 = vld [vmem:[%s8811_s24 + $0x20] sm:$0xff] }
 0x459   : > { %7394 = vmatprep.subr.mxu1 %v8312_v6 }
 0x45b   : > { %7428 = vmatpush3.bf16.msra.mxu0 %v2136_v59 }
 0x45c   : > { %7395 = vmatpush3.xpose.msk.msra.mxu1 %vm1726_vm3, %v7381_v34  ;;  %7429 = vmatprep.subr.bf16.mxu0 %v2135_v60 }
 0x45d   : > { %7396 = vmatprep.subr.mxu1 %v8312_v6 }
 0x45f   : > { %7430 = vmatpush3.bf16.msra.mxu0 %v2135_v60 }
 0x460   : > { %7397 = vmatpush3.xpose.msk.msra.mxu1 %vm1726_vm3, %v7380_v63  ;;  %7431 = vmatprep.subr.bf16.mxu0 %v2134_v0 }
 0x461   : > { %7398 = vmatprep.subr.mxu1 %v8312_v6 }
 0x463   : > { %7432 = vmatpush3.bf16.msra.mxu0 %v2134_v0 }
 0x464   : > { %7399 = vmatpush3.xpose.msk.msra.mxu1 %vm1726_vm3, %v1682_v37  ;;  %7433 = vmatprep.subr.bf16.mxu0 %v2133_v1 }
 0x465   : > { %7400 = vmatprep.subr.mxu1 %v8312_v6 }
 0x467   : > { %7434 = vmatpush3.bf16.msra.mxu0 %v2133_v1 }
 0x468   : > { %7401 = vmatpush3.xpose.msk.msra.mxu1 %vm1726_vm3, %v8731_v32  ;;  %7435 = vmatprep.subr.bf16.mxu0 %v2132_v2 }
 0x469   : > { %7402 = vmatprep.subr.mxu1 %v8312_v6 }
 0x46b   : > { %7436 = vmatpush3.bf16.msra.mxu0 %v2132_v2 }
 0x46c   : > { %7403 = vmatpush3.xpose.msk.msra.mxu1 %vm1726_vm3, %v8717_v23 }
 0x46d   : > { %7404 = vmatprep.subr.mxu1 %v8312_v6 }
 0x470   : > { %7405 = vmatpush3.xpose.msk.msra.mxu1 %vm1726_vm3, %v8711_v20  ;;  %v683_v20 = vld [vmem:[%s8811_s24] sm:$0xff] }
 0x471   : > { %7406 = vmatprep.subr.mxu1 %v8312_v6 }
 0x474   : > { %7407 = vmatpush3.xpose.msk.msra.mxu1 %vm1726_vm3, %v8722_v26 }
 0x475   : > { %7408 = vmatprep.subr.mxu1 %v8312_v6 }
 0x478   : > { %7409 = vmatpush3.xpose.msk.msra.mxu1 %vm1726_vm3, %v8713_v21  ;;  %v684_v21 = vld [vmem:[%s8811_s24 + $0x8] sm:$0xff] }
 0x479   : > { %7410 = vmatprep.subr.mxu1 %v8312_v6 }
 0x47c   : > { %7411 = vmatpush3.xpose.msk.msra.mxu1 %vm1726_vm3, %v8700_v13 }
 0x47d   : > { %7412 = vmatprep.subr.mxu1 %v8312_v6 }
 0x480   : > { %7413 = vmatpush3.xpose.msk.msra.mxu1 %vm1726_vm3, %v8691_v8 }
 0x481   : > { %7414 = vmatprep.subr.mxu1 %v8312_v6 }
 0x484   : > { %7415 = vmatpush3.xpose.msk.msra.mxu1 %vm1726_vm3, %v8705_v16 }
 0x485   : > { %7416 = vmatprep.subr.mxu1 %v8312_v6 }
 0x488   : > { %7417 = vmatpush3.xpose.msk.msra.mxu1 %vm1726_vm3, %v8695_v10 }
 0x48b   : > { %7419 = vmatmul.mubr.msk.f32.vlgmr.msra.gmra.mxu1 %vm1726_vm3, %v1560_v3 }
 0x48c   : > { %2612 = vmatprep.mubr.bf16.mxu1 %v8311_v41 }
 0x4a4   : > { %v1735_v4 = vpop.xlane.xlu1 %1734 }
 0x4a6   : > { %v1729_v5 = vpop.xlane.xlu0 %1728 }
 0x4a8   : > { %v1738_v7 = vpop.xlane.xlu1 %1737 }
 0x4aa   : > { %v1732_v8 = vpop.xlane.xlu0 %1731 }
 0x4b6   : > { %v1741_v9 = vpop.xlane.xlu0 %1740 }
 0x4ba   : > { %v1744_v11 = vpop.xlane.xlu1 %1743  ;;  %v1747_v18 = vpop.xlane.xlu0 %1746 }
 0x4be   : > { %v1750_v19 = vpop.xlane.xlu1 %1749 }
 0x4c6   : > { %v1753_v63 = vpop.xlane.xlu0 %1752 }
 0x4ca   : > { %v1756_v32 = vpop.xlane.xlu1 %1755  ;;  %v1759_v52 = vpop.xlane.xlu0 %1758 }
 0x4ce   : > { %v1762_v62 = vpop.xlane.xlu1 %1761 }
 0x4d6   : > { %v1765_v3 = vpop.xlane.xlu0 %1764 }
 0x54b   : > { %v1892_v12 = vpop.f32.mrf.mxu1 }
 0x54c   : > { %v8805_v13 = vrot.slane %v1892_v12, %v8587_v58 }
 0x54d   : > { %v7420_v10 = vpop.f32.mrf.mxu1 }
 0x54e   : > { %v1900_v14 = vadd.f32 %v8805_v13, %v1729_v5  ;;  %v1901_v15 = vadd.f32 %v8805_v13, %v1732_v8  ;;  %v1902_v16 = vadd.f32 %v8805_v13, %v1735_v4  ;;  %v1903_v17 = vadd.f32 %v8805_v13, %v1738_v7  ;;  %v1768_v4 = vpop.xlane.xlu1 %1767  ;;  %v692_v10 = vld [vmem:[%s8811_s24 + $0x48] sm:$0xff] }
 0x54f   : > { %v1904_v22 = vadd.f32 %v8805_v13, %v1741_v9  ;;  %v1905_v23 = vadd.f32 %v8805_v13, %v1744_v11  ;;  %v1906_v30 = vadd.f32 %v8805_v13, %v1747_v18  ;;  %v1907_v31 = vadd.f32 %v8805_v13, %v1750_v19  ;;  %v691_v11 = vld [vmem:[%s8811_s24 + $0x40] sm:$0xff] }
 0x550   : > { %vm1916_vm4 = vcmp.gt.f32.partialorder %v1900_v14, 0.0  ;;  %v1932_v24 = vmul.f32 0.2, %v1900_v14  ;;  %vm1917_vm5 = vcmp.gt.f32.partialorder %v1901_v15, 0.0  ;;  %v1933_v25 = vmul.f32 0.2, %v1901_v15 }
 0x551   : > { %vm1918_vm6 = vcmp.gt.f32.partialorder %v1902_v16, 0.0  ;;  %v1934_v26 = vmul.f32 0.2, %v1902_v16  ;;  %vm1919_vm7 = vcmp.gt.f32.partialorder %v1903_v17, 0.0  ;;  %v1935_v27 = vmul.f32 0.2, %v1903_v17 }
 0x552   : > { %v1948_v28 = vsel %vm1916_vm4, %v1900_v14, %v1932_v24  ;;  %v1949_v29 = vsel %vm1917_vm5, %v1901_v15, %v1933_v25  ;;  %v1936_v37 = vmul.f32 0.2, %v1904_v22  ;;  %vm1920_vm8 = vcmp.gt.f32.partialorder %v1904_v22, 0.0  ;;  %v1774_v18 = vpop.xlane.xlu1 %1773  ;;  %v694_v24 = vld [vmem:[%s8811_s24 + $0x58] sm:$0xff] }
 0x553   : > { %v8823_v33 = vadd.f32 %v1948_v28, %v683_v20  ;;  %v8825_v34 = vadd.f32 %v1949_v29, %v684_v21  ;;  %v1950_v36 = vsel %vm1918_vm6, %v1902_v16, %v1934_v26  ;;  %v1951_v39 = vsel %vm1919_vm7, %v1903_v17, %v1935_v27  ;;  %v1771_v17 = vpop.xlane.xlu0 %1770 }
 0x554   : > { %vm1921_vm9 = vcmp.gt.f32.partialorder %v1905_v23, 0.0  ;;  %v1937_v40 = vmul.f32 0.2, %v1905_v23  ;;  %v8831_v42 = vadd.f32 %v1950_v36, %v685_v35  ;;  %v1938_v43 = vmul.f32 0.2, %v1906_v30 }
 0x555   : > { %1980 = vmax.xlane.f32.xlu0 %v8823_v33  ;;  %1982 = vmax.xlane.f32.xlu1 %v8825_v34  ;;  %v8833_v44 = vadd.f32 %v1951_v39, %v686_v38  ;;  %v1952_v46 = vsel %vm1920_vm8, %v1904_v22, %v1936_v37  ;;  %vm1922_vm10 = vcmp.gt.f32.partialorder %v1906_v30, 0.0  ;;  %v1939_v47 = vmul.f32 0.2, %v1907_v31  ;;  %v697_v39 = vld [vmem:[%s8811_s24 + $0x70] sm:$0xff] }
 0x556   : > { %v1953_v49 = vsel %vm1921_vm9, %v1905_v23, %v1937_v40  ;;  %vm1923_vm11 = vcmp.gt.f32.partialorder %v1907_v31, 0.0  ;;  %v1908_v50 = vadd.f32 %v8805_v13, %v1753_v63  ;;  %v1909_v51 = vadd.f32 %v8805_v13, %v1756_v32  ;;  %v693_v23 = vld [vmem:[%s8811_s24 + $0x50] sm:$0xff]  ;;  %v696_v32 = vld [vmem:[%s8811_s24 + $0x68] sm:$0xff] }
 0x557   : > { %v8841_v61 = vadd.f32 %v1952_v46, %v687_v45  ;;  %v1954_v53 = vsel %vm1922_vm10, %v1906_v30, %v1938_v43  ;;  %v8843_v54 = vadd.f32 %v1953_v49, %v688_v48  ;;  %v1955_v59 = vsel %vm1923_vm11, %v1907_v31, %v1939_v47  ;;  %v695_v31 = vld [vmem:[%s8811_s24 + $0x60] sm:$0xff]  ;;  %v698_v43 = vld [vmem:[%s8811_s24 + $0x78] sm:$0xff] }
 0x558   : > { %v1910_v60 = vadd.f32 %v8805_v13, %v1759_v52  ;;  %v1911_v0 = vadd.f32 %v8805_v13, %v1762_v62  ;;  %v1940_v1 = vmul.f32 0.2, %v1908_v50  ;;  %v1941_v2 = vmul.f32 0.2, %v1909_v51 }
 0x559   : > { %1984 = vmax.xlane.f32.xlu0 %v8831_v42  ;;  %1986 = vmax.xlane.f32.xlu1 %v8833_v44  ;;  %vm1924_vm12 = vcmp.gt.f32.partialorder %v1908_v50, 0.0  ;;  %vm1925_vm13 = vcmp.gt.f32.partialorder %v1909_v51, 0.0  ;;  %v8851_v5 = vadd.f32 %v1954_v53, %v689_v55  ;;  %v8853_v7 = vadd.f32 %v1955_v59, %v690_v56 }
 0x55a   : > { %vm1926_vm14 = vcmp.gt.f32.partialorder %v1910_v60, 0.0  ;;  %v1942_v8 = vmul.f32 0.2, %v1910_v60  ;;  %vm1927_vm15 = vcmp.gt.f32.partialorder %v1911_v0, 0.0  ;;  %v1943_v9 = vmul.f32 0.2, %v1911_v0 }
 0x55b   : > { %v1956_v12 = vsel %vm1924_vm12, %v1908_v50, %v1940_v1  ;;  %v1957_v14 = vsel %vm1925_vm13, %v1909_v51, %v1941_v2  ;;  %v1912_v15 = vadd.f32 %v8805_v13, %v1765_v3  ;;  %v1913_v16 = vadd.f32 %v8805_v13, %v1768_v4 }
 0x55c   : > { %v8861_v19 = vadd.f32 %v1956_v12, %v691_v11  ;;  %v8863_v20 = vadd.f32 %v1957_v14, %v692_v10  ;;  %v1958_v21 = vsel %vm1926_vm14, %v1910_v60, %v1942_v8  ;;  %v1959_v22 = vsel %vm1927_vm15, %v1911_v0, %v1943_v9 }
 0x55d   : > { %1988 = vmax.xlane.f32.xlu0 %v8841_v61  ;;  %1990 = vmax.xlane.f32.xlu1 %v8843_v54  ;;  %v1944_v25 = vmul.f32 0.2, %v1912_v15  ;;  %v1945_v26 = vmul.f32 0.2, %v1913_v16  ;;  %v1914_v27 = vadd.f32 %v8805_v13, %v1771_v17  ;;  %v1915_v28 = vadd.f32 %v8805_v13, %v1774_v18 }
 0x55e   : > { %vm1928_vm0 = vcmp.gt.f32.partialorder %v1912_v15, 0.0  ;;  %vm1929_vm1 = vcmp.gt.f32.partialorder %v1913_v16, 0.0  ;;  %v8872_v29 = vadd.f32 %v1958_v21, %v693_v23  ;;  %v8874_v30 = vadd.f32 %v1959_v22, %v694_v24 }
 0x55f   : > { %v1960_v63 = vsel %vm1928_vm0, %v1912_v15, %v1944_v25  ;;  %v1961_v35 = vsel %vm1929_vm1, %v1913_v16, %v1945_v26  ;;  %v1946_v36 = vmul.f32 0.2, %v1914_v27  ;;  %v1947_v37 = vmul.f32 0.2, %v1915_v28 }
 0x560   : > { %vm1930_vm4 = vcmp.gt.f32.partialorder %v1914_v27, 0.0  ;;  %vm1931_vm5 = vcmp.gt.f32.partialorder %v1915_v28, 0.0  ;;  %v8880_v13 = vadd.f32 %v1960_v63, %v695_v31  ;;  %v8882_v38 = vadd.f32 %v1961_v35, %v696_v32 }
 0x561   : > { %1992 = vmax.xlane.f32.xlu0 %v8851_v5  ;;  %1994 = vmax.xlane.f32.xlu1 %v8853_v7  ;;  %v1962_v40 = vsel %vm1930_vm4, %v1914_v27, %v1946_v36  ;;  %v1963_v45 = vsel %vm1931_vm5, %v1915_v28, %v1947_v37 }
 0x562   : > { %v8888_v46 = vadd.f32 %v1962_v40, %v697_v39  ;;  %v8890_v47 = vadd.f32 %v1963_v45, %v698_v43 }
 0x565   : > { %1996 = vmax.xlane.f32.xlu0 %v8861_v19  ;;  %1998 = vmax.xlane.f32.xlu1 %v8863_v20 }
 0x569   : > { %2000 = vmax.xlane.f32.xlu0 %v8872_v29  ;;  %2002 = vmax.xlane.f32.xlu1 %v8874_v30 }
 0x56d   : > { %2004 = vmax.xlane.f32.xlu0 %v8880_v13  ;;  %2006 = vmax.xlane.f32.xlu1 %v8882_v38 }
 0x571   : > { %2008 = vmax.xlane.f32.xlu0 %v8888_v46  ;;  %2010 = vmax.xlane.f32.xlu1 %v8890_v47 }
 0x5de   : > { %v1981_v48 = vpop.xlane.xlu0 %1980  ;;  %v1983_v49 = vpop.xlane.xlu1 %1982 }
 0x5df   : > { %v2012_v50 = vsub.f32 %v8823_v33, %v1981_v48  ;;  %v2013_v51 = vsub.f32 %v8825_v34, %v1983_v49 }
 0x5e1   : > { %v2028_v52 = vmul.f32 1.442695, %v2012_v50  ;;  %v2030_v62 = vmul.f32 1.442695, %v2013_v51 }
 0x5e2   : > { %v1985_v53 = vpop.xlane.xlu0 %1984  ;;  %v1987_v55 = vpop.xlane.xlu1 %1986 }
 0x5e3   : > { %8015 = vpow2.f32 %v2028_v52  ;;  %v2014_v56 = vsub.f32 %v8831_v42, %v1985_v53  ;;  %v2015_v59 = vsub.f32 %v8833_v44, %v1987_v55  ;;  %v7851_v52 = vld [vmem:[%s10473_s8 + $0x18] sm:$0xff]  }
 0x5e4   : > { %8017 = vpow2.f32 %v2030_v62  ;;  %7453 = vmatprep.subr.bf16.mxu0 %v7851_v52 }
 0x5e5   : > { %v2032_v60 = vmul.f32 1.442695, %v2014_v56  ;;  %v2034_v0 = vmul.f32 1.442695, %v2015_v59 }
 0x5e6   : > { %v1989_v1 = vpop.xlane.xlu0 %1988  ;;  %v1991_v2 = vpop.xlane.xlu1 %1990 }
 0x5e7   : > { %8019 = vpow2.f32 %v2032_v60  ;;  %v2016_v3 = vsub.f32 %v8841_v61, %v1989_v1  ;;  %v2017_v33 = vsub.f32 %v8843_v54, %v1991_v2 }
 0x5e8   : > { %8021 = vpow2.f32 %v2034_v0 }
 0x5e9   : > { %v2036_v34 = vmul.f32 1.442695, %v2016_v3  ;;  %v2038_v4 = vmul.f32 1.442695, %v2017_v33 }
 0x5ea   : > { %v1993_v8 = vpop.xlane.xlu0 %1992  ;;  %v1995_v9 = vpop.xlane.xlu1 %1994 }
 0x5eb   : > { %8023 = vpow2.f32 %v2036_v34  ;;  %v2018_v42 = vsub.f32 %v8851_v5, %v1993_v8  ;;  %v2019_v44 = vsub.f32 %v8853_v7, %v1995_v9 }
 0x5ec   : > { %8025 = vpow2.f32 %v2038_v4 }
 0x5ed   : > { %v2040_v11 = vmul.f32 1.442695, %v2018_v42  ;;  %v2042_v12 = vmul.f32 1.442695, %v2019_v44 }
 0x5ee   : > { %v1997_v10 = vpop.xlane.xlu0 %1996  ;;  %v1999_v14 = vpop.xlane.xlu1 %1998 }
 0x5ef   : > { %8027 = vpow2.f32 %v2040_v11  ;;  %v2020_v61 = vsub.f32 %v8861_v19, %v1997_v10  ;;  %v2021_v54 = vsub.f32 %v8863_v20, %v1999_v14 }
 0x5f0   : > { %v8904_v15 = vpop.eup %8015  ;;  %8029 = vpow2.f32 %v2042_v12 }
 0x5f1   : > { %v8906_v16 = vpop.eup %8017  ;;  %v2044_v17 = vmul.f32 1.442695, %v2020_v61  ;;  %v2046_v18 = vmul.f32 1.442695, %v2021_v54  ;;  %2060 = vadd.xlane.f32.xlu0 %v8904_v15 }
 0x5f2   : > { %2062 = vadd.xlane.f32.xlu1 %v8906_v16  ;;  %v2001_v5 = vpop.xlane.xlu0 %2000  ;;  %v2003_v7 = vpop.xlane.xlu1 %2002 }
 0x5f3   : > { %8031 = vpow2.f32 %v2044_v17  ;;  %v2022_v21 = vsub.f32 %v8872_v29, %v2001_v5  ;;  %v2023_v19 = vsub.f32 %v8874_v30, %v2003_v7 }
 0x5f4   : > { %v8912_v22 = vpop.eup %8019  ;;  %8033 = vpow2.f32 %v2046_v18 }
 0x5f5   : > { %v8914_v20 = vpop.eup %8021  ;;  %v2048_v23 = vmul.f32 1.442695, %v2022_v21  ;;  %v2050_v24 = vmul.f32 1.442695, %v2023_v19  ;;  %2064 = vadd.xlane.f32.xlu0 %v8912_v22 }
 0x5f6   : > { %2066 = vadd.xlane.f32.xlu1 %v8914_v20  ;;  %v2005_v25 = vpop.xlane.xlu0 %2004  ;;  %v2007_v26 = vpop.xlane.xlu1 %2006 }
 0x5f7   : > { %8035 = vpow2.f32 %v2048_v23  ;;  %v2024_v27 = vsub.f32 %v8880_v13, %v2005_v25  ;;  %v2025_v28 = vsub.f32 %v8882_v38, %v2007_v26 }
 0x5f8   : > { %v8920_v29 = vpop.eup %8023  ;;  %8037 = vpow2.f32 %v2050_v24 }
 0x5f9   : > { %v8922_v30 = vpop.eup %8025  ;;  %v2052_v31 = vmul.f32 1.442695, %v2024_v27  ;;  %v2054_v63 = vmul.f32 1.442695, %v2025_v28  ;;  %2068 = vadd.xlane.f32.xlu0 %v8920_v29 }
 0x5fa   : > { %2070 = vadd.xlane.f32.xlu1 %v8922_v30  ;;  %v2009_v32 = vpop.xlane.xlu0 %2008  ;;  %v2011_v35 = vpop.xlane.xlu1 %2010 }
 0x5fb   : > { %8039 = vpow2.f32 %v2052_v31  ;;  %v2026_v36 = vsub.f32 %v8888_v46, %v2009_v32  ;;  %v2027_v37 = vsub.f32 %v8890_v47, %v2011_v35 }
 0x5fc   : > { %v8928_v13 = vpop.eup %8027  ;;  %8041 = vpow2.f32 %v2054_v63 }
 0x5fd   : > { %v8930_v38 = vpop.eup %8029  ;;  %v2056_v39 = vmul.f32 1.442695, %v2026_v36  ;;  %v2058_v40 = vmul.f32 1.442695, %v2027_v37  ;;  %2072 = vadd.xlane.f32.xlu0 %v8928_v13 }
 0x5fe   : > { %2074 = vadd.xlane.f32.xlu1 %v8930_v38 }
 0x5ff   : > { %8043 = vpow2.f32 %v2056_v39 }
 0x600   : > { %v8934_v43 = vpop.eup %8031  ;;  %8045 = vpow2.f32 %v2058_v40 }
 0x601   : > { %v8936_v45 = vpop.eup %8033  ;;  %2076 = vadd.xlane.f32.xlu0 %v8934_v43 }
 0x602   : > { %2078 = vadd.xlane.f32.xlu1 %v8936_v45 }
 0x604   : > { %v8940_v46 = vpop.eup %8035 }
 0x605   : > { %v8942_v47 = vpop.eup %8037  ;;  %2080 = vadd.xlane.f32.xlu0 %v8940_v46 }
 0x606   : > { %2082 = vadd.xlane.f32.xlu1 %v8942_v47 }
 0x608   : > { %v8946_v48 = vpop.eup %8039 }
 0x609   : > { %v8948_v49 = vpop.eup %8041  ;;  %2084 = vadd.xlane.f32.xlu0 %v8946_v48 }
 0x60a   : > { %2086 = vadd.xlane.f32.xlu1 %v8948_v49 }
 0x60c   : > { %v8952_v50 = vpop.eup %8043 }
 0x60d   : > { %v8954_v51 = vpop.eup %8045  ;;  %2088 = vadd.xlane.f32.xlu0 %v8952_v50 }
 0x60e   : > { %2090 = vadd.xlane.f32.xlu1 %v8954_v51 }
 0x67a   : > { %v2061_v62 = vpop.xlane.xlu0 %2060 }
 0x67b   : > { %8047 = vrcp.f32 %v2061_v62  ;;  %v2063_v53 = vpop.xlane.xlu1 %2062 }
 0x67c   : > { %8049 = vrcp.f32 %v2063_v53 }
 0x67e   : > { %v2065_v55 = vpop.xlane.xlu0 %2064 }
 0x67f   : > { %8051 = vrcp.f32 %v2065_v55  ;;  %v2067_v56 = vpop.xlane.xlu1 %2066 }
 0x680   : > { %8053 = vrcp.f32 %v2067_v56  ;;  %v7863_v56 = vld [vmem:[%s10474_s9 + $0x54] ss:$8 sps:$4 sm:$0xff]  }
 0x682   : > { %v2069_v59 = vpop.xlane.xlu0 %2068 }
 0x683   : > { %8055 = vrcp.f32 %v2069_v59  ;;  %v2071_v60 = vpop.xlane.xlu1 %2070  ;;  %v7861_v59 = vld [vmem:[%s10474_s9 + $0x50] ss:$8 sps:$4 sm:$0xff]  }
 0x684   : > { %8057 = vrcp.f32 %v2071_v60  ;;  %v7866_v60 = vld [vmem:[%s10474_s9 + $0x44] ss:$8 sps:$4 sm:$0xff]  }
 0x686   : > { %v2073_v0 = vpop.xlane.xlu0 %2072 }
 0x687   : > { %8059 = vrcp.f32 %v2073_v0  ;;  %v2075_v1 = vpop.xlane.xlu1 %2074  ;;  %v7864_v0 = vld [vmem:[%s10474_s9 + $0x40] ss:$8 sps:$4 sm:$0xff]  }
 0x688   : > { %v8048_v2 = vpop.eup %8047  ;;  %8061 = vrcp.f32 %v2075_v1  ;;  %v7869_v1 = vld [vmem:[%s10474_s9 + $0x34] ss:$8 sps:$4 sm:$0xff]  }
 0x689   : > { %v8050_v3 = vpop.eup %8049  ;;  %v2108_v33 = vmul.f32 %v8048_v2, %v8904_v15  ;;  %v7852_v15 = vld [vmem:[%s10473_s8 + $0x10] sm:$0xff]  }
 0x68a   : > { %v2077_v34 = vpop.xlane.xlu0 %2076  ;;  %v2109_v4 = vmul.f32 %v8050_v3, %v8906_v16  ;;  %v7867_v2 = vld [vmem:[%s10474_s9 + $0x30] ss:$8 sps:$4 sm:$0xff]  }
 0x68b   : > { %8063 = vrcp.f32 %v2077_v34  ;;  %v2079_v8 = vpop.xlane.xlu1 %2078 }
 0x68c   : > { %v8052_v9 = vpop.eup %8051  ;;  %8065 = vrcp.f32 %v2079_v8  ;;  %v2124_v42 = vpack.c.bf16 %v2109_v4, %v2108_v33  ;;  %v9019_v33 = vld [vmem:[%s10501_s0 + $0x6] ss:$0 sm:$0xff] }
 0x68d   : > { %v8054_v44 = vpop.eup %8053  ;;  %v2110_v11 = vmul.f32 %v8052_v9, %v8912_v22  ;;  %v7853_v22 = vld [vmem:[%s10473_s8 + $0x8] sm:$0xff]  }
 0x68e   : > { %7437 = vmatprep.mubr.bf16.mxu0 %v2124_v42  ;;  %v2081_v12 = vpop.xlane.xlu0 %2080  ;;  %v2111_v10 = vmul.f32 %v8054_v44, %v8914_v20  ;;  %v9026_v42 = vld [vmem:[%s10501_s0 + $0x7] ss:$0 sm:$0xff] }
 0x68f   : > { %8067 = vrcp.f32 %v2081_v12  ;;  %v2083_v14 = vpop.xlane.xlu1 %2082 }
 0x690   : > { %v8056_v61 = vpop.eup %8055  ;;  %8069 = vrcp.f32 %v2083_v14  ;;  %v2125_v54 = vpack.c.bf16 %v2111_v10, %v2110_v11 }
 0x691   : > { %v8058_v16 = vpop.eup %8057  ;;  %v2112_v17 = vmul.f32 %v8056_v61, %v8920_v29 }
 0x692   : > { %7438 = vmatmul.mubr.bf16.vlgmr.msra.gmra.mxu0 %v2125_v54  ;;  %v2085_v18 = vpop.xlane.xlu0 %2084  ;;  %v2113_v5 = vmul.f32 %v8058_v16, %v8922_v30 }
 0x693   : > { %8071 = vrcp.f32 %v2085_v18  ;;  %v2087_v7 = vpop.xlane.xlu1 %2086  ;;  %7454 = vmatpush3.bf16.msra.mxu0 %v7851_v52 }
 0x694   : > { %v8060_v21 = vpop.eup %8059  ;;  %8073 = vrcp.f32 %v2087_v7  ;;  %v2126_v19 = vpack.c.bf16 %v2113_v5, %v2112_v17  ;;  %7455 = vmatprep.subr.bf16.mxu0 %v7852_v15 }
 0x695   : > { %v8062_v20 = vpop.eup %8061  ;;  %v2114_v23 = vmul.f32 %v8060_v21, %v8928_v13 }
 0x696   : > { %7441 = vmatprep.mubr.bf16.mxu0 %v2126_v19  ;;  %v2089_v24 = vpop.xlane.xlu0 %2088  ;;  %v2115_v25 = vmul.f32 %v8062_v20, %v8930_v38 }
 0x697   : > { %8075 = vrcp.f32 %v2089_v24  ;;  %v2091_v26 = vpop.xlane.xlu1 %2090  ;;  %7456 = vmatpush3.bf16.msra.mxu0 %v7852_v15 }
 0x698   : > { %v8064_v27 = vpop.eup %8063  ;;  %8077 = vrcp.f32 %v2091_v26  ;;  %v2127_v28 = vpack.c.bf16 %v2115_v25, %v2114_v23  ;;  %7457 = vmatprep.subr.bf16.mxu0 %v7853_v22 }
 0x699   : > { %v8066_v29 = vpop.eup %8065  ;;  %v2116_v30 = vmul.f32 %v8064_v27, %v8934_v43 }
 0x69a   : > { %7442 = vmatmul.mubr.bf16.gmra.mxu0 %v2127_v28  ;;  %v2117_v31 = vmul.f32 %v8066_v29, %v8936_v45 }
 0x69b   : > { %7458 = vmatpush3.bf16.msra.mxu0 %v7853_v22 }
 0x69c   : > { %v8068_v63 = vpop.eup %8067  ;;  %v2128_v32 = vpack.c.bf16 %v2117_v31, %v2116_v30 }
 0x69d   : > { %v8070_v35 = vpop.eup %8069  ;;  %v2118_v36 = vmul.f32 %v8068_v63, %v8940_v46 }
 0x69e   : > { %7445 = vmatprep.mubr.bf16.mxu0 %v2128_v32  ;;  %v2119_v37 = vmul.f32 %v8070_v35, %v8942_v47  ;;  %v7854_v47 = vld [vmem:[%s10473_s8] sm:$0xff]  }
 0x69f   : > { %7459 = vmatprep.subr.bf16.mxu0 %v7854_v47 }
 0x6a0   : > { %v8072_v13 = vpop.eup %8071  ;;  %v2129_v38 = vpack.c.bf16 %v2119_v37, %v2118_v36  ;;  %7460 = vmatpush3.bf16.msra.mxu0 %v7854_v47 }
 0x6a1   : > { %v8074_v39 = vpop.eup %8073  ;;  %v2120_v40 = vmul.f32 %v8072_v13, %v8946_v48  ;;  %v7855_v48 = vld [vmem:[%s10474_s9 + $0x70] ss:$8 sps:$4 sm:$0xff]  }
 0x6a2   : > { %7446 = vmatmul.mubr.bf16.gmra.mxu0 %v2129_v38  ;;  %v2121_v43 = vmul.f32 %v8074_v39, %v8948_v49  ;;  %v7857_v49 = vld [vmem:[%s10474_s9 + $0x74] ss:$8 sps:$4 sm:$0xff]  }
 0x6a3   : > { %2580 = vmatprep.subr.bf16.mxu1 %v7857_v49 }
 0x6a4   : > { %v8076_v52 = vpop.eup %8075  ;;  %v2130_v62 = vpack.c.bf16 %v2121_v43, %v2120_v40  ;;  %2581 = vmatpush1.bf16.msra.mxu1 %v7855_v48 }
 0x6a5   : > { %v8078_v45 = vpop.eup %8077  ;;  %v2122_v53 = vmul.f32 %v8076_v52, %v8952_v50  ;;  %v7860_v50 = vld [vmem:[%s10474_s9 + $0x64] ss:$8 sps:$4 sm:$0xff]  }
 0x6a6   : > { %7449 = vmatprep.mubr.bf16.mxu0 %v2130_v62  ;;  %v2123_v55 = vmul.f32 %v8078_v45, %v8954_v51  ;;  %v7858_v51 = vld [vmem:[%s10474_s9 + $0x60] ss:$8 sps:$4 sm:$0xff]   ;;  %2582 = vmatprep.subr.bf16.mxu1 %v7860_v50 }
 0x6a8   : > { %v2131_v46 = vpack.c.bf16 %v2123_v55, %v2122_v53  ;;  %2583 = vmatpush1.bf16.msra.mxu1 %v7858_v51 }
 0x6a9   : > { %2584 = vmatprep.subr.bf16.mxu1 %v7863_v56 }
 0x6aa   : > { %7450 = vmatmul.mubr.bf16.gmra.mxu0 %v2131_v46 }
 0x6ac   : > { %2585 = vmatpush1.bf16.msra.mxu1 %v7861_v59 }
 0x6ad   : > { %2586 = vmatprep.subr.bf16.mxu1 %v7866_v60 }
 0x6b0   : > { %2587 = vmatpush1.bf16.msra.mxu1 %v7864_v0 }
 0x6b1   : > { %2588 = vmatprep.subr.bf16.mxu1 %v7869_v1 }
 0x6b4   : > { %2589 = vmatpush1.bf16.msra.mxu1 %v7867_v2 }
 0x752   : > { %v7439_v3 = vpop.f32.mrf.mxu0 }
 0x753   : > { %v2239_v8 = vmul.f32 %v7439_v3, %v9019_v33 }
 0x754   : > { %v2174_v34 = vpop.f32.mrf.mxu0 }
 0x755   : > { %v2237_v4 = vmul.f32 %v2174_v34, %v9019_v33  ;;  %v2255_v61 = vadd.f32 %v2239_v8, %v9026_v42 }
 0x756   : > { %v7440_v9 = vpop.f32.mrf.mxu0 }
 0x757   : > { %v2240_v44 = vmul.f32 %v7440_v9, %v9019_v33  ;;  %v2253_v12 = vadd.f32 %v2237_v4, %v9026_v42  ;;  %v2271_v21 = vmax.f32 %v2255_v61, 0.0 }
 0x758   : > { %v2177_v11 = vpop.f32.mrf.mxu0 }
 0x759   : > { %v2256_v10 = vadd.f32 %v2240_v44, %v9026_v42  ;;  %v2238_v14 = vmul.f32 %v2177_v11, %v9019_v33  ;;  %v2269_v18 = vmax.f32 %v2253_v12, 0.0 }
 0x75a   : > { %v7443_v54 = vpop.f32.mrf.mxu0 }
 0x75b   : > { %v2254_v15 = vadd.f32 %v2238_v14, %v9026_v42  ;;  %v2272_v16 = vmax.f32 %v2256_v10, 0.0  ;;  %v2243_v19 = vmul.f32 %v7443_v54, %v9019_v33 }
 0x75c   : > { %v2190_v17 = vpop.f32.mrf.mxu0 }
 0x75d   : > { %v2270_v5 = vmax.f32 %v2254_v15, 0.0  ;;  %v2241_v7 = vmul.f32 %v2190_v17, %v9019_v33  ;;  %v2287_v24 = vpack.c.bf16 %v2272_v16, %v2271_v21  ;;  %v2259_v29 = vadd.f32 %v2243_v19, %v9026_v42  ;;  %v7872_v17 = vld [vmem:[%s10474_s9 + $0x24] ss:$8 sps:$4 sm:$0xff]   ;;  %v7879_v21 = vld [vmem:[%s10475_s10 + $0x78] sm:$0xff]  }
 0x75e   : > { %v7444_v22 = vpop.f32.mrf.mxu0  ;;  %2590 = vmatprep.subr.bf16.mxu1 %v7872_v17  ;;  %v7880_v19 = vld [vmem:[%s10475_s10 + $0x38] sm:$0xff]   ;;  %6970 = vmatprep.subr.bf16.mxu0 %v7879_v21 }
 0x75f   : > { %v2286_v20 = vpack.c.bf16 %v2270_v5, %v2269_v18  ;;  %v2244_v23 = vmul.f32 %v7444_v22, %v9019_v33  ;;  %v2257_v26 = vadd.f32 %v2241_v7, %v9026_v42  ;;  %v2275_v13 = vmax.f32 %v2259_v29, 0.0  ;;  %v7875_v18 = vld [vmem:[%s10474_s9 + $0x14] ss:$8 sps:$4 sm:$0xff]   ;;  %v7878_v5 = vld [vmem:[%s10474_s9 + $0x4] ss:$8 sps:$4 sm:$0xff]  }
 0x760   : > { %v2193_v25 = vpop.f32.mrf.mxu0  ;;  %v7876_v7 = vld [vmem:[%s10474_s9] ss:$8 sps:$4 sm:$0xff]   ;;  %v7881_v22 = vld [vmem:[%s10475_s10 + $0x70] sm:$0xff]  }
 0x761   : > { %v2260_v27 = vadd.f32 %v2244_v23, %v9026_v42  ;;  %v2242_v28 = vmul.f32 %v2193_v25, %v9019_v33  ;;  %7461 = vmatprep.mubr.msk.bf16.mxu0 %vm1726_vm3, %v2286_v20  ;;  %v2273_v35 = vmax.f32 %v2257_v26, 0.0  ;;  %v7882_v20 = vld [vmem:[%s10475_s10 + $0x30] sm:$0xff]   ;;  %v7883_v23 = vld [vmem:[%s10475_s10 + $0x68] sm:$0xff]   ;;  %v7885_v25 = vld [vmem:[%s10475_s10 + $0x60] sm:$0xff]  }
 0x762   : > { %v7447_v30 = vpop.f32.mrf.mxu0  ;;  %7462 = vmatmul.mubr.msk.bf16.vlgmr.msra.gmra.mxu0 %vm1726_vm3, %v2287_v24  ;;  %v7884_v24 = vld [vmem:[%s10475_s10 + $0x28] sm:$0xff]   ;;  %v7886_v26 = vld [vmem:[%s10475_s10 + $0x20] sm:$0xff]  }
 0x763   : > { %v2258_v31 = vadd.f32 %v2242_v28, %v9026_v42  ;;  %v2276_v63 = vmax.f32 %v2260_v27, 0.0  ;;  %v2247_v38 = vmul.f32 %v7447_v30, %v9019_v33  ;;  %6971 = vmatpush3.bf16.msra.mxu0 %v7880_v19  ;;  %v7887_v27 = vld [vmem:[%s10475_s10 + $0x58] sm:$0xff]  }
 0x764   : > { %v2206_v32 = vpop.f32.mrf.mxu0  ;;  %6972 = vmatprep.subr.bf16.mxu0 %v7881_v22  ;;  %v7888_v28 = vld [vmem:[%s10475_s10 + $0x18] sm:$0xff]  }
 0x765   : > { %v2274_v36 = vmax.f32 %v2258_v31, 0.0  ;;  %v2245_v37 = vmul.f32 %v2206_v32, %v9019_v33  ;;  %v2289_v52 = vpack.c.bf16 %v2276_v63, %v2275_v13  ;;  %v2263_v46 = vadd.f32 %v2247_v38, %v9026_v42  ;;  %v9117_v31 = vld [vmem:[%s10501_s0 + $0x10] ss:$0 sm:$0xff] }
 0x766   : > { %v7448_v39 = vpop.f32.mrf.mxu0 }
 0x767   : > { %v2288_v40 = vpack.c.bf16 %v2274_v36, %v2273_v35  ;;  %v2248_v43 = vmul.f32 %v7448_v39, %v9019_v33  ;;  %v2261_v45 = vadd.f32 %v2245_v37, %v9026_v42  ;;  %v2279_v60 = vmax.f32 %v2263_v46, 0.0  ;;  %6973 = vmatpush3.bf16.msra.mxu0 %v7882_v20 }
 0x768   : > { %v2209_v62 = vpop.f32.mrf.mxu0  ;;  %6974 = vmatprep.subr.bf16.mxu0 %v7883_v23 }
 0x769   : > { %v2264_v53 = vadd.f32 %v2248_v43, %v9026_v42  ;;  %v2246_v55 = vmul.f32 %v2209_v62, %v9019_v33  ;;  %7465 = vmatprep.mubr.msk.bf16.mxu0 %vm1726_vm3, %v2288_v40  ;;  %v2277_v51 = vmax.f32 %v2261_v45, 0.0 }
 0x76a   : > { %v7451_v47 = vpop.f32.mrf.mxu0  ;;  %7466 = vmatmul.mubr.msk.bf16.gmra.mxu0 %vm1726_vm3, %v2289_v52 }
 0x76b   : > { %v2262_v48 = vadd.f32 %v2246_v55, %v9026_v42  ;;  %v2280_v49 = vmax.f32 %v2264_v53, 0.0  ;;  %v2251_v0 = vmul.f32 %v7451_v47, %v9019_v33  ;;  %6975 = vmatpush3.bf16.msra.mxu0 %v7884_v24 }
 0x76c   : > { %v2222_v50 = vpop.f32.mrf.mxu0  ;;  %6976 = vmatprep.subr.bf16.mxu0 %v7885_v25 }
 0x76d   : > { %v2278_v56 = vmax.f32 %v2262_v48, 0.0  ;;  %v2249_v59 = vmul.f32 %v2222_v50, %v9019_v33  ;;  %v2291_v34 = vpack.c.bf16 %v2280_v49, %v2279_v60  ;;  %v2267_v11 = vadd.f32 %v2251_v0, %v9026_v42 }
 0x76e   : > { %v7452_v1 = vpop.f32.mrf.mxu0 }
 0x76f   : > { %v2290_v2 = vpack.c.bf16 %v2278_v56, %v2277_v51  ;;  %v2252_v3 = vmul.f32 %v7452_v1, %v9019_v33  ;;  %v2265_v8 = vadd.f32 %v2249_v59, %v9026_v42  ;;  %v2283_v54 = vmax.f32 %v2267_v11, 0.0  ;;  %6977 = vmatpush3.bf16.msra.mxu0 %v7886_v26  ;;  %v7889_v26 = vld [vmem:[%s10475_s10 + $0x50] sm:$0xff]  }
 0x770   : > { %v2225_v4 = vpop.f32.mrf.mxu0  ;;  %6978 = vmatprep.subr.bf16.mxu0 %v7887_v27  ;;  %v7890_v27 = vld [vmem:[%s10475_s10 + $0x10] sm:$0xff]  }
 0x771   : > { %v2268_v9 = vadd.f32 %v2252_v3, %v9026_v42  ;;  %v2250_v44 = vmul.f32 %v2225_v4, %v9019_v33  ;;  %7469 = vmatprep.mubr.msk.bf16.mxu0 %vm1726_vm3, %v2290_v2  ;;  %v2281_v14 = vmax.f32 %v2265_v8, 0.0  ;;  %v7870_v33 = vld [vmem:[%s10474_s9 + $0x20] ss:$8 sps:$4 sm:$0xff]  }
 0x772   : > { %7470 = vmatmul.mubr.msk.bf16.gmra.mxu0 %vm1726_vm3, %v2291_v34  ;;  %2591 = vmatpush1.bf16.msra.mxu1 %v7870_v33 }
 0x773   : > { %v2266_v12 = vadd.f32 %v2250_v44, %v9026_v42  ;;  %v2284_v10 = vmax.f32 %v2268_v9, 0.0  ;;  %v7873_v42 = vld [vmem:[%s10474_s9 + $0x10] ss:$8 sps:$4 sm:$0xff]   ;;  %2592 = vmatprep.subr.bf16.mxu1 %v7875_v18  ;;  %6979 = vmatpush3.bf16.msra.mxu0 %v7888_v28  ;;  %v7891_v28 = vld [vmem:[%s10475_s10 + $0x48] sm:$0xff]  }
 0x774   : > { %6980 = vmatprep.subr.bf16.mxu0 %v7889_v26 }
 0x775   : > { %v2282_v61 = vmax.f32 %v2266_v12, 0.0  ;;  %v2293_v16 = vpack.c.bf16 %v2284_v10, %v2283_v54 }
 0x776   : > { %2593 = vmatpush1.bf16.msra.mxu1 %v7873_v42 }
 0x777   : > { %v2292_v15 = vpack.c.bf16 %v2282_v61, %v2281_v14  ;;  %2594 = vmatprep.subr.bf16.mxu1 %v7878_v5  ;;  %6981 = vmatpush3.bf16.msra.mxu0 %v7890_v27 }
 0x778   : > { %6982 = vmatprep.subr.bf16.mxu0 %v7891_v28 }
 0x779   : > { %7473 = vmatprep.mubr.msk.bf16.mxu0 %vm1726_vm3, %v2292_v15 }
 0x77a   : > { %7474 = vmatmul.mubr.msk.bf16.gmra.mxu0 %vm1726_vm3, %v2293_v16  ;;  %2595 = vmatpush1.bf16.msra.mxu1 %v7876_v7 }
 0x822   : > { %v7463_v29 = vpop.f32.mrf.mxu0 }
 0x823   : > { %v2393_v62 = vadd.f32 %v7463_v29, %v9117_v31  ;;  %v7892_v29 = vld [vmem:[%s10475_s10 + $0x8] sm:$0xff]  }
 0x824   : > { %v2384_v30 = vpop.f32.mrf.mxu0  ;;  %6983 = vmatpush3.bf16.msra.mxu0 %v7892_v29 }
 0x825   : > { %v2385_v32 = vadd.f32 %v2384_v30, %v9117_v31  ;;  %v2449_v55 = vmax.f32 %v2393_v62, 0.0  ;;  %v7893_v30 = vld [vmem:[%s10475_s10 + $0x40] sm:$0xff]  }
 0x826   : > { %v7464_v63 = vpop.f32.mrf.mxu0  ;;  %6984 = vmatprep.subr.bf16.mxu0 %v7893_v30 }
 0x827   : > { %v2447_v13 = vmax.f32 %v2385_v32, 0.0  ;;  %v2396_v40 = vadd.f32 %v7464_v63, %v9117_v31  ;;  %v7895_v63 = vld [vmem:[%s10476_s11 + $0x38] sm:$0xff]   ;;  %v7896_v32 = vld [vmem:[%s10476_s11 + $0x30] sm:$0xff]  }
 0x828   : > { %v2387_v35 = vpop.f32.mrf.mxu0  ;;  %7477 = vmatprep.subr.bf16.mxu1 %v7895_v63 }
 0x829   : > { %v2388_v36 = vadd.f32 %v2387_v35, %v9117_v31  ;;  %v2450_v45 = vmax.f32 %v2396_v40, 0.0  ;;  %v7897_v35 = vld [vmem:[%s10476_s11 + $0x28] sm:$0xff]  }
 0x82a   : > { %v7467_v37 = vpop.f32.mrf.mxu0 }
 0x82b   : > { %v2448_v38 = vmax.f32 %v2388_v36, 0.0  ;;  %v2466_v46 = vpack.c.bf16 %v2450_v45, %v2449_v55  ;;  %v2409_v1 = vadd.f32 %v7467_v37, %v9117_v31  ;;  %v6652_v36 = vld [vmem:[%s10501_s0 + $0x11] ss:$8 sm:$0x3] }
 0x82c   : > { %v2400_v39 = vpop.f32.mrf.mxu0 }
 0x82d   : > { %v2465_v43 = vpack.c.bf16 %v2448_v38, %v2447_v13  ;;  %v2401_v49 = vadd.f32 %v2400_v39, %v9117_v31  ;;  %v2453_v34 = vmax.f32 %v2409_v1, 0.0  ;;  %v9173_v13 = vrot.slane %v6652_v36, %v8585_v57 }
 0x82e   : > { %v7468_v52 = vpop.f32.mrf.mxu0  ;;  %v9176_v38 = vrot.slane %v6652_v36, %v8587_v58 }
 0x82f   : > { %2613 = vmatmul.mubr.bf16.vlgmr.msra.gmra.mxu1 %v2465_v43  ;;  %v2451_v56 = vmax.f32 %v2401_v49, 0.0  ;;  %v2412_v59 = vadd.f32 %v7468_v52, %v9117_v31 }
 0x830   : > { %2622 = vmatprep.mubr.bf16.mxu1 %v8311_v41  ;;  %v2403_v53 = vpop.f32.mrf.mxu0  ;;  %7478 = vmatpush3.bf16.msra.mxu1 %v7895_v63 }
 0x831   : > { %v2404_v47 = vadd.f32 %v2403_v53, %v9117_v31  ;;  %v2454_v2 = vmax.f32 %v2412_v59, 0.0  ;;  %7479 = vmatprep.subr.bf16.mxu1 %v7896_v32 }
 0x832   : > { %v7471_v48 = vpop.f32.mrf.mxu0 }
 0x833   : > { %v2452_v50 = vmax.f32 %v2404_v47, 0.0  ;;  %v2468_v4 = vpack.c.bf16 %v2454_v2, %v2453_v34  ;;  %v2425_v15 = vadd.f32 %v7471_v48, %v9117_v31 }
 0x834   : > { %v2416_v51 = vpop.f32.mrf.mxu0  ;;  %7480 = vmatpush3.bf16.msra.mxu1 %v7896_v32 }
 0x835   : > { %v2467_v60 = vpack.c.bf16 %v2452_v50, %v2451_v56  ;;  %v2417_v44 = vadd.f32 %v2416_v51, %v9117_v31  ;;  %v2457_v17 = vmax.f32 %v2425_v15, 0.0  ;;  %7481 = vmatprep.subr.bf16.mxu1 %v7897_v35 }
 0x836   : > { %v7472_v0 = vpop.f32.mrf.mxu0 }
 0x837   : > { %2623 = vmatmul.mubr.bf16.gmra.mxu1 %v2466_v46  ;;  %v2455_v10 = vmax.f32 %v2417_v44, 0.0  ;;  %v2428_v14 = vadd.f32 %v7472_v0, %v9117_v31 }
 0x838   : > { %2632 = vmatprep.mubr.bf16.mxu1 %v8311_v41  ;;  %v2419_v3 = vpop.f32.mrf.mxu0  ;;  %7482 = vmatpush3.bf16.msra.mxu1 %v7897_v35 }
 0x839   : > { %v2420_v8 = vadd.f32 %v2419_v3, %v9117_v31  ;;  %v2458_v16 = vmax.f32 %v2428_v14, 0.0 }
 0x83a   : > { %v7475_v9 = vpop.f32.mrf.mxu0 }
 0x83b   : > { %v2456_v11 = vmax.f32 %v2420_v8, 0.0  ;;  %v2470_v42 = vpack.c.bf16 %v2458_v16, %v2457_v17  ;;  %v2441_v20 = vadd.f32 %v7475_v9, %v9117_v31 }
 0x83c   : > { %v2432_v12 = vpop.f32.mrf.mxu0 }
 0x83d   : > { %v2469_v61 = vpack.c.bf16 %v2456_v11, %v2455_v10  ;;  %v2433_v5 = vadd.f32 %v2432_v12, %v9117_v31  ;;  %v2461_v24 = vmax.f32 %v2441_v20, 0.0 }
 0x83e   : > { %v7476_v54 = vpop.f32.mrf.mxu0 }
 0x83f   : > { %2633 = vmatmul.mubr.bf16.gmra.mxu1 %v2467_v60  ;;  %v2459_v21 = vmax.f32 %v2433_v5, 0.0  ;;  %v2444_v19 = vadd.f32 %v7476_v54, %v9117_v31 }
 0x840   : > { %2642 = vmatprep.mubr.bf16.mxu1 %v8311_v41  ;;  %v2435_v33 = vpop.f32.mrf.mxu0 }
 0x841   : > { %v2436_v18 = vadd.f32 %v2435_v33, %v9117_v31  ;;  %v2462_v23 = vmax.f32 %v2444_v19, 0.0  ;;  %v7894_v31 = vld [vmem:[%s10475_s10] sm:$0xff]  }
 0x842   : > { %6985 = vmatpush3.bf16.msra.mxu0 %v7894_v31 }
 0x843   : > { %v2460_v7 = vmax.f32 %v2436_v18, 0.0  ;;  %v2472_v25 = vpack.c.bf16 %v2462_v23, %v2461_v24 }
 0x845   : > { %v2471_v22 = vpack.c.bf16 %v2460_v7, %v2459_v21 }
 0x847   : > { %2643 = vmatmul.mubr.bf16.gmra.mxu1 %v2468_v4 }
 0x848   : > { %2652 = vmatprep.mubr.bf16.mxu1 %v8311_v41 }
 0x84f   : > { %2653 = vmatmul.mubr.bf16.gmra.mxu1 %v2469_v61 }
 0x850   : > { %2662 = vmatprep.mubr.bf16.mxu1 %v8311_v41 }
 0x857   : > { %2663 = vmatmul.mubr.bf16.gmra.mxu1 %v2470_v42 }
 0x858   : > { %2672 = vmatprep.mubr.bf16.mxu1 %v8311_v41 }
 0x85f   : > { %2673 = vmatmul.mubr.bf16.gmra.mxu1 %v2471_v22 }
 0x860   : > { %2682 = vmatprep.mubr.bf16.mxu1 %v8311_v41 }
 0x867   : > { %2683 = vmatmul.mubr.bf16.gmra.mxu1 %v2472_v25 }
 0x8ef   : > { %v2614_v37 = vpop.f32.mrf.mxu1 }
 0x8f0   : > { %v2615_v62 = vadd.f32 %v2614_v37, %v9176_v38 }
 0x8f1   : > { %v2616_v39 = vpop.f32.mrf.mxu1 }
 0x8f2   : > { %v2617_v43 = vadd.f32 %v2616_v39, %v9173_v13  ;;  %v2693_v49 = vmax.f32 %v2615_v62, 0.0 }
 0x8f3   : > { %v2618_v40 = vpop.f32.mrf.mxu1 }
 0x8f4   : > { %v2619_v52 = vadd.f32 %v2618_v40, %v9176_v38  ;;  %v2694_v47 = vmax.f32 %v2617_v43, 0.0 }
 0x8f5   : > { %v2620_v45 = vpop.f32.mrf.mxu1 }
 0x8f6   : > { %v2621_v53 = vadd.f32 %v2620_v45, %v9173_v13  ;;  %v2695_v55 = vmax.f32 %v2619_v52, 0.0 }
 0x8f7   : > { %v2624_v46 = vpop.f32.mrf.mxu1 }
 0x8f8   : > { %v2696_v48 = vmax.f32 %v2621_v53, 0.0  ;;  %v2726_v56 = vpack.c.bf16 %v2695_v55, %v2693_v49  ;;  %v2625_v1 = vadd.f32 %v2624_v46, %v9176_v38 }
 0x8f9   : > { %v2626_v50 = vpop.f32.mrf.mxu1 }
 0x8fa   : > { %v2727_v51 = vpack.c.bf16 %v2696_v48, %v2694_v47  ;;  %v2627_v60 = vadd.f32 %v2626_v50, %v9173_v13  ;;  %v2697_v44 = vmax.f32 %v2625_v1, 0.0 }
 0x8fb   : > { %v2628_v59 = vpop.f32.mrf.mxu1 }
 0x8fc   : > { %v2629_v0 = vadd.f32 %v2628_v59, %v9176_v38  ;;  %2902 = vmatprep.mubr.bf16.mxu0 %v2727_v51  ;;  %v2698_v8 = vmax.f32 %v2627_v60, 0.0 }
 0x8fd   : > { %v2630_v2 = vpop.f32.mrf.mxu1  ;;  %2903 = vmatmul.mubr.bf16.vlgmr.msra.gmra.mxu0 %v2726_v56 }
 0x8fe   : > { %v2631_v3 = vadd.f32 %v2630_v2, %v9173_v13  ;;  %v2699_v34 = vmax.f32 %v2629_v0, 0.0 }
 0x8ff   : > { %v2634_v4 = vpop.f32.mrf.mxu1 }
 0x900   : > { %v2700_v9 = vmax.f32 %v2631_v3, 0.0  ;;  %v2728_v10 = vpack.c.bf16 %v2699_v34, %v2697_v44  ;;  %v2635_v15 = vadd.f32 %v2634_v4, %v9176_v38 }
 0x901   : > { %v2636_v11 = vpop.f32.mrf.mxu1 }
 0x902   : > { %v2729_v12 = vpack.c.bf16 %v2700_v9, %v2698_v8  ;;  %v2637_v61 = vadd.f32 %v2636_v11, %v9173_v13  ;;  %v2701_v7 = vmax.f32 %v2635_v15, 0.0 }
 0x903   : > { %v2638_v14 = vpop.f32.mrf.mxu1 }
 0x904   : > { %v2639_v54 = vadd.f32 %v2638_v14, %v9176_v38  ;;  %2910 = vmatprep.mubr.bf16.mxu0 %v2729_v12  ;;  %v2702_v18 = vmax.f32 %v2637_v61, 0.0 }
 0x905   : > { %v2640_v16 = vpop.f32.mrf.mxu1  ;;  %2911 = vmatmul.mubr.bf16.gmra.mxu0 %v2728_v10 }
 0x906   : > { %v2641_v33 = vadd.f32 %v2640_v16, %v9173_v13  ;;  %v2703_v17 = vmax.f32 %v2639_v54, 0.0 }
 0x907   : > { %v2644_v42 = vpop.f32.mrf.mxu1 }
 0x908   : > { %v2704_v5 = vmax.f32 %v2641_v33, 0.0  ;;  %v2730_v22 = vpack.c.bf16 %v2703_v17, %v2701_v7  ;;  %v2645_v25 = vadd.f32 %v2644_v42, %v9176_v38 }
 0x909   : > { %v2646_v21 = vpop.f32.mrf.mxu1 }
 0x90a   : > { %v2731_v19 = vpack.c.bf16 %v2704_v5, %v2702_v18  ;;  %v2647_v23 = vadd.f32 %v2646_v21, %v9173_v13  ;;  %v2705_v63 = vmax.f32 %v2645_v25, 0.0 }
 0x90b   : > { %v2648_v20 = vpop.f32.mrf.mxu1 }
 0x90c   : > { %v2649_v24 = vadd.f32 %v2648_v20, %v9176_v38  ;;  %2918 = vmatprep.mubr.bf16.mxu0 %v2731_v19  ;;  %v2706_v30 = vmax.f32 %v2647_v23, 0.0 }
 0x90d   : > { %v2650_v26 = vpop.f32.mrf.mxu1  ;;  %2919 = vmatmul.mubr.bf16.gmra.mxu0 %v2730_v22 }
 0x90e   : > { %v2651_v27 = vadd.f32 %v2650_v26, %v9173_v13  ;;  %v2707_v28 = vmax.f32 %v2649_v24, 0.0 }
 0x90f   : > { %v2654_v29 = vpop.f32.mrf.mxu1 }
 0x910   : > { %v2708_v31 = vmax.f32 %v2651_v27, 0.0  ;;  %v2732_v36 = vpack.c.bf16 %v2707_v28, %v2705_v63  ;;  %v2655_v43 = vadd.f32 %v2654_v29, %v9176_v38  ;;  %v7898_v63 = vld [vmem:[%s10476_s11 + $0x20] sm:$0xff]  }
 0x911   : > { %v2656_v32 = vpop.f32.mrf.mxu1  ;;  %7483 = vmatprep.subr.bf16.mxu1 %v7898_v63 }
 0x912   : > { %v2733_v35 = vpack.c.bf16 %v2708_v31, %v2706_v30  ;;  %v2657_v39 = vadd.f32 %v2656_v32, %v9173_v13  ;;  %v2709_v47 = vmax.f32 %v2655_v43, 0.0  ;;  %7484 = vmatpush3.bf16.msra.mxu1 %v7898_v63  ;;  %v7901_v32 = vld [vmem:[%s10476_s11 + $0x8] sm:$0xff]  }
 0x913   : > { %v2658_v37 = vpop.f32.mrf.mxu1 }
 0x914   : > { %v2659_v40 = vadd.f32 %v2658_v37, %v9176_v38  ;;  %2926 = vmatprep.mubr.bf16.mxu0 %v2733_v35  ;;  %v2710_v55 = vmax.f32 %v2657_v39, 0.0  ;;  %v7902_v35 = vld [vmem:[%s10476_s11] sm:$0xff]   ;;  %v7904_v37 = vld [vmem:[%s10477_s12 + $0x10] sm:$0xff]  }
 0x915   : > { %v2660_v52 = vpop.f32.mrf.mxu1  ;;  %2927 = vmatmul.mubr.bf16.gmra.mxu0 %v2732_v36  ;;  %v7903_v36 = vld [vmem:[%s10477_s12 + $0x18] sm:$0xff]  }
 0x916   : > { %v2661_v62 = vadd.f32 %v2660_v52, %v9173_v13  ;;  %v2711_v45 = vmax.f32 %v2659_v40, 0.0  ;;  %7509 = vmatprep.subr.bf16.mxu0 %v7903_v36  ;;  %v9235_v52 = vld [vmem:[%s10501_s0 + $0x12] ss:$0 sm:$0xff] }
 0x917   : > { %v2664_v53 = vpop.f32.mrf.mxu1  ;;  %7510 = vmatpush3.bf16.msra.mxu0 %v7903_v36 }
 0x918   : > { %v2712_v46 = vmax.f32 %v2661_v62, 0.0  ;;  %v2734_v50 = vpack.c.bf16 %v2711_v45, %v2709_v47  ;;  %v2665_v60 = vadd.f32 %v2664_v53, %v9176_v38  ;;  %7511 = vmatprep.subr.bf16.mxu0 %v7904_v37 }
 0x919   : > { %v2666_v48 = vpop.f32.mrf.mxu1 }
 0x91a   : > { %v2735_v49 = vpack.c.bf16 %v2712_v46, %v2710_v55  ;;  %v2667_v56 = vadd.f32 %v2666_v48, %v9173_v13  ;;  %v2713_v8 = vmax.f32 %v2665_v60, 0.0 }
 0x91b   : > { %v2668_v51 = vpop.f32.mrf.mxu1  ;;  %7512 = vmatpush3.bf16.msra.mxu0 %v7904_v37 }
 0x91c   : > { %v2669_v59 = vadd.f32 %v2668_v51, %v9176_v38  ;;  %2934 = vmatprep.mubr.bf16.mxu0 %v2735_v49  ;;  %v2714_v34 = vmax.f32 %v2667_v56, 0.0 }
 0x91d   : > { %v2670_v0 = vpop.f32.mrf.mxu1  ;;  %2935 = vmatmul.mubr.bf16.gmra.mxu0 %v2734_v50 }
 0x91e   : > { %v2671_v1 = vadd.f32 %v2670_v0, %v9173_v13  ;;  %v2715_v2 = vmax.f32 %v2669_v59, 0.0 }
 0x91f   : > { %v2674_v3 = vpop.f32.mrf.mxu1 }
 0x920   : > { %v2716_v4 = vmax.f32 %v2671_v1, 0.0  ;;  %v2736_v11 = vpack.c.bf16 %v2715_v2, %v2713_v8  ;;  %v2675_v61 = vadd.f32 %v2674_v3, %v9176_v38 }
 0x921   : > { %v2676_v9 = vpop.f32.mrf.mxu1 }
 0x922   : > { %v2737_v44 = vpack.c.bf16 %v2716_v4, %v2714_v34  ;;  %v2677_v10 = vadd.f32 %v2676_v9, %v9173_v13  ;;  %v2717_v18 = vmax.f32 %v2675_v61, 0.0 }
 0x923   : > { %v2678_v12 = vpop.f32.mrf.mxu1 }
 0x924   : > { %v2679_v14 = vadd.f32 %v2678_v12, %v9176_v38  ;;  %2942 = vmatprep.mubr.bf16.mxu0 %v2737_v44  ;;  %v2718_v17 = vmax.f32 %v2677_v10, 0.0 }
 0x925   : > { %v2680_v54 = vpop.f32.mrf.mxu1  ;;  %2943 = vmatmul.mubr.bf16.gmra.mxu0 %v2736_v11 }
 0x926   : > { %v2681_v15 = vadd.f32 %v2680_v54, %v9173_v13  ;;  %v2719_v16 = vmax.f32 %v2679_v14, 0.0 }
 0x927   : > { %v2684_v33 = vpop.f32.mrf.mxu1 }
 0x928   : > { %v2720_v42 = vmax.f32 %v2681_v15, 0.0  ;;  %v2738_v21 = vpack.c.bf16 %v2719_v16, %v2717_v18  ;;  %v2685_v23 = vadd.f32 %v2684_v33, %v9176_v38 }
 0x929   : > { %v2686_v5 = vpop.f32.mrf.mxu1 }
 0x92a   : > { %v2739_v7 = vpack.c.bf16 %v2720_v42, %v2718_v17  ;;  %v2687_v22 = vadd.f32 %v2686_v5, %v9173_v13  ;;  %v2721_v29 = vmax.f32 %v2685_v23, 0.0 }
 0x92b   : > { %v2688_v19 = vpop.f32.mrf.mxu1 }
 0x92c   : > { %v2689_v20 = vadd.f32 %v2688_v19, %v9176_v38  ;;  %2950 = vmatprep.mubr.bf16.mxu0 %v2739_v7  ;;  %v2722_v27 = vmax.f32 %v2687_v22, 0.0  ;;  %v7899_v38 = vld [vmem:[%s10476_s11 + $0x18] sm:$0xff]  }
 0x92d   : > { %v2690_v24 = vpop.f32.mrf.mxu1  ;;  %2951 = vmatmul.mubr.bf16.gmra.mxu0 %v2738_v21  ;;  %7485 = vmatprep.subr.bf16.mxu1 %v7899_v38 }
 0x92e   : > { %v2691_v25 = vadd.f32 %v2690_v24, %v9173_v13  ;;  %v2723_v26 = vmax.f32 %v2689_v20, 0.0  ;;  %7486 = vmatpush3.bf16.msra.mxu1 %v7899_v38  ;;  %v7900_v13 = vld [vmem:[%s10476_s11 + $0x10] sm:$0xff]  }
 0x92f   : > { %7487 = vmatprep.subr.bf16.mxu1 %v7900_v13 }
 0x930   : > { %v2724_v28 = vmax.f32 %v2691_v25, 0.0  ;;  %v2740_v31 = vpack.c.bf16 %v2723_v26, %v2721_v29 }
 0x932   : > { %v2741_v30 = vpack.c.bf16 %v2724_v28, %v2722_v27  ;;  %7488 = vmatpush3.bf16.msra.mxu1 %v7900_v13 }
 0x933   : > { %7489 = vmatprep.subr.bf16.mxu1 %v7901_v32 }
 0x934   : > { %2958 = vmatprep.mubr.bf16.mxu0 %v2741_v30 }
 0x935   : > { %2959 = vmatmul.mubr.bf16.gmra.mxu0 %v2740_v31 }
 0x936   : > { %7490 = vmatpush3.bf16.msra.mxu1 %v7901_v32 }
 0x937   : > { %7491 = vmatprep.subr.bf16.mxu1 %v7902_v35 }
 0x93a   : > { %7492 = vmatpush3.bf16.msra.mxu1 %v7902_v35 }
 0x93b   : > { %7533 = vmatprep.subr.mxu1 %v8312_v6 }
 0x9bd   : > { %v6986_v39 = vpop.f32.mrf.mxu0 }
 0x9bf   : > { %v6987_v40 = vpop.f32.mrf.mxu0 }
 0x9c0   : > { %v6988_v43 = vadd.f32 %v6987_v40, %v6986_v39 }
 0x9c1   : > { %v6989_v62 = vpop.f32.mrf.mxu0 }
 0x9c2   : > { %v2905_v53 = vadd.f32 %v6988_v43, %v9235_v52 }
 0x9c3   : > { %v6990_v45 = vpop.f32.mrf.mxu0 }
 0x9c4   : > { %v6991_v55 = vadd.f32 %v6990_v45, %v6989_v62  ;;  %v2967_v49 = vmax.f32 %v2905_v53, 0.0 }
 0x9c5   : > { %v6992_v46 = vpop.f32.mrf.mxu0 }
 0x9c6   : > { %v2908_v47 = vadd.f32 %v6991_v55, %v9235_v52 }
 0x9c7   : > { %v6993_v48 = vpop.f32.mrf.mxu0 }
 0x9c8   : > { %v2968_v50 = vmax.f32 %v2908_v47, 0.0  ;;  %v6994_v51 = vadd.f32 %v6993_v48, %v6992_v46 }
 0x9c9   : > { %v6995_v56 = vpop.f32.mrf.mxu0 }
 0x9ca   : > { %v2984_v59 = vpack.c.bf16 %v2968_v50, %v2967_v49  ;;  %v2913_v0 = vadd.f32 %v6994_v51, %v9235_v52 }
 0x9cb   : > { %v6996_v60 = vpop.f32.mrf.mxu0 }
 0x9cc   : > { %v6997_v1 = vadd.f32 %v6996_v60, %v6995_v56  ;;  %7493 = vmatprep.mubr.bf16.mxu1 %v2984_v59  ;;  %v2969_v4 = vmax.f32 %v2913_v0, 0.0 }
 0x9cd   : > { %v6998_v2 = vpop.f32.mrf.mxu0 }
 0x9ce   : > { %v2916_v3 = vadd.f32 %v6997_v1, %v9235_v52 }
 0x9cf   : > { %v6999_v34 = vpop.f32.mrf.mxu0 }
 0x9d0   : > { %v2970_v8 = vmax.f32 %v2916_v3, 0.0  ;;  %v7000_v9 = vadd.f32 %v6999_v34, %v6998_v2 }
 0x9d1   : > { %v7001_v44 = vpop.f32.mrf.mxu0 }
 0x9d2   : > { %v2985_v11 = vpack.c.bf16 %v2970_v8, %v2969_v4  ;;  %v2921_v10 = vadd.f32 %v7000_v9, %v9235_v52 }
 0x9d3   : > { %v7002_v12 = vpop.f32.mrf.mxu0 }
 0x9d4   : > { %v7003_v14 = vadd.f32 %v7002_v12, %v7001_v44  ;;  %7494 = vmatmul.mubr.bf16.vlgmr.msra.gmra.mxu1 %v2985_v11  ;;  %v2971_v16 = vmax.f32 %v2921_v10, 0.0 }
 0x9d5   : > { %v7004_v61 = vpop.f32.mrf.mxu0 }
 0x9d6   : > { %v2924_v54 = vadd.f32 %v7003_v14, %v9235_v52 }
 0x9d7   : > { %v7005_v15 = vpop.f32.mrf.mxu0 }
 0x9d8   : > { %v2972_v33 = vmax.f32 %v2924_v54, 0.0  ;;  %v7006_v17 = vadd.f32 %v7005_v15, %v7004_v61  ;;  %v7905_v61 = vld [vmem:[%s10477_s12 + $0x8] sm:$0xff]   ;;  %v7906_v54 = vld [vmem:[%s10477_s12] sm:$0xff]  }
 0x9d9   : > { %v7007_v42 = vpop.f32.mrf.mxu0  ;;  %7513 = vmatprep.subr.bf16.mxu0 %v7905_v61 }
 0x9da   : > { %v2986_v18 = vpack.c.bf16 %v2972_v33, %v2971_v16  ;;  %v2929_v7 = vadd.f32 %v7006_v17, %v9235_v52  ;;  %7514 = vmatpush3.bf16.msra.mxu0 %v7905_v61  ;;  %v2983_v16 = vld [vmem:[%s10501_s0 + $0x13] ss:$0 sm:$0xff] }
 0x9db   : > { %v7008_v5 = vpop.f32.mrf.mxu0  ;;  %7515 = vmatprep.subr.bf16.mxu0 %v7906_v54 }
 0x9dc   : > { %v7009_v21 = vadd.f32 %v7008_v5, %v7007_v42  ;;  %7497 = vmatprep.mubr.bf16.mxu1 %v2986_v18  ;;  %v2973_v23 = vmax.f32 %v2929_v7, 0.0 }
 0x9dd   : > { %v7010_v19 = vpop.f32.mrf.mxu0 }
 0x9de   : > { %v2932_v22 = vadd.f32 %v7009_v21, %v9235_v52  ;;  %7516 = vmatpush3.bf16.msra.mxu0 %v7906_v54  ;;  %v3170_v54 = vld [vmem:[%s10501_s0 + $0x15] ss:$0 sm:$0xff] }
 0x9df   : > { %v7011_v20 = vpop.f32.mrf.mxu0 }
 0x9e0   : > { %v2974_v24 = vmax.f32 %v2932_v22, 0.0  ;;  %v7012_v25 = vadd.f32 %v7011_v20, %v7010_v19 }
 0x9e1   : > { %v7013_v26 = vpop.f32.mrf.mxu0 }
 0x9e2   : > { %v2987_v27 = vpack.c.bf16 %v2974_v24, %v2973_v23  ;;  %v2937_v29 = vadd.f32 %v7012_v25, %v9235_v52 }
 0x9e3   : > { %v7014_v28 = vpop.f32.mrf.mxu0 }
 0x9e4   : > { %v7015_v30 = vadd.f32 %v7014_v28, %v7013_v26  ;;  %7498 = vmatmul.mubr.bf16.gmra.mxu1 %v2987_v27  ;;  %v2975_v13 = vmax.f32 %v2937_v29, 0.0 }
 0x9e5   : > { %v7016_v31 = vpop.f32.mrf.mxu0 }
 0x9e6   : > { %v2940_v63 = vadd.f32 %v7015_v30, %v9235_v52 }
 0x9e7   : > { %v7017_v38 = vpop.f32.mrf.mxu0 }
 0x9e8   : > { %v2976_v32 = vmax.f32 %v2940_v63, 0.0  ;;  %v7018_v35 = vadd.f32 %v7017_v38, %v7016_v31 }
 0x9e9   : > { %v7019_v36 = vpop.f32.mrf.mxu0 }
 0x9ea   : > { %v2988_v37 = vpack.c.bf16 %v2976_v32, %v2975_v13  ;;  %v2945_v40 = vadd.f32 %v7018_v35, %v9235_v52 }
 0x9eb   : > { %v7020_v39 = vpop.f32.mrf.mxu0 }
 0x9ec   : > { %v7021_v43 = vadd.f32 %v7020_v39, %v7019_v36  ;;  %7501 = vmatprep.mubr.bf16.mxu1 %v2988_v37  ;;  %v2977_v55 = vmax.f32 %v2945_v40, 0.0 }
 0x9ed   : > { %v7022_v62 = vpop.f32.mrf.mxu0 }
 0x9ee   : > { %v2948_v45 = vadd.f32 %v7021_v43, %v9235_v52 }
 0x9ef   : > { %v7023_v53 = vpop.f32.mrf.mxu0 }
 0x9f0   : > { %v2978_v46 = vmax.f32 %v2948_v45, 0.0  ;;  %v7024_v47 = vadd.f32 %v7023_v53, %v7022_v62 }
 0x9f1   : > { %v7025_v48 = vpop.f32.mrf.mxu0 }
 0x9f2   : > { %v2989_v49 = vpack.c.bf16 %v2978_v46, %v2977_v55  ;;  %v2953_v51 = vadd.f32 %v7024_v47, %v9235_v52 }
 0x9f3   : > { %v7026_v50 = vpop.f32.mrf.mxu0 }
 0x9f4   : > { %v7027_v56 = vadd.f32 %v7026_v50, %v7025_v48  ;;  %7502 = vmatmul.mubr.bf16.gmra.mxu1 %v2989_v49  ;;  %v2979_v1 = vmax.f32 %v2953_v51, 0.0 }
 0x9f5   : > { %v7028_v59 = vpop.f32.mrf.mxu0 }
 0x9f6   : > { %v2956_v60 = vadd.f32 %v7027_v56, %v9235_v52 }
 0x9f7   : > { %v7029_v0 = vpop.f32.mrf.mxu0 }
 0x9f8   : > { %v2980_v2 = vmax.f32 %v2956_v60, 0.0  ;;  %v7030_v3 = vadd.f32 %v7029_v0, %v7028_v59 }
 0x9f9   : > { %v7031_v34 = vpop.f32.mrf.mxu0 }
 0x9fa   : > { %v2990_v4 = vpack.c.bf16 %v2980_v2, %v2979_v1  ;;  %v2961_v9 = vadd.f32 %v7030_v3, %v9235_v52 }
 0x9fb   : > { %v7032_v8 = vpop.f32.mrf.mxu0 }
 0x9fc   : > { %v7033_v44 = vadd.f32 %v7032_v8, %v7031_v34  ;;  %7505 = vmatprep.mubr.bf16.mxu1 %v2990_v4  ;;  %v2981_v12 = vmax.f32 %v2961_v9, 0.0 }
 0x9fe   : > { %v2964_v11 = vadd.f32 %v7033_v44, %v9235_v52 }
 0xa00   : > { %v2982_v10 = vmax.f32 %v2964_v11, 0.0 }
 0xa02   : > { %v2991_v14 = vpack.c.bf16 %v2982_v10, %v2981_v12 }
 0xa04   : > { %7506 = vmatmul.mubr.bf16.gmra.mxu1 %v2991_v14 }
 0xa05   : > { %7565 = vmatprep.mubr.msk.f32.mxu1 %vm8313_vm2, %v8312_v6 }
 0xa94   : > { %v7495_v52 = vpop.f32.mrf.mxu1 }
 0xa95   : > { %v3099_v18 = vadd.f32 %v7495_v52, %v2983_v16 }
 0xa96   : > { %v3090_v15 = vpop.f32.mrf.mxu1 }
 0xa97   : > { %v3091_v17 = vadd.f32 %v3090_v15, %v2983_v16  ;;  %v3155_v20 = vmax.f32 %v3099_v18, 0.0 }
 0xa98   : > { %v7496_v33 = vpop.f32.mrf.mxu1 }
 0xa99   : > { %v3102_v42 = vadd.f32 %v7496_v33, %v2983_v16  ;;  %v3153_v19 = vmax.f32 %v3091_v17, 0.0 }
 0xa9a   : > { %v3093_v5 = vpop.f32.mrf.mxu1 }
 0xa9b   : > { %v3094_v7 = vadd.f32 %v3093_v5, %v2983_v16  ;;  %v3156_v21 = vmax.f32 %v3102_v42, 0.0 }
 0xa9d   : > { %v3154_v22 = vmax.f32 %v3094_v7, 0.0  ;;  %v3174_v24 = vpack.c.bf16 %v3156_v21, %v3155_v20 }
 0xa9f   : > { %v3173_v23 = vpack.c.bf16 %v3154_v22, %v3153_v19 }
 0xaa1   : > { %7517 = vmatprep.mubr.msk.bf16.mxu0 %vm1726_vm3, %v3173_v23 }
 0xaa2   : > { %7518 = vmatmul.mubr.msk.bf16.vlgmr.msra.gmra.mxu0 %vm1726_vm3, %v3174_v24 }
 0xaa4   : > { %v7499_v25 = vpop.f32.mrf.mxu1 }
 0xaa5   : > { %v3115_v30 = vadd.f32 %v7499_v25, %v2983_v16 }
 0xaa6   : > { %v3106_v26 = vpop.f32.mrf.mxu1 }
 0xaa7   : > { %v3107_v28 = vadd.f32 %v3106_v26, %v2983_v16  ;;  %v3159_v35 = vmax.f32 %v3115_v30, 0.0 }
 0xaa8   : > { %v7500_v27 = vpop.f32.mrf.mxu1 }
 0xaa9   : > { %v3118_v29 = vadd.f32 %v7500_v27, %v2983_v16  ;;  %v3157_v13 = vmax.f32 %v3107_v28, 0.0 }
 0xaaa   : > { %v3109_v31 = vpop.f32.mrf.mxu1 }
 0xaab   : > { %v3110_v63 = vadd.f32 %v3109_v31, %v2983_v16  ;;  %v3160_v38 = vmax.f32 %v3118_v29, 0.0 }
 0xaad   : > { %v3158_v32 = vmax.f32 %v3110_v63, 0.0  ;;  %v3176_v37 = vpack.c.bf16 %v3160_v38, %v3159_v35 }
 0xaaf   : > { %v3175_v36 = vpack.c.bf16 %v3158_v32, %v3157_v13 }
 0xab1   : > { %7521 = vmatprep.mubr.msk.bf16.mxu0 %vm1726_vm3, %v3175_v36 }
 0xab2   : > { %7522 = vmatmul.mubr.msk.bf16.gmra.mxu0 %vm1726_vm3, %v3176_v37 }
 0xab4   : > { %v7503_v39 = vpop.f32.mrf.mxu1 }
 0xab5   : > { %v3131_v53 = vadd.f32 %v7503_v39, %v2983_v16 }
 0xab6   : > { %v3122_v40 = vpop.f32.mrf.mxu1 }
 0xab7   : > { %v3123_v62 = vadd.f32 %v3122_v40, %v2983_v16  ;;  %v3163_v50 = vmax.f32 %v3131_v53, 0.0 }
 0xab8   : > { %v7504_v43 = vpop.f32.mrf.mxu1 }
 0xab9   : > { %v3134_v45 = vadd.f32 %v7504_v43, %v2983_v16  ;;  %v3161_v48 = vmax.f32 %v3123_v62, 0.0 }
 0xaba   : > { %v3125_v55 = vpop.f32.mrf.mxu1 }
 0xabb   : > { %v3126_v46 = vadd.f32 %v3125_v55, %v2983_v16  ;;  %v3164_v47 = vmax.f32 %v3134_v45, 0.0 }
 0xabd   : > { %v3162_v49 = vmax.f32 %v3126_v46, 0.0  ;;  %v3178_v56 = vpack.c.bf16 %v3164_v47, %v3163_v50 }
 0xabf   : > { %v3177_v51 = vpack.c.bf16 %v3162_v49, %v3161_v48  ;;  %v3169_v48 = vld [vmem:[%s10501_s0 + $0x14] ss:$0 sm:$0xff] }
 0xac1   : > { %7525 = vmatprep.mubr.msk.bf16.mxu0 %vm1726_vm3, %v3177_v51 }
 0xac2   : > { %7526 = vmatmul.mubr.msk.bf16.gmra.mxu0 %vm1726_vm3, %v3178_v56 }
 0xac4   : > { %v7507_v59 = vpop.f32.mrf.mxu1 }
 0xac5   : > { %v3147_v3 = vadd.f32 %v7507_v59, %v2983_v16 }
 0xac6   : > { %v3138_v60 = vpop.f32.mrf.mxu1 }
 0xac7   : > { %v3139_v1 = vadd.f32 %v3138_v60, %v2983_v16  ;;  %v3167_v11 = vmax.f32 %v3147_v3, 0.0 }
 0xac8   : > { %v7508_v0 = vpop.f32.mrf.mxu1 }
 0xac9   : > { %v3150_v2 = vadd.f32 %v7508_v0, %v2983_v16  ;;  %v3165_v9 = vmax.f32 %v3139_v1, 0.0 }
 0xaca   : > { %v3141_v34 = vpop.f32.mrf.mxu1 }
 0xacb   : > { %v3142_v4 = vadd.f32 %v3141_v34, %v2983_v16  ;;  %v3168_v8 = vmax.f32 %v3150_v2, 0.0 }
 0xacd   : > { %v3166_v44 = vmax.f32 %v3142_v4, 0.0  ;;  %v3180_v10 = vpack.c.bf16 %v3168_v8, %v3167_v11 }
 0xacf   : > { %v3179_v12 = vpack.c.bf16 %v3166_v44, %v3165_v9 }
 0xad1   : > { %7529 = vmatprep.mubr.msk.bf16.mxu0 %vm1726_vm3, %v3179_v12 }
 0xad2   : > { %7530 = vmatmul.mubr.msk.bf16.gmra.mxu0 %vm1726_vm3, %v3180_v10 }
 0xb62   : > { %v9272_v14 = vpop.f32.mrf.mxu0 }
 0xb63   : > { %v3336_v33 = vmul.f32 %v9272_v14, %v3170_v54 }
 0xb64   : > { %v9274_v61 = vpop.f32.mrf.mxu0 }
 0xb65   : > { %v3334_v52 = vmul.f32 %v9274_v61, %v3170_v54 }
 0xb66   : > { %v9280_v15 = vpop.f32.mrf.mxu0 }
 0xb67   : > { %3350 = vadd.xlane.f32.xlu0 %v3334_v52  ;;  %v3337_v42 = vmul.f32 %v9280_v15, %v3170_v54  ;;  %v3689_v46 = vpack.c.bf16 %v9280_v15, %v9272_v14 }
 0xb68   : > { %v9282_v16 = vpop.f32.mrf.mxu0 }
 0xb69   : > { %v3335_v17 = vmul.f32 %v9282_v16, %v3170_v54  ;;  %v3688_v47 = vpack.c.bf16 %v9282_v16, %v9274_v61 }
 0xb6b   : > { %3354 = vadd.xlane.f32.xlu0 %v3336_v33  ;;  %3352 = vadd.xlane.f32.xlu1 %v3335_v17 }
 0xb6f   : > { %3356 = vadd.xlane.f32.xlu1 %v3337_v42 }
 0xb72   : > { %v9287_v18 = vpop.f32.mrf.mxu0 }
 0xb73   : > { %v3340_v22 = vmul.f32 %v9287_v18, %v3170_v54 }
 0xb74   : > { %v9289_v5 = vpop.f32.mrf.mxu0 }
 0xb75   : > { %v3338_v7 = vmul.f32 %v9289_v5, %v3170_v54 }
 0xb76   : > { %v9292_v21 = vpop.f32.mrf.mxu0 }
 0xb77   : > { %3358 = vadd.xlane.f32.xlu0 %v3338_v7  ;;  %v3341_v23 = vmul.f32 %v9292_v21, %v3170_v54  ;;  %v3691_v53 = vpack.c.bf16 %v9292_v21, %v9287_v18  ;;  %v8272_v7 = vld [vmem:[%s8811_s24 + $0x8] sm:$0xff] }
 0xb78   : > { %v9294_v19 = vpop.f32.mrf.mxu0 }
 0xb79   : > { %v3339_v20 = vmul.f32 %v9294_v19, %v3170_v54  ;;  %v3690_v55 = vpack.c.bf16 %v9294_v19, %v9289_v5 }
 0xb7b   : > { %3362 = vadd.xlane.f32.xlu0 %v3340_v22  ;;  %3360 = vadd.xlane.f32.xlu1 %v3339_v20 }
 0xb7f   : > { %3364 = vadd.xlane.f32.xlu1 %v3341_v23 }
 0xb82   : > { %v7527_v24 = vpop.f32.mrf.mxu0 }
 0xb83   : > { %v3344_v29 = vmul.f32 %v7527_v24, %v3170_v54 }
 0xb84   : > { %v3303_v25 = vpop.f32.mrf.mxu0 }
 0xb85   : > { %v3342_v26 = vmul.f32 %v3303_v25, %v3170_v54 }
 0xb86   : > { %v7528_v27 = vpop.f32.mrf.mxu0 }
 0xb87   : > { %3366 = vadd.xlane.f32.xlu0 %v3342_v26  ;;  %v3345_v31 = vmul.f32 %v7528_v27, %v3170_v54  ;;  %v3693_v43 = vpack.c.bf16 %v7528_v27, %v7527_v24 }
 0xb88   : > { %v3306_v28 = vpop.f32.mrf.mxu0 }
 0xb89   : > { %v3343_v30 = vmul.f32 %v3306_v28, %v3170_v54  ;;  %v3692_v45 = vpack.c.bf16 %v3306_v28, %v3303_v25 }
 0xb8b   : > { %3370 = vadd.xlane.f32.xlu0 %v3344_v29  ;;  %3368 = vadd.xlane.f32.xlu1 %v3343_v30 }
 0xb8f   : > { %3372 = vadd.xlane.f32.xlu1 %v3345_v31 }
 0xb92   : > { %v7531_v63 = vpop.f32.mrf.mxu0 }
 0xb93   : > { %v3348_v37 = vmul.f32 %v7531_v63, %v3170_v54 }
 0xb94   : > { %v3319_v38 = vpop.f32.mrf.mxu0 }
 0xb95   : > { %v3346_v13 = vmul.f32 %v3319_v38, %v3170_v54 }
 0xb96   : > { %v7532_v32 = vpop.f32.mrf.mxu0 }
 0xb97   : > { %v3695_v35 = vpack.c.bf16 %v7532_v32, %v7531_v63  ;;  %3374 = vadd.xlane.f32.xlu0 %v3346_v13  ;;  %7534 = vmatpush3.xpose.msra.mxu1 %v7532_v32  ;;  %v3349_v62 = vmul.f32 %v7532_v32, %v3170_v54 }
 0xb98   : > { %v3322_v36 = vpop.f32.mrf.mxu0  ;;  %7535 = vmatprep.subr.mxu1 %v8312_v6 }
 0xb99   : > { %7568 = vmatprep.subr.bf16.mxu0 %v3695_v35  ;;  %v3694_v39 = vpack.c.bf16 %v3322_v36, %v3319_v38  ;;  %v3347_v40 = vmul.f32 %v3322_v36, %v3170_v54 }
 0xb9a   : > { %7569 = vmatpush3.bf16.msra.mxu0 %v3695_v35  ;;  %v8275_v35 = vld [vmem:[%s8811_s24 + $0x20] sm:$0xff] }
 0xb9b   : > { %3378 = vadd.xlane.f32.xlu0 %v3348_v37  ;;  %7536 = vmatpush3.xpose.msra.mxu1 %v7531_v63 }
 0xb9c   : > { %7570 = vmatprep.subr.bf16.mxu0 %v3694_v39  ;;  %3376 = vadd.xlane.f32.xlu1 %v3347_v40 }
 0xb9d   : > { %7537 = vmatprep.subr.mxu1 %v8312_v6 }
 0xb9e   : > { %7571 = vmatpush3.bf16.msra.mxu0 %v3694_v39  ;;  %v8276_v39 = vld [vmem:[%s8811_s24 + $0x28] sm:$0xff] }
 0xb9f   : > { %7538 = vmatpush3.xpose.msra.mxu1 %v3322_v36  ;;  %7572 = vmatprep.subr.bf16.mxu0 %v3693_v43 }
 0xba0   : > { %3380 = vadd.xlane.f32.xlu1 %v3349_v62  ;;  %7539 = vmatprep.subr.mxu1 %v8312_v6 }
 0xba2   : > { %7573 = vmatpush3.bf16.msra.mxu0 %v3693_v43 }
 0xba3   : > { %7540 = vmatpush3.xpose.msra.mxu1 %v3319_v38  ;;  %7574 = vmatprep.subr.bf16.mxu0 %v3692_v45 }
 0xba4   : > { %7541 = vmatprep.subr.mxu1 %v8312_v6 }
 0xba6   : > { %7575 = vmatpush3.bf16.msra.mxu0 %v3692_v45 }
 0xba7   : > { %7542 = vmatpush3.xpose.msra.mxu1 %v7528_v27  ;;  %7576 = vmatprep.subr.bf16.mxu0 %v3691_v53  ;;  %v8274_v27 = vld [vmem:[%s8811_s24 + $0x18] sm:$0xff] }
 0xba8   : > { %7543 = vmatprep.subr.mxu1 %v8312_v6 }
 0xbaa   : > { %7577 = vmatpush3.bf16.msra.mxu0 %v3691_v53 }
 0xbab   : > { %7544 = vmatpush3.xpose.msra.mxu1 %v7527_v24  ;;  %7578 = vmatprep.subr.bf16.mxu0 %v3690_v55  ;;  %v8273_v24 = vld [vmem:[%s8811_s24 + $0x10] sm:$0xff] }
 0xbac   : > { %7545 = vmatprep.subr.mxu1 %v8312_v6 }
 0xbae   : > { %7579 = vmatpush3.bf16.msra.mxu0 %v3690_v55 }
 0xbaf   : > { %7546 = vmatpush3.xpose.msra.mxu1 %v3306_v28  ;;  %7580 = vmatprep.subr.bf16.mxu0 %v3689_v46 }
 0xbb0   : > { %7547 = vmatprep.subr.mxu1 %v8312_v6 }
 0xbb2   : > { %7581 = vmatpush3.bf16.msra.mxu0 %v3689_v46 }
 0xbb3   : > { %7548 = vmatpush3.xpose.msra.mxu1 %v3303_v25  ;;  %7582 = vmatprep.subr.bf16.mxu0 %v3688_v47 }
 0xbb4   : > { %7549 = vmatprep.subr.mxu1 %v8312_v6 }
 0xbb6   : > { %7583 = vmatpush3.bf16.msra.mxu0 %v3688_v47 }
 0xbb7   : > { %7550 = vmatpush3.xpose.msra.mxu1 %v9292_v21 }
 0xbb8   : > { %7551 = vmatprep.subr.mxu1 %v8312_v6 }
 0xbbb   : > { %7552 = vmatpush3.xpose.msra.mxu1 %v9287_v18  ;;  %v8271_v18 = vld [vmem:[%s8811_s24] sm:$0xff] }
 0xbbc   : > { %7553 = vmatprep.subr.mxu1 %v8312_v6 }
 0xbbf   : > { %7554 = vmatpush3.xpose.msra.mxu1 %v9294_v19 }
 0xbc0   : > { %7555 = vmatprep.subr.mxu1 %v8312_v6 }
 0xbc3   : > { %7556 = vmatpush3.xpose.msra.mxu1 %v9289_v5 }
 0xbc4   : > { %7557 = vmatprep.subr.mxu1 %v8312_v6 }
 0xbc7   : > { %7558 = vmatpush3.xpose.msra.mxu1 %v9280_v15 }
 0xbc8   : > { %7559 = vmatprep.subr.mxu1 %v8312_v6 }
 0xbcb   : > { %7560 = vmatpush3.xpose.msra.mxu1 %v9272_v14 }
 0xbcc   : > { %7561 = vmatprep.subr.mxu1 %v8312_v6 }
 0xbcf   : > { %7562 = vmatpush3.xpose.msra.mxu1 %v9282_v16 }
 0xbd0   : > { %7563 = vmatprep.subr.mxu1 %v8312_v6 }
 0xbd3   : > { %7564 = vmatpush3.xpose.msra.mxu1 %v9274_v61 }
 0xbd6   : > { %7566 = vmatmul.mubr.f32.vlgmr.msra.gmra.mxu1 %v3169_v48  ;;  %v8277_v48 = vld [vmem:[%s8811_s24 + $0x30] sm:$0xff] }
 0xbd7   : > { %4176 = vmatprep.mubr.bf16.mxu1 %v8311_v41 }
 0xbf0   : > { %v3351_v49 = vpop.xlane.xlu0 %3350 }
 0xbf4   : > { %v3353_v50 = vpop.xlane.xlu1 %3352  ;;  %v3355_v51 = vpop.xlane.xlu0 %3354 }
 0xbf8   : > { %v3357_v56 = vpop.xlane.xlu1 %3356 }
 0xc00   : > { %v3359_v59 = vpop.xlane.xlu0 %3358 }
 0xc04   : > { %v3361_v60 = vpop.xlane.xlu1 %3360  ;;  %v3363_v9 = vpop.xlane.xlu0 %3362 }
 0xc08   : > { %v3365_v44 = vpop.xlane.xlu1 %3364 }
 0xc10   : > { %v3367_v17 = vpop.xlane.xlu0 %3366 }
 0xc14   : > { %v3369_v42 = vpop.xlane.xlu1 %3368  ;;  %v3371_v13 = vpop.xlane.xlu0 %3370 }
 0xc18   : > { %v3373_v32 = vpop.xlane.xlu1 %3372 }
 0xc20   : > { %v3375_v46 = vpop.xlane.xlu0 %3374 }
 0xc25   : > { %v3377_v47 = vpop.xlane.xlu1 %3376 }
 0xc96   : > { %v3448_v0 = vpop.f32.mrf.mxu1 }
 0xc97   : > { %v9335_v1 = vrot.slane %v3448_v0, %v8587_v58 }
 0xc98   : > { %v7567_v2 = vpop.f32.mrf.mxu1 }
 0xc99   : > { %v3456_v3 = vadd.f32 %v9335_v1, %v3351_v49  ;;  %v3457_v34 = vadd.f32 %v9335_v1, %v3353_v50  ;;  %v3458_v4 = vadd.f32 %v9335_v1, %v3355_v51  ;;  %v3459_v8 = vadd.f32 %v9335_v1, %v3357_v56  ;;  %v8278_v50 = vld [vmem:[%s8811_s24 + $0x38] sm:$0xff] }
 0xc9a   : > { %v3460_v11 = vadd.f32 %v9335_v1, %v3359_v59  ;;  %v3461_v12 = vadd.f32 %v9335_v1, %v3361_v60  ;;  %v3462_v16 = vadd.f32 %v9335_v1, %v3363_v9  ;;  %v3463_v33 = vadd.f32 %v9335_v1, %v3365_v44  ;;  %v8280_v44 = vld [vmem:[%s8811_s24 + $0x48] sm:$0xff] }
 0xc9b   : > { %vm3472_vm6 = vcmp.gt.f32.partialorder %v3456_v3, 0.0  ;;  %v3488_v10 = vmul.f32 0.2, %v3456_v3  ;;  %vm3473_vm7 = vcmp.gt.f32.partialorder %v3457_v34, 0.0  ;;  %v3489_v14 = vmul.f32 0.2, %v3457_v34 }
 0xc9c   : > { %vm3474_vm8 = vcmp.gt.f32.partialorder %v3458_v4, 0.0  ;;  %v3490_v61 = vmul.f32 0.2, %v3458_v4  ;;  %vm3475_vm9 = vcmp.gt.f32.partialorder %v3459_v8, 0.0  ;;  %v3491_v54 = vmul.f32 0.2, %v3459_v8 }
 0xc9d   : > { %v3504_v52 = vsel %vm3472_vm6, %v3456_v3, %v3488_v10  ;;  %v3505_v15 = vsel %vm3473_vm7, %v3457_v34, %v3489_v14  ;;  %v3492_v22 = vmul.f32 0.2, %v3460_v11  ;;  %vm3476_vm10 = vcmp.gt.f32.partialorder %v3460_v11, 0.0  ;;  %v3379_v34 = vpop.xlane.xlu0 %3378 }
 0xc9e   : > { %v9346_v5 = vadd.f32 %v8271_v18, %v3504_v52  ;;  %v9349_v21 = vadd.f32 %v8272_v7, %v3505_v15  ;;  %v3506_v19 = vsel %vm3474_vm8, %v3458_v4, %v3490_v61  ;;  %v3507_v20 = vsel %vm3475_vm9, %v3459_v8, %v3491_v54  ;;  %v3381_v4 = vpop.xlane.xlu1 %3380  ;;  %v8279_v8 = vld [vmem:[%s8811_s24 + $0x40] sm:$0xff]  ;;  %v8281_v15 = vld [vmem:[%s8811_s24 + $0x50] sm:$0xff] }
 0xc9f   : > { %vm3477_vm11 = vcmp.gt.f32.partialorder %v3461_v12, 0.0  ;;  %v3493_v23 = vmul.f32 0.2, %v3461_v12  ;;  %v9354_v25 = vadd.f32 %v8273_v24, %v3506_v19  ;;  %v3494_v26 = vmul.f32 0.2, %v3462_v16  ;;  %v8283_v19 = vld [vmem:[%s8811_s24 + $0x60] sm:$0xff] }
 0xca0   : > { %3536 = vmax.xlane.f32.xlu0 %v9346_v5  ;;  %3538 = vmax.xlane.f32.xlu1 %v9349_v21  ;;  %v9357_v28 = vadd.f32 %v8274_v27, %v3507_v20  ;;  %v3508_v29 = vsel %vm3476_vm10, %v3460_v11, %v3492_v22  ;;  %vm3478_vm12 = vcmp.gt.f32.partialorder %v3462_v16, 0.0  ;;  %v3495_v30 = vmul.f32 0.2, %v3463_v33  ;;  %v8284_v20 = vld [vmem:[%s8811_s24 + $0x68] sm:$0xff]  ;;  %v8285_v27 = vld [vmem:[%s8811_s24 + $0x70] sm:$0xff] }
 0xca1   : > { %v3509_v31 = vsel %vm3477_vm11, %v3461_v12, %v3493_v23  ;;  %vm3479_vm13 = vcmp.gt.f32.partialorder %v3463_v33, 0.0  ;;  %v3464_v63 = vadd.f32 %v9335_v1, %v3367_v17  ;;  %v3465_v38 = vadd.f32 %v9335_v1, %v3369_v42 }
 0xca2   : > { %v9364_v36 = vadd.f32 %v8275_v35, %v3508_v29  ;;  %v3510_v37 = vsel %vm3478_vm12, %v3462_v16, %v3494_v26  ;;  %v9367_v40 = vadd.f32 %v8276_v39, %v3509_v31  ;;  %v3511_v43 = vsel %vm3479_vm13, %v3463_v33, %v3495_v30  ;;  %v8282_v33 = vld [vmem:[%s8811_s24 + $0x58] sm:$0xff] }
 0xca3   : > { %v3466_v62 = vadd.f32 %v9335_v1, %v3371_v13  ;;  %v3467_v45 = vadd.f32 %v9335_v1, %v3373_v32  ;;  %v3496_v53 = vmul.f32 0.2, %v3464_v63  ;;  %v3497_v55 = vmul.f32 0.2, %v3465_v38  ;;  %v8286_v30 = vld [vmem:[%s8811_s24 + $0x78] sm:$0xff] }
 0xca4   : > { %3540 = vmax.xlane.f32.xlu0 %v9354_v25  ;;  %3542 = vmax.xlane.f32.xlu1 %v9357_v28  ;;  %vm3480_vm14 = vcmp.gt.f32.partialorder %v3464_v63, 0.0  ;;  %vm3481_vm15 = vcmp.gt.f32.partialorder %v3465_v38, 0.0  ;;  %v9374_v49 = vadd.f32 %v8277_v48, %v3510_v37  ;;  %v9377_v51 = vadd.f32 %v8278_v50, %v3511_v43 }
 0xca5   : > { %vm3482_vm0 = vcmp.gt.f32.partialorder %v3466_v62, 0.0  ;;  %v3498_v56 = vmul.f32 0.2, %v3466_v62  ;;  %vm3483_vm1 = vcmp.gt.f32.partialorder %v3467_v45, 0.0  ;;  %v3499_v59 = vmul.f32 0.2, %v3467_v45 }
 0xca6   : > { %v3512_v60 = vsel %vm3480_vm14, %v3464_v63, %v3496_v53  ;;  %v3513_v0 = vsel %vm3481_vm15, %v3465_v38, %v3497_v55  ;;  %v3468_v2 = vadd.f32 %v9335_v1, %v3375_v46  ;;  %v3469_v3 = vadd.f32 %v9335_v1, %v3377_v47 }
 0xca7   : > { %v9384_v9 = vadd.f32 %v8279_v8, %v3512_v60  ;;  %v9387_v11 = vadd.f32 %v8280_v44, %v3513_v0  ;;  %v3514_v12 = vsel %vm3482_vm0, %v3466_v62, %v3498_v56  ;;  %v3515_v10 = vsel %vm3483_vm1, %v3467_v45, %v3499_v59 }
 0xca8   : > { %3544 = vmax.xlane.f32.xlu0 %v9364_v36  ;;  %3546 = vmax.xlane.f32.xlu1 %v9367_v40  ;;  %v3500_v14 = vmul.f32 0.2, %v3468_v2  ;;  %v3501_v61 = vmul.f32 0.2, %v3469_v3  ;;  %v3470_v54 = vadd.f32 %v9335_v1, %v3379_v34  ;;  %v3471_v52 = vadd.f32 %v9335_v1, %v3381_v4 }
 0xca9   : > { %vm3484_vm4 = vcmp.gt.f32.partialorder %v3468_v2, 0.0  ;;  %vm3485_vm5 = vcmp.gt.f32.partialorder %v3469_v3, 0.0  ;;  %v9395_v16 = vadd.f32 %v8281_v15, %v3514_v12  ;;  %v9398_v17 = vadd.f32 %v8282_v33, %v3515_v10 }
 0xcaa   : > { %v3516_v42 = vsel %vm3484_vm4, %v3468_v2, %v3500_v14  ;;  %v3517_v18 = vsel %vm3485_vm5, %v3469_v3, %v3501_v61  ;;  %v3502_v7 = vmul.f32 0.2, %v3470_v54  ;;  %v3503_v1 = vmul.f32 0.2, %v3471_v52 }
 0xcab   : > { %vm3486_vm6 = vcmp.gt.f32.partialorder %v3470_v54, 0.0  ;;  %vm3487_vm7 = vcmp.gt.f32.partialorder %v3471_v52, 0.0  ;;  %v9403_v22 = vadd.f32 %v8283_v19, %v3516_v42  ;;  %v9406_v23 = vadd.f32 %v8284_v20, %v3517_v18 }
 0xcac   : > { %3548 = vmax.xlane.f32.xlu0 %v9374_v49  ;;  %3550 = vmax.xlane.f32.xlu1 %v9377_v51  ;;  %v3518_v24 = vsel %vm3486_vm6, %v3470_v54, %v3502_v7  ;;  %v3519_v26 = vsel %vm3487_vm7, %v3471_v52, %v3503_v1 }
 0xcad   : > { %v9411_v29 = vadd.f32 %v8285_v27, %v3518_v24  ;;  %v9414_v31 = vadd.f32 %v8286_v30, %v3519_v26 }
 0xcb0   : > { %3552 = vmax.xlane.f32.xlu0 %v9384_v9  ;;  %3554 = vmax.xlane.f32.xlu1 %v9387_v11 }
 0xcb4   : > { %3556 = vmax.xlane.f32.xlu0 %v9395_v16  ;;  %3558 = vmax.xlane.f32.xlu1 %v9398_v17 }
 0xcb8   : > { %3560 = vmax.xlane.f32.xlu0 %v9403_v22  ;;  %3562 = vmax.xlane.f32.xlu1 %v9406_v23 }
 0xcbc   : > { %3564 = vmax.xlane.f32.xlu0 %v9411_v29  ;;  %3566 = vmax.xlane.f32.xlu1 %v9414_v31 }
 0xd29   : > { %v3537_v63 = vpop.xlane.xlu0 %3536  ;;  %v3539_v38 = vpop.xlane.xlu1 %3538 }
 0xd2a   : > { %v3568_v13 = vsub.f32 %v9346_v5, %v3537_v63  ;;  %v3569_v32 = vsub.f32 %v9349_v21, %v3539_v38 }
 0xd2c   : > { %v3584_v35 = vmul.f32 1.442695, %v3568_v13  ;;  %v3586_v37 = vmul.f32 1.442695, %v3569_v32 }
 0xd2d   : > { %v3541_v39 = vpop.xlane.xlu0 %3540  ;;  %v3543_v43 = vpop.xlane.xlu1 %3542 }
 0xd2e   : > { %8079 = vpow2.f32 %v3584_v35  ;;  %v3570_v62 = vsub.f32 %v9354_v25, %v3541_v39  ;;  %v3571_v45 = vsub.f32 %v9357_v28, %v3543_v43  ;;  %v7907_v35 = vld [vmem:[%s10478_s13 + $0x38] sm:$0xff]  }
 0xd2f   : > { %8081 = vpow2.f32 %v3586_v37  ;;  %7600 = vmatprep.subr.bf16.mxu0 %v7907_v35 }
 0xd30   : > { %v3588_v53 = vmul.f32 1.442695, %v3570_v62  ;;  %v3590_v55 = vmul.f32 1.442695, %v3571_v45 }
 0xd31   : > { %v3545_v46 = vpop.xlane.xlu0 %3544  ;;  %v3547_v47 = vpop.xlane.xlu1 %3546 }
 0xd32   : > { %8083 = vpow2.f32 %v3588_v53  ;;  %v3572_v48 = vsub.f32 %v9364_v36, %v3545_v46  ;;  %v3573_v5 = vsub.f32 %v9367_v40, %v3547_v47 }
 0xd33   : > { %8085 = vpow2.f32 %v3590_v55 }
 0xd34   : > { %v3592_v21 = vmul.f32 1.442695, %v3572_v48  ;;  %v3594_v50 = vmul.f32 1.442695, %v3573_v5 }
 0xd35   : > { %v3549_v56 = vpop.xlane.xlu0 %3548  ;;  %v3551_v59 = vpop.xlane.xlu1 %3550 }
 0xd36   : > { %8087 = vpow2.f32 %v3592_v21  ;;  %v3574_v25 = vsub.f32 %v9374_v49, %v3549_v56  ;;  %v3575_v28 = vsub.f32 %v9377_v51, %v3551_v59 }
 0xd37   : > { %8089 = vpow2.f32 %v3594_v50 }
 0xd38   : > { %v3596_v60 = vmul.f32 1.442695, %v3574_v25  ;;  %v3598_v0 = vmul.f32 1.442695, %v3575_v28 }
 0xd39   : > { %v3553_v2 = vpop.xlane.xlu0 %3552  ;;  %v3555_v3 = vpop.xlane.xlu1 %3554 }
 0xd3a   : > { %8091 = vpow2.f32 %v3596_v60  ;;  %v3576_v36 = vsub.f32 %v9384_v9, %v3553_v2  ;;  %v3577_v40 = vsub.f32 %v9387_v11, %v3555_v3 }
 0xd3b   : > { %v9428_v34 = vpop.eup %8079  ;;  %8093 = vpow2.f32 %v3598_v0 }
 0xd3c   : > { %v9430_v4 = vpop.eup %8081  ;;  %v3600_v8 = vmul.f32 1.442695, %v3576_v36  ;;  %v3602_v44 = vmul.f32 1.442695, %v3577_v40  ;;  %3616 = vadd.xlane.f32.xlu0 %v9428_v34 }
 0xd3d   : > { %3618 = vadd.xlane.f32.xlu1 %v9430_v4  ;;  %v3557_v49 = vpop.xlane.xlu0 %3556  ;;  %v3559_v51 = vpop.xlane.xlu1 %3558 }
 0xd3e   : > { %8095 = vpow2.f32 %v3600_v8  ;;  %v3578_v12 = vsub.f32 %v9395_v16, %v3557_v49  ;;  %v3579_v9 = vsub.f32 %v9398_v17, %v3559_v51 }
 0xd3f   : > { %v9436_v10 = vpop.eup %8083  ;;  %8097 = vpow2.f32 %v3602_v44 }
 0xd40   : > { %v9438_v11 = vpop.eup %8085  ;;  %v3604_v14 = vmul.f32 1.442695, %v3578_v12  ;;  %v3606_v61 = vmul.f32 1.442695, %v3579_v9  ;;  %3620 = vadd.xlane.f32.xlu0 %v9436_v10 }
 0xd41   : > { %3622 = vadd.xlane.f32.xlu1 %v9438_v11  ;;  %v3561_v54 = vpop.xlane.xlu0 %3560  ;;  %v3563_v52 = vpop.xlane.xlu1 %3562 }
 0xd42   : > { %8099 = vpow2.f32 %v3604_v14  ;;  %v3580_v15 = vsub.f32 %v9403_v22, %v3561_v54  ;;  %v3581_v16 = vsub.f32 %v9406_v23, %v3563_v52 }
 0xd43   : > { %v9444_v33 = vpop.eup %8087  ;;  %8101 = vpow2.f32 %v3606_v61 }
 0xd44   : > { %v9446_v17 = vpop.eup %8089  ;;  %v3608_v42 = vmul.f32 1.442695, %v3580_v15  ;;  %v3610_v18 = vmul.f32 1.442695, %v3581_v16  ;;  %3624 = vadd.xlane.f32.xlu0 %v9444_v33 }
 0xd45   : > { %3626 = vadd.xlane.f32.xlu1 %v9446_v17  ;;  %v3565_v7 = vpop.xlane.xlu0 %3564  ;;  %v3567_v1 = vpop.xlane.xlu1 %3566 }
 0xd46   : > { %8103 = vpow2.f32 %v3608_v42  ;;  %v3582_v19 = vsub.f32 %v9411_v29, %v3565_v7  ;;  %v3583_v22 = vsub.f32 %v9414_v31, %v3567_v1 }
 0xd47   : > { %v9452_v20 = vpop.eup %8091  ;;  %8105 = vpow2.f32 %v3610_v18 }
 0xd48   : > { %v9454_v23 = vpop.eup %8093  ;;  %v3612_v24 = vmul.f32 1.442695, %v3582_v19  ;;  %v3614_v26 = vmul.f32 1.442695, %v3583_v22  ;;  %3628 = vadd.xlane.f32.xlu0 %v9452_v20  ;;  %v7911_v19 = vld [vmem:[%s10478_s13 + $0x18] sm:$0xff]  }
 0xd49   : > { %3630 = vadd.xlane.f32.xlu1 %v9454_v23 }
 0xd4a   : > { %8107 = vpow2.f32 %v3612_v24 }
 0xd4b   : > { %v9458_v27 = vpop.eup %8095  ;;  %8109 = vpow2.f32 %v3614_v26 }
 0xd4c   : > { %v9460_v30 = vpop.eup %8097  ;;  %3632 = vadd.xlane.f32.xlu0 %v9458_v27 }
 0xd4d   : > { %3634 = vadd.xlane.f32.xlu1 %v9460_v30 }
 0xd4f   : > { %v9464_v29 = vpop.eup %8099 }
 0xd50   : > { %v9466_v31 = vpop.eup %8101  ;;  %3636 = vadd.xlane.f32.xlu0 %v9464_v29 }
 0xd51   : > { %3638 = vadd.xlane.f32.xlu1 %v9466_v31 }
 0xd53   : > { %v9470_v63 = vpop.eup %8103 }
 0xd54   : > { %v9472_v38 = vpop.eup %8105  ;;  %3640 = vadd.xlane.f32.xlu0 %v9470_v63 }
 0xd55   : > { %3642 = vadd.xlane.f32.xlu1 %v9472_v38 }
 0xd57   : > { %v9476_v13 = vpop.eup %8107 }
 0xd58   : > { %v9478_v32 = vpop.eup %8109  ;;  %3644 = vadd.xlane.f32.xlu0 %v9476_v13 }
 0xd59   : > { %3646 = vadd.xlane.f32.xlu1 %v9478_v32 }
 0xdc5   : > { %v3617_v37 = vpop.xlane.xlu0 %3616 }
 0xdc6   : > { %8111 = vrcp.f32 %v3617_v37  ;;  %v3619_v39 = vpop.xlane.xlu1 %3618 }
 0xdc7   : > { %8113 = vrcp.f32 %v3619_v39 }
 0xdc9   : > { %v3621_v43 = vpop.xlane.xlu0 %3620 }
 0xdca   : > { %8115 = vrcp.f32 %v3621_v43  ;;  %v3623_v62 = vpop.xlane.xlu1 %3622 }
 0xdcb   : > { %8117 = vrcp.f32 %v3623_v62 }
 0xdcd   : > { %v3625_v45 = vpop.xlane.xlu0 %3624 }
 0xdce   : > { %8119 = vrcp.f32 %v3625_v45  ;;  %v3627_v53 = vpop.xlane.xlu1 %3626  ;;  %v7912_v45 = vld [vmem:[%s10478_s13 + $0x10] sm:$0xff]  }
 0xdcf   : > { %8121 = vrcp.f32 %v3627_v53  ;;  %v7920_v53 = vld [vmem:[%s10479_s14 + $0x64] ss:$8 sps:$4 sm:$0xff]  }
 0xdd1   : > { %v3629_v55 = vpop.xlane.xlu0 %3628 }
 0xdd2   : > { %8123 = vrcp.f32 %v3629_v55  ;;  %v3631_v46 = vpop.xlane.xlu1 %3630  ;;  %v7918_v55 = vld [vmem:[%s10479_s14 + $0x60] ss:$8 sps:$4 sm:$0xff]  }
 0xdd3   : > { %v8112_v47 = vpop.eup %8111  ;;  %8125 = vrcp.f32 %v3631_v46  ;;  %v7923_v46 = vld [vmem:[%s10479_s14 + $0x54] ss:$8 sps:$4 sm:$0xff]  }
 0xdd4   : > { %v8114_v48 = vpop.eup %8113  ;;  %v3664_v5 = vmul.f32 %v8112_v47, %v9428_v34  ;;  %v7908_v34 = vld [vmem:[%s10478_s13 + $0x30] sm:$0xff]  }
 0xdd5   : > { %v3633_v21 = vpop.xlane.xlu0 %3632  ;;  %v3665_v50 = vmul.f32 %v8114_v48, %v9430_v4  ;;  %v7921_v47 = vld [vmem:[%s10479_s14 + $0x50] ss:$8 sps:$4 sm:$0xff]   ;;  %v7926_v48 = vld [vmem:[%s10479_s14 + $0x44] ss:$8 sps:$4 sm:$0xff]  }
 0xdd6   : > { %8127 = vrcp.f32 %v3633_v21  ;;  %v3635_v56 = vpop.xlane.xlu1 %3634  ;;  %v7929_v21 = vld [vmem:[%s10479_s14 + $0x34] ss:$8 sps:$4 sm:$0xff]  }
 0xdd7   : > { %v8116_v59 = vpop.eup %8115  ;;  %8129 = vrcp.f32 %v3635_v56  ;;  %v3680_v25 = vpack.c.bf16 %v3665_v50, %v3664_v5  ;;  %v7924_v5 = vld [vmem:[%s10479_s14 + $0x40] ss:$8 sps:$4 sm:$0xff]   ;;  %v7927_v50 = vld [vmem:[%s10479_s14 + $0x30] ss:$8 sps:$4 sm:$0xff]  }
 0xdd8   : > { %v8118_v28 = vpop.eup %8117  ;;  %v3666_v60 = vmul.f32 %v8116_v59, %v9436_v10  ;;  %v7909_v10 = vld [vmem:[%s10478_s13 + $0x28] sm:$0xff]   ;;  %v9555_v59 = vld [vmem:[%s10501_s0 + $0x16] ss:$0 sm:$0xff] }
 0xdd9   : > { %v3667_v0 = vmul.f32 %v8118_v28, %v9438_v11  ;;  %7584 = vmatprep.mubr.bf16.mxu0 %v3680_v25  ;;  %v3637_v2 = vpop.xlane.xlu0 %3636 }
 0xdda   : > { %8131 = vrcp.f32 %v3637_v2  ;;  %v3639_v3 = vpop.xlane.xlu1 %3638  ;;  %v9562_v2 = vld [vmem:[%s10501_s0 + $0x17] ss:$0 sm:$0xff] }
 0xddb   : > { %v8120_v36 = vpop.eup %8119  ;;  %8133 = vrcp.f32 %v3639_v3  ;;  %v3681_v40 = vpack.c.bf16 %v3667_v0, %v3666_v60 }
 0xddc   : > { %v8122_v4 = vpop.eup %8121  ;;  %v3668_v8 = vmul.f32 %v8120_v36, %v9444_v33  ;;  %v7910_v33 = vld [vmem:[%s10478_s13 + $0x20] sm:$0xff]  }
 0xddd   : > { %7585 = vmatmul.mubr.bf16.vlgmr.msra.gmra.mxu0 %v3681_v40  ;;  %v3641_v44 = vpop.xlane.xlu0 %3640  ;;  %v3669_v49 = vmul.f32 %v8122_v4, %v9446_v17 }
 0xdde   : > { %8135 = vrcp.f32 %v3641_v44  ;;  %v3643_v51 = vpop.xlane.xlu1 %3642  ;;  %7601 = vmatpush3.bf16.msra.mxu0 %v7907_v35 }
 0xddf   : > { %v8124_v12 = vpop.eup %8123  ;;  %8137 = vrcp.f32 %v3643_v51  ;;  %v3682_v9 = vpack.c.bf16 %v3669_v49, %v3668_v8  ;;  %7602 = vmatprep.subr.bf16.mxu0 %v7908_v34 }
 0xde0   : > { %v8126_v11 = vpop.eup %8125  ;;  %v3670_v14 = vmul.f32 %v8124_v12, %v9452_v20 }
 0xde1   : > { %7588 = vmatprep.mubr.bf16.mxu0 %v3682_v9  ;;  %v3645_v61 = vpop.xlane.xlu0 %3644  ;;  %v3671_v54 = vmul.f32 %v8126_v11, %v9454_v23 }
 0xde2   : > { %8139 = vrcp.f32 %v3645_v61  ;;  %v3647_v52 = vpop.xlane.xlu1 %3646  ;;  %7603 = vmatpush3.bf16.msra.mxu0 %v7908_v34 }
 0xde3   : > { %v8128_v15 = vpop.eup %8127  ;;  %8141 = vrcp.f32 %v3647_v52  ;;  %v3683_v16 = vpack.c.bf16 %v3671_v54, %v3670_v14  ;;  %7604 = vmatprep.subr.bf16.mxu0 %v7909_v10 }
 0xde4   : > { %v8130_v17 = vpop.eup %8129  ;;  %v3672_v42 = vmul.f32 %v8128_v15, %v9458_v27 }
 0xde5   : > { %7589 = vmatmul.mubr.bf16.gmra.mxu0 %v3683_v16  ;;  %v3673_v18 = vmul.f32 %v8130_v17, %v9460_v30 }
 0xde6   : > { %7605 = vmatpush3.bf16.msra.mxu0 %v7909_v10 }
 0xde7   : > { %v8132_v7 = vpop.eup %8131  ;;  %v3684_v1 = vpack.c.bf16 %v3673_v18, %v3672_v42  ;;  %7606 = vmatprep.subr.bf16.mxu0 %v7910_v33 }
 0xde8   : > { %v8134_v22 = vpop.eup %8133  ;;  %v3674_v20 = vmul.f32 %v8132_v7, %v9464_v29 }
 0xde9   : > { %7592 = vmatprep.mubr.bf16.mxu0 %v3684_v1  ;;  %v3675_v23 = vmul.f32 %v8134_v22, %v9466_v31 }
 0xdea   : > { %7607 = vmatpush3.bf16.msra.mxu0 %v7910_v33 }
 0xdeb   : > { %v8136_v24 = vpop.eup %8135  ;;  %v3685_v26 = vpack.c.bf16 %v3675_v23, %v3674_v20  ;;  %7608 = vmatprep.subr.bf16.mxu0 %v7911_v19 }
 0xdec   : > { %v8138_v27 = vpop.eup %8137  ;;  %v3676_v30 = vmul.f32 %v8136_v24, %v9470_v63  ;;  %v7913_v63 = vld [vmem:[%s10478_s13 + $0x8] sm:$0xff]  }
 0xded   : > { %7593 = vmatmul.mubr.bf16.gmra.mxu0 %v3685_v26  ;;  %v3677_v35 = vmul.f32 %v8138_v27, %v9472_v38  ;;  %v7914_v38 = vld [vmem:[%s10478_s13] sm:$0xff]  }
 0xdee   : > { %7609 = vmatpush3.bf16.msra.mxu0 %v7911_v19 }
 0xdef   : > { %v8140_v37 = vpop.eup %8139  ;;  %v3686_v39 = vpack.c.bf16 %v3677_v35, %v3676_v30  ;;  %7610 = vmatprep.subr.bf16.mxu0 %v7912_v45 }
 0xdf0   : > { %v8142_v43 = vpop.eup %8141  ;;  %v3678_v62 = vmul.f32 %v8140_v37, %v9476_v13  ;;  %v7915_v13 = vld [vmem:[%s10479_s14 + $0x70] ss:$8 sps:$4 sm:$0xff]  }
 0xdf1   : > { %7596 = vmatprep.mubr.bf16.mxu0 %v3686_v39  ;;  %v3679_v29 = vmul.f32 %v8142_v43, %v9478_v32  ;;  %v7917_v32 = vld [vmem:[%s10479_s14 + $0x74] ss:$8 sps:$4 sm:$0xff]  }
 0xdf2   : > { %7611 = vmatpush3.bf16.msra.mxu0 %v7912_v45  ;;  %4144 = vmatprep.subr.bf16.mxu1 %v7917_v32 }
 0xdf3   : > { %v3687_v31 = vpack.c.bf16 %v3679_v29, %v3678_v62  ;;  %7612 = vmatprep.subr.bf16.mxu0 %v7913_v63  ;;  %4145 = vmatpush1.bf16.msra.mxu1 %v7915_v13 }
 0xdf4   : > { %4146 = vmatprep.subr.bf16.mxu1 %v7920_v53 }
 0xdf5   : > { %7597 = vmatmul.mubr.bf16.gmra.mxu0 %v3687_v31 }
 0xdf6   : > { %7613 = vmatpush3.bf16.msra.mxu0 %v7913_v63 }
 0xdf7   : > { %7614 = vmatprep.subr.bf16.mxu0 %v7914_v38  ;;  %4147 = vmatpush1.bf16.msra.mxu1 %v7918_v55 }
 0xdf8   : > { %4148 = vmatprep.subr.bf16.mxu1 %v7923_v46 }
 0xdfa   : > { %7615 = vmatpush3.bf16.msra.mxu0 %v7914_v38 }
 0xdfb   : > { %4149 = vmatpush1.bf16.msra.mxu1 %v7921_v47 }
 0xdfc   : > { %4150 = vmatprep.subr.bf16.mxu1 %v7926_v48 }
 0xdff   : > { %4151 = vmatpush1.bf16.msra.mxu1 %v7924_v5 }
 0xe00   : > { %4152 = vmatprep.subr.bf16.mxu1 %v7929_v21 }
 0xe03   : > { %4153 = vmatpush1.bf16.msra.mxu1 %v7927_v50 }
 0xe9d   : > { %v7586_v56 = vpop.f32.mrf.mxu0 }
 0xe9e   : > { %v3795_v60 = vmul.f32 %v7586_v56, %v9555_v59 }
 0xe9f   : > { %v3730_v25 = vpop.f32.mrf.mxu0 }
 0xea0   : > { %v3793_v28 = vmul.f32 %v3730_v25, %v9555_v59  ;;  %v3811_v8 = vadd.f32 %v3795_v60, %v9562_v2 }
 0xea1   : > { %v7587_v0 = vpop.f32.mrf.mxu0 }
 0xea2   : > { %v3796_v3 = vmul.f32 %v7587_v0, %v9555_v59  ;;  %v3809_v40 = vadd.f32 %v3793_v28, %v9562_v2  ;;  %v3827_v14 = vmax.f32 %v3811_v8, 0.0 }
 0xea3   : > { %v3733_v36 = vpop.f32.mrf.mxu0 }
 0xea4   : > { %v3812_v34 = vadd.f32 %v3796_v3, %v9562_v2  ;;  %v3794_v4 = vmul.f32 %v3733_v36, %v9555_v59  ;;  %v3825_v9 = vmax.f32 %v3809_v40, 0.0 }
 0xea5   : > { %v7590_v44 = vpop.f32.mrf.mxu0 }
 0xea6   : > { %v3810_v49 = vadd.f32 %v3794_v4, %v9562_v2  ;;  %v3828_v51 = vmax.f32 %v3812_v34, 0.0  ;;  %v3799_v61 = vmul.f32 %v7590_v44, %v9555_v59 }
 0xea7   : > { %v3746_v12 = vpop.f32.mrf.mxu0 }
 0xea8   : > { %v3826_v10 = vmax.f32 %v3810_v49, 0.0  ;;  %v3797_v11 = vmul.f32 %v3746_v12, %v9555_v59  ;;  %v3843_v16 = vpack.c.bf16 %v3828_v51, %v3827_v14  ;;  %v3815_v7 = vadd.f32 %v3799_v61, %v9562_v2  ;;  %v7930_v12 = vld [vmem:[%s10479_s14 + $0x20] ss:$8 sps:$4 sm:$0xff]   ;;  %v7939_v14 = vld [vmem:[%s10480_s15 + $0x78] sm:$0xff]  }
 0xea9   : > { %v7591_v54 = vpop.f32.mrf.mxu0  ;;  %v7940_v61 = vld [vmem:[%s10480_s15 + $0x38] sm:$0xff]   ;;  %7111 = vmatprep.subr.bf16.mxu0 %v7939_v14 }
 0xeaa   : > { %v3800_v52 = vmul.f32 %v7591_v54, %v9555_v59  ;;  %v3842_v15 = vpack.c.bf16 %v3826_v10, %v3825_v9  ;;  %v3813_v17 = vadd.f32 %v3797_v11, %v9562_v2  ;;  %v3831_v27 = vmax.f32 %v3815_v7, 0.0  ;;  %v7935_v9 = vld [vmem:[%s10479_s14 + $0x14] ss:$8 sps:$4 sm:$0xff]   ;;  %v7938_v10 = vld [vmem:[%s10479_s14 + $0x4] ss:$8 sps:$4 sm:$0xff]  }
 0xeab   : > { %v3749_v33 = vpop.f32.mrf.mxu0  ;;  %v7936_v11 = vld [vmem:[%s10479_s14] ss:$8 sps:$4 sm:$0xff]   ;;  %v7941_v54 = vld [vmem:[%s10480_s15 + $0x70] sm:$0xff]  }
 0xeac   : > { %v3816_v42 = vadd.f32 %v3800_v52, %v9562_v2  ;;  %v3798_v18 = vmul.f32 %v3749_v33, %v9555_v59  ;;  %7616 = vmatprep.mubr.bf16.mxu0 %v3842_v15  ;;  %v3829_v23 = vmax.f32 %v3813_v17, 0.0  ;;  %v7942_v52 = vld [vmem:[%s10480_s15 + $0x30] sm:$0xff]   ;;  %v7943_v15 = vld [vmem:[%s10480_s15 + $0x68] sm:$0xff]   ;;  %v7945_v33 = vld [vmem:[%s10480_s15 + $0x60] sm:$0xff]  }
 0xead   : > { %v7594_v1 = vpop.f32.mrf.mxu0  ;;  %7617 = vmatmul.mubr.bf16.vlgmr.msra.gmra.mxu0 %v3843_v16  ;;  %v7944_v16 = vld [vmem:[%s10480_s15 + $0x28] sm:$0xff]   ;;  %v7946_v17 = vld [vmem:[%s10480_s15 + $0x20] sm:$0xff]  }
 0xeae   : > { %v3814_v19 = vadd.f32 %v3798_v18, %v9562_v2  ;;  %v3832_v22 = vmax.f32 %v3816_v42, 0.0  ;;  %v3803_v30 = vmul.f32 %v7594_v1, %v9555_v59  ;;  %7112 = vmatpush3.bf16.msra.mxu0 %v7940_v61  ;;  %v7947_v42 = vld [vmem:[%s10480_s15 + $0x58] sm:$0xff]  }
 0xeaf   : > { %v3762_v20 = vpop.f32.mrf.mxu0  ;;  %7113 = vmatprep.subr.bf16.mxu0 %v7941_v54  ;;  %v7948_v18 = vld [vmem:[%s10480_s15 + $0x18] sm:$0xff]  }
 0xeb0   : > { %v3830_v24 = vmax.f32 %v3814_v19, 0.0  ;;  %v3801_v26 = vmul.f32 %v3762_v20, %v9555_v59  ;;  %v3845_v43 = vpack.c.bf16 %v3832_v22, %v3831_v27  ;;  %v3819_v63 = vadd.f32 %v3803_v30, %v9562_v2  ;;  %v9645_v19 = vld [vmem:[%s10501_s0 + $0x20] ss:$0 sm:$0xff] }
 0xeb1   : > { %v7595_v35 = vpop.f32.mrf.mxu0 }
 0xeb2   : > { %v3804_v37 = vmul.f32 %v7595_v35, %v9555_v59  ;;  %v3844_v39 = vpack.c.bf16 %v3830_v24, %v3829_v23  ;;  %v3817_v29 = vadd.f32 %v3801_v26, %v9562_v2  ;;  %v3835_v48 = vmax.f32 %v3819_v63, 0.0  ;;  %7114 = vmatpush3.bf16.msra.mxu0 %v7942_v52 }
 0xeb3   : > { %v3765_v62 = vpop.f32.mrf.mxu0  ;;  %7115 = vmatprep.subr.bf16.mxu0 %v7943_v15 }
 0xeb4   : > { %v3820_v31 = vadd.f32 %v3804_v37, %v9562_v2  ;;  %v3802_v45 = vmul.f32 %v3765_v62, %v9555_v59  ;;  %7620 = vmatprep.mubr.bf16.mxu0 %v3844_v39  ;;  %v3833_v55 = vmax.f32 %v3817_v29, 0.0 }
 0xeb5   : > { %v7598_v38 = vpop.f32.mrf.mxu0  ;;  %7621 = vmatmul.mubr.bf16.gmra.mxu0 %v3845_v43 }
 0xeb6   : > { %v3818_v13 = vadd.f32 %v3802_v45, %v9562_v2  ;;  %v3836_v32 = vmax.f32 %v3820_v31, 0.0  ;;  %v3807_v5 = vmul.f32 %v7598_v38, %v9555_v59  ;;  %7116 = vmatpush3.bf16.msra.mxu0 %v7944_v16 }
 0xeb7   : > { %v3778_v53 = vpop.f32.mrf.mxu0  ;;  %7117 = vmatprep.subr.bf16.mxu0 %v7945_v33 }
 0xeb8   : > { %v3834_v46 = vmax.f32 %v3818_v13, 0.0  ;;  %v3805_v47 = vmul.f32 %v3778_v53, %v9555_v59  ;;  %v3847_v25 = vpack.c.bf16 %v3836_v32, %v3835_v48  ;;  %v3823_v36 = vadd.f32 %v3807_v5, %v9562_v2 }
 0xeb9   : > { %v7599_v21 = vpop.f32.mrf.mxu0 }
 0xeba   : > { %v3808_v50 = vmul.f32 %v7599_v21, %v9555_v59  ;;  %v3846_v56 = vpack.c.bf16 %v3834_v46, %v3833_v55  ;;  %v3821_v60 = vadd.f32 %v3805_v47, %v9562_v2  ;;  %v3839_v44 = vmax.f32 %v3823_v36, 0.0  ;;  %7118 = vmatpush3.bf16.msra.mxu0 %v7946_v17  ;;  %v7949_v17 = vld [vmem:[%s10480_s15 + $0x50] sm:$0xff]  }
 0xebb   : > { %v3781_v28 = vpop.f32.mrf.mxu0  ;;  %7119 = vmatprep.subr.bf16.mxu0 %v7947_v42  ;;  %v7950_v42 = vld [vmem:[%s10480_s15 + $0x10] sm:$0xff]  }
 0xebc   : > { %v3824_v0 = vadd.f32 %v3808_v50, %v9562_v2  ;;  %v3806_v3 = vmul.f32 %v3781_v28, %v9555_v59  ;;  %7624 = vmatprep.mubr.bf16.mxu0 %v3846_v56  ;;  %v3837_v4 = vmax.f32 %v3821_v60, 0.0  ;;  %v7932_v59 = vld [vmem:[%s10479_s14 + $0x24] ss:$8 sps:$4 sm:$0xff]  }
 0xebd   : > { %7625 = vmatmul.mubr.bf16.gmra.mxu0 %v3847_v25  ;;  %4154 = vmatprep.subr.bf16.mxu1 %v7932_v59 }
 0xebe   : > { %v3822_v40 = vadd.f32 %v3806_v3, %v9562_v2  ;;  %v3840_v34 = vmax.f32 %v3824_v0, 0.0  ;;  %4155 = vmatpush1.bf16.msra.mxu1 %v7930_v12  ;;  %v7933_v2 = vld [vmem:[%s10479_s14 + $0x10] ss:$8 sps:$4 sm:$0xff]   ;;  %7120 = vmatpush3.bf16.msra.mxu0 %v7948_v18  ;;  %v7951_v18 = vld [vmem:[%s10480_s15 + $0x48] sm:$0xff]  }
 0xebf   : > { %4156 = vmatprep.subr.bf16.mxu1 %v7935_v9  ;;  %7121 = vmatprep.subr.bf16.mxu0 %v7949_v17 }
 0xec0   : > { %v3838_v8 = vmax.f32 %v3822_v40, 0.0  ;;  %v3849_v51 = vpack.c.bf16 %v3840_v34, %v3839_v44 }
 0xec2   : > { %v3848_v49 = vpack.c.bf16 %v3838_v8, %v3837_v4  ;;  %4157 = vmatpush1.bf16.msra.mxu1 %v7933_v2  ;;  %7122 = vmatpush3.bf16.msra.mxu0 %v7950_v42 }
 0xec3   : > { %4158 = vmatprep.subr.bf16.mxu1 %v7938_v10  ;;  %7123 = vmatprep.subr.bf16.mxu0 %v7951_v18 }
 0xec4   : > { %7628 = vmatprep.mubr.bf16.mxu0 %v3848_v49 }
 0xec5   : > { %7629 = vmatmul.mubr.bf16.gmra.mxu0 %v3849_v51 }
 0xec6   : > { %4159 = vmatpush1.bf16.msra.mxu1 %v7936_v11 }
 0xf6d   : > { %v7618_v7 = vpop.f32.mrf.mxu0 }
 0xf6e   : > { %v3957_v62 = vadd.f32 %v7618_v7, %v9645_v19  ;;  %v7952_v7 = vld [vmem:[%s10480_s15 + $0x8] sm:$0xff]  }
 0xf6f   : > { %v3948_v1 = vpop.f32.mrf.mxu0  ;;  %7124 = vmatpush3.bf16.msra.mxu0 %v7952_v7 }
 0xf70   : > { %v3949_v20 = vadd.f32 %v3948_v1, %v9645_v19  ;;  %v4013_v45 = vmax.f32 %v3957_v62, 0.0  ;;  %v7953_v1 = vld [vmem:[%s10480_s15 + $0x40] sm:$0xff]  }
 0xf71   : > { %v7619_v22 = vpop.f32.mrf.mxu0  ;;  %7125 = vmatprep.subr.bf16.mxu0 %v7953_v1 }
 0xf72   : > { %v4011_v27 = vmax.f32 %v3949_v20, 0.0  ;;  %v3960_v37 = vadd.f32 %v7619_v22, %v9645_v19  ;;  %v7955_v22 = vld [vmem:[%s10481_s16 + $0x38] sm:$0xff]   ;;  %v7956_v20 = vld [vmem:[%s10481_s16 + $0x30] sm:$0xff]  }
 0xf73   : > { %v3951_v23 = vpop.f32.mrf.mxu0  ;;  %7632 = vmatprep.subr.bf16.mxu1 %v7955_v22 }
 0xf74   : > { %v3952_v24 = vadd.f32 %v3951_v23, %v9645_v19  ;;  %v4014_v29 = vmax.f32 %v3960_v37, 0.0  ;;  %v7957_v23 = vld [vmem:[%s10481_s16 + $0x28] sm:$0xff]  }
 0xf75   : > { %v7622_v26 = vpop.f32.mrf.mxu0 }
 0xf76   : > { %v4012_v30 = vmax.f32 %v3952_v24, 0.0  ;;  %v4030_v63 = vpack.c.bf16 %v4014_v29, %v4013_v45  ;;  %v3973_v21 = vadd.f32 %v7622_v26, %v9645_v19  ;;  %v6713_v24 = vld [vmem:[%s10501_s0 + $0x21] ss:$8 sm:$0x3] }
 0xf77   : > { %v3964_v35 = vpop.f32.mrf.mxu0 }
 0xf78   : > { %v4029_v39 = vpack.c.bf16 %v4012_v30, %v4011_v27  ;;  %v3965_v32 = vadd.f32 %v3964_v35, %v9645_v19  ;;  %v4017_v25 = vmax.f32 %v3973_v21, 0.0  ;;  %v9701_v27 = vrot.slane %v6713_v24, %v8585_v57 }
 0xf79   : > { %v7623_v43 = vpop.f32.mrf.mxu0  ;;  %v9704_v30 = vrot.slane %v6713_v24, %v8587_v58 }
 0xf7a   : > { %4177 = vmatmul.mubr.bf16.vlgmr.msra.gmra.mxu1 %v4029_v39  ;;  %v4015_v46 = vmax.f32 %v3965_v32, 0.0  ;;  %v3976_v47 = vadd.f32 %v7623_v43, %v9645_v19 }
 0xf7b   : > { %4186 = vmatprep.mubr.bf16.mxu1 %v8311_v41  ;;  %v3967_v31 = vpop.f32.mrf.mxu0  ;;  %7633 = vmatpush3.bf16.msra.mxu1 %v7955_v22 }
 0xf7c   : > { %v3968_v38 = vadd.f32 %v3967_v31, %v9645_v19  ;;  %v4018_v50 = vmax.f32 %v3976_v47, 0.0  ;;  %7634 = vmatprep.subr.bf16.mxu1 %v7956_v20 }
 0xf7d   : > { %v7626_v13 = vpop.f32.mrf.mxu0 }
 0xf7e   : > { %v4016_v53 = vmax.f32 %v3968_v38, 0.0  ;;  %v4032_v28 = vpack.c.bf16 %v4018_v50, %v4017_v25  ;;  %v3989_v49 = vadd.f32 %v7626_v13, %v9645_v19 }
 0xf7f   : > { %v3980_v55 = vpop.f32.mrf.mxu0  ;;  %7635 = vmatpush3.bf16.msra.mxu1 %v7956_v20 }
 0xf80   : > { %v4031_v48 = vpack.c.bf16 %v4016_v53, %v4015_v46  ;;  %v3981_v3 = vadd.f32 %v3980_v55, %v9645_v19  ;;  %v4021_v59 = vmax.f32 %v3989_v49, 0.0  ;;  %7636 = vmatprep.subr.bf16.mxu1 %v7957_v23 }
 0xf81   : > { %v7627_v5 = vpop.f32.mrf.mxu0 }
 0xf82   : > { %4187 = vmatmul.mubr.bf16.gmra.mxu1 %v4030_v63  ;;  %v4019_v34 = vmax.f32 %v3981_v3, 0.0  ;;  %v3992_v4 = vadd.f32 %v7627_v5, %v9645_v19 }
 0xf83   : > { %4196 = vmatprep.mubr.bf16.mxu1 %v8311_v41  ;;  %v3983_v56 = vpop.f32.mrf.mxu0  ;;  %7637 = vmatpush3.bf16.msra.mxu1 %v7957_v23 }
 0xf84   : > { %v3984_v60 = vadd.f32 %v3983_v56, %v9645_v19  ;;  %v4022_v51 = vmax.f32 %v3992_v4, 0.0 }
 0xf85   : > { %v7630_v0 = vpop.f32.mrf.mxu0 }
 0xf86   : > { %v4020_v36 = vmax.f32 %v3984_v60, 0.0  ;;  %v4034_v2 = vpack.c.bf16 %v4022_v51, %v4021_v59  ;;  %v4005_v52 = vadd.f32 %v7630_v0, %v9645_v19 }
 0xf87   : > { %v3996_v40 = vpop.f32.mrf.mxu0 }
 0xf88   : > { %v4033_v8 = vpack.c.bf16 %v4020_v36, %v4019_v34  ;;  %v3997_v10 = vadd.f32 %v3996_v40, %v9645_v19  ;;  %v4025_v16 = vmax.f32 %v4005_v52, 0.0 }
 0xf89   : > { %v7631_v44 = vpop.f32.mrf.mxu0 }
 0xf8a   : > { %4197 = vmatmul.mubr.bf16.gmra.mxu1 %v4031_v48  ;;  %v4023_v14 = vmax.f32 %v3997_v10, 0.0  ;;  %v4008_v61 = vadd.f32 %v7631_v44, %v9645_v19 }
 0xf8b   : > { %4206 = vmatprep.mubr.bf16.mxu1 %v8311_v41  ;;  %v3999_v12 = vpop.f32.mrf.mxu0 }
 0xf8c   : > { %v4000_v9 = vadd.f32 %v3999_v12, %v9645_v19  ;;  %v4026_v15 = vmax.f32 %v4008_v61, 0.0  ;;  %v7954_v19 = vld [vmem:[%s10480_s15] sm:$0xff]  }
 0xf8d   : > { %7126 = vmatpush3.bf16.msra.mxu0 %v7954_v19 }
 0xf8e   : > { %v4024_v11 = vmax.f32 %v4000_v9, 0.0  ;;  %v4036_v33 = vpack.c.bf16 %v4026_v15, %v4025_v16 }
 0xf90   : > { %v4035_v54 = vpack.c.bf16 %v4024_v11, %v4023_v14 }
 0xf92   : > { %4207 = vmatmul.mubr.bf16.gmra.mxu1 %v4032_v28 }
 0xf93   : > { %4216 = vmatprep.mubr.bf16.mxu1 %v8311_v41 }
 0xf9a   : > { %4217 = vmatmul.mubr.bf16.gmra.mxu1 %v4033_v8 }
 0xf9b   : > { %4226 = vmatprep.mubr.bf16.mxu1 %v8311_v41 }
 0xfa2   : > { %4227 = vmatmul.mubr.bf16.gmra.mxu1 %v4034_v2 }
 0xfa3   : > { %4236 = vmatprep.mubr.bf16.mxu1 %v8311_v41 }
 0xfaa   : > { %4237 = vmatmul.mubr.bf16.gmra.mxu1 %v4035_v54 }
 0xfab   : > { %4246 = vmatprep.mubr.bf16.mxu1 %v8311_v41 }
 0xfb2   : > { %4247 = vmatmul.mubr.bf16.gmra.mxu1 %v4036_v33 }
0x103a   : > { %v4178_v26 = vpop.f32.mrf.mxu1 }
0x103b   : > { %v4179_v62 = vadd.f32 %v4178_v26, %v9704_v30 }
0x103c   : > { %v4180_v35 = vpop.f32.mrf.mxu1 }
0x103d   : > { %v4181_v39 = vadd.f32 %v4180_v35, %v9701_v27  ;;  %v4257_v32 = vmax.f32 %v4179_v62, 0.0 }
0x103e   : > { %v4182_v37 = vpop.f32.mrf.mxu1 }
0x103f   : > { %v4183_v43 = vadd.f32 %v4182_v37, %v9704_v30  ;;  %v4258_v38 = vmax.f32 %v4181_v39, 0.0 }
0x1040   : > { %v4184_v29 = vpop.f32.mrf.mxu1 }
0x1041   : > { %v4185_v31 = vadd.f32 %v4184_v29, %v9701_v27  ;;  %v4259_v45 = vmax.f32 %v4183_v43, 0.0 }
0x1042   : > { %v4188_v63 = vpop.f32.mrf.mxu1 }
0x1043   : > { %v4260_v13 = vmax.f32 %v4185_v31, 0.0  ;;  %v4290_v46 = vpack.c.bf16 %v4259_v45, %v4257_v32  ;;  %v4189_v21 = vadd.f32 %v4188_v63, %v9704_v30 }
0x1044   : > { %v4190_v53 = vpop.f32.mrf.mxu1 }
0x1045   : > { %v4291_v55 = vpack.c.bf16 %v4260_v13, %v4258_v38  ;;  %v4191_v48 = vadd.f32 %v4190_v53, %v9701_v27  ;;  %v4261_v3 = vmax.f32 %v4189_v21, 0.0 }
0x1046   : > { %v4192_v47 = vpop.f32.mrf.mxu1 }
0x1047   : > { %v4193_v5 = vadd.f32 %v4192_v47, %v9704_v30  ;;  %4466 = vmatprep.mubr.bf16.mxu0 %v4291_v55  ;;  %v4262_v60 = vmax.f32 %v4191_v48, 0.0 }
0x1048   : > { %v4194_v50 = vpop.f32.mrf.mxu1  ;;  %4467 = vmatmul.mubr.bf16.vlgmr.msra.gmra.mxu0 %v4290_v46 }
0x1049   : > { %v4195_v56 = vadd.f32 %v4194_v50, %v9701_v27  ;;  %v4263_v25 = vmax.f32 %v4193_v5, 0.0 }
0x104a   : > { %v4198_v28 = vpop.f32.mrf.mxu1 }
0x104b   : > { %v4264_v0 = vmax.f32 %v4195_v56, 0.0  ;;  %v4292_v34 = vpack.c.bf16 %v4263_v25, %v4261_v3  ;;  %v4199_v49 = vadd.f32 %v4198_v28, %v9704_v30 }
0x104c   : > { %v4200_v36 = vpop.f32.mrf.mxu1 }
0x104d   : > { %v4293_v40 = vpack.c.bf16 %v4264_v0, %v4262_v60  ;;  %v4201_v8 = vadd.f32 %v4200_v36, %v9701_v27  ;;  %v4265_v11 = vmax.f32 %v4199_v49, 0.0 }
0x104e   : > { %v4202_v4 = vpop.f32.mrf.mxu1 }
0x104f   : > { %v4203_v44 = vadd.f32 %v4202_v4, %v9704_v30  ;;  %4474 = vmatprep.mubr.bf16.mxu0 %v4293_v40  ;;  %v4266_v9 = vmax.f32 %v4201_v8, 0.0 }
0x1050   : > { %v4204_v51 = vpop.f32.mrf.mxu1  ;;  %4475 = vmatmul.mubr.bf16.gmra.mxu0 %v4292_v34 }
0x1051   : > { %v4205_v12 = vadd.f32 %v4204_v51, %v9701_v27  ;;  %v4267_v59 = vmax.f32 %v4203_v44, 0.0 }
0x1052   : > { %v4208_v2 = vpop.f32.mrf.mxu1 }
0x1053   : > { %v4268_v10 = vmax.f32 %v4205_v12, 0.0  ;;  %v4294_v54 = vpack.c.bf16 %v4267_v59, %v4265_v11  ;;  %v4209_v33 = vadd.f32 %v4208_v2, %v9704_v30 }
0x1054   : > { %v4210_v14 = vpop.f32.mrf.mxu1 }
0x1055   : > { %v4295_v61 = vpack.c.bf16 %v4268_v10, %v4266_v9  ;;  %v4211_v15 = vadd.f32 %v4210_v14, %v9701_v27  ;;  %v4269_v22 = vmax.f32 %v4209_v33, 0.0 }
0x1056   : > { %v4212_v52 = vpop.f32.mrf.mxu1 }
0x1057   : > { %v4213_v16 = vadd.f32 %v4212_v52, %v9704_v30  ;;  %4482 = vmatprep.mubr.bf16.mxu0 %v4295_v61  ;;  %v4270_v1 = vmax.f32 %v4211_v15, 0.0 }
0x1058   : > { %v4214_v17 = vpop.f32.mrf.mxu1  ;;  %4483 = vmatmul.mubr.bf16.gmra.mxu0 %v4294_v54 }
0x1059   : > { %v4215_v42 = vadd.f32 %v4214_v17, %v9701_v27  ;;  %v4271_v18 = vmax.f32 %v4213_v16, 0.0 }
0x105a   : > { %v4218_v7 = vpop.f32.mrf.mxu1 }
0x105b   : > { %v4272_v19 = vmax.f32 %v4215_v42, 0.0  ;;  %v4296_v24 = vpack.c.bf16 %v4271_v18, %v4269_v22  ;;  %v4219_v39 = vadd.f32 %v4218_v7, %v9704_v30  ;;  %v7958_v22 = vld [vmem:[%s10481_s16 + $0x20] sm:$0xff]  }
0x105c   : > { %v4220_v20 = vpop.f32.mrf.mxu1  ;;  %7638 = vmatprep.subr.bf16.mxu1 %v7958_v22 }
0x105d   : > { %v4297_v23 = vpack.c.bf16 %v4272_v19, %v4270_v1  ;;  %v4221_v35 = vadd.f32 %v4220_v20, %v9701_v27  ;;  %v4273_v38 = vmax.f32 %v4219_v39, 0.0  ;;  %7639 = vmatpush3.bf16.msra.mxu1 %v7958_v22  ;;  %v7961_v20 = vld [vmem:[%s10481_s16 + $0x8] sm:$0xff]   ;;  %v7967_v39 = vld [vmem:[%s10482_s17 + $0x18] sm:$0xff]  }
0x105e   : > { %v4222_v26 = vpop.f32.mrf.mxu1 }
0x105f   : > { %v4223_v37 = vadd.f32 %v4222_v26, %v9704_v30  ;;  %4490 = vmatprep.mubr.bf16.mxu0 %v4297_v23  ;;  %v4274_v45 = vmax.f32 %v4221_v35, 0.0  ;;  %v7962_v23 = vld [vmem:[%s10481_s16] sm:$0xff]   ;;  %v7964_v26 = vld [vmem:[%s10482_s17 + $0x30] sm:$0xff]   ;;  %v7965_v35 = vld [vmem:[%s10482_s17 + $0x28] sm:$0xff]  }
0x1060   : > { %v4224_v43 = vpop.f32.mrf.mxu1  ;;  %4491 = vmatmul.mubr.bf16.gmra.mxu0 %v4296_v24  ;;  %v7963_v24 = vld [vmem:[%s10482_s17 + $0x38] sm:$0xff]  }
0x1061   : > { %v4225_v62 = vadd.f32 %v4224_v43, %v9701_v27  ;;  %v4275_v29 = vmax.f32 %v4223_v37, 0.0  ;;  %7664 = vmatprep.subr.bf16.mxu0 %v7963_v24  ;;  %v7966_v37 = vld [vmem:[%s10482_s17 + $0x20] sm:$0xff]  }
0x1062   : > { %v4228_v31 = vpop.f32.mrf.mxu1  ;;  %7665 = vmatpush3.bf16.msra.mxu0 %v7963_v24 }
0x1063   : > { %v4276_v63 = vmax.f32 %v4225_v62, 0.0  ;;  %v4298_v53 = vpack.c.bf16 %v4275_v29, %v4273_v38  ;;  %v4229_v48 = vadd.f32 %v4228_v31, %v9704_v30  ;;  %7666 = vmatprep.subr.bf16.mxu0 %v7964_v26  ;;  %v9772_v31 = vld [vmem:[%s10501_s0 + $0x22] ss:$0 sm:$0xff] }
0x1064   : > { %v4230_v13 = vpop.f32.mrf.mxu1 }
0x1065   : > { %v4299_v32 = vpack.c.bf16 %v4276_v63, %v4274_v45  ;;  %v4231_v46 = vadd.f32 %v4230_v13, %v9701_v27  ;;  %v4277_v60 = vmax.f32 %v4229_v48, 0.0 }
0x1066   : > { %v4232_v55 = vpop.f32.mrf.mxu1  ;;  %7667 = vmatpush3.bf16.msra.mxu0 %v7964_v26 }
0x1067   : > { %v4233_v47 = vadd.f32 %v4232_v55, %v9704_v30  ;;  %4498 = vmatprep.mubr.bf16.mxu0 %v4299_v32  ;;  %v4278_v25 = vmax.f32 %v4231_v46, 0.0  ;;  %7668 = vmatprep.subr.bf16.mxu0 %v7965_v35 }
0x1068   : > { %v4234_v5 = vpop.f32.mrf.mxu1  ;;  %4499 = vmatmul.mubr.bf16.gmra.mxu0 %v4298_v53 }
0x1069   : > { %v4235_v21 = vadd.f32 %v4234_v5, %v9701_v27  ;;  %v4279_v50 = vmax.f32 %v4233_v47, 0.0 }
0x106a   : > { %v4238_v56 = vpop.f32.mrf.mxu1  ;;  %7669 = vmatpush3.bf16.msra.mxu0 %v7965_v35 }
0x106b   : > { %v4280_v28 = vmax.f32 %v4235_v21, 0.0  ;;  %v4300_v36 = vpack.c.bf16 %v4279_v50, %v4277_v60  ;;  %v4239_v8 = vadd.f32 %v4238_v56, %v9704_v30  ;;  %7670 = vmatprep.subr.bf16.mxu0 %v7966_v37 }
0x106c   : > { %v4240_v0 = vpop.f32.mrf.mxu1 }
0x106d   : > { %v4301_v3 = vpack.c.bf16 %v4280_v28, %v4278_v25  ;;  %v4241_v34 = vadd.f32 %v4240_v0, %v9701_v27  ;;  %v4281_v9 = vmax.f32 %v4239_v8, 0.0 }
0x106e   : > { %v4242_v40 = vpop.f32.mrf.mxu1  ;;  %7671 = vmatpush3.bf16.msra.mxu0 %v7966_v37 }
0x106f   : > { %v4243_v4 = vadd.f32 %v4242_v40, %v9704_v30  ;;  %4506 = vmatprep.mubr.bf16.mxu0 %v4301_v3  ;;  %v4282_v59 = vmax.f32 %v4241_v34, 0.0  ;;  %7672 = vmatprep.subr.bf16.mxu0 %v7967_v39 }
0x1070   : > { %v4244_v44 = vpop.f32.mrf.mxu1  ;;  %4507 = vmatmul.mubr.bf16.gmra.mxu0 %v4300_v36 }
0x1071   : > { %v4245_v49 = vadd.f32 %v4244_v44, %v9701_v27  ;;  %v4283_v51 = vmax.f32 %v4243_v4, 0.0 }
0x1072   : > { %v4248_v12 = vpop.f32.mrf.mxu1  ;;  %7673 = vmatpush3.bf16.msra.mxu0 %v7967_v39 }
0x1073   : > { %v4284_v2 = vmax.f32 %v4245_v49, 0.0  ;;  %v4302_v14 = vpack.c.bf16 %v4283_v51, %v4281_v9  ;;  %v4249_v15 = vadd.f32 %v4248_v12, %v9704_v30 }
0x1074   : > { %v4250_v10 = vpop.f32.mrf.mxu1 }
0x1075   : > { %v4303_v11 = vpack.c.bf16 %v4284_v2, %v4282_v59  ;;  %v4251_v54 = vadd.f32 %v4250_v10, %v9701_v27  ;;  %v4285_v7 = vmax.f32 %v4249_v15, 0.0 }
0x1076   : > { %v4252_v61 = vpop.f32.mrf.mxu1 }
0x1077   : > { %v4253_v52 = vadd.f32 %v4252_v61, %v9704_v30  ;;  %4514 = vmatprep.mubr.bf16.mxu0 %v4303_v11  ;;  %v4286_v42 = vmax.f32 %v4251_v54, 0.0  ;;  %v7959_v30 = vld [vmem:[%s10481_s16 + $0x18] sm:$0xff]  }
0x1078   : > { %v4254_v16 = vpop.f32.mrf.mxu1  ;;  %4515 = vmatmul.mubr.bf16.gmra.mxu0 %v4302_v14  ;;  %7640 = vmatprep.subr.bf16.mxu1 %v7959_v30 }
0x1079   : > { %v4255_v33 = vadd.f32 %v4254_v16, %v9701_v27  ;;  %v4287_v17 = vmax.f32 %v4253_v52, 0.0  ;;  %7641 = vmatpush3.bf16.msra.mxu1 %v7959_v30  ;;  %v7960_v27 = vld [vmem:[%s10481_s16 + $0x10] sm:$0xff]  }
0x107a   : > { %7642 = vmatprep.subr.bf16.mxu1 %v7960_v27 }
0x107b   : > { %v4288_v18 = vmax.f32 %v4255_v33, 0.0  ;;  %v4304_v19 = vpack.c.bf16 %v4287_v17, %v4285_v7 }
0x107d   : > { %v4305_v1 = vpack.c.bf16 %v4288_v18, %v4286_v42  ;;  %7643 = vmatpush3.bf16.msra.mxu1 %v7960_v27 }
0x107e   : > { %7644 = vmatprep.subr.bf16.mxu1 %v7961_v20 }
0x107f   : > { %4522 = vmatprep.mubr.bf16.mxu0 %v4305_v1 }
0x1080   : > { %4523 = vmatmul.mubr.bf16.gmra.mxu0 %v4304_v19 }
0x1081   : > { %7645 = vmatpush3.bf16.msra.mxu1 %v7961_v20 }
0x1082   : > { %7646 = vmatprep.subr.bf16.mxu1 %v7962_v23 }
0x1085   : > { %7647 = vmatpush3.bf16.msra.mxu1 %v7962_v23 }
0x1086   : > { %7696 = vmatprep.subr.mxu1 %v8312_v6 }
0x1108   : > { %v7127_v43 = vpop.f32.mrf.mxu0 }
0x110a   : > { %v7128_v62 = vpop.f32.mrf.mxu0 }
0x110b   : > { %v7129_v29 = vadd.f32 %v7128_v62, %v7127_v43 }
0x110c   : > { %v7130_v45 = vpop.f32.mrf.mxu0 }
0x110d   : > { %v4469_v38 = vadd.f32 %v7129_v29, %v9772_v31 }
0x110e   : > { %v7131_v63 = vpop.f32.mrf.mxu0 }
0x110f   : > { %v7132_v13 = vadd.f32 %v7131_v63, %v7130_v45  ;;  %v4531_v46 = vmax.f32 %v4469_v38, 0.0 }
0x1110   : > { %v7133_v32 = vpop.f32.mrf.mxu0 }
0x1111   : > { %v4472_v53 = vadd.f32 %v7132_v13, %v9772_v31 }
0x1112   : > { %v7134_v55 = vpop.f32.mrf.mxu0 }
0x1113   : > { %v4532_v47 = vmax.f32 %v4472_v53, 0.0  ;;  %v7135_v48 = vadd.f32 %v7134_v55, %v7133_v32 }
0x1114   : > { %v7136_v5 = vpop.f32.mrf.mxu0 }
0x1115   : > { %v4548_v21 = vpack.c.bf16 %v4532_v47, %v4531_v46  ;;  %v4477_v56 = vadd.f32 %v7135_v48, %v9772_v31 }
0x1116   : > { %v7137_v50 = vpop.f32.mrf.mxu0 }
0x1117   : > { %v7138_v25 = vadd.f32 %v7137_v50, %v7136_v5  ;;  %7648 = vmatprep.mubr.bf16.mxu1 %v4548_v21  ;;  %v4533_v3 = vmax.f32 %v4477_v56, 0.0 }
0x1118   : > { %v7139_v28 = vpop.f32.mrf.mxu0 }
0x1119   : > { %v4480_v60 = vadd.f32 %v7138_v25, %v9772_v31 }
0x111a   : > { %v7140_v0 = vpop.f32.mrf.mxu0 }
0x111b   : > { %v4534_v36 = vmax.f32 %v4480_v60, 0.0  ;;  %v7141_v40 = vadd.f32 %v7140_v0, %v7139_v28 }
0x111c   : > { %v7142_v34 = vpop.f32.mrf.mxu0 }
0x111d   : > { %v4549_v4 = vpack.c.bf16 %v4534_v36, %v4533_v3  ;;  %v4485_v44 = vadd.f32 %v7141_v40, %v9772_v31 }
0x111e   : > { %v7143_v8 = vpop.f32.mrf.mxu0 }
0x111f   : > { %v7144_v49 = vadd.f32 %v7143_v8, %v7142_v34  ;;  %7649 = vmatmul.mubr.bf16.vlgmr.msra.gmra.mxu1 %v4549_v4  ;;  %v4535_v2 = vmax.f32 %v4485_v44, 0.0 }
0x1120   : > { %v7145_v51 = vpop.f32.mrf.mxu0 }
0x1121   : > { %v4488_v12 = vadd.f32 %v7144_v49, %v9772_v31 }
0x1122   : > { %v7146_v59 = vpop.f32.mrf.mxu0 }
0x1123   : > { %v4536_v9 = vmax.f32 %v4488_v12, 0.0  ;;  %v7147_v10 = vadd.f32 %v7146_v59, %v7145_v51  ;;  %v7968_v51 = vld [vmem:[%s10482_s17 + $0x10] sm:$0xff]   ;;  %v7969_v12 = vld [vmem:[%s10482_s17 + $0x8] sm:$0xff]  }
0x1124   : > { %v7148_v11 = vpop.f32.mrf.mxu0  ;;  %7674 = vmatprep.subr.bf16.mxu0 %v7968_v51 }
0x1125   : > { %v4550_v14 = vpack.c.bf16 %v4536_v9, %v4535_v2  ;;  %v4493_v54 = vadd.f32 %v7147_v10, %v9772_v31  ;;  %7675 = vmatpush3.bf16.msra.mxu0 %v7968_v51  ;;  %v4547_v9 = vld [vmem:[%s10501_s0 + $0x23] ss:$0 sm:$0xff] }
0x1126   : > { %v7149_v61 = vpop.f32.mrf.mxu0  ;;  %7676 = vmatprep.subr.bf16.mxu0 %v7969_v12 }
0x1127   : > { %v7150_v52 = vadd.f32 %v7149_v61, %v7148_v11  ;;  %7652 = vmatprep.mubr.bf16.mxu1 %v4550_v14  ;;  %v4537_v17 = vmax.f32 %v4493_v54, 0.0 }
0x1128   : > { %v7151_v15 = vpop.f32.mrf.mxu0 }
0x1129   : > { %v4496_v16 = vadd.f32 %v7150_v52, %v9772_v31  ;;  %7677 = vmatpush3.bf16.msra.mxu0 %v7969_v12  ;;  %v9809_v12 = vld [vmem:[%s10501_s0 + $0x25] ss:$0 sm:$0xff] }
0x112a   : > { %v7152_v33 = vpop.f32.mrf.mxu0 }
0x112b   : > { %v4538_v42 = vmax.f32 %v4496_v16, 0.0  ;;  %v7153_v18 = vadd.f32 %v7152_v33, %v7151_v15 }
0x112c   : > { %v7154_v7 = vpop.f32.mrf.mxu0 }
0x112d   : > { %v4551_v1 = vpack.c.bf16 %v4538_v42, %v4537_v17  ;;  %v4501_v22 = vadd.f32 %v7153_v18, %v9772_v31 }
0x112e   : > { %v7155_v19 = vpop.f32.mrf.mxu0 }
0x112f   : > { %v7156_v30 = vadd.f32 %v7155_v19, %v7154_v7  ;;  %7653 = vmatmul.mubr.bf16.gmra.mxu1 %v4551_v1  ;;  %v4539_v24 = vmax.f32 %v4501_v22, 0.0 }
0x1130   : > { %v7157_v27 = vpop.f32.mrf.mxu0 }
0x1131   : > { %v4504_v20 = vadd.f32 %v7156_v30, %v9772_v31 }
0x1132   : > { %v7158_v23 = vpop.f32.mrf.mxu0 }
0x1133   : > { %v4540_v26 = vmax.f32 %v4504_v20, 0.0  ;;  %v7159_v35 = vadd.f32 %v7158_v23, %v7157_v27 }
0x1134   : > { %v7160_v37 = vpop.f32.mrf.mxu0 }
0x1135   : > { %v4552_v39 = vpack.c.bf16 %v4540_v26, %v4539_v24  ;;  %v4509_v62 = vadd.f32 %v7159_v35, %v9772_v31 }
0x1136   : > { %v7161_v43 = vpop.f32.mrf.mxu0 }
0x1137   : > { %v7162_v29 = vadd.f32 %v7161_v43, %v7160_v37  ;;  %7656 = vmatprep.mubr.bf16.mxu1 %v4552_v39  ;;  %v4541_v13 = vmax.f32 %v4509_v62, 0.0 }
0x1138   : > { %v7163_v45 = vpop.f32.mrf.mxu0 }
0x1139   : > { %v4512_v63 = vadd.f32 %v7162_v29, %v9772_v31 }
0x113a   : > { %v7164_v38 = vpop.f32.mrf.mxu0 }
0x113b   : > { %v4542_v32 = vmax.f32 %v4512_v63, 0.0  ;;  %v7165_v53 = vadd.f32 %v7164_v38, %v7163_v45 }
0x113c   : > { %v7166_v55 = vpop.f32.mrf.mxu0 }
0x113d   : > { %v4553_v46 = vpack.c.bf16 %v4542_v32, %v4541_v13  ;;  %v4517_v48 = vadd.f32 %v7165_v53, %v9772_v31 }
0x113e   : > { %v7167_v47 = vpop.f32.mrf.mxu0 }
0x113f   : > { %v7168_v5 = vadd.f32 %v7167_v47, %v7166_v55  ;;  %7657 = vmatmul.mubr.bf16.gmra.mxu1 %v4553_v46  ;;  %v4543_v25 = vmax.f32 %v4517_v48, 0.0 }
0x1140   : > { %v7169_v21 = vpop.f32.mrf.mxu0 }
0x1141   : > { %v4520_v50 = vadd.f32 %v7168_v5, %v9772_v31 }
0x1142   : > { %v7170_v56 = vpop.f32.mrf.mxu0 }
0x1143   : > { %v4544_v28 = vmax.f32 %v4520_v50, 0.0  ;;  %v7171_v60 = vadd.f32 %v7170_v56, %v7169_v21 }
0x1144   : > { %v7172_v0 = vpop.f32.mrf.mxu0 }
0x1145   : > { %v4554_v3 = vpack.c.bf16 %v4544_v28, %v4543_v25  ;;  %v4525_v40 = vadd.f32 %v7171_v60, %v9772_v31 }
0x1146   : > { %v7173_v36 = vpop.f32.mrf.mxu0 }
0x1147   : > { %v7174_v34 = vadd.f32 %v7173_v36, %v7172_v0  ;;  %7660 = vmatprep.mubr.bf16.mxu1 %v4554_v3  ;;  %v4545_v8 = vmax.f32 %v4525_v40, 0.0 }
0x1149   : > { %v4528_v4 = vadd.f32 %v7174_v34, %v9772_v31  ;;  %v7970_v31 = vld [vmem:[%s10482_s17] sm:$0xff]  }
0x114a   : > { %7678 = vmatprep.subr.bf16.mxu0 %v7970_v31 }
0x114b   : > { %v4546_v44 = vmax.f32 %v4528_v4, 0.0  ;;  %7679 = vmatpush3.bf16.msra.mxu0 %v7970_v31 }
0x114d   : > { %v4555_v49 = vpack.c.bf16 %v4546_v44, %v4545_v8 }
0x114f   : > { %7661 = vmatmul.mubr.bf16.gmra.mxu1 %v4555_v49 }
0x1150   : > { %7728 = vmatprep.mubr.msk.f32.mxu1 %vm8313_vm2, %v8312_v6 }
0x11df   : > { %v7650_v59 = vpop.f32.mrf.mxu1 }
0x11e0   : > { %v4663_v61 = vadd.f32 %v7650_v59, %v4547_v9 }
0x11e1   : > { %v4654_v2 = vpop.f32.mrf.mxu1 }
0x11e2   : > { %v4655_v11 = vadd.f32 %v4654_v2, %v4547_v9  ;;  %v4719_v17 = vmax.f32 %v4663_v61, 0.0 }
0x11e3   : > { %v7651_v10 = vpop.f32.mrf.mxu1 }
0x11e4   : > { %v4666_v14 = vadd.f32 %v7651_v10, %v4547_v9  ;;  %v4717_v16 = vmax.f32 %v4655_v11, 0.0 }
0x11e5   : > { %v4657_v54 = vpop.f32.mrf.mxu1 }
0x11e6   : > { %v4658_v52 = vadd.f32 %v4657_v54, %v4547_v9  ;;  %v4720_v15 = vmax.f32 %v4666_v14, 0.0 }
0x11e8   : > { %v4718_v33 = vmax.f32 %v4658_v52, 0.0  ;;  %v4738_v18 = vpack.c.bf16 %v4720_v15, %v4719_v17 }
0x11ea   : > { %v4737_v42 = vpack.c.bf16 %v4718_v33, %v4717_v16 }
0x11ec   : > { %7680 = vmatprep.mubr.bf16.mxu0 %v4737_v42 }
0x11ed   : > { %7681 = vmatmul.mubr.bf16.vlgmr.msra.gmra.mxu0 %v4738_v18 }
0x11ef   : > { %v7654_v7 = vpop.f32.mrf.mxu1 }
0x11f0   : > { %v4679_v27 = vadd.f32 %v7654_v7, %v4547_v9 }
0x11f1   : > { %v4670_v1 = vpop.f32.mrf.mxu1 }
0x11f2   : > { %v4671_v22 = vadd.f32 %v4670_v1, %v4547_v9  ;;  %v4723_v37 = vmax.f32 %v4679_v27, 0.0 }
0x11f3   : > { %v7655_v19 = vpop.f32.mrf.mxu1 }
0x11f4   : > { %v4682_v30 = vadd.f32 %v7655_v19, %v4547_v9  ;;  %v4721_v26 = vmax.f32 %v4671_v22, 0.0 }
0x11f5   : > { %v4673_v20 = vpop.f32.mrf.mxu1 }
0x11f6   : > { %v4674_v23 = vadd.f32 %v4673_v20, %v4547_v9  ;;  %v4724_v24 = vmax.f32 %v4682_v30, 0.0 }
0x11f8   : > { %v4722_v35 = vmax.f32 %v4674_v23, 0.0  ;;  %v4740_v43 = vpack.c.bf16 %v4724_v24, %v4723_v37 }
0x11fa   : > { %v4739_v39 = vpack.c.bf16 %v4722_v35, %v4721_v26 }
0x11fc   : > { %7684 = vmatprep.mubr.bf16.mxu0 %v4739_v39 }
0x11fd   : > { %7685 = vmatmul.mubr.bf16.gmra.mxu0 %v4740_v43 }
0x11ff   : > { %v7658_v62 = vpop.f32.mrf.mxu1 }
0x1200   : > { %v4695_v13 = vadd.f32 %v7658_v62, %v4547_v9 }
0x1201   : > { %v4686_v29 = vpop.f32.mrf.mxu1 }
0x1202   : > { %v4687_v63 = vadd.f32 %v4686_v29, %v4547_v9  ;;  %v4727_v48 = vmax.f32 %v4695_v13, 0.0 }
0x1203   : > { %v7659_v45 = vpop.f32.mrf.mxu1 }
0x1204   : > { %v4698_v38 = vadd.f32 %v7659_v45, %v4547_v9  ;;  %v4725_v46 = vmax.f32 %v4687_v63, 0.0 }
0x1205   : > { %v4689_v32 = vpop.f32.mrf.mxu1 }
0x1206   : > { %v4690_v53 = vadd.f32 %v4689_v32, %v4547_v9  ;;  %v4728_v55 = vmax.f32 %v4698_v38, 0.0 }
0x1208   : > { %v4726_v47 = vmax.f32 %v4690_v53, 0.0  ;;  %v4742_v21 = vpack.c.bf16 %v4728_v55, %v4727_v48 }
0x120a   : > { %v4741_v5 = vpack.c.bf16 %v4726_v47, %v4725_v46 }
0x120c   : > { %7688 = vmatprep.mubr.bf16.mxu0 %v4741_v5 }
0x120d   : > { %7689 = vmatmul.mubr.bf16.gmra.mxu0 %v4742_v21 }
0x120f   : > { %v7662_v50 = vpop.f32.mrf.mxu1 }
0x1210   : > { %v4711_v0 = vadd.f32 %v7662_v50, %v4547_v9 }
0x1211   : > { %v4702_v56 = vpop.f32.mrf.mxu1 }
0x1212   : > { %v4703_v28 = vadd.f32 %v4702_v56, %v4547_v9  ;;  %v4731_v8 = vmax.f32 %v4711_v0, 0.0 }
0x1213   : > { %v7663_v25 = vpop.f32.mrf.mxu1 }
0x1214   : > { %v4714_v60 = vadd.f32 %v7663_v25, %v4547_v9  ;;  %v4729_v34 = vmax.f32 %v4703_v28, 0.0 }
0x1215   : > { %v4705_v3 = vpop.f32.mrf.mxu1 }
0x1216   : > { %v4706_v36 = vadd.f32 %v4705_v3, %v4547_v9  ;;  %v4732_v40 = vmax.f32 %v4714_v60, 0.0 }
0x1218   : > { %v4730_v4 = vmax.f32 %v4706_v36, 0.0  ;;  %v4744_v49 = vpack.c.bf16 %v4732_v40, %v4731_v8  ;;  %v4733_v8 = vld [vmem:[%s10501_s0 + $0x24] ss:$0 sm:$0xff] }
0x121a   : > { %v4743_v44 = vpack.c.bf16 %v4730_v4, %v4729_v34 }
0x121c   : > { %7692 = vmatprep.mubr.bf16.mxu0 %v4743_v44 }
0x121d   : > { %7693 = vmatmul.mubr.bf16.gmra.mxu0 %v4744_v49 }
0x12ad   : > { %v9804_v51 = vpop.f32.mrf.mxu0 }
0x12ae   : > { %v4908_v9 = vmul.f32 %v9804_v51, %v9809_v12 }
0x12af   : > { %v9811_v31 = vpop.f32.mrf.mxu0 }
0x12b0   : > { %v4906_v59 = vmul.f32 %v9811_v31, %v9809_v12  ;;  %v4928_v54 = vsel %vm1726_vm3, %v4908_v9, 0.0 }
0x12b1   : > { %v9815_v2 = vpop.f32.mrf.mxu0 }
0x12b2   : > { %v4922_v10 = vsel %vm1726_vm3, %v4906_v59, 0.0  ;;  %v4909_v61 = vmul.f32 %v9815_v2, %v9809_v12  ;;  %v5328_v34 = vpack.c.bf16 %v9815_v2, %v9804_v51 }
0x12b3   : > { %4923 = vadd.xlane.f32.xlu0 %v4922_v10  ;;  %v9820_v11 = vpop.f32.mrf.mxu0 }
0x12b4   : > { %v4907_v14 = vmul.f32 %v9820_v11, %v9809_v12  ;;  %v4931_v15 = vsel %vm1726_vm3, %v4909_v61, 0.0  ;;  %v5327_v4 = vpack.c.bf16 %v9820_v11, %v9811_v31 }
0x12b6   : > { %v4925_v52 = vsel %vm1726_vm3, %v4907_v14, 0.0 }
0x12b7   : > { %4929 = vadd.xlane.f32.xlu0 %v4928_v54  ;;  %4926 = vadd.xlane.f32.xlu1 %v4925_v52 }
0x12bb   : > { %4932 = vadd.xlane.f32.xlu1 %v4931_v15 }
0x12bd   : > { %v9829_v16 = vpop.f32.mrf.mxu0 }
0x12be   : > { %v4912_v18 = vmul.f32 %v9829_v16, %v9809_v12 }
0x12bf   : > { %v9831_v33 = vpop.f32.mrf.mxu0 }
0x12c0   : > { %v4910_v17 = vmul.f32 %v9831_v33, %v9809_v12  ;;  %v4940_v30 = vsel %vm1726_vm3, %v4912_v18, 0.0 }
0x12c1   : > { %v9835_v42 = vpop.f32.mrf.mxu0 }
0x12c2   : > { %v4934_v7 = vsel %vm1726_vm3, %v4910_v17, 0.0  ;;  %v4913_v22 = vmul.f32 %v9835_v42, %v9809_v12  ;;  %v5330_v36 = vpack.c.bf16 %v9835_v42, %v9829_v16 }
0x12c3   : > { %4935 = vadd.xlane.f32.xlu0 %v4934_v7  ;;  %v9840_v1 = vpop.f32.mrf.mxu0 }
0x12c4   : > { %v4911_v19 = vmul.f32 %v9840_v1, %v9809_v12  ;;  %v4943_v20 = vsel %vm1726_vm3, %v4913_v22, 0.0  ;;  %v5329_v40 = vpack.c.bf16 %v9840_v1, %v9831_v33 }
0x12c6   : > { %v4937_v27 = vsel %vm1726_vm3, %v4911_v19, 0.0 }
0x12c7   : > { %4941 = vadd.xlane.f32.xlu0 %v4940_v30  ;;  %4938 = vadd.xlane.f32.xlu1 %v4937_v27 }
0x12cb   : > { %4944 = vadd.xlane.f32.xlu1 %v4943_v20  ;;  %v8287_v20 = vld [vmem:[%s8811_s24] sm:$0xff] }
0x12cd   : > { %v7690_v23 = vpop.f32.mrf.mxu0 }
0x12ce   : > { %v4916_v37 = vmul.f32 %v7690_v23, %v9809_v12 }
0x12cf   : > { %v9849_v24 = vpop.f32.mrf.mxu0 }
0x12d0   : > { %v4914_v26 = vmul.f32 %v9849_v24, %v9809_v12  ;;  %v4952_v45 = vsel %vm1726_vm3, %v4916_v37, 0.0 }
0x12d1   : > { %v7691_v35 = vpop.f32.mrf.mxu0 }
0x12d2   : > { %v4946_v39 = vsel %vm1726_vm3, %v4914_v26, 0.0  ;;  %v4917_v29 = vmul.f32 %v7691_v35, %v9809_v12  ;;  %v5332_v60 = vpack.c.bf16 %v7691_v35, %v7690_v23 }
0x12d3   : > { %4947 = vadd.xlane.f32.xlu0 %v4946_v39  ;;  %v4878_v43 = vpop.f32.mrf.mxu0 }
0x12d4   : > { %v4915_v62 = vmul.f32 %v4878_v43, %v9809_v12  ;;  %v4955_v38 = vsel %vm1726_vm3, %v4917_v29, 0.0  ;;  %v5331_v3 = vpack.c.bf16 %v4878_v43, %v9849_v24 }
0x12d6   : > { %v4949_v63 = vsel %vm1726_vm3, %v4915_v62, 0.0  ;;  %v8289_v62 = vld [vmem:[%s8811_s24 + $0x10] sm:$0xff] }
0x12d7   : > { %4953 = vadd.xlane.f32.xlu0 %v4952_v45  ;;  %4950 = vadd.xlane.f32.xlu1 %v4949_v63  ;;  %v8290_v63 = vld [vmem:[%s8811_s24 + $0x18] sm:$0xff] }
0x12db   : > { %4956 = vadd.xlane.f32.xlu1 %v4955_v38 }
0x12dd   : > { %v7694_v13 = vpop.f32.mrf.mxu0 }
0x12de   : > { %v4920_v46 = vmul.f32 %v7694_v13, %v9809_v12 }
0x12df   : > { %v4891_v32 = vpop.f32.mrf.mxu0 }
0x12e0   : > { %v4918_v53 = vmul.f32 %v4891_v32, %v9809_v12  ;;  %v4964_v25 = vsel %vm1726_vm3, %v4920_v46, 0.0 }
0x12e1   : > { %v7695_v55 = vpop.f32.mrf.mxu0 }
0x12e2   : > { %v5334_v47 = vpack.c.bf16 %v7695_v55, %v7694_v13  ;;  %7697 = vmatpush3.xpose.msk.msra.mxu1 %vm1726_vm3, %v7695_v55  ;;  %v4958_v48 = vsel %vm1726_vm3, %v4918_v53, 0.0  ;;  %v4921_v56 = vmul.f32 %v7695_v55, %v9809_v12 }
0x12e3   : > { %4959 = vadd.xlane.f32.xlu0 %v4958_v48  ;;  %v4894_v5 = vpop.f32.mrf.mxu0  ;;  %7698 = vmatprep.subr.mxu1 %v8312_v6 }
0x12e4   : > { %v4919_v21 = vmul.f32 %v4894_v5, %v9809_v12  ;;  %v5333_v50 = vpack.c.bf16 %v4894_v5, %v4891_v32  ;;  %7731 = vmatprep.subr.bf16.mxu0 %v5334_v47  ;;  %v4967_v0 = vsel %vm1726_vm3, %v4921_v56, 0.0  ;;  %v8292_v56 = vld [vmem:[%s8811_s24 + $0x28] sm:$0xff] }
0x12e5   : > { %7732 = vmatpush3.bf16.msra.mxu0 %v5334_v47 }
0x12e6   : > { %7699 = vmatpush3.xpose.msk.msra.mxu1 %vm1726_vm3, %v7694_v13  ;;  %7733 = vmatprep.subr.bf16.mxu0 %v5333_v50  ;;  %v4961_v28 = vsel %vm1726_vm3, %v4919_v21, 0.0 }
0x12e7   : > { %4965 = vadd.xlane.f32.xlu0 %v4964_v25  ;;  %4962 = vadd.xlane.f32.xlu1 %v4961_v28 }
0x12e8   : > { %7700 = vmatprep.subr.mxu1 %v8312_v6 }
0x12e9   : > { %7734 = vmatpush3.bf16.msra.mxu0 %v5333_v50 }
0x12ea   : > { %7701 = vmatpush3.xpose.msk.msra.mxu1 %vm1726_vm3, %v4894_v5  ;;  %7735 = vmatprep.subr.bf16.mxu0 %v5332_v60  ;;  %v8291_v5 = vld [vmem:[%s8811_s24 + $0x20] sm:$0xff] }
0x12eb   : > { %4968 = vadd.xlane.f32.xlu1 %v4967_v0  ;;  %7702 = vmatprep.subr.mxu1 %v8312_v6 }
0x12ed   : > { %7736 = vmatpush3.bf16.msra.mxu0 %v5332_v60 }
0x12ee   : > { %7703 = vmatpush3.xpose.msk.msra.mxu1 %vm1726_vm3, %v4891_v32  ;;  %7737 = vmatprep.subr.bf16.mxu0 %v5331_v3 }
0x12ef   : > { %7704 = vmatprep.subr.mxu1 %v8312_v6 }
0x12f1   : > { %7738 = vmatpush3.bf16.msra.mxu0 %v5331_v3 }
0x12f2   : > { %7705 = vmatpush3.xpose.msk.msra.mxu1 %vm1726_vm3, %v7691_v35  ;;  %7739 = vmatprep.subr.bf16.mxu0 %v5330_v36 }
0x12f3   : > { %7706 = vmatprep.subr.mxu1 %v8312_v6 }
0x12f5   : > { %7740 = vmatpush3.bf16.msra.mxu0 %v5330_v36 }
0x12f6   : > { %7707 = vmatpush3.xpose.msk.msra.mxu1 %vm1726_vm3, %v7690_v23  ;;  %7741 = vmatprep.subr.bf16.mxu0 %v5329_v40 }
0x12f7   : > { %7708 = vmatprep.subr.mxu1 %v8312_v6 }
0x12f9   : > { %7742 = vmatpush3.bf16.msra.mxu0 %v5329_v40 }
0x12fa   : > { %7709 = vmatpush3.xpose.msk.msra.mxu1 %vm1726_vm3, %v4878_v43  ;;  %7743 = vmatprep.subr.bf16.mxu0 %v5328_v34 }
0x12fb   : > { %7710 = vmatprep.subr.mxu1 %v8312_v6 }
0x12fd   : > { %7744 = vmatpush3.bf16.msra.mxu0 %v5328_v34 }
0x12fe   : > { %7711 = vmatpush3.xpose.msk.msra.mxu1 %vm1726_vm3, %v9849_v24  ;;  %7745 = vmatprep.subr.bf16.mxu0 %v5327_v4  ;;  %v8288_v24 = vld [vmem:[%s8811_s24 + $0x8] sm:$0xff] }
0x12ff   : > { %7712 = vmatprep.subr.mxu1 %v8312_v6 }
0x1301   : > { %7746 = vmatpush3.bf16.msra.mxu0 %v5327_v4  ;;  %v8293_v4 = vld [vmem:[%s8811_s24 + $0x30] sm:$0xff] }
0x1302   : > { %7713 = vmatpush3.xpose.msk.msra.mxu1 %vm1726_vm3, %v9835_v42 }
0x1303   : > { %7714 = vmatprep.subr.mxu1 %v8312_v6 }
0x1306   : > { %7715 = vmatpush3.xpose.msk.msra.mxu1 %vm1726_vm3, %v9829_v16 }
0x1307   : > { %7716 = vmatprep.subr.mxu1 %v8312_v6 }
0x130a   : > { %7717 = vmatpush3.xpose.msk.msra.mxu1 %vm1726_vm3, %v9840_v1 }
0x130b   : > { %7718 = vmatprep.subr.mxu1 %v8312_v6 }
0x130e   : > { %7719 = vmatpush3.xpose.msk.msra.mxu1 %vm1726_vm3, %v9831_v33 }
0x130f   : > { %7720 = vmatprep.subr.mxu1 %v8312_v6 }
0x1312   : > { %7721 = vmatpush3.xpose.msk.msra.mxu1 %vm1726_vm3, %v9815_v2 }
0x1313   : > { %7722 = vmatprep.subr.mxu1 %v8312_v6 }
0x1316   : > { %7723 = vmatpush3.xpose.msk.msra.mxu1 %vm1726_vm3, %v9804_v51 }
0x1317   : > { %7724 = vmatprep.subr.mxu1 %v8312_v6 }
0x131a   : > { %7725 = vmatpush3.xpose.msk.msra.mxu1 %vm1726_vm3, %v9820_v11 }
0x131b   : > { %7726 = vmatprep.subr.mxu1 %v8312_v6 }
0x131e   : > { %7727 = vmatpush3.xpose.msk.msra.mxu1 %vm1726_vm3, %v9811_v31 }
0x1321   : > { %7729 = vmatmul.mubr.msk.f32.vlgmr.msra.gmra.mxu1 %vm1726_vm3, %v4733_v8 }
0x1322   : > { %5807 = vmatprep.mubr.bf16.mxu1 %v8311_v41 }
0x133c   : > { %v4924_v44 = vpop.xlane.xlu0 %4923 }
0x1340   : > { %v4927_v49 = vpop.xlane.xlu1 %4926  ;;  %v4930_v51 = vpop.xlane.xlu0 %4929 }
0x1344   : > { %v4933_v12 = vpop.xlane.xlu1 %4932 }
0x134c   : > { %v4936_v59 = vpop.xlane.xlu0 %4935 }
0x1350   : > { %v4939_v2 = vpop.xlane.xlu1 %4938  ;;  %v4942_v54 = vpop.xlane.xlu0 %4941 }
0x1354   : > { %v4945_v52 = vpop.xlane.xlu1 %4944 }
0x135c   : > { %v4948_v30 = vpop.xlane.xlu0 %4947 }
0x1360   : > { %v4951_v27 = vpop.xlane.xlu1 %4950  ;;  %v4954_v47 = vpop.xlane.xlu0 %4953 }
0x1364   : > { %v4957_v48 = vpop.xlane.xlu1 %4956 }
0x136c   : > { %v4960_v40 = vpop.xlane.xlu0 %4959 }
0x1370   : > { %v4963_v34 = vpop.xlane.xlu1 %4962 }
0x13e1   : > { %v5087_v9 = vpop.f32.mrf.mxu1 }
0x13e2   : > { %v9923_v6 = vrot.slane %v5087_v9, %v8587_v58 }
0x13e3   : > { %v7730_v10 = vpop.f32.mrf.mxu1 }
0x13e4   : > { %v5095_v31 = vadd.f32 %v9923_v6, %v4924_v44  ;;  %v5096_v11 = vadd.f32 %v9923_v6, %v4927_v49  ;;  %v5097_v14 = vadd.f32 %v9923_v6, %v4930_v51  ;;  %v5098_v61 = vadd.f32 %v9923_v6, %v4933_v12  ;;  %v8294_v44 = vld [vmem:[%s8811_s24 + $0x38] sm:$0xff] }
0x13e5   : > { %v5099_v15 = vadd.f32 %v9923_v6, %v4936_v59  ;;  %v5100_v16 = vadd.f32 %v9923_v6, %v4939_v2  ;;  %v5101_v19 = vadd.f32 %v9923_v6, %v4942_v54  ;;  %v5102_v22 = vadd.f32 %v9923_v6, %v4945_v52  ;;  %v8296_v54 = vld [vmem:[%s8811_s24 + $0x48] sm:$0xff] }
0x13e6   : > { %vm5111_vm2 = vcmp.gt.f32.partialorder %v5095_v31, 0.0  ;;  %v5127_v33 = vmul.f32 0.2, %v5095_v31  ;;  %vm5112_vm8 = vcmp.gt.f32.partialorder %v5096_v11, 0.0  ;;  %v5128_v17 = vmul.f32 0.2, %v5096_v11 }
0x13e7   : > { %vm5113_vm9 = vcmp.gt.f32.partialorder %v5097_v14, 0.0  ;;  %v5129_v42 = vmul.f32 0.2, %v5097_v14  ;;  %vm5114_vm10 = vcmp.gt.f32.partialorder %v5098_v61, 0.0  ;;  %v5130_v18 = vmul.f32 0.2, %v5098_v61 }
0x13e8   : > { %v5143_v7 = vsel %vm5111_vm2, %v5095_v31, %v5127_v33  ;;  %v5144_v1 = vsel %vm5112_vm8, %v5096_v11, %v5128_v17  ;;  %v5131_v37 = vmul.f32 0.2, %v5099_v15  ;;  %vm5115_vm11 = vcmp.gt.f32.partialorder %v5099_v15, 0.0  ;;  %v4966_v31 = vpop.xlane.xlu0 %4965  ;;  %v4969_v11 = vpop.xlane.xlu1 %4968 }
0x13e9   : > { %v9934_v23 = vadd.f32 %v8287_v20, %v5143_v7  ;;  %v9937_v26 = vadd.f32 %v8288_v24, %v5144_v1  ;;  %v5145_v35 = vsel %vm5113_vm9, %v5097_v14, %v5129_v42  ;;  %v5146_v39 = vsel %vm5114_vm10, %v5098_v61, %v5130_v18  ;;  %v8295_v14 = vld [vmem:[%s8811_s24 + $0x40] sm:$0xff]  ;;  %v8297_v7 = vld [vmem:[%s8811_s24 + $0x50] sm:$0xff] }
0x13ea   : > { %vm5116_vm12 = vcmp.gt.f32.partialorder %v5100_v16, 0.0  ;;  %v5132_v43 = vmul.f32 0.2, %v5100_v16  ;;  %v9942_v29 = vadd.f32 %v8289_v62, %v5145_v35  ;;  %v5133_v45 = vmul.f32 0.2, %v5101_v19  ;;  %v8299_v24 = vld [vmem:[%s8811_s24 + $0x60] sm:$0xff] }
0x13eb   : > { %5175 = vmax.xlane.f32.xlu0 %v9934_v23  ;;  %5177 = vmax.xlane.f32.xlu1 %v9937_v26  ;;  %v9945_v38 = vadd.f32 %v8290_v63, %v5146_v39  ;;  %v5147_v13 = vsel %vm5115_vm11, %v5099_v15, %v5131_v37  ;;  %vm5117_vm13 = vcmp.gt.f32.partialorder %v5101_v19, 0.0  ;;  %v5134_v32 = vmul.f32 0.2, %v5102_v22  ;;  %v8300_v37 = vld [vmem:[%s8811_s24 + $0x68] sm:$0xff] }
0x13ec   : > { %v5148_v53 = vsel %vm5116_vm12, %v5100_v16, %v5132_v43  ;;  %vm5118_vm14 = vcmp.gt.f32.partialorder %v5102_v22, 0.0  ;;  %v5103_v55 = vadd.f32 %v9923_v6, %v4948_v30  ;;  %v5104_v46 = vadd.f32 %v9923_v6, %v4951_v27 }
0x13ed   : > { %v9952_v21 = vadd.f32 %v8291_v5, %v5147_v13  ;;  %v5149_v50 = vsel %vm5117_vm13, %v5101_v19, %v5133_v45  ;;  %v9955_v25 = vadd.f32 %v8292_v56, %v5148_v53  ;;  %v5150_v28 = vsel %vm5118_vm14, %v5102_v22, %v5134_v32  ;;  %v8298_v19 = vld [vmem:[%s8811_s24 + $0x58] sm:$0xff]  ;;  %v8301_v45 = vld [vmem:[%s8811_s24 + $0x70] sm:$0xff] }
0x13ee   : > { %v5105_v60 = vadd.f32 %v9923_v6, %v4954_v47  ;;  %v5106_v0 = vadd.f32 %v9923_v6, %v4957_v48  ;;  %v5135_v3 = vmul.f32 0.2, %v5103_v55  ;;  %v5136_v36 = vmul.f32 0.2, %v5104_v46  ;;  %v8302_v13 = vld [vmem:[%s8811_s24 + $0x78] sm:$0xff]  ;;  %s10444_s24 = scalar_lea.vmem %s10486_s21, %s8447_s25 }
0x13ef   : > { %5179 = vmax.xlane.f32.xlu0 %v9942_v29  ;;  %5181 = vmax.xlane.f32.xlu1 %v9945_v38  ;;  %vm5119_vm15 = vcmp.gt.f32.partialorder %v5103_v55, 0.0  ;;  %vm5120_vm0 = vcmp.gt.f32.partialorder %v5104_v46, 0.0  ;;  %v9962_v8 = vadd.f32 %v8293_v4, %v5149_v50  ;;  %v9965_v49 = vadd.f32 %v8294_v44, %v5150_v28 }
0x13f0   : > { %vm5121_vm1 = vcmp.gt.f32.partialorder %v5105_v60, 0.0  ;;  %v5137_v51 = vmul.f32 0.2, %v5105_v60  ;;  %vm5122_vm4 = vcmp.gt.f32.partialorder %v5106_v0, 0.0  ;;  %v5138_v12 = vmul.f32 0.2, %v5106_v0 }
0x13f1   : > { %v5151_v59 = vsel %vm5119_vm15, %v5103_v55, %v5135_v3  ;;  %v5152_v2 = vsel %vm5120_vm0, %v5104_v46, %v5136_v36  ;;  %v5107_v9 = vadd.f32 %v9923_v6, %v4960_v40  ;;  %v5108_v10 = vadd.f32 %v9923_v6, %v4963_v34 }
0x13f2   : > { %v9972_v61 = vadd.f32 %v8295_v14, %v5151_v59  ;;  %v9975_v52 = vadd.f32 %v8296_v54, %v5152_v2  ;;  %v5153_v15 = vsel %vm5121_vm1, %v5105_v60, %v5137_v51  ;;  %v5154_v16 = vsel %vm5122_vm4, %v5106_v0, %v5138_v12 }
0x13f3   : > { %5183 = vmax.xlane.f32.xlu0 %v9952_v21  ;;  %5185 = vmax.xlane.f32.xlu1 %v9955_v25  ;;  %v5139_v33 = vmul.f32 0.2, %v5107_v9  ;;  %v5140_v17 = vmul.f32 0.2, %v5108_v10  ;;  %v5109_v42 = vadd.f32 %v9923_v6, %v4966_v31  ;;  %v5110_v18 = vadd.f32 %v9923_v6, %v4969_v11 }
0x13f4   : > { %vm5123_vm5 = vcmp.gt.f32.partialorder %v5107_v9, 0.0  ;;  %vm5124_vm6 = vcmp.gt.f32.partialorder %v5108_v10, 0.0  ;;  %v9983_v1 = vadd.f32 %v8297_v7, %v5153_v15  ;;  %v9986_v22 = vadd.f32 %v8298_v19, %v5154_v16 }
0x13f5   : > { %v5155_v30 = vsel %vm5123_vm5, %v5107_v9, %v5139_v33  ;;  %v5156_v27 = vsel %vm5124_vm6, %v5108_v10, %v5140_v17  ;;  %v5141_v20 = vmul.f32 0.2, %v5109_v42  ;;  %v5142_v6 = vmul.f32 0.2, %v5110_v18 }
0x13f6   : > { %vm5125_vm7 = vcmp.gt.f32.partialorder %v5109_v42, 0.0  ;;  %vm5126_vm2 = vcmp.gt.f32.partialorder %v5110_v18, 0.0  ;;  %v9991_v35 = vadd.f32 %v8299_v24, %v5155_v30  ;;  %v9994_v39 = vadd.f32 %v8300_v37, %v5156_v27 }
0x13f7   : > { %5187 = vmax.xlane.f32.xlu0 %v9962_v8  ;;  %5189 = vmax.xlane.f32.xlu1 %v9965_v49  ;;  %v5157_v43 = vsel %vm5125_vm7, %v5109_v42, %v5141_v20  ;;  %v5158_v62 = vsel %vm5126_vm2, %v5110_v18, %v5142_v6 }
0x13f8   : > { %v9999_v63 = vadd.f32 %v8301_v45, %v5157_v43  ;;  %v10002_v32 = vadd.f32 %v8302_v13, %v5158_v62 }
0x13fb   : > { %5191 = vmax.xlane.f32.xlu0 %v9972_v61  ;;  %5193 = vmax.xlane.f32.xlu1 %v9975_v52 }
0x13ff   : > { %5195 = vmax.xlane.f32.xlu0 %v9983_v1  ;;  %5197 = vmax.xlane.f32.xlu1 %v9986_v22 }
0x1403   : > { %5199 = vmax.xlane.f32.xlu0 %v9991_v35  ;;  %5201 = vmax.xlane.f32.xlu1 %v9994_v39 }
0x1407   : > { %5203 = vmax.xlane.f32.xlu0 %v9999_v63  ;;  %5205 = vmax.xlane.f32.xlu1 %v10002_v32 }
0x1474   : > { %v5176_v53 = vpop.xlane.xlu0 %5175  ;;  %v5178_v55 = vpop.xlane.xlu1 %5177 }
0x1475   : > { %v5207_v46 = vsub.f32 %v9934_v23, %v5176_v53  ;;  %v5208_v47 = vsub.f32 %v9937_v26, %v5178_v55 }
0x1477   : > { %v5223_v48 = vmul.f32 1.442695, %v5207_v46  ;;  %v5225_v5 = vmul.f32 1.442695, %v5208_v47  ;;  %v7971_v47 = vld [vmem:[%s10483_s18 + $0x18] sm:$0xff]  }
0x1478   : > { %v5180_v50 = vpop.xlane.xlu0 %5179  ;;  %v5182_v56 = vpop.xlane.xlu1 %5181  ;;  %7763 = vmatprep.subr.bf16.mxu0 %v7971_v47 }
0x1479   : > { %8143 = vpow2.f32 %v5223_v48  ;;  %v5209_v28 = vsub.f32 %v9942_v29, %v5180_v50  ;;  %v5210_v60 = vsub.f32 %v9945_v38, %v5182_v56 }
0x147a   : > { %8145 = vpow2.f32 %v5225_v5 }
0x147b   : > { %v5227_v0 = vmul.f32 1.442695, %v5209_v28  ;;  %v5229_v3 = vmul.f32 1.442695, %v5210_v60 }
0x147c   : > { %v5184_v36 = vpop.xlane.xlu0 %5183  ;;  %v5186_v40 = vpop.xlane.xlu1 %5185 }
0x147d   : > { %8147 = vpow2.f32 %v5227_v0  ;;  %v5211_v34 = vsub.f32 %v9952_v21, %v5184_v36  ;;  %v5212_v23 = vsub.f32 %v9955_v25, %v5186_v40 }
0x147e   : > { %8149 = vpow2.f32 %v5229_v3 }
0x147f   : > { %v5231_v26 = vmul.f32 1.442695, %v5211_v34  ;;  %v5233_v4 = vmul.f32 1.442695, %v5212_v23 }
0x1480   : > { %v5188_v44 = vpop.xlane.xlu0 %5187  ;;  %v5190_v51 = vpop.xlane.xlu1 %5189 }
0x1481   : > { %8151 = vpow2.f32 %v5231_v26  ;;  %v5213_v29 = vsub.f32 %v9962_v8, %v5188_v44  ;;  %v5214_v38 = vsub.f32 %v9965_v49, %v5190_v51 }
0x1482   : > { %8153 = vpow2.f32 %v5233_v4 }
0x1483   : > { %v5235_v12 = vmul.f32 1.442695, %v5213_v29  ;;  %v5237_v59 = vmul.f32 1.442695, %v5214_v38 }
0x1484   : > { %v5192_v2 = vpop.xlane.xlu0 %5191  ;;  %v5194_v9 = vpop.xlane.xlu1 %5193 }
0x1485   : > { %8155 = vpow2.f32 %v5235_v12  ;;  %v5215_v21 = vsub.f32 %v9972_v61, %v5192_v2  ;;  %v5216_v25 = vsub.f32 %v9975_v52, %v5194_v9 }
0x1486   : > { %v10016_v10 = vpop.eup %8143  ;;  %8157 = vpow2.f32 %v5237_v59 }
0x1487   : > { %v10018_v31 = vpop.eup %8145  ;;  %v5239_v11 = vmul.f32 1.442695, %v5215_v21  ;;  %v5241_v14 = vmul.f32 1.442695, %v5216_v25  ;;  %5255 = vadd.xlane.f32.xlu0 %v10016_v10  ;;  %v7972_v25 = vld [vmem:[%s10483_s18 + $0x10] sm:$0xff]  }
0x1488   : > { %5257 = vadd.xlane.f32.xlu1 %v10018_v31  ;;  %v5196_v8 = vpop.xlane.xlu0 %5195  ;;  %v5198_v49 = vpop.xlane.xlu1 %5197 }
0x1489   : > { %8159 = vpow2.f32 %v5239_v11  ;;  %v5217_v54 = vsub.f32 %v9983_v1, %v5196_v8  ;;  %v5218_v61 = vsub.f32 %v9986_v22, %v5198_v49 }
0x148a   : > { %v10024_v15 = vpop.eup %8147  ;;  %8161 = vpow2.f32 %v5241_v14 }
0x148b   : > { %v10026_v52 = vpop.eup %8149  ;;  %v5243_v16 = vmul.f32 1.442695, %v5217_v54  ;;  %v5245_v33 = vmul.f32 1.442695, %v5218_v61  ;;  %5259 = vadd.xlane.f32.xlu0 %v10024_v15  ;;  %v7973_v61 = vld [vmem:[%s10483_s18 + $0x8] sm:$0xff]  }
0x148c   : > { %5261 = vadd.xlane.f32.xlu1 %v10026_v52  ;;  %v5200_v17 = vpop.xlane.xlu0 %5199  ;;  %v5202_v42 = vpop.xlane.xlu1 %5201 }
0x148d   : > { %8163 = vpow2.f32 %v5243_v16  ;;  %v5219_v18 = vsub.f32 %v9991_v35, %v5200_v17  ;;  %v5220_v7 = vsub.f32 %v9994_v39, %v5202_v42 }
0x148e   : > { %v10032_v1 = vpop.eup %8151  ;;  %8165 = vpow2.f32 %v5245_v33 }
0x148f   : > { %v10034_v19 = vpop.eup %8153  ;;  %v5247_v22 = vmul.f32 1.442695, %v5219_v18  ;;  %v5249_v30 = vmul.f32 1.442695, %v5220_v7  ;;  %5263 = vadd.xlane.f32.xlu0 %v10032_v1 }
0x1490   : > { %5265 = vadd.xlane.f32.xlu1 %v10034_v19  ;;  %v5204_v27 = vpop.xlane.xlu0 %5203  ;;  %v5206_v20 = vpop.xlane.xlu1 %5205 }
0x1491   : > { %8167 = vpow2.f32 %v5247_v22  ;;  %v5221_v6 = vsub.f32 %v9999_v63, %v5204_v27  ;;  %v5222_v24 = vsub.f32 %v10002_v32, %v5206_v20 }
0x1492   : > { %v10040_v35 = vpop.eup %8155  ;;  %8169 = vpow2.f32 %v5249_v30 }
0x1493   : > { %v10042_v37 = vpop.eup %8157  ;;  %v5251_v39 = vmul.f32 1.442695, %v5221_v6  ;;  %v5253_v43 = vmul.f32 1.442695, %v5222_v24  ;;  %5267 = vadd.xlane.f32.xlu0 %v10040_v35 }
0x1494   : > { %5269 = vadd.xlane.f32.xlu1 %v10042_v37 }
0x1495   : > { %8171 = vpow2.f32 %v5251_v39 }
0x1496   : > { %v10046_v62 = vpop.eup %8159  ;;  %8173 = vpow2.f32 %v5253_v43 }
0x1497   : > { %v10048_v45 = vpop.eup %8161  ;;  %5271 = vadd.xlane.f32.xlu0 %v10046_v62 }
0x1498   : > { %5273 = vadd.xlane.f32.xlu1 %v10048_v45 }
0x149a   : > { %v10052_v63 = vpop.eup %8163 }
0x149b   : > { %v10054_v13 = vpop.eup %8165  ;;  %5275 = vadd.xlane.f32.xlu0 %v10052_v63 }
0x149c   : > { %5277 = vadd.xlane.f32.xlu1 %v10054_v13 }
0x149e   : > { %v10058_v32 = vpop.eup %8167 }
0x149f   : > { %v10060_v53 = vpop.eup %8169  ;;  %5279 = vadd.xlane.f32.xlu0 %v10058_v32 }
0x14a0   : > { %5281 = vadd.xlane.f32.xlu1 %v10060_v53 }
0x14a2   : > { %v10064_v55 = vpop.eup %8171 }
0x14a3   : > { %v10066_v46 = vpop.eup %8173  ;;  %5283 = vadd.xlane.f32.xlu0 %v10064_v55 }
0x14a4   : > { %5285 = vadd.xlane.f32.xlu1 %v10066_v46 }
0x1510   : > { %v5256_v48 = vpop.xlane.xlu0 %5255 }
0x1511   : > { %8175 = vrcp.f32 %v5256_v48  ;;  %v5258_v5 = vpop.xlane.xlu1 %5257 }
0x1512   : > { %8177 = vrcp.f32 %v5258_v5 }
0x1514   : > { %v5260_v50 = vpop.xlane.xlu0 %5259 }
0x1515   : > { %8179 = vrcp.f32 %v5260_v50  ;;  %v5262_v56 = vpop.xlane.xlu1 %5261  ;;  %v7983_v50 = vld [vmem:[%s10484_s19 + $0x54] ss:$8 sps:$4 sm:$0xff]  }
0x1516   : > { %8181 = vrcp.f32 %v5262_v56  ;;  %v7981_v56 = vld [vmem:[%s10484_s19 + $0x50] ss:$8 sps:$4 sm:$0xff]  }
0x1518   : > { %v5264_v28 = vpop.xlane.xlu0 %5263 }
0x1519   : > { %8183 = vrcp.f32 %v5264_v28  ;;  %v5266_v60 = vpop.xlane.xlu1 %5265  ;;  %v7986_v28 = vld [vmem:[%s10484_s19 + $0x44] ss:$8 sps:$4 sm:$0xff]  }
0x151a   : > { %8185 = vrcp.f32 %v5266_v60  ;;  %v7984_v60 = vld [vmem:[%s10484_s19 + $0x40] ss:$8 sps:$4 sm:$0xff]  }
0x151c   : > { %v5268_v0 = vpop.xlane.xlu0 %5267 }
0x151d   : > { %8187 = vrcp.f32 %v5268_v0  ;;  %v5270_v3 = vpop.xlane.xlu1 %5269  ;;  %v7989_v0 = vld [vmem:[%s10484_s19 + $0x34] ss:$8 sps:$4 sm:$0xff]  }
0x151e   : > { %v8176_v36 = vpop.eup %8175  ;;  %8189 = vrcp.f32 %v5270_v3  ;;  %v7987_v3 = vld [vmem:[%s10484_s19 + $0x30] ss:$8 sps:$4 sm:$0xff]  }
0x151f   : > { %v8178_v40 = vpop.eup %8177  ;;  %v5303_v34 = vmul.f32 %v8176_v36, %v10016_v10 }
0x1520   : > { %v5272_v23 = vpop.xlane.xlu0 %5271  ;;  %v5304_v26 = vmul.f32 %v8178_v40, %v10018_v31  ;;  %v10131_v40 = vld [vmem:[%s10501_s0 + $0x26] ss:$0 sm:$0xff] }
0x1521   : > { %8191 = vrcp.f32 %v5272_v23  ;;  %v5274_v4 = vpop.xlane.xlu1 %5273 }
0x1522   : > { %v8180_v44 = vpop.eup %8179  ;;  %8193 = vrcp.f32 %v5274_v4  ;;  %v5319_v51 = vpack.c.bf16 %v5304_v26, %v5303_v34 }
0x1523   : > { %v8182_v29 = vpop.eup %8181  ;;  %v5305_v38 = vmul.f32 %v8180_v44, %v10024_v15  ;;  %v10138_v44 = vld [vmem:[%s10501_s0 + $0x27] ss:$0 sm:$0xff] }
0x1524   : > { %v5306_v12 = vmul.f32 %v8182_v29, %v10026_v52  ;;  %7747 = vmatprep.mubr.bf16.mxu0 %v5319_v51  ;;  %v5276_v59 = vpop.xlane.xlu0 %5275 }
0x1525   : > { %8195 = vrcp.f32 %v5276_v59  ;;  %v5278_v2 = vpop.xlane.xlu1 %5277 }
0x1526   : > { %v8184_v9 = vpop.eup %8183  ;;  %v5320_v21 = vpack.c.bf16 %v5306_v12, %v5305_v38  ;;  %8197 = vrcp.f32 %v5278_v2 }
0x1527   : > { %v8186_v10 = vpop.eup %8185  ;;  %v5307_v31 = vmul.f32 %v8184_v9, %v10032_v1 }
0x1528   : > { %7748 = vmatmul.mubr.bf16.vlgmr.msra.gmra.mxu0 %v5320_v21  ;;  %v5280_v11 = vpop.xlane.xlu0 %5279  ;;  %v5308_v14 = vmul.f32 %v8186_v10, %v10034_v19 }
0x1529   : > { %8199 = vrcp.f32 %v5280_v11  ;;  %v5282_v8 = vpop.xlane.xlu1 %5281  ;;  %7764 = vmatpush3.bf16.msra.mxu0 %v7971_v47 }
0x152a   : > { %v8188_v49 = vpop.eup %8187  ;;  %8201 = vrcp.f32 %v5282_v8  ;;  %v5321_v54 = vpack.c.bf16 %v5308_v14, %v5307_v31  ;;  %7765 = vmatprep.subr.bf16.mxu0 %v7972_v25 }
0x152b   : > { %v8190_v15 = vpop.eup %8189  ;;  %v5309_v52 = vmul.f32 %v8188_v49, %v10040_v35 }
0x152c   : > { %7751 = vmatprep.mubr.bf16.mxu0 %v5321_v54  ;;  %v5284_v16 = vpop.xlane.xlu0 %5283  ;;  %v5310_v33 = vmul.f32 %v8190_v15, %v10042_v37 }
0x152d   : > { %8203 = vrcp.f32 %v5284_v16  ;;  %v5286_v17 = vpop.xlane.xlu1 %5285  ;;  %7766 = vmatpush3.bf16.msra.mxu0 %v7972_v25 }
0x152e   : > { %v8192_v42 = vpop.eup %8191  ;;  %8205 = vrcp.f32 %v5286_v17  ;;  %v5322_v18 = vpack.c.bf16 %v5310_v33, %v5309_v52  ;;  %7767 = vmatprep.subr.bf16.mxu0 %v7973_v61 }
0x152f   : > { %v8194_v7 = vpop.eup %8193  ;;  %v5311_v1 = vmul.f32 %v8192_v42, %v10046_v62 }
0x1530   : > { %7752 = vmatmul.mubr.bf16.gmra.mxu0 %v5322_v18  ;;  %v5312_v19 = vmul.f32 %v8194_v7, %v10048_v45 }
0x1531   : > { %7768 = vmatpush3.bf16.msra.mxu0 %v7973_v61 }
0x1532   : > { %v8196_v22 = vpop.eup %8195  ;;  %v5323_v30 = vpack.c.bf16 %v5312_v19, %v5311_v1 }
0x1533   : > { %v8198_v27 = vpop.eup %8197  ;;  %v5313_v20 = vmul.f32 %v8196_v22, %v10052_v63 }
0x1534   : > { %7755 = vmatprep.mubr.bf16.mxu0 %v5323_v30  ;;  %v5314_v6 = vmul.f32 %v8198_v27, %v10054_v13  ;;  %v7974_v13 = vld [vmem:[%s10483_s18] sm:$0xff]  }
0x1535   : > { %7769 = vmatprep.subr.bf16.mxu0 %v7974_v13 }
0x1536   : > { %v8200_v24 = vpop.eup %8199  ;;  %v5324_v35 = vpack.c.bf16 %v5314_v6, %v5313_v20  ;;  %7770 = vmatpush3.bf16.msra.mxu0 %v7974_v13 }
0x1537   : > { %v8202_v37 = vpop.eup %8201  ;;  %v5315_v39 = vmul.f32 %v8200_v24, %v10058_v32  ;;  %v7975_v32 = vld [vmem:[%s10484_s19 + $0x70] ss:$8 sps:$4 sm:$0xff]  }
0x1538   : > { %7756 = vmatmul.mubr.bf16.gmra.mxu0 %v5324_v35  ;;  %v5316_v43 = vmul.f32 %v8202_v37, %v10060_v53  ;;  %v7977_v53 = vld [vmem:[%s10484_s19 + $0x74] ss:$8 sps:$4 sm:$0xff]  }
0x1539   : > { %5775 = vmatprep.subr.bf16.mxu1 %v7977_v53 }
0x153a   : > { %v8204_v62 = vpop.eup %8203  ;;  %v5325_v47 = vpack.c.bf16 %v5316_v43, %v5315_v39  ;;  %5776 = vmatpush1.bf16.msra.mxu1 %v7975_v32 }
0x153b   : > { %v8206_v45 = vpop.eup %8205  ;;  %v5317_v48 = vmul.f32 %v8204_v62, %v10064_v55  ;;  %v7980_v55 = vld [vmem:[%s10484_s19 + $0x64] ss:$8 sps:$4 sm:$0xff]  }
0x153c   : > { %7759 = vmatprep.mubr.bf16.mxu0 %v5325_v47  ;;  %v5318_v5 = vmul.f32 %v8206_v45, %v10066_v46  ;;  %v7978_v46 = vld [vmem:[%s10484_s19 + $0x60] ss:$8 sps:$4 sm:$0xff]   ;;  %5777 = vmatprep.subr.bf16.mxu1 %v7980_v55 }
0x153e   : > { %v5326_v63 = vpack.c.bf16 %v5318_v5, %v5317_v48  ;;  %5778 = vmatpush1.bf16.msra.mxu1 %v7978_v46 }
0x153f   : > { %5779 = vmatprep.subr.bf16.mxu1 %v7983_v50 }
0x1540   : > { %7760 = vmatmul.mubr.bf16.gmra.mxu0 %v5326_v63 }
0x1542   : > { %5780 = vmatpush1.bf16.msra.mxu1 %v7981_v56 }
0x1543   : > { %5781 = vmatprep.subr.bf16.mxu1 %v7986_v28 }
0x1546   : > { %5782 = vmatpush1.bf16.msra.mxu1 %v7984_v60 }
0x1547   : > { %5783 = vmatprep.subr.bf16.mxu1 %v7989_v0 }
0x154a   : > { %5784 = vmatpush1.bf16.msra.mxu1 %v7987_v3 }
0x15e8   : > { %v7749_v36 = vpop.f32.mrf.mxu0 }
0x15e9   : > { %v5434_v26 = vmul.f32 %v7749_v36, %v10131_v40 }
0x15ea   : > { %v5369_v34 = vpop.f32.mrf.mxu0 }
0x15eb   : > { %v5432_v23 = vmul.f32 %v5369_v34, %v10131_v40  ;;  %v5450_v2 = vadd.f32 %v5434_v26, %v10138_v44 }
0x15ec   : > { %v7750_v4 = vpop.f32.mrf.mxu0 }
0x15ed   : > { %v5435_v51 = vmul.f32 %v7750_v4, %v10131_v40  ;;  %v5448_v38 = vadd.f32 %v5432_v23, %v10138_v44  ;;  %v5466_v8 = vmax.f32 %v5450_v2, 0.0 }
0x15ee   : > { %v5372_v29 = vpop.f32.mrf.mxu0 }
0x15ef   : > { %v5451_v12 = vadd.f32 %v5435_v51, %v10138_v44  ;;  %v5433_v59 = vmul.f32 %v5372_v29, %v10131_v40  ;;  %v5464_v31 = vmax.f32 %v5448_v38, 0.0 }
0x15f0   : > { %v7753_v9 = vpop.f32.mrf.mxu0 }
0x15f1   : > { %v5449_v21 = vadd.f32 %v5433_v59, %v10138_v44  ;;  %v5467_v25 = vmax.f32 %v5451_v12, 0.0  ;;  %v5438_v49 = vmul.f32 %v7753_v9, %v10131_v40 }
0x15f2   : > { %v5385_v10 = vpop.f32.mrf.mxu0 }
0x15f3   : > { %v5465_v11 = vmax.f32 %v5449_v21, 0.0  ;;  %v5436_v14 = vmul.f32 %v5385_v10, %v10131_v40  ;;  %v5482_v52 = vpack.c.bf16 %v5467_v25, %v5466_v8  ;;  %v5454_v18 = vadd.f32 %v5438_v49, %v10138_v44  ;;  %v7992_v25 = vld [vmem:[%s10484_s19 + $0x24] ss:$8 sps:$4 sm:$0xff]   ;;  %v7995_v10 = vld [vmem:[%s10484_s19 + $0x14] ss:$8 sps:$4 sm:$0xff]  }
0x15f4   : > { %v7754_v54 = vpop.f32.mrf.mxu0  ;;  %5785 = vmatprep.subr.bf16.mxu1 %v7992_v25  ;;  %v8000_v8 = vld [vmem:[%s10485_s20 + $0x38] sm:$0xff]   ;;  %v8001_v49 = vld [vmem:[%s10485_s20 + $0x70] sm:$0xff]  }
0x15f5   : > { %v5481_v61 = vpack.c.bf16 %v5465_v11, %v5464_v31  ;;  %v5439_v15 = vmul.f32 %v7754_v54, %v10131_v40  ;;  %v5452_v33 = vadd.f32 %v5436_v14, %v10138_v44  ;;  %v5470_v6 = vmax.f32 %v5454_v18, 0.0  ;;  %v7998_v31 = vld [vmem:[%s10484_s19 + $0x4] ss:$8 sps:$4 sm:$0xff]   ;;  %v7996_v11 = vld [vmem:[%s10484_s19] ss:$8 sps:$4 sm:$0xff]   ;;  %v7999_v14 = vld [vmem:[%s10485_s20 + $0x78] sm:$0xff]  }
0x15f6   : > { %v5388_v16 = vpop.f32.mrf.mxu0  ;;  %7252 = vmatprep.subr.bf16.mxu0 %v7999_v14  ;;  %v8002_v54 = vld [vmem:[%s10485_s20 + $0x30] sm:$0xff]  }
0x15f7   : > { %v5455_v17 = vadd.f32 %v5439_v15, %v10138_v44  ;;  %v5437_v42 = vmul.f32 %v5388_v16, %v10131_v40  ;;  %7771 = vmatprep.mubr.msk.bf16.mxu0 %vm1726_vm3, %v5481_v61  ;;  %v5468_v30 = vmax.f32 %v5452_v33, 0.0  ;;  %v8003_v61 = vld [vmem:[%s10485_s20 + $0x68] sm:$0xff]   ;;  %v8006_v16 = vld [vmem:[%s10485_s20 + $0x20] sm:$0xff]   ;;  %v8007_v33 = vld [vmem:[%s10485_s20 + $0x58] sm:$0xff]  }
0x15f8   : > { %v7757_v7 = vpop.f32.mrf.mxu0  ;;  %7772 = vmatmul.mubr.msk.bf16.vlgmr.msra.gmra.mxu0 %vm1726_vm3, %v5482_v52  ;;  %v8004_v15 = vld [vmem:[%s10485_s20 + $0x28] sm:$0xff]   ;;  %v8005_v52 = vld [vmem:[%s10485_s20 + $0x60] sm:$0xff]  }
0x15f9   : > { %v5453_v1 = vadd.f32 %v5437_v42, %v10138_v44  ;;  %v5471_v19 = vmax.f32 %v5455_v17, 0.0  ;;  %v5442_v24 = vmul.f32 %v7757_v7, %v10131_v40  ;;  %7253 = vmatpush3.bf16.msra.mxu0 %v8000_v8  ;;  %v8008_v17 = vld [vmem:[%s10485_s20 + $0x18] sm:$0xff]   ;;  %v10229_v7 = vld [vmem:[%s10501_s0 + $0x30] ss:$0 sm:$0xff] }
0x15fa   : > { %v5401_v22 = vpop.f32.mrf.mxu0  ;;  %7254 = vmatprep.subr.bf16.mxu0 %v8001_v49 }
0x15fb   : > { %v5469_v27 = vmax.f32 %v5453_v1, 0.0  ;;  %v5440_v20 = vmul.f32 %v5401_v22, %v10131_v40  ;;  %v5484_v43 = vpack.c.bf16 %v5471_v19, %v5470_v6  ;;  %v5458_v5 = vadd.f32 %v5442_v24, %v10138_v44 }
0x15fc   : > { %v7758_v35 = vpop.f32.mrf.mxu0 }
0x15fd   : > { %v5483_v37 = vpack.c.bf16 %v5469_v27, %v5468_v30  ;;  %v5443_v39 = vmul.f32 %v7758_v35, %v10131_v40  ;;  %v5456_v47 = vadd.f32 %v5440_v20, %v10138_v44  ;;  %v5474_v56 = vmax.f32 %v5458_v5, 0.0  ;;  %7255 = vmatpush3.bf16.msra.mxu0 %v8002_v54 }
0x15fe   : > { %v5404_v62 = vpop.f32.mrf.mxu0  ;;  %7256 = vmatprep.subr.bf16.mxu0 %v8003_v61 }
0x15ff   : > { %v5459_v45 = vadd.f32 %v5443_v39, %v10138_v44  ;;  %v5441_v48 = vmul.f32 %v5404_v62, %v10131_v40  ;;  %7775 = vmatprep.mubr.msk.bf16.mxu0 %vm1726_vm3, %v5483_v37  ;;  %v5472_v55 = vmax.f32 %v5456_v47, 0.0 }
0x1600   : > { %v7761_v63 = vpop.f32.mrf.mxu0  ;;  %7776 = vmatmul.mubr.msk.bf16.gmra.mxu0 %vm1726_vm3, %v5484_v43 }
0x1601   : > { %v5457_v13 = vadd.f32 %v5441_v48, %v10138_v44  ;;  %v5475_v32 = vmax.f32 %v5459_v45, 0.0  ;;  %v5446_v28 = vmul.f32 %v7761_v63, %v10131_v40  ;;  %7257 = vmatpush3.bf16.msra.mxu0 %v8004_v15 }
0x1602   : > { %v5417_v53 = vpop.f32.mrf.mxu0  ;;  %7258 = vmatprep.subr.bf16.mxu0 %v8005_v52  ;;  %v8009_v52 = vld [vmem:[%s10485_s20 + $0x50] sm:$0xff]  }
0x1603   : > { %v5473_v46 = vmax.f32 %v5457_v13, 0.0  ;;  %v5444_v50 = vmul.f32 %v5417_v53, %v10131_v40  ;;  %v5486_v36 = vpack.c.bf16 %v5475_v32, %v5474_v56  ;;  %v5462_v51 = vadd.f32 %v5446_v28, %v10138_v44 }
0x1604   : > { %v7762_v60 = vpop.f32.mrf.mxu0 }
0x1605   : > { %v5485_v0 = vpack.c.bf16 %v5473_v46, %v5472_v55  ;;  %v5447_v3 = vmul.f32 %v7762_v60, %v10131_v40  ;;  %v5460_v23 = vadd.f32 %v5444_v50, %v10138_v44  ;;  %v5478_v2 = vmax.f32 %v5462_v51, 0.0  ;;  %7259 = vmatpush3.bf16.msra.mxu0 %v8006_v16  ;;  %v8010_v16 = vld [vmem:[%s10485_s20 + $0x10] sm:$0xff]  }
0x1606   : > { %v5420_v34 = vpop.f32.mrf.mxu0  ;;  %7260 = vmatprep.subr.bf16.mxu0 %v8007_v33  ;;  %v8011_v33 = vld [vmem:[%s10485_s20 + $0x48] sm:$0xff]  }
0x1607   : > { %v5463_v26 = vadd.f32 %v5447_v3, %v10138_v44  ;;  %v5445_v4 = vmul.f32 %v5420_v34, %v10131_v40  ;;  %7779 = vmatprep.mubr.msk.bf16.mxu0 %vm1726_vm3, %v5485_v0  ;;  %v5476_v12 = vmax.f32 %v5460_v23, 0.0  ;;  %v7990_v40 = vld [vmem:[%s10484_s19 + $0x20] ss:$8 sps:$4 sm:$0xff]  }
0x1608   : > { %7780 = vmatmul.mubr.msk.bf16.gmra.mxu0 %vm1726_vm3, %v5486_v36  ;;  %5786 = vmatpush1.bf16.msra.mxu1 %v7990_v40 }
0x1609   : > { %v5461_v29 = vadd.f32 %v5445_v4, %v10138_v44  ;;  %v5479_v38 = vmax.f32 %v5463_v26, 0.0  ;;  %v7993_v44 = vld [vmem:[%s10484_s19 + $0x10] ss:$8 sps:$4 sm:$0xff]   ;;  %5787 = vmatprep.subr.bf16.mxu1 %v7995_v10  ;;  %7261 = vmatpush3.bf16.msra.mxu0 %v8008_v17  ;;  %v8013_v17 = vld [vmem:[%s10485_s20 + $0x40] sm:$0xff]  }
0x160a   : > { %7262 = vmatprep.subr.bf16.mxu0 %v8009_v52 }
0x160b   : > { %v5477_v59 = vmax.f32 %v5461_v29, 0.0  ;;  %v5488_v21 = vpack.c.bf16 %v5479_v38, %v5478_v2 }
0x160c   : > { %5788 = vmatpush1.bf16.msra.mxu1 %v7993_v44 }
0x160d   : > { %v5487_v9 = vpack.c.bf16 %v5477_v59, %v5476_v12  ;;  %5789 = vmatprep.subr.bf16.mxu1 %v7998_v31  ;;  %7263 = vmatpush3.bf16.msra.mxu0 %v8010_v16 }
0x160e   : > { %7264 = vmatprep.subr.bf16.mxu0 %v8011_v33 }
0x160f   : > { %7783 = vmatprep.mubr.msk.bf16.mxu0 %vm1726_vm3, %v5487_v9 }
0x1610   : > { %7784 = vmatmul.mubr.msk.bf16.gmra.mxu0 %vm1726_vm3, %v5488_v21  ;;  %5790 = vmatpush1.bf16.msra.mxu1 %v7996_v11 }
0x16b8   : > { %v7773_v42 = vpop.f32.mrf.mxu0 }
0x16b9   : > { %v5588_v43 = vadd.f32 %v7773_v42, %v10229_v7  ;;  %v8014_v42 = vld [vmem:[%s10485_s20] sm:$0xff]  }
0x16ba   : > { %v5579_v18 = vpop.f32.mrf.mxu0 }
0x16bb   : > { %v5580_v19 = vadd.f32 %v5579_v18, %v10229_v7  ;;  %v5644_v45 = vmax.f32 %v5588_v43, 0.0  ;;  %v6791_v18 = vld [vmem:[%s10501_s0 + $0x31] ss:$8 sm:$0x3] }
0x16bc   : > { %v7774_v1 = vpop.f32.mrf.mxu0 }
0x16bd   : > { %v5642_v20 = vmax.f32 %v5580_v19, 0.0  ;;  %v5591_v35 = vadd.f32 %v7774_v1, %v10229_v7  ;;  %v10276_v1 = vrot.slane %v6791_v18, %v8585_v57  ;;  %v10279_v19 = vrot.slane %v6791_v18, %v8587_v58 }
0x16be   : > { %v5582_v22 = vpop.f32.mrf.mxu0 }
0x16bf   : > { %v5583_v30 = vadd.f32 %v5582_v22, %v10229_v7  ;;  %v5645_v62 = vmax.f32 %v5591_v35, 0.0 }
0x16c0   : > { %v7777_v27 = vpop.f32.mrf.mxu0 }
0x16c1   : > { %v5643_v6 = vmax.f32 %v5583_v30, 0.0  ;;  %v5661_v48 = vpack.c.bf16 %v5645_v62, %v5644_v45  ;;  %v5604_v28 = vadd.f32 %v7777_v27, %v10229_v7 }
0x16c2   : > { %v5595_v24 = vpop.f32.mrf.mxu0 }
0x16c3   : > { %v5660_v37 = vpack.c.bf16 %v5643_v6, %v5642_v20  ;;  %v5596_v13 = vadd.f32 %v5595_v24, %v10229_v7  ;;  %v5648_v3 = vmax.f32 %v5604_v28, 0.0 }
0x16c4   : > { %v7778_v39 = vpop.f32.mrf.mxu0 }
0x16c5   : > { %5808 = vmatmul.mubr.bf16.vlgmr.msra.gmra.mxu1 %v5660_v37  ;;  %v5646_v55 = vmax.f32 %v5596_v13, 0.0  ;;  %v5607_v46 = vadd.f32 %v7778_v39, %v10229_v7 }
0x16c6   : > { %5817 = vmatprep.mubr.bf16.mxu1 %v8311_v41  ;;  %v5598_v47 = vpop.f32.mrf.mxu0 }
0x16c7   : > { %v5599_v5 = vadd.f32 %v5598_v47, %v10229_v7  ;;  %v5649_v60 = vmax.f32 %v5607_v46, 0.0 }
0x16c8   : > { %v7781_v63 = vpop.f32.mrf.mxu0 }
0x16c9   : > { %v5647_v32 = vmax.f32 %v5599_v5, 0.0  ;;  %v5663_v36 = vpack.c.bf16 %v5649_v60, %v5648_v3  ;;  %v5620_v2 = vadd.f32 %v7781_v63, %v10229_v7 }
0x16ca   : > { %v5611_v53 = vpop.f32.mrf.mxu0 }
0x16cb   : > { %v5662_v50 = vpack.c.bf16 %v5647_v32, %v5646_v55  ;;  %v5612_v26 = vadd.f32 %v5611_v53, %v10229_v7  ;;  %v5652_v40 = vmax.f32 %v5620_v2, 0.0 }
0x16cc   : > { %v7782_v56 = vpop.f32.mrf.mxu0 }
0x16cd   : > { %5818 = vmatmul.mubr.bf16.gmra.mxu1 %v5661_v48  ;;  %v5650_v29 = vmax.f32 %v5612_v26, 0.0  ;;  %v5623_v38 = vadd.f32 %v7782_v56, %v10229_v7 }
0x16ce   : > { %5827 = vmatprep.mubr.bf16.mxu1 %v8311_v41  ;;  %v5614_v0 = vpop.f32.mrf.mxu0 }
0x16cf   : > { %v5615_v34 = vadd.f32 %v5614_v0, %v10229_v7  ;;  %v5653_v9 = vmax.f32 %v5623_v38, 0.0 }
0x16d0   : > { %v7785_v23 = vpop.f32.mrf.mxu0 }
0x16d1   : > { %v5651_v4 = vmax.f32 %v5615_v34, 0.0  ;;  %v5665_v25 = vpack.c.bf16 %v5653_v9, %v5652_v40  ;;  %v5636_v49 = vadd.f32 %v7785_v23, %v10229_v7 }
0x16d2   : > { %v5627_v51 = vpop.f32.mrf.mxu0 }
0x16d3   : > { %v5664_v12 = vpack.c.bf16 %v5651_v4, %v5650_v29  ;;  %v5628_v10 = vadd.f32 %v5627_v51, %v10229_v7  ;;  %v5656_v61 = vmax.f32 %v5636_v49, 0.0 }
0x16d4   : > { %v7786_v59 = vpop.f32.mrf.mxu0 }
0x16d5   : > { %5828 = vmatmul.mubr.bf16.gmra.mxu1 %v5662_v50  ;;  %v5654_v11 = vmax.f32 %v5628_v10, 0.0  ;;  %v5639_v14 = vadd.f32 %v7786_v59, %v10229_v7 }
0x16d6   : > { %5837 = vmatprep.mubr.bf16.mxu1 %v8311_v41  ;;  %v5630_v21 = vpop.f32.mrf.mxu0 }
0x16d7   : > { %v5631_v44 = vadd.f32 %v5630_v21, %v10229_v7  ;;  %v5657_v54 = vmax.f32 %v5639_v14, 0.0 }
0x16d9   : > { %v5655_v31 = vmax.f32 %v5631_v44, 0.0  ;;  %v5667_v15 = vpack.c.bf16 %v5657_v54, %v5656_v61 }
0x16db   : > { %v5666_v8 = vpack.c.bf16 %v5655_v31, %v5654_v11 }
0x16dd   : > { %5838 = vmatmul.mubr.bf16.gmra.mxu1 %v5663_v36 }
0x16de   : > { %5847 = vmatprep.mubr.bf16.mxu1 %v8311_v41 }
0x16e5   : > { %5848 = vmatmul.mubr.bf16.gmra.mxu1 %v5664_v12 }
0x16e6   : > { %5857 = vmatprep.mubr.bf16.mxu1 %v8311_v41 }
0x16ed   : > { %5858 = vmatmul.mubr.bf16.gmra.mxu1 %v5665_v25 }
0x16ee   : > { %5867 = vmatprep.mubr.bf16.mxu1 %v8311_v41 }
0x16f5   : > { %5868 = vmatmul.mubr.bf16.gmra.mxu1 %v5666_v8 }
0x16f6   : > { %5877 = vmatprep.mubr.bf16.mxu1 %v8311_v41  ;;  %v8012_v41 = vld [vmem:[%s10485_s20 + $0x8] sm:$0xff]  }
0x16f7   : > { %7265 = vmatpush3.bf16.msra.mxu0 %v8012_v41 }
0x16f8   : > { %7266 = vmatprep.subr.bf16.mxu0 %v8013_v17 }
0x16fb   : > { %7267 = vmatpush3.bf16.msra.mxu0 %v8014_v42 }
0x16fd   : > { %5878 = vmatmul.mubr.bf16.gmra.mxu1 %v5667_v15 }
0x1785   : > { %v5809_v7 = vpop.f32.mrf.mxu1 }
0x1786   : > { %v5810_v6 = vadd.f32 %v5809_v7, %v10279_v19 }
0x1787   : > { %v5811_v22 = vpop.f32.mrf.mxu1 }
0x1788   : > { %v5812_v27 = vadd.f32 %v5811_v22, %v10276_v1  ;;  %v5888_v57 = vmax.f32 %v5810_v6, 0.0 }
0x1789   : > { %v5813_v30 = vpop.f32.mrf.mxu1 }
0x178a   : > { %v5814_v20 = vadd.f32 %v5813_v30, %v10279_v19  ;;  %v5889_v43 = vmax.f32 %v5812_v27, 0.0 }
0x178b   : > { %v5815_v24 = vpop.f32.mrf.mxu1 }
0x178c   : > { %v5816_v35 = vadd.f32 %v5815_v24, %v10276_v1  ;;  %v5890_v37 = vmax.f32 %v5814_v20, 0.0 }
0x178d   : > { %v5819_v39 = vpop.f32.mrf.mxu1 }
0x178e   : > { %v5891_v62 = vmax.f32 %v5816_v35, 0.0  ;;  %v5921_v58 = vpack.c.bf16 %v5890_v37, %v5888_v57  ;;  %v5820_v13 = vadd.f32 %v5819_v39, %v10279_v19 }
0x178f   : > { %v5821_v47 = vpop.f32.mrf.mxu1 }
0x1790   : > { %v5922_v45 = vpack.c.bf16 %v5891_v62, %v5889_v43  ;;  %v5822_v5 = vadd.f32 %v5821_v47, %v10276_v1  ;;  %v5892_v28 = vmax.f32 %v5820_v13, 0.0 }
0x1791   : > { %v5823_v48 = vpop.f32.mrf.mxu1 }
0x1792   : > { %v5824_v63 = vadd.f32 %v5823_v48, %v10279_v19  ;;  %6097 = vmatprep.mubr.bf16.mxu0 %v5922_v45  ;;  %v5893_v50 = vmax.f32 %v5822_v5, 0.0 }
0x1793   : > { %v5825_v32 = vpop.f32.mrf.mxu1  ;;  %6098 = vmatmul.mubr.bf16.vlgmr.msra.gmra.mxu0 %v5921_v58 }
0x1794   : > { %v5826_v53 = vadd.f32 %v5825_v32, %v10276_v1  ;;  %v5894_v55 = vmax.f32 %v5824_v63, 0.0 }
0x1795   : > { %v5829_v46 = vpop.f32.mrf.mxu1 }
0x1796   : > { %v5895_v56 = vmax.f32 %v5826_v53, 0.0  ;;  %v5923_v3 = vpack.c.bf16 %v5894_v55, %v5892_v28  ;;  %v5830_v26 = vadd.f32 %v5829_v46, %v10279_v19 }
0x1797   : > { %v5831_v60 = vpop.f32.mrf.mxu1 }
0x1798   : > { %v5924_v0 = vpack.c.bf16 %v5895_v56, %v5893_v50  ;;  %v5832_v34 = vadd.f32 %v5831_v60, %v10276_v1  ;;  %v5896_v2 = vmax.f32 %v5830_v26, 0.0 }
0x1799   : > { %v5833_v36 = vpop.f32.mrf.mxu1 }
0x179a   : > { %v5834_v23 = vadd.f32 %v5833_v36, %v10279_v19  ;;  %6105 = vmatprep.mubr.bf16.mxu0 %v5924_v0  ;;  %v5897_v12 = vmax.f32 %v5832_v34, 0.0 }
0x179b   : > { %v5835_v4 = vpop.f32.mrf.mxu1  ;;  %6106 = vmatmul.mubr.bf16.gmra.mxu0 %v5923_v3 }
0x179c   : > { %v5836_v51 = vadd.f32 %v5835_v4, %v10276_v1  ;;  %v5898_v29 = vmax.f32 %v5834_v23, 0.0 }
0x179d   : > { %v5839_v38 = vpop.f32.mrf.mxu1 }
0x179e   : > { %v5899_v59 = vmax.f32 %v5836_v51, 0.0  ;;  %v5925_v40 = vpack.c.bf16 %v5898_v29, %v5896_v2  ;;  %v5840_v31 = vadd.f32 %v5839_v38, %v10279_v19 }
0x179f   : > { %v5841_v9 = vpop.f32.mrf.mxu1 }
0x17a0   : > { %v5926_v21 = vpack.c.bf16 %v5899_v59, %v5897_v12  ;;  %v5842_v44 = vadd.f32 %v5841_v9, %v10276_v1  ;;  %v5900_v15 = vmax.f32 %v5840_v31, 0.0 }
0x17a1   : > { %v5843_v25 = vpop.f32.mrf.mxu1 }
0x17a2   : > { %v5844_v10 = vadd.f32 %v5843_v25, %v10279_v19  ;;  %6113 = vmatprep.mubr.bf16.mxu0 %v5926_v21  ;;  %v5901_v54 = vmax.f32 %v5842_v44, 0.0 }
0x17a3   : > { %v5845_v11 = vpop.f32.mrf.mxu1  ;;  %6114 = vmatmul.mubr.bf16.gmra.mxu0 %v5925_v40 }
0x17a4   : > { %v5846_v14 = vadd.f32 %v5845_v11, %v10276_v1  ;;  %v5902_v8 = vmax.f32 %v5844_v10, 0.0 }
0x17a5   : > { %v5849_v49 = vpop.f32.mrf.mxu1 }
0x17a6   : > { %v5903_v61 = vmax.f32 %v5846_v14, 0.0  ;;  %v5927_v33 = vpack.c.bf16 %v5902_v8, %v5900_v15  ;;  %v5850_v18 = vadd.f32 %v5849_v49, %v10279_v19  ;;  %v10316_v49 = vld [vmem:[%s10501_s0 + $0x32] ss:$0 sm:$0xff] }
0x17a7   : > { %v5851_v52 = vpop.f32.mrf.mxu1 }
0x17a8   : > { %v5928_v16 = vpack.c.bf16 %v5903_v61, %v5901_v54  ;;  %v5852_v17 = vadd.f32 %v5851_v52, %v10276_v1  ;;  %v5904_v24 = vmax.f32 %v5850_v18, 0.0  ;;  %v10322_v52 = vld [vmem:[%s10501_s0 + $0x33] ss:$0 sm:$0xff] }
0x17a9   : > { %v5853_v41 = vpop.f32.mrf.mxu1 }
0x17aa   : > { %v5854_v42 = vadd.f32 %v5853_v41, %v10279_v19  ;;  %6121 = vmatprep.mubr.bf16.mxu0 %v5928_v16  ;;  %v5905_v20 = vmax.f32 %v5852_v17, 0.0 }
0x17ab   : > { %v5855_v7 = vpop.f32.mrf.mxu1  ;;  %6122 = vmatmul.mubr.bf16.gmra.mxu0 %v5927_v33 }
0x17ac   : > { %v5856_v22 = vadd.f32 %v5855_v7, %v10276_v1  ;;  %v5906_v30 = vmax.f32 %v5854_v42, 0.0 }
0x17ad   : > { %v5859_v27 = vpop.f32.mrf.mxu1 }
0x17ae   : > { %v5907_v6 = vmax.f32 %v5856_v22, 0.0  ;;  %v5929_v39 = vpack.c.bf16 %v5906_v30, %v5904_v24  ;;  %v5860_v47 = vadd.f32 %v5859_v27, %v10279_v19 }
0x17af   : > { %v5861_v35 = vpop.f32.mrf.mxu1 }
0x17b0   : > { %v5930_v37 = vpack.c.bf16 %v5907_v6, %v5905_v20  ;;  %v5862_v62 = vadd.f32 %v5861_v35, %v10276_v1  ;;  %v5908_v32 = vmax.f32 %v5860_v47, 0.0 }
0x17b1   : > { %v5863_v43 = vpop.f32.mrf.mxu1 }
0x17b2   : > { %v5864_v57 = vadd.f32 %v5863_v43, %v10279_v19  ;;  %6129 = vmatprep.mubr.bf16.mxu0 %v5930_v37  ;;  %v5909_v63 = vmax.f32 %v5862_v62, 0.0 }
0x17b3   : > { %v5865_v45 = vpop.f32.mrf.mxu1  ;;  %6130 = vmatmul.mubr.bf16.gmra.mxu0 %v5929_v39 }
0x17b4   : > { %v5866_v58 = vadd.f32 %v5865_v45, %v10276_v1  ;;  %v5910_v48 = vmax.f32 %v5864_v57, 0.0 }
0x17b5   : > { %v5869_v5 = vpop.f32.mrf.mxu1 }
0x17b6   : > { %v5911_v13 = vmax.f32 %v5866_v58, 0.0  ;;  %v5931_v46 = vpack.c.bf16 %v5910_v48, %v5908_v32  ;;  %v5870_v60 = vadd.f32 %v5869_v5, %v10279_v19 }
0x17b7   : > { %v5871_v53 = vpop.f32.mrf.mxu1 }
0x17b8   : > { %v5932_v55 = vpack.c.bf16 %v5911_v13, %v5909_v63  ;;  %v5872_v56 = vadd.f32 %v5871_v53, %v10276_v1  ;;  %v5912_v4 = vmax.f32 %v5870_v60, 0.0 }
0x17b9   : > { %v5873_v50 = vpop.f32.mrf.mxu1 }
0x17ba   : > { %v5874_v28 = vadd.f32 %v5873_v50, %v10279_v19  ;;  %6137 = vmatprep.mubr.bf16.mxu0 %v5932_v55  ;;  %v5913_v23 = vmax.f32 %v5872_v56, 0.0 }
0x17bb   : > { %v5875_v0 = vpop.f32.mrf.mxu1  ;;  %6138 = vmatmul.mubr.bf16.gmra.mxu0 %v5931_v46 }
0x17bc   : > { %v5876_v3 = vadd.f32 %v5875_v0, %v10276_v1  ;;  %v5914_v36 = vmax.f32 %v5874_v28, 0.0 }
0x17bd   : > { %v5879_v34 = vpop.f32.mrf.mxu1 }
0x17be   : > { %v5915_v26 = vmax.f32 %v5876_v3, 0.0  ;;  %v5933_v38 = vpack.c.bf16 %v5914_v36, %v5912_v4  ;;  %v5880_v9 = vadd.f32 %v5879_v34, %v10279_v19 }
0x17bf   : > { %v5881_v51 = vpop.f32.mrf.mxu1 }
0x17c0   : > { %v5934_v29 = vpack.c.bf16 %v5915_v26, %v5913_v23  ;;  %v5882_v59 = vadd.f32 %v5881_v51, %v10276_v1  ;;  %v5916_v31 = vmax.f32 %v5880_v9, 0.0 }
0x17c1   : > { %v5883_v12 = vpop.f32.mrf.mxu1 }
0x17c2   : > { %v5884_v2 = vadd.f32 %v5883_v12, %v10279_v19  ;;  %6145 = vmatprep.mubr.bf16.mxu0 %v5934_v29  ;;  %v5917_v44 = vmax.f32 %v5882_v59, 0.0 }
0x17c3   : > { %v5885_v21 = vpop.f32.mrf.mxu1  ;;  %6146 = vmatmul.mubr.bf16.gmra.mxu0 %v5933_v38 }
0x17c4   : > { %v5886_v40 = vadd.f32 %v5885_v21, %v10276_v1  ;;  %v5918_v25 = vmax.f32 %v5884_v2, 0.0 }
0x17c6   : > { %v5919_v10 = vmax.f32 %v5886_v40, 0.0  ;;  %v5935_v14 = vpack.c.bf16 %v5918_v25, %v5916_v31 }
0x17c8   : > { %v5936_v11 = vpack.c.bf16 %v5919_v10, %v5917_v44 }
0x17ca   : > { %6153 = vmatprep.mubr.bf16.mxu0 %v5936_v11 }
0x17cb   : > { %6154 = vmatmul.mubr.bf16.gmra.mxu0 %v5935_v14 }
0x1853   : > { %v7268_v8 = vpop.f32.mrf.mxu0 }
0x1855   : > { %v7269_v54 = vpop.f32.mrf.mxu0 }
0x1856   : > { %v7270_v19 = vadd.f32 %v7269_v54, %v7268_v8 }
0x1857   : > { %v7271_v61 = vpop.f32.mrf.mxu0 }
0x1858   : > { %v6100_v15 = vadd.f32 %v7270_v19, %v10316_v49 }
0x1859   : > { %v7272_v1 = vpop.f32.mrf.mxu0 }
0x185a   : > { %v6162_v16 = vmax.f32 %v6100_v15, 0.0  ;;  %v7273_v33 = vadd.f32 %v7272_v1, %v7271_v61 }
0x185b   : > { %v7274_v41 = vpop.f32.mrf.mxu0 }
0x185c   : > { %v6103_v17 = vadd.f32 %v7273_v33, %v10316_v49  ;;  %v6180_v42 = vmul.f32 %v10322_v52, %v6162_v16 }
0x185d   : > { %v7275_v18 = vpop.f32.mrf.mxu0 }
0x185e   : > { %v6163_v7 = vmax.f32 %v6103_v17, 0.0  ;;  %v7276_v22 = vadd.f32 %v7275_v18, %v7274_v41  ;;  %6196 = vadd.xlane.f32.xlu0 %v6180_v42 }
0x185f   : > { %v7277_v30 = vpop.f32.mrf.mxu0 }
0x1860   : > { %v6108_v27 = vadd.f32 %v7276_v22, %v10316_v49  ;;  %v6181_v20 = vmul.f32 %v10322_v52, %v6163_v7 }
0x1861   : > { %v7278_v6 = vpop.f32.mrf.mxu0 }
0x1862   : > { %v6164_v24 = vmax.f32 %v6108_v27, 0.0  ;;  %v7279_v35 = vadd.f32 %v7278_v6, %v7277_v30  ;;  %6198 = vadd.xlane.f32.xlu1 %v6181_v20 }
0x1863   : > { %v7280_v37 = vpop.f32.mrf.mxu0 }
0x1864   : > { %v6111_v39 = vadd.f32 %v7279_v35, %v10316_v49  ;;  %v6182_v43 = vmul.f32 %v10322_v52, %v6164_v24 }
0x1865   : > { %v7281_v62 = vpop.f32.mrf.mxu0 }
0x1866   : > { %v6165_v57 = vmax.f32 %v6111_v39, 0.0  ;;  %v7282_v47 = vadd.f32 %v7281_v62, %v7280_v37  ;;  %6200 = vadd.xlane.f32.xlu0 %v6182_v43 }
0x1867   : > { %v7283_v45 = vpop.f32.mrf.mxu0 }
0x1868   : > { %v6116_v58 = vadd.f32 %v7282_v47, %v10316_v49  ;;  %v6183_v48 = vmul.f32 %v10322_v52, %v6165_v57 }
0x1869   : > { %v7284_v5 = vpop.f32.mrf.mxu0 }
0x186a   : > { %v6166_v63 = vmax.f32 %v6116_v58, 0.0  ;;  %v7285_v13 = vadd.f32 %v7284_v5, %v7283_v45  ;;  %6202 = vadd.xlane.f32.xlu1 %v6183_v48 }
0x186b   : > { %v7286_v32 = vpop.f32.mrf.mxu0 }
0x186c   : > { %v6119_v53 = vadd.f32 %v7285_v13, %v10316_v49  ;;  %v6184_v55 = vmul.f32 %v10322_v52, %v6166_v63 }
0x186d   : > { %v7287_v46 = vpop.f32.mrf.mxu0 }
0x186e   : > { %v6167_v50 = vmax.f32 %v6119_v53, 0.0  ;;  %v7288_v56 = vadd.f32 %v7287_v46, %v7286_v32  ;;  %6204 = vadd.xlane.f32.xlu0 %v6184_v55  ;;  %v10358_v55 = vld [vmem:[%s10501_s0 + $0x34] ss:$0 sm:$0xff] }
0x186f   : > { %v7289_v28 = vpop.f32.mrf.mxu0 }
0x1870   : > { %v6124_v60 = vadd.f32 %v7288_v56, %v10316_v49  ;;  %v6185_v0 = vmul.f32 %v10322_v52, %v6167_v50 }
0x1871   : > { %v7290_v3 = vpop.f32.mrf.mxu0 }
0x1872   : > { %v6168_v36 = vmax.f32 %v6124_v60, 0.0  ;;  %v7291_v34 = vadd.f32 %v7290_v3, %v7289_v28  ;;  %6206 = vadd.xlane.f32.xlu1 %v6185_v0 }
0x1873   : > { %v7292_v23 = vpop.f32.mrf.mxu0 }
0x1874   : > { %v6127_v26 = vadd.f32 %v7291_v34, %v10316_v49  ;;  %v6186_v4 = vmul.f32 %v10322_v52, %v6168_v36 }
0x1875   : > { %v7293_v51 = vpop.f32.mrf.mxu0 }
0x1876   : > { %v6169_v29 = vmax.f32 %v6127_v26, 0.0  ;;  %v7294_v38 = vadd.f32 %v7293_v51, %v7292_v23  ;;  %6208 = vadd.xlane.f32.xlu0 %v6186_v4 }
0x1877   : > { %v7295_v12 = vpop.f32.mrf.mxu0 }
0x1878   : > { %v6132_v59 = vadd.f32 %v7294_v38, %v10316_v49  ;;  %v6187_v2 = vmul.f32 %v10322_v52, %v6169_v29 }
0x1879   : > { %v7296_v9 = vpop.f32.mrf.mxu0 }
0x187a   : > { %v6170_v21 = vmax.f32 %v6132_v59, 0.0  ;;  %v7297_v40 = vadd.f32 %v7296_v9, %v7295_v12  ;;  %6210 = vadd.xlane.f32.xlu1 %v6187_v2 }
0x187b   : > { %v7298_v25 = vpop.f32.mrf.mxu0 }
0x187c   : > { %v6135_v44 = vadd.f32 %v7297_v40, %v10316_v49  ;;  %v6188_v10 = vmul.f32 %v10322_v52, %v6170_v21 }
0x187d   : > { %v7299_v31 = vpop.f32.mrf.mxu0 }
0x187e   : > { %v6171_v11 = vmax.f32 %v6135_v44, 0.0  ;;  %v7300_v14 = vadd.f32 %v7299_v31, %v7298_v25  ;;  %6212 = vadd.xlane.f32.xlu0 %v6188_v10 }
0x187f   : > { %v7301_v8 = vpop.f32.mrf.mxu0 }
0x1880   : > { %v6140_v54 = vadd.f32 %v7300_v14, %v10316_v49  ;;  %v6189_v19 = vmul.f32 %v10322_v52, %v6171_v11 }
0x1881   : > { %v7302_v61 = vpop.f32.mrf.mxu0 }
0x1882   : > { %v6172_v15 = vmax.f32 %v6140_v54, 0.0  ;;  %v7303_v1 = vadd.f32 %v7302_v61, %v7301_v8  ;;  %6214 = vadd.xlane.f32.xlu1 %v6189_v19 }
0x1883   : > { %v7304_v16 = vpop.f32.mrf.mxu0 }
0x1884   : > { %v6143_v33 = vadd.f32 %v7303_v1, %v10316_v49  ;;  %v6190_v41 = vmul.f32 %v10322_v52, %v6172_v15 }
0x1885   : > { %v7305_v17 = vpop.f32.mrf.mxu0 }
0x1886   : > { %v6173_v42 = vmax.f32 %v6143_v33, 0.0  ;;  %v7306_v18 = vadd.f32 %v7305_v17, %v7304_v16  ;;  %6216 = vadd.xlane.f32.xlu0 %v6190_v41 }
0x1887   : > { %v7307_v7 = vpop.f32.mrf.mxu0 }
0x1888   : > { %v6148_v22 = vadd.f32 %v7306_v18, %v10316_v49  ;;  %v6191_v30 = vmul.f32 %v10322_v52, %v6173_v42 }
0x1889   : > { %v7308_v27 = vpop.f32.mrf.mxu0 }
0x188a   : > { %v6174_v20 = vmax.f32 %v6148_v22, 0.0  ;;  %v7309_v6 = vadd.f32 %v7308_v27, %v7307_v7  ;;  %6218 = vadd.xlane.f32.xlu1 %v6191_v30 }
0x188b   : > { %v7310_v24 = vpop.f32.mrf.mxu0 }
0x188c   : > { %v6151_v35 = vadd.f32 %v7309_v6, %v10316_v49  ;;  %v6192_v37 = vmul.f32 %v10322_v52, %v6174_v20 }
0x188d   : > { %v7311_v39 = vpop.f32.mrf.mxu0 }
0x188e   : > { %v6175_v43 = vmax.f32 %v6151_v35, 0.0  ;;  %v7312_v62 = vadd.f32 %v7311_v39, %v7310_v24  ;;  %6220 = vadd.xlane.f32.xlu0 %v6192_v37 }
0x188f   : > { %v7313_v57 = vpop.f32.mrf.mxu0 }
0x1890   : > { %v6156_v47 = vadd.f32 %v7312_v62, %v10316_v49  ;;  %v6193_v45 = vmul.f32 %v10322_v52, %v6175_v43 }
0x1891   : > { %v7314_v58 = vpop.f32.mrf.mxu0 }
0x1892   : > { %v6176_v48 = vmax.f32 %v6156_v47, 0.0  ;;  %v7315_v5 = vadd.f32 %v7314_v58, %v7313_v57  ;;  %6222 = vadd.xlane.f32.xlu1 %v6193_v45 }
0x1894   : > { %v6159_v63 = vadd.f32 %v7315_v5, %v10316_v49  ;;  %v6194_v13 = vmul.f32 %v10322_v52, %v6176_v48 }
0x1896   : > { %v6177_v32 = vmax.f32 %v6159_v63, 0.0  ;;  %6224 = vadd.xlane.f32.xlu0 %v6194_v13 }
0x1898   : > { %v6195_v53 = vmul.f32 %v10322_v52, %v6177_v32 }
0x189a   : > { %6226 = vadd.xlane.f32.xlu1 %v6195_v53 }
0x18e7   : > { %v6197_v46 = vpop.xlane.xlu0 %6196 }
0x18e8   : > { %v10361_v50 = vadd.f32 %v6197_v46, %v10358_v55 }
0x18ea   : > { %v6244_v56 = vand.u32 2147483647, %v10361_v50  ;;  %vm6340_vm3 = vcmp.ge.f32.partialorder %v10361_v50, 0.0 }
0x18eb   : > { %v6199_v28 = vpop.xlane.xlu1 %6198 }
0x18ec   : > { %v6260_v49 = vsub.f32 0.0, %v6244_v56  ;;  %v10365_v60 = vadd.f32 %v6199_v28, %v10358_v55 }
0x18ee   : > { %v6276_v0 = vmul.f32 1.442695, %v6260_v49  ;;  %v6245_v52 = vand.u32 2147483647, %v10365_v60  ;;  %vm6341_vm8 = vcmp.ge.f32.partialorder %v10365_v60, 0.0 }
0x18ef   : > { %v6201_v3 = vpop.xlane.xlu0 %6200 }
0x18f0   : > { %8207 = vpow2.f32 %v6276_v0  ;;  %v6261_v36 = vsub.f32 0.0, %v6245_v52  ;;  %v10369_v34 = vadd.f32 %v6201_v3, %v10358_v55 }
0x18f2   : > { %v6278_v23 = vmul.f32 1.442695, %v6261_v36  ;;  %v6246_v26 = vand.u32 2147483647, %v10369_v34  ;;  %vm6342_vm9 = vcmp.ge.f32.partialorder %v10369_v34, 0.0 }
0x18f3   : > { %v6203_v4 = vpop.xlane.xlu1 %6202 }
0x18f4   : > { %8209 = vpow2.f32 %v6278_v23  ;;  %v6262_v51 = vsub.f32 0.0, %v6246_v26  ;;  %v10373_v29 = vadd.f32 %v6203_v4, %v10358_v55 }
0x18f6   : > { %v6280_v38 = vmul.f32 1.442695, %v6262_v51  ;;  %v6247_v12 = vand.u32 2147483647, %v10373_v29  ;;  %vm6343_vm10 = vcmp.ge.f32.partialorder %v10373_v29, 0.0 }
0x18f7   : > { %v6205_v59 = vpop.xlane.xlu0 %6204 }
0x18f8   : > { %8211 = vpow2.f32 %v6280_v38  ;;  %v6263_v2 = vsub.f32 0.0, %v6247_v12  ;;  %v10377_v9 = vadd.f32 %v6205_v59, %v10358_v55 }
0x18fa   : > { %v6282_v21 = vmul.f32 1.442695, %v6263_v2  ;;  %v6248_v40 = vand.u32 2147483647, %v10377_v9  ;;  %vm6344_vm11 = vcmp.ge.f32.partialorder %v10377_v9, 0.0 }
0x18fb   : > { %v6207_v25 = vpop.xlane.xlu1 %6206 }
0x18fc   : > { %8213 = vpow2.f32 %v6282_v21  ;;  %v6264_v44 = vsub.f32 0.0, %v6248_v40  ;;  %v10381_v10 = vadd.f32 %v6207_v25, %v10358_v55 }
0x18fd   : > { %v8208_v31 = vpop.eup %8207 }
0x18fe   : > { %v6308_v11 = vadd.f32 1.0, %v8208_v31  ;;  %v6284_v14 = vmul.f32 1.442695, %v6264_v44  ;;  %v6249_v8 = vand.u32 2147483647, %v10381_v10  ;;  %vm6345_vm12 = vcmp.ge.f32.partialorder %v10381_v10, 0.0 }
0x18ff   : > { %v6209_v54 = vpop.xlane.xlu0 %6208 }
0x1900   : > { %8215 = vrcp.f32 %v6308_v11  ;;  %v6265_v19 = vsub.f32 0.0, %v6249_v8  ;;  %v10385_v61 = vadd.f32 %v6209_v54, %v10358_v55 }
0x1901   : > { %v8210_v15 = vpop.eup %8209  ;;  %8217 = vpow2.f32 %v6284_v14 }
0x1902   : > { %v6309_v1 = vadd.f32 1.0, %v8210_v15  ;;  %v6286_v16 = vmul.f32 1.442695, %v6265_v19  ;;  %v6250_v33 = vand.u32 2147483647, %v10385_v61  ;;  %vm6346_vm13 = vcmp.ge.f32.partialorder %v10385_v61, 0.0 }
0x1903   : > { %v6211_v41 = vpop.xlane.xlu1 %6210 }
0x1904   : > { %8219 = vrcp.f32 %v6309_v1  ;;  %v6266_v17 = vsub.f32 0.0, %v6250_v33  ;;  %v10389_v42 = vadd.f32 %v6211_v41, %v10358_v55 }
0x1905   : > { %v8212_v18 = vpop.eup %8211  ;;  %8221 = vpow2.f32 %v6286_v16 }
0x1906   : > { %v6310_v7 = vadd.f32 1.0, %v8212_v18  ;;  %v6288_v22 = vmul.f32 1.442695, %v6266_v17  ;;  %v6251_v30 = vand.u32 2147483647, %v10389_v42  ;;  %vm6347_vm14 = vcmp.ge.f32.partialorder %v10389_v42, 0.0 }
0x1907   : > { %v6213_v27 = vpop.xlane.xlu0 %6212 }
0x1908   : > { %8223 = vrcp.f32 %v6310_v7  ;;  %v6267_v20 = vsub.f32 0.0, %v6251_v30  ;;  %v10393_v6 = vadd.f32 %v6213_v27, %v10358_v55 }
0x1909   : > { %v8214_v24 = vpop.eup %8213  ;;  %8225 = vpow2.f32 %v6288_v22 }
0x190a   : > { %v6311_v35 = vadd.f32 1.0, %v8214_v24  ;;  %v6290_v37 = vmul.f32 1.442695, %v6267_v20  ;;  %v6252_v39 = vand.u32 2147483647, %v10393_v6  ;;  %vm6348_vm15 = vcmp.ge.f32.partialorder %v10393_v6, 0.0 }
0x190b   : > { %v6215_v43 = vpop.xlane.xlu1 %6214 }
0x190c   : > { %8227 = vrcp.f32 %v6311_v35  ;;  %v6268_v62 = vsub.f32 0.0, %v6252_v39  ;;  %v10397_v57 = vadd.f32 %v6215_v43, %v10358_v55 }
0x190d   : > { %v8216_v47 = vpop.eup %8215  ;;  %8229 = vpow2.f32 %v6290_v37 }
0x190e   : > { %v8218_v45 = vpop.eup %8217  ;;  %v6292_v58 = vmul.f32 1.442695, %v6268_v62  ;;  %v6253_v48 = vand.u32 2147483647, %v10397_v57  ;;  %v6356_v5 = vmul.f32 %v8216_v47, %v8208_v31  ;;  %vm6349_vm0 = vcmp.ge.f32.partialorder %v10397_v57, 0.0 }
0x190f   : > { %v6312_v63 = vadd.f32 1.0, %v8218_v45  ;;  %v6217_v13 = vpop.xlane.xlu0 %6216 }
0x1910   : > { %8231 = vpow2.f32 %v6292_v58  ;;  %v6269_v32 = vsub.f32 0.0, %v6253_v48  ;;  %v10402_v53 = vadd.f32 %v6217_v13, %v10358_v55  ;;  %v6372_v46 = vsel %vm6340_vm3, %v8216_v47, %v6356_v5 }
0x1911   : > { %v8220_v56 = vpop.eup %8219  ;;  %8233 = vrcp.f32 %v6312_v63  ;;  %6390 = vperm.xlu0 %7798, %v6372_v46  }
0x1912   : > { %v8222_v28 = vpop.eup %8221  ;;  %v6294_v49 = vmul.f32 1.442695, %v6269_v32  ;;  %v6254_v0 = vand.u32 2147483647, %v10402_v53  ;;  %v6357_v52 = vmul.f32 %v8220_v56, %v8210_v15  ;;  %vm6350_vm1 = vcmp.ge.f32.partialorder %v10402_v53, 0.0 }
0x1913   : > { %v6313_v3 = vadd.f32 1.0, %v8222_v28  ;;  %v6219_v50 = vpop.xlane.xlu1 %6218 }
0x1914   : > { %8235 = vpow2.f32 %v6294_v49  ;;  %v6270_v36 = vsub.f32 0.0, %v6254_v0  ;;  %v10407_v23 = vadd.f32 %v6219_v50, %v10358_v55  ;;  %v6373_v26 = vsel %vm6341_vm8, %v8220_v56, %v6357_v52 }
0x1915   : > { %v8224_v4 = vpop.eup %8223  ;;  %8237 = vrcp.f32 %v6313_v3  ;;  %6395 = vperm.xlu1 %7799, %v6373_v26  }
0x1916   : > { %v8226_v51 = vpop.eup %8225  ;;  %v6296_v38 = vmul.f32 1.442695, %v6270_v36  ;;  %v6255_v12 = vand.u32 2147483647, %v10407_v23  ;;  %v6358_v59 = vmul.f32 %v8224_v4, %v8212_v18  ;;  %vm6351_vm4 = vcmp.ge.f32.partialorder %v10407_v23, 0.0 }
0x1917   : > { %v6314_v2 = vadd.f32 1.0, %v8226_v51  ;;  %v6221_v60 = vpop.xlane.xlu0 %6220 }
0x1918   : > { %8239 = vpow2.f32 %v6296_v38  ;;  %v6271_v21 = vsub.f32 0.0, %v6255_v12  ;;  %v10412_v40 = vadd.f32 %v6221_v60, %v10358_v55  ;;  %v6374_v25 = vsel %vm6342_vm9, %v8224_v4, %v6358_v59 }
0x1919   : > { %v8228_v44 = vpop.eup %8227  ;;  %8241 = vrcp.f32 %v6314_v2  ;;  %6400 = vperm.xlu1 %7799, %v6374_v25  }
0x191a   : > { %v8230_v31 = vpop.eup %8229  ;;  %v6298_v11 = vmul.f32 1.442695, %v6271_v21  ;;  %v6256_v14 = vand.u32 2147483647, %v10412_v40  ;;  %v6359_v8 = vmul.f32 %v8228_v44, %v8214_v24  ;;  %vm6352_vm5 = vcmp.ge.f32.partialorder %v10412_v40, 0.0 }
0x191b   : > { %v6315_v54 = vadd.f32 1.0, %v8230_v31  ;;  %v6223_v34 = vpop.xlane.xlu1 %6222 }
0x191c   : > { %8243 = vpow2.f32 %v6298_v11  ;;  %v6272_v19 = vsub.f32 0.0, %v6256_v14  ;;  %v10417_v15 = vadd.f32 %v6223_v34, %v10358_v55  ;;  %v6375_v1 = vsel %vm6343_vm10, %v8228_v44, %v6359_v8 }
0x191d   : > { %v8232_v16 = vpop.eup %8231  ;;  %8245 = vrcp.f32 %v6315_v54  ;;  %6405 = vperm.xlu1 %7799, %v6375_v1  }
0x191e   : > { %v8234_v33 = vpop.eup %8233  ;;  %v6316_v41 = vadd.f32 1.0, %v8232_v16  ;;  %v6300_v17 = vmul.f32 1.442695, %v6272_v19  ;;  %v6257_v18 = vand.u32 2147483647, %v10417_v15  ;;  %vm6353_vm6 = vcmp.ge.f32.partialorder %v10417_v15, 0.0 }
0x191f   : > { %v6225_v7 = vpop.xlane.xlu0 %6224  ;;  %v6360_v22 = vmul.f32 %v8234_v33, %v8218_v45 }
0x1920   : > { %8247 = vrcp.f32 %v6316_v41  ;;  %v6273_v29 = vsub.f32 0.0, %v6257_v18  ;;  %v10422_v30 = vadd.f32 %v6225_v7, %v10358_v55 }
0x1921   : > { %v8236_v27 = vpop.eup %8235  ;;  %8249 = vpow2.f32 %v6300_v17  ;;  %v6376_v20 = vsel %vm6344_vm11, %v8234_v33, %v6360_v22 }
0x1922   : > { %v8238_v24 = vpop.eup %8237  ;;  %v6317_v35 = vadd.f32 1.0, %v8236_v27  ;;  %v6302_v37 = vmul.f32 1.442695, %v6273_v29  ;;  %v6258_v39 = vand.u32 2147483647, %v10422_v30  ;;  %6410 = vperm.xlu1 %7799, %v6376_v20   ;;  %vm6354_vm7 = vcmp.ge.f32.partialorder %v10422_v30, 0.0 }
0x1923   : > { %v6227_v43 = vpop.xlane.xlu1 %6226  ;;  %v6361_v62 = vmul.f32 %v8238_v24, %v8222_v28 }
0x1924   : > { %8251 = vrcp.f32 %v6317_v35  ;;  %v6274_v9 = vsub.f32 0.0, %v6258_v39  ;;  %v10427_v47 = vadd.f32 %v6227_v43, %v10358_v55 }
0x1925   : > { %v8240_v45 = vpop.eup %8239  ;;  %8253 = vpow2.f32 %v6302_v37  ;;  %v6377_v58 = vsel %vm6345_vm12, %v8238_v24, %v6361_v62 }
0x1926   : > { %v8242_v48 = vpop.eup %8241  ;;  %v6318_v5 = vadd.f32 1.0, %v8240_v45  ;;  %v6304_v63 = vmul.f32 1.442695, %v6274_v9  ;;  %v6259_v13 = vand.u32 2147483647, %v10427_v47  ;;  %6415 = vperm.xlu1 %7799, %v6377_v58   ;;  %vm6355_vm2 = vcmp.ge.f32.partialorder %v10427_v47, 0.0 }
0x1927   : > { %v6362_v32 = vmul.f32 %v8242_v48, %v8226_v51 }
0x1928   : > { %8255 = vrcp.f32 %v6318_v5  ;;  %v6275_v46 = vsub.f32 0.0, %v6259_v13 }
0x1929   : > { %v8244_v10 = vpop.eup %8243  ;;  %8257 = vpow2.f32 %v6304_v63  ;;  %v6378_v56 = vsel %vm6346_vm13, %v8242_v48, %v6362_v32 }
0x192a   : > { %v8246_v28 = vpop.eup %8245  ;;  %v6319_v55 = vadd.f32 1.0, %v8244_v10  ;;  %v6306_v49 = vmul.f32 1.442695, %v6275_v46  ;;  %6420 = vperm.xlu1 %7799, %v6378_v56  }
0x192b   : > { %v6363_v0 = vmul.f32 %v8246_v28, %v8230_v31 }
0x192c   : > { %8259 = vrcp.f32 %v6319_v55 }
0x192d   : > { %v8248_v52 = vpop.eup %8247  ;;  %8261 = vpow2.f32 %v6306_v49  ;;  %v6379_v3 = vsel %vm6347_vm14, %v8246_v28, %v6363_v0 }
0x192e   : > { %v8250_v50 = vpop.eup %8249  ;;  %6425 = vperm.xlu1 %7799, %v6379_v3   ;;  %v6364_v36 = vmul.f32 %v8248_v52, %v8232_v16 }
0x192f   : > { %v6320_v61 = vadd.f32 1.0, %v8250_v50 }
0x1930   : > { %v6380_v26 = vsel %vm6348_vm15, %v8248_v52, %v6364_v36 }
0x1931   : > { %v8252_v4 = vpop.eup %8251  ;;  %8263 = vrcp.f32 %v6320_v61 }
0x1932   : > { %v8254_v51 = vpop.eup %8253  ;;  %6430 = vperm.xlu1 %7799, %v6380_v26   ;;  %v6365_v38 = vmul.f32 %v8252_v4, %v8236_v27 }
0x1933   : > { %v6321_v12 = vadd.f32 1.0, %v8254_v51 }
0x1934   : > { %v6381_v42 = vsel %vm6349_vm0, %v8252_v4, %v6365_v38 }
0x1935   : > { %v8256_v59 = vpop.eup %8255  ;;  %8265 = vrcp.f32 %v6321_v12  ;;  %6435 = vperm.xlu0 %7798, %v6381_v42  }
0x1936   : > { %v8258_v2 = vpop.eup %8257  ;;  %v6366_v60 = vmul.f32 %v8256_v59, %v8240_v45 }
0x1937   : > { %v6322_v21 = vadd.f32 1.0, %v8258_v2 }
0x1938   : > { %v6382_v6 = vsel %vm6350_vm1, %v8256_v59, %v6366_v60 }
0x1939   : > { %v8260_v25 = vpop.eup %8259  ;;  %8267 = vrcp.f32 %v6322_v21  ;;  %6440 = vperm.xlu1 %7799, %v6382_v6  }
0x193a   : > { %v8262_v44 = vpop.eup %8261  ;;  %v6367_v31 = vmul.f32 %v8260_v25, %v8244_v10 }
0x193b   : > { %v6323_v11 = vadd.f32 1.0, %v8262_v44 }
0x193c   : > { %v6383_v57 = vsel %vm6351_vm4, %v8260_v25, %v6367_v31 }
0x193d   : > { %8269 = vrcp.f32 %v6323_v11  ;;  %6445 = vperm.xlu0 %7798, %v6383_v57  }
0x193e   : > { %v8264_v14 = vpop.eup %8263 }
0x193f   : > { %v6368_v8 = vmul.f32 %v8264_v14, %v8250_v50 }
0x1941   : > { %v6384_v54 = vsel %vm6352_vm5, %v8264_v14, %v6368_v8 }
0x1942   : > { %v8266_v34 = vpop.eup %8265  ;;  %6450 = vperm.xlu1 %7799, %v6384_v54  }
0x1943   : > { %v6369_v53 = vmul.f32 %v8266_v34, %v8254_v51 }
0x1945   : > { %v6385_v19 = vsel %vm6353_vm6, %v8266_v34, %v6369_v53 }
0x1946   : > { %v8268_v1 = vpop.eup %8267  ;;  %6455 = vperm.xlu0 %7798, %v6385_v19  }
0x1947   : > { %v6370_v16 = vmul.f32 %v8268_v1, %v8258_v2 }
0x1949   : > { %v6386_v23 = vsel %vm6354_vm7, %v8268_v1, %v6370_v16 }
0x194a   : > { %v8270_v33 = vpop.eup %8269  ;;  %6460 = vperm.xlu1 %7799, %v6386_v23  }
0x194b   : > { %v6371_v41 = vmul.f32 %v8270_v33, %v8262_v44 }
0x194d   : > { %v6387_v40 = vsel %vm6355_vm2, %v8270_v33, %v6371_v41 }
0x194e   : > { %6465 = vperm.xlu0 %7798, %v6387_v40  }
0x198c   : > { %v6391_v15 = vpop.permute.xlu0 %6390 }
0x198d   : > { %6468 = vst [vmem:[%s10444_s24] sm:$0xff] %v6391_v15 }
0x1990   : > { %v6396_v17 = vpop.permute.xlu1 %6395 }
0x1991   : > { %6469 = vst [vmem:[%s10444_s24 + $0x8] sm:$0xff] %v6396_v17 }
0x1994   : > { %v6401_v18 = vpop.permute.xlu1 %6400 }
0x1995   : > { %6470 = vst [vmem:[%s10444_s24 + $0x10] sm:$0xff] %v6401_v18 }
0x1998   : > { %v6406_v7 = vpop.permute.xlu1 %6405 }
0x1999   : > { %6471 = vst [vmem:[%s10444_s24 + $0x18] sm:$0xff] %v6406_v7 }
0x199d   : > { %v6411_v22 = vpop.permute.xlu1 %6410 }
0x199e   : > { %6472 = vst [vmem:[%s10444_s24 + $0x20] sm:$0xff] %v6411_v22 }
0x19a1   : > { %v6416_v29 = vpop.permute.xlu1 %6415 }
0x19a2   : > { %6473 = vst [vmem:[%s10444_s24 + $0x28] sm:$0xff] %v6416_v29 }
0x19a5   : > { %v6421_v30 = vpop.permute.xlu1 %6420 }
0x19a6   : > { %6474 = vst [vmem:[%s10444_s24 + $0x30] sm:$0xff] %v6421_v30 }
0x19a9   : > { %v6426_v27 = vpop.permute.xlu1 %6425 }
0x19aa   : > { %6475 = vst [vmem:[%s10444_s24 + $0x38] sm:$0xff] %v6426_v27 }
0x19ad   : > { %v6431_v20 = vpop.permute.xlu1 %6430 }
0x19ae   : > { %6476 = vst [vmem:[%s10444_s24 + $0x40] sm:$0xff] %v6431_v20 }
0x19b0   : > { %v6436_v24 = vpop.permute.xlu0 %6435 }
0x19b1   : > { %6477 = vst [vmem:[%s10444_s24 + $0x48] sm:$0xff] %v6436_v24 }
0x19b4   : > { %v6441_v35 = vpop.permute.xlu1 %6440 }
0x19b5   : > { %6478 = vst [vmem:[%s10444_s24 + $0x50] sm:$0xff] %v6441_v35 }
0x19b8   : > { %v6446_v37 = vpop.permute.xlu0 %6445 }
0x19b9   : > { %6479 = vst [vmem:[%s10444_s24 + $0x58] sm:$0xff] %v6446_v37 }
0x19bd   : > { %v6451_v39 = vpop.permute.xlu1 %6450 }
0x19be   : > { %6480 = vst [vmem:[%s10444_s24 + $0x60] sm:$0xff] %v6451_v39 }
0x19c1   : > { %v6456_v43 = vpop.permute.xlu0 %6455 }
0x19c2   : > { %6481 = vst [vmem:[%s10444_s24 + $0x68] sm:$0xff] %v6456_v43 }
0x19c5   : > { %v6461_v62 = vpop.permute.xlu1 %6460 }
0x19c6   : > { %6482 = vst [vmem:[%s10444_s24 + $0x70] sm:$0xff] %v6461_v62 }
0x19c9   : > { %v6466_v9 = vpop.permute.xlu0 %6465 }
0x19ca   : > { %6483 = vst [vmem:[%s10444_s24 + $0x78] sm:$0xff] %v6466_v9 }
0x19cb PF: > { %s31_s2 = sadd.s32 1, %s8309_s2  }
0x19cc   : > { %p28_p4 = scmp.ge.s32.totalorder %s31_s2, 4  }
0x19ce   :  { %30 = sbr.rel (!%p28_p4) target bundleno = 7 (0x7), region = 141 }

</bundles_post_ra>
